<compile_context>
chip_gen: v6e
topology: v6e:2x2x1
jax: 0.10.0
libtpu: 0.0.40
codegen_flags: <defaults>
</compile_context>

<pallas_src>
import jax
import jax.numpy as jnp
from jax.experimental import pallas as pl
from jax.experimental.pallas import tpu as pltpu


def _round_up(x, m):
    return ((x + m - 1) // m) * m


def _tpu_hw_info():
    """(vmem_capacity_bytes, tensorcores_per_device) with conservative fallbacks."""
    vmem_cap = 64 << 20                     # v7x-sized fallback (safe everywhere)
    try:
        vmem_cap = int(pltpu.get_tpu_info().vmem_capacity_bytes)
    except Exception:
        pass
    cores = 1
    try:
        kind = jax.devices()[0].device_kind.lower()
        if "7" in kind:                     # v7x: 2 TensorCores share the grid
            cores = 2
    except Exception:
        pass
    return vmem_cap, cores


def _make_kernel(mm_dtype, approx_sigmoid):
    def kernel(idx_ref, x_ref,
               ln1_g_ref, ln1_b_ref, w1_ref, b1_ref,
               ln2_g_ref, ln2_b_ref, w2_ref, b2_ref,
               wo_ref, bo_ref, wg_ref, bg_ref,
               out_ref):
        j = pl.program_id(0)      # node-block axis ("parallel")
        i = pl.program_id(1)      # edge-tile axis ("arbitrary", accumulates)

        @pl.when(i == 0)
        def _():
            out_ref[...] = jnp.zeros_like(out_ref)

        x = x_ref[...].astype(jnp.float32)                          # [TE, D] f32

        def layernorm(v, g, b):
            mu = jnp.mean(v, axis=-1, keepdims=True)
            vc = v - mu
            var = jnp.mean(vc * vc, axis=-1, keepdims=True)
            return vc * jax.lax.rsqrt(var + 1e-5) * g + b

        def matmul(a, w_ref_):   # bf16 (or f32) MXU operands, f32 accumulation
            return jnp.dot(a.astype(mm_dtype), w_ref_[...],
                           preferred_element_type=jnp.float32)

        h = layernorm(x, ln1_g_ref[...], ln1_b_ref[...])
        h = matmul(h, w1_ref) + b1_ref[...]
        h = jnp.where(h > 0, h, jnp.exp(jnp.minimum(h, 0.0)) - 1.0)  # ELU
        h = layernorm(h, ln2_g_ref[...], ln2_b_ref[...])
        h = matmul(h, w2_ref) + b2_ref[...]                          # [TE, H] f32

        o = matmul(h, wo_ref) + bo_ref[...]                          # [TE, D] f32
        # Gate: 1-wide matmul replaced by an f32 lane reduce (VPU/XLU, frees MXU).
        g = jnp.sum(h * wg_ref[...], axis=-1, keepdims=True) + bg_ref[...]   # [TE,1]
        denom = 1.0 + jnp.exp(-g)
        g = pl.reciprocal(denom, approx=True) if approx_sigmoid else 1.0 / denom
        gated = o * g                                                # [TE, D] f32

        # scatter_add over this node block via one-hot matmul.
        # One-hot 0/1 is exact in bf16; f32 accumulation keeps the sum exact.
        node_tile = out_ref.shape[0]
        idx = idx_ref[...]                                           # [1, TE] lane-major
        local = idx - j * node_tile                                  # node id within block
        iota_col = jax.lax.broadcasted_iota(jnp.int32, (node_tile, 1), 0)
        onehot_t = (iota_col == local).astype(mm_dtype)              # [NT, TE]
        out_ref[...] += jnp.dot(onehot_t, gated.astype(mm_dtype),
                                preferred_element_type=jnp.float32)

    return kernel


def edge_aggregation(edges, edges_index, params, num_nodes, *,
                     tile_e=512, node_tile=None, fast=True):
    """Pallas forward pass for EdgeAggregation. Returns [num_nodes, D] float32."""
    E, D = edges.shape
    hidden = params["w1"].shape[1]
    assert tile_e % 128 == 0, "tile_e must be a multiple of 128 (>=256 recommended)"

    vmem_cap, n_cores = _tpu_hw_info()

    # --- node-block tiling: one resident output block per TensorCore -----------
    #     (1 block on v5e/v6e; 2 blocks on v7x so "parallel" j feeds both TCs).
    if node_tile is None:
        node_tile = _round_up(-(-num_nodes // n_cores), 8)
    assert node_tile % 8 == 0
    n_pad = _round_up(num_nodes, node_tile)

    # --- pad edges to a multiple of tile_e; padded rows target node id n_pad,
    #     which never matches any block-local iota (exactly zero contribution) ---
    e_pad = _round_up(E, tile_e)
    idx = edges_index.astype(jnp.int32)
    x = edges
    if e_pad != E:
        x = jnp.concatenate([x, jnp.zeros((e_pad - E, D), x.dtype)], axis=0)
        idx = jnp.concatenate([idx, jnp.full((e_pad - E,), n_pad, jnp.int32)])
    idx_row = idx.reshape(1, e_pad)                                   # lane-major

    # --- weights: bf16 MXU operands in fast mode; elementwise math stays f32 ---
    mm_dtype = jnp.bfloat16 if fast else jnp.float32
    weights = [
        params["ln1_g"], params["ln1_b"],
        params["w1"].astype(mm_dtype), params["b1"],
        params["ln2_g"], params["ln2_b"],
        params["w2"].astype(mm_dtype), params["b2"],
        params["wo"].astype(mm_dtype), params["bo"],
        params["wg"].T,                  # (1, hidden) f32, lane-reduce gate weights
        params["bg"],
    ]

    grid = (n_pad // node_tile, e_pad // tile_e)
    in_specs = (
        [pl.BlockSpec((1, tile_e), lambda j, i: (0, i)),              # edge indices
         pl.BlockSpec((tile_e, D), lambda j, i: (i, 0))]              # edge features
        + [pl.BlockSpec(w.shape, lambda j, i: (0, 0)) for w in weights]
    )
    out_spec = pl.BlockSpec((node_tile, D), lambda j, i: (j, 0))

    # --- VMEM budget (accurate, then clamped to the per-generation ceiling) ----
    mm_itemsize = jnp.dtype(mm_dtype).itemsize
    w_bytes = sum(int(w.size) * w.dtype.itemsize for w in weights)    # resident
    est = (2 * tile_e * 4                           # idx tile (double-buffered)
           + 2 * tile_e * D * x.dtype.itemsize      # edge tile (double-buffered)
           + w_bytes                                # constant index_map -> resident
           + 2 * node_tile * D * 4                  # resident f32 accumulator (+wb)
           + node_tile * tile_e * mm_itemsize       # one-hot scatter operand
           + tile_e * max(D, hidden) * 4 * 6)       # f32 x copy, h, o, gate temps
    cap = max(vmem_cap - (8 << 20), 16 << 20)       # ≈56 MiB on v7x, ~120 on v5e/v6e
    vmem_limit = int(min(max(int(1.25 * est) + (4 << 20), 32 << 20), cap))

    out = pl.pallas_call(
        _make_kernel(mm_dtype, approx_sigmoid=fast),
        out_shape=jax.ShapeDtypeStruct((n_pad, D), jnp.float32),
        grid_spec=pltpu.PrefetchScalarGridSpec(
            num_scalar_prefetch=0,
            grid=grid,
            in_specs=in_specs,
            out_specs=out_spec,
        ),
        compiler_params=pltpu.CompilerParams(
            dimension_semantics=("parallel", "arbitrary"),
            vmem_limit_bytes=vmem_limit),
    )(idx_row, x, *weights)
    return out[:num_nodes]


def init_params(key, input_hidden, hidden):
    """Deterministic init mimicking PyTorch defaults (LayerNorm=identity, Linear=U(±1/sqrt(fan_in)))."""
    ks = jax.random.split(key, 4)

    def lin(k, fan_in, fan_out):
        kw, kb = jax.random.split(k)
        bound = 1.0 / jnp.sqrt(fan_in)
        w = jax.random.uniform(kw, (fan_in, fan_out), jnp.float32, -bound, bound)
        b = jax.random.uniform(kb, (1, fan_out), jnp.float32, -bound, bound)
        return w, b

    w1, b1 = lin(ks[0], input_hidden, hidden)
    w2, b2 = lin(ks[1], hidden, hidden)
    wo, bo = lin(ks[2], hidden, input_hidden)
    wg, bg = lin(ks[3], hidden, 1)
    return {
        "ln1_g": jnp.ones((1, input_hidden), jnp.float32),
        "ln1_b": jnp.zeros((1, input_hidden), jnp.float32),
        "w1": w1, "b1": b1,
        "ln2_g": jnp.ones((1, hidden), jnp.float32),
        "ln2_b": jnp.zeros((1, hidden), jnp.float32),
        "w2": w2, "b2": b2,
        "wo": wo, "bo": bo,
        "wg": wg, "bg": bg,
    }


def reference(edges, edges_index, p, num_nodes, mm_dtype=jnp.float32):
    """Pure-JAX reference. With mm_dtype=bf16 it mirrors the kernel's fast MXU path."""
    x = edges.astype(jnp.float32)

    def ln(v, g, b):
        mu = v.mean(-1, keepdims=True)
        var = ((v - mu) ** 2).mean(-1, keepdims=True)
        return (v - mu) / jnp.sqrt(var + 1e-5) * g + b

    prec = jax.lax.Precision.HIGHEST if mm_dtype == jnp.float32 else None

    def mm(a, w):
        return jnp.dot(a.astype(mm_dtype), w.astype(mm_dtype),
                       preferred_element_type=jnp.float32, precision=prec)

    h = ln(x, p["ln1_g"], p["ln1_b"])
    h = mm(h, p["w1"]) + p["b1"]
    h = jnp.where(h > 0, h, jnp.exp(jnp.minimum(h, 0.0)) - 1.0)
    h = ln(h, p["ln2_g"], p["ln2_b"])
    h = mm(h, p["w2"]) + p["b2"]
    o = mm(h, p["wo"]) + p["bo"]
    # Gate matches the kernel: f32 reduce over the f32 post-MLP activations.
    g = jax.nn.sigmoid(jnp.dot(h, p["wg"], preferred_element_type=jnp.float32,
                               precision=jax.lax.Precision.HIGHEST) + p["bg"])
    out = o * g
    if mm_dtype != jnp.float32:
        # Mirror the kernel's bf16 scatter operand (one-hot x gated, f32 accumulate).
        out = out.astype(mm_dtype).astype(jnp.float32)
    return jnp.zeros((num_nodes, edges.shape[1]), jnp.float32).at[edges_index].add(out)


if __name__ == "__main__":
    E, D_IN, HIDDEN, N_NODES = 1000, 32, 32, 64

    key = jax.random.PRNGKey(0)
    k_edges, k_idx, k_params = jax.random.split(key, 3)

    edges = jax.random.normal(k_edges, (E, D_IN), jnp.float32)
    edges_index = jax.random.randint(k_idx, (E,), 0, N_NODES, jnp.int32)
    params = init_params(k_params, D_IN, HIDDEN)

    # 1) Exact f32 path, per-TensorCore node tiling default, tight tolerance.
    out_f32 = jax.block_until_ready(
        edge_aggregation(edges, edges_index, params, N_NODES, tile_e=512, fast=False))
    ref_f32 = reference(edges, edges_index, params, N_NODES)
    assert out_f32.shape == (N_NODES, D_IN)
    assert jnp.allclose(out_f32, ref_f32, atol=1e-4, rtol=1e-4), \
        float(jnp.abs(out_f32 - ref_f32).max())

    # 2) Fast path: bf16 MXU MLP + bf16 one-hot scatter + approx sigmoid,
    #    default node tiling (1 block on v5e/v6e, 2 on v7x).
    out_fast = jax.block_until_ready(
        edge_aggregation(edges, edges_index, params, N_NODES, tile_e=512, fast=True))
    ref_bf16 = reference(edges, edges_index, params, N_NODES, mm_dtype=jnp.bfloat16)
    assert out_fast.shape == (N_NODES, D_IN)
    assert jnp.allclose(out_fast, ref_bf16, atol=1e-2, rtol=1e-2), \
        float(jnp.abs(out_fast - ref_bf16).max())

    # 3) Multi-node-block correctness check ("parallel" j axis, 2 blocks x 4 edge
    #    tiles). Not the perf default on single-TensorCore chips.
    out_mb = jax.block_until_ready(
        edge_aggregation(edges, edges_index, params, N_NODES, tile_e=256,
                         node_tile=32, fast=True))
    assert out_mb.shape == (N_NODES, D_IN)
    assert jnp.allclose(out_mb, ref_bf16, atol=1e-2, rtol=1e-2), \
        float(jnp.abs(out_mb - ref_bf16).max())

    print("KERNEL_OK")
</pallas_src>

<mosaic_0001>
module attributes {stable_mosaic.version = 11 : i64} {
  func.func @kernel(%arg0: i32, %arg1: i32, %arg2: memref<1x512xi32, #tpu.memory_space<vmem>>, %arg3: memref<512x32xf32, #tpu.memory_space<vmem>>, %arg4: memref<1x32xf32, #tpu.memory_space<vmem>>, %arg5: memref<1x32xf32, #tpu.memory_space<vmem>>, %arg6: memref<32x32xf32, #tpu.memory_space<vmem>>, %arg7: memref<1x32xf32, #tpu.memory_space<vmem>>, %arg8: memref<1x32xf32, #tpu.memory_space<vmem>>, %arg9: memref<1x32xf32, #tpu.memory_space<vmem>>, %arg10: memref<32x32xf32, #tpu.memory_space<vmem>>, %arg11: memref<1x32xf32, #tpu.memory_space<vmem>>, %arg12: memref<32x32xf32, #tpu.memory_space<vmem>>, %arg13: memref<1x32xf32, #tpu.memory_space<vmem>>, %arg14: memref<1x32xf32, #tpu.memory_space<vmem>>, %arg15: memref<1x1xf32, #tpu.memory_space<vmem>>, %arg16: memref<64x32xf32, #tpu.memory_space<vmem>>) attributes {dimension_semantics = [#tpu.dimension_semantics<parallel>, #tpu.dimension_semantics<arbitrary>], iteration_bounds = array<i64: 1, 2>, scalar_prefetch = 0 : i64, scratch_operands = 0 : i64, tpu.core_type = #tpu.core_type<tc>, window_params = [{transform_indices = @transform_0, window_bounds = array<i64: 1, 512>}, {transform_indices = @transform_1, window_bounds = array<i64: 512, 32>}, {pipeline_mode = #tpu.pipeline_mode<synchronous>, transform_indices = @transform_2, window_bounds = array<i64: 1, 32>}, {pipeline_mode = #tpu.pipeline_mode<synchronous>, transform_indices = @transform_3, window_bounds = array<i64: 1, 32>}, {pipeline_mode = #tpu.pipeline_mode<synchronous>, transform_indices = @transform_4, window_bounds = array<i64: 32, 32>}, {pipeline_mode = #tpu.pipeline_mode<synchronous>, transform_indices = @transform_5, window_bounds = array<i64: 1, 32>}, {pipeline_mode = #tpu.pipeline_mode<synchronous>, transform_indices = @transform_6, window_bounds = array<i64: 1, 32>}, {pipeline_mode = #tpu.pipeline_mode<synchronous>, transform_indices = @transform_7, window_bounds = array<i64: 1, 32>}, {pipeline_mode = #tpu.pipeline_mode<synchronous>, transform_indices = @transform_8, window_bounds = array<i64: 32, 32>}, {pipeline_mode = #tpu.pipeline_mode<synchronous>, transform_indices = @transform_9, window_bounds = array<i64: 1, 32>}, {pipeline_mode = #tpu.pipeline_mode<synchronous>, transform_indices = @transform_10, window_bounds = array<i64: 32, 32>}, {pipeline_mode = #tpu.pipeline_mode<synchronous>, transform_indices = @transform_11, window_bounds = array<i64: 1, 32>}, {pipeline_mode = #tpu.pipeline_mode<synchronous>, transform_indices = @transform_12, window_bounds = array<i64: 1, 32>}, {pipeline_mode = #tpu.pipeline_mode<synchronous>, transform_indices = @transform_13, window_bounds = array<i64: 1, 1>}, {transform_indices = @transform_14, window_bounds = array<i64: 64, 32>}]} {
    %c0_i32 = arith.constant 0 : i32
    %0 = arith.cmpi eq, %arg1, %c0_i32 : i32
    %1 = arith.extui %0 : i1 to i32
    %c0_i32_0 = arith.constant 0 : i32
    %2 = arith.cmpi ne, %1, %c0_i32_0 : i32
    scf.if %2 {
      %cst_52 = arith.constant 0.000000e+00 : f32
      %102 = vector.broadcast %cst_52 : f32 to vector<64x32xf32>
      %c0_53 = arith.constant 0 : index
      %c0_54 = arith.constant 0 : index
      %103 = vector.load %arg16[%c0_53, %c0_54] : memref<64x32xf32, #tpu.memory_space<vmem>>, vector<64x32xf32>
      tpu.vector_store %arg16[%c0_53, %c0_54], %102 {strides = array<i32>} : memref<64x32xf32, #tpu.memory_space<vmem>>, vector<64x32xf32>,
    } else {
    }
    %c0 = arith.constant 0 : index
    %c0_1 = arith.constant 0 : index
    %3 = vector.load %arg3[%c0, %c0_1] : memref<512x32xf32, #tpu.memory_space<vmem>>, vector<512x32xf32>
    %c0_2 = arith.constant 0 : index
    %c0_3 = arith.constant 0 : index
    %4 = vector.load %arg4[%c0_2, %c0_3] : memref<1x32xf32, #tpu.memory_space<vmem>>, vector<1x32xf32>
    %c0_4 = arith.constant 0 : index
    %c0_5 = arith.constant 0 : index
    %5 = vector.load %arg5[%c0_4, %c0_5] : memref<1x32xf32, #tpu.memory_space<vmem>>, vector<1x32xf32>
    %cst = arith.constant dense<0.000000e+00> : vector<512xf32>
    %6 = vector.multi_reduction <add>, %3, %cst [1] : vector<512x32xf32> to vector<512xf32>
    %7 = vector.shape_cast %6 : vector<512xf32> to vector<512x1xf32>
    %cst_6 = arith.constant 3.200000e+01 : f32
    %8 = vector.broadcast %cst_6 : f32 to vector<512x1xf32>
    %9 = arith.divf %7, %8 : vector<512x1xf32>
    %10 = vector.broadcast %9 : vector<512x1xf32> to vector<512x32xf32>
    %11 = arith.subf %3, %10 : vector<512x32xf32>
    %12 = arith.mulf %11, %11 : vector<512x32xf32>
    %cst_7 = arith.constant dense<0.000000e+00> : vector<512xf32>
    %13 = vector.multi_reduction <add>, %12, %cst_7 [1] : vector<512x32xf32> to vector<512xf32>
    %14 = vector.shape_cast %13 : vector<512xf32> to vector<512x1xf32>
    %cst_8 = arith.constant 3.200000e+01 : f32
    %15 = vector.broadcast %cst_8 : f32 to vector<512x1xf32>
    %16 = arith.divf %14, %15 : vector<512x1xf32>
    %cst_9 = arith.constant 9.99999974E-6 : f32
    %17 = vector.broadcast %cst_9 : f32 to vector<512x1xf32>
    %18 = arith.addf %16, %17 : vector<512x1xf32>
    %19 = math.rsqrt %18 : vector<512x1xf32>
    %20 = vector.broadcast %19 : vector<512x1xf32> to vector<512x32xf32>
    %21 = arith.mulf %11, %20 : vector<512x32xf32>
    %22 = vector.broadcast %4 : vector<1x32xf32> to vector<512x32xf32>
    %23 = arith.mulf %21, %22 : vector<512x32xf32>
    %24 = vector.broadcast %5 : vector<1x32xf32> to vector<512x32xf32>
    %25 = arith.addf %23, %24 : vector<512x32xf32>
    %c0_10 = arith.constant 0 : index
    %c0_11 = arith.constant 0 : index
    %26 = vector.load %arg6[%c0_10, %c0_11] : memref<32x32xf32, #tpu.memory_space<vmem>>, vector<32x32xf32>
    %cst_12 = arith.constant dense<0.000000e+00> : vector<512x32xf32>
    %27 = tpu.matmul %25, %26, %cst_12 {dimension_numbers = #tpu.dot_dimension_numbers<[1], [0], [0], [1], [0, 0, 1, 1], [], []>} : vector<512x32xf32>, vector<32x32xf32>, vector<512x32xf32> -> vector<512x32xf32>
    %c0_13 = arith.constant 0 : index
    %c0_14 = arith.constant 0 : index
    %28 = vector.load %arg7[%c0_13, %c0_14] : memref<1x32xf32, #tpu.memory_space<vmem>>, vector<1x32xf32>
    %29 = vector.broadcast %28 : vector<1x32xf32> to vector<512x32xf32>
    %30 = arith.addf %27, %29 : vector<512x32xf32>
    %cst_15 = arith.constant 0.000000e+00 : f32
    %31 = vector.broadcast %cst_15 : f32 to vector<512x32xf32>
    %32 = arith.cmpf ogt, %30, %31 : vector<512x32xf32>
    %cst_16 = arith.constant 0.000000e+00 : f32
    %33 = vector.broadcast %cst_16 : f32 to vector<512x32xf32>
    %34 = arith.minimumf %30, %33 : vector<512x32xf32>
    %35 = math.exp %34 : vector<512x32xf32>
    %cst_17 = arith.constant 1.000000e+00 : f32
    %36 = vector.broadcast %cst_17 : f32 to vector<512x32xf32>
    %37 = arith.subf %35, %36 : vector<512x32xf32>
    %38 = arith.select %32, %30, %37 : vector<512x32xi1>, vector<512x32xf32>
    %c0_18 = arith.constant 0 : index
    %c0_19 = arith.constant 0 : index
    %39 = vector.load %arg8[%c0_18, %c0_19] : memref<1x32xf32, #tpu.memory_space<vmem>>, vector<1x32xf32>
    %c0_20 = arith.constant 0 : index
    %c0_21 = arith.constant 0 : index
    %40 = vector.load %arg9[%c0_20, %c0_21] : memref<1x32xf32, #tpu.memory_space<vmem>>, vector<1x32xf32>
    %cst_22 = arith.constant dense<0.000000e+00> : vector<512xf32>
    %41 = vector.multi_reduction <add>, %38, %cst_22 [1] : vector<512x32xf32> to vector<512xf32>
    %42 = vector.shape_cast %41 : vector<512xf32> to vector<512x1xf32>
    %cst_23 = arith.constant 3.200000e+01 : f32
    %43 = vector.broadcast %cst_23 : f32 to vector<512x1xf32>
    %44 = arith.divf %42, %43 : vector<512x1xf32>
    %45 = vector.broadcast %44 : vector<512x1xf32> to vector<512x32xf32>
    %46 = arith.subf %38, %45 : vector<512x32xf32>
    %47 = arith.mulf %46, %46 : vector<512x32xf32>
    %cst_24 = arith.constant dense<0.000000e+00> : vector<512xf32>
    %48 = vector.multi_reduction <add>, %47, %cst_24 [1] : vector<512x32xf32> to vector<512xf32>
    %49 = vector.shape_cast %48 : vector<512xf32> to vector<512x1xf32>
    %cst_25 = arith.constant 3.200000e+01 : f32
    %50 = vector.broadcast %cst_25 : f32 to vector<512x1xf32>
    %51 = arith.divf %49, %50 : vector<512x1xf32>
    %cst_26 = arith.constant 9.99999974E-6 : f32
    %52 = vector.broadcast %cst_26 : f32 to vector<512x1xf32>
    %53 = arith.addf %51, %52 : vector<512x1xf32>
    %54 = math.rsqrt %53 : vector<512x1xf32>
    %55 = vector.broadcast %54 : vector<512x1xf32> to vector<512x32xf32>
    %56 = arith.mulf %46, %55 : vector<512x32xf32>
    %57 = vector.broadcast %39 : vector<1x32xf32> to vector<512x32xf32>
    %58 = arith.mulf %56, %57 : vector<512x32xf32>
    %59 = vector.broadcast %40 : vector<1x32xf32> to vector<512x32xf32>
    %60 = arith.addf %58, %59 : vector<512x32xf32>
    %c0_27 = arith.constant 0 : index
    %c0_28 = arith.constant 0 : index
    %61 = vector.load %arg10[%c0_27, %c0_28] : memref<32x32xf32, #tpu.memory_space<vmem>>, vector<32x32xf32>
    %cst_29 = arith.constant dense<0.000000e+00> : vector<512x32xf32>
    %62 = tpu.matmul %60, %61, %cst_29 {dimension_numbers = #tpu.dot_dimension_numbers<[1], [0], [0], [1], [0, 0, 1, 1], [], []>} : vector<512x32xf32>, vector<32x32xf32>, vector<512x32xf32> -> vector<512x32xf32>
    %c0_30 = arith.constant 0 : index
    %c0_31 = arith.constant 0 : index
    %63 = vector.load %arg11[%c0_30, %c0_31] : memref<1x32xf32, #tpu.memory_space<vmem>>, vector<1x32xf32>
    %64 = vector.broadcast %63 : vector<1x32xf32> to vector<512x32xf32>
    %65 = arith.addf %62, %64 : vector<512x32xf32>
    %c0_32 = arith.constant 0 : index
    %c0_33 = arith.constant 0 : index
    %66 = vector.load %arg12[%c0_32, %c0_33] : memref<32x32xf32, #tpu.memory_space<vmem>>, vector<32x32xf32>
    %cst_34 = arith.constant dense<0.000000e+00> : vector<512x32xf32>
    %67 = tpu.matmul %65, %66, %cst_34 {dimension_numbers = #tpu.dot_dimension_numbers<[1], [0], [0], [1], [0, 0, 1, 1], [], []>} : vector<512x32xf32>, vector<32x32xf32>, vector<512x32xf32> -> vector<512x32xf32>
    %c0_35 = arith.constant 0 : index
    %c0_36 = arith.constant 0 : index
    %68 = vector.load %arg13[%c0_35, %c0_36] : memref<1x32xf32, #tpu.memory_space<vmem>>, vector<1x32xf32>
    %69 = vector.broadcast %68 : vector<1x32xf32> to vector<512x32xf32>
    %70 = arith.addf %67, %69 : vector<512x32xf32>
    %c0_37 = arith.constant 0 : index
    %c0_38 = arith.constant 0 : index
    %71 = vector.load %arg14[%c0_37, %c0_38] : memref<1x32xf32, #tpu.memory_space<vmem>>, vector<1x32xf32>
    %72 = vector.broadcast %71 : vector<1x32xf32> to vector<512x32xf32>
    %73 = arith.mulf %65, %72 : vector<512x32xf32>
    %cst_39 = arith.constant dense<0.000000e+00> : vector<512xf32>
    %74 = vector.multi_reduction <add>, %73, %cst_39 [1] : vector<512x32xf32> to vector<512xf32>
    %75 = vector.shape_cast %74 : vector<512xf32> to vector<512x1xf32>
    %c0_40 = arith.constant 0 : index
    %c0_41 = arith.constant 0 : index
    %76 = vector.load %arg15[%c0_40, %c0_41] : memref<1x1xf32, #tpu.memory_space<vmem>>, vector<1x1xf32>
    %77 = vector.broadcast %76 : vector<1x1xf32> to vector<512x1xf32>
    %78 = arith.addf %75, %77 : vector<512x1xf32>
    %cst_42 = arith.constant 0.000000e+00 : f32
    %79 = vector.broadcast %cst_42 : f32 to vector<512x1xf32>
    %80 = arith.subf %79, %78 : vector<512x1xf32>
    %81 = math.exp %80 : vector<512x1xf32>
    %cst_43 = arith.constant 1.000000e+00 : f32
    %82 = vector.broadcast %cst_43 : f32 to vector<512x1xf32>
    %83 = arith.addf %82, %81 : vector<512x1xf32>
    %cst_44 = arith.constant 1.000000e+00 : f32
    %84 = vector.broadcast %cst_44 : f32 to vector<512x1xf32>
    %85 = arith.divf %84, %83 : vector<512x1xf32>
    %86 = vector.broadcast %85 : vector<512x1xf32> to vector<512x32xf32>
    %87 = arith.mulf %70, %86 : vector<512x32xf32>
    %c0_45 = arith.constant 0 : index
    %c0_46 = arith.constant 0 : index
    %88 = vector.load %arg2[%c0_45, %c0_46] : memref<1x512xi32, #tpu.memory_space<vmem>>, vector<1x512xi32>
    %c64_i32 = arith.constant 64 : i32
    %89 = arith.muli %arg0, %c64_i32 : i32
    %90 = vector.broadcast %89 : i32 to vector<1x512xi32>
    %91 = arith.subi %88, %90 : vector<1x512xi32>
    %92 = tpu.iota {dimensions = array<i32: 0>} : vector<64x1xi32>
    %93 = vector.broadcast %92 : vector<64x1xi32> to vector<64x512xi32>
    %94 = vector.broadcast %91 : vector<1x512xi32> to vector<64x512xi32>
    %95 = arith.cmpi eq, %93, %94 : vector<64x512xi32>
    %96 = arith.extui %95 : vector<64x512xi1> to vector<64x512xi32>
    %97 = arith.sitofp %96 : vector<64x512xi32> to vector<64x512xf32>
    %c0_47 = arith.constant 0 : index
    %c0_48 = arith.constant 0 : index
    %98 = vector.load %arg16[%c0_47, %c0_48] : memref<64x32xf32, #tpu.memory_space<vmem>>, vector<64x32xf32>
    %cst_49 = arith.constant dense<0.000000e+00> : vector<64x32xf32>
    %99 = tpu.matmul %97, %87, %cst_49 {dimension_numbers = #tpu.dot_dimension_numbers<[1], [0], [0], [1], [0, 0, 1, 1], [], []>} : vector<64x512xf32>, vector<512x32xf32>, vector<64x32xf32> -> vector<64x32xf32>
    %100 = arith.addf %98, %99 : vector<64x32xf32>
    %c0_50 = arith.constant 0 : index
    %c0_51 = arith.constant 0 : index
    %101 = vector.load %arg16[%c0_50, %c0_51] : memref<64x32xf32, #tpu.memory_space<vmem>>, vector<64x32xf32>
    tpu.vector_store %arg16[%c0_50, %c0_51], %100 {strides = array<i32>} : memref<64x32xf32, #tpu.memory_space<vmem>>, vector<64x32xf32>,
    return
  }
  func.func @transform_0(%arg0: i32, %arg1: i32) -> (i32, i32) {
    %c0_i32 = arith.constant 0 : i32
    %c0_i32_0 = arith.constant 0 : i32
    return %c0_i32, %arg1 : i32, i32
  }
  func.func @transform_1(%arg0: i32, %arg1: i32) -> (i32, i32) {
    %c0_i32 = arith.constant 0 : i32
    %c0_i32_0 = arith.constant 0 : i32
    return %arg1, %c0_i32 : i32, i32
  }
  func.func @transform_2(%arg0: i32, %arg1: i32) -> (i32, i32) {
    %c0_i32 = arith.constant 0 : i32
    %c0_i32_0 = arith.constant 0 : i32
    %c0_i32_1 = arith.constant 0 : i32
    return %c0_i32, %c0_i32_0 : i32, i32
  }
  func.func @transform_3(%arg0: i32, %arg1: i32) -> (i32, i32) {
    %c0_i32 = arith.constant 0 : i32
    %c0_i32_0 = arith.constant 0 : i32
    %c0_i32_1 = arith.constant 0 : i32
    return %c0_i32, %c0_i32_0 : i32, i32
  }
  func.func @transform_4(%arg0: i32, %arg1: i32) -> (i32, i32) {
    %c0_i32 = arith.constant 0 : i32
    %c0_i32_0 = arith.constant 0 : i32
    %c0_i32_1 = arith.constant 0 : i32
    return %c0_i32, %c0_i32_0 : i32, i32
  }
  func.func @transform_5(%arg0: i32, %arg1: i32) -> (i32, i32) {
    %c0_i32 = arith.constant 0 : i32
    %c0_i32_0 = arith.constant 0 : i32
    %c0_i32_1 = arith.constant 0 : i32
    return %c0_i32, %c0_i32_0 : i32, i32
  }
  func.func @transform_6(%arg0: i32, %arg1: i32) -> (i32, i32) {
    %c0_i32 = arith.constant 0 : i32
    %c0_i32_0 = arith.constant 0 : i32
    %c0_i32_1 = arith.constant 0 : i32
    return %c0_i32, %c0_i32_0 : i32, i32
  }
  func.func @transform_7(%arg0: i32, %arg1: i32) -> (i32, i32) {
    %c0_i32 = arith.constant 0 : i32
    %c0_i32_0 = arith.constant 0 : i32
    %c0_i32_1 = arith.constant 0 : i32
    return %c0_i32, %c0_i32_0 : i32, i32
  }
  func.func @transform_8(%arg0: i32, %arg1: i32) -> (i32, i32) {
    %c0_i32 = arith.constant 0 : i32
    %c0_i32_0 = arith.constant 0 : i32
    %c0_i32_1 = arith.constant 0 : i32
    return %c0_i32, %c0_i32_0 : i32, i32
  }
  func.func @transform_9(%arg0: i32, %arg1: i32) -> (i32, i32) {
    %c0_i32 = arith.constant 0 : i32
    %c0_i32_0 = arith.constant 0 : i32
    %c0_i32_1 = arith.constant 0 : i32
    return %c0_i32, %c0_i32_0 : i32, i32
  }
  func.func @transform_10(%arg0: i32, %arg1: i32) -> (i32, i32) {
    %c0_i32 = arith.constant 0 : i32
    %c0_i32_0 = arith.constant 0 : i32
    %c0_i32_1 = arith.constant 0 : i32
    return %c0_i32, %c0_i32_0 : i32, i32
  }
  func.func @transform_11(%arg0: i32, %arg1: i32) -> (i32, i32) {
    %c0_i32 = arith.constant 0 : i32
    %c0_i32_0 = arith.constant 0 : i32
    %c0_i32_1 = arith.constant 0 : i32
    return %c0_i32, %c0_i32_0 : i32, i32
  }
  func.func @transform_12(%arg0: i32, %arg1: i32) -> (i32, i32) {
    %c0_i32 = arith.constant 0 : i32
    %c0_i32_0 = arith.constant 0 : i32
    %c0_i32_1 = arith.constant 0 : i32
    return %c0_i32, %c0_i32_0 : i32, i32
  }
  func.func @transform_13(%arg0: i32, %arg1: i32) -> (i32, i32) {
    %c0_i32 = arith.constant 0 : i32
    %c0_i32_0 = arith.constant 0 : i32
    %c0_i32_1 = arith.constant 0 : i32
    return %c0_i32, %c0_i32_0 : i32, i32
  }
  func.func @transform_14(%arg0: i32, %arg1: i32) -> (i32, i32) {
    %c0_i32 = arith.constant 0 : i32
    %c0_i32_0 = arith.constant 0 : i32
    return %arg0, %c0_i32 : i32, i32
  }
}

</mosaic_0001>

<bundles_post_ra>
// kernel: tpu_custom_call.1
= control target key start
LH: loop header
LB: loop body
LE: loop exit
PB: predicated region body
PF: predicated region fallthrough
CT: control target
= control target key end

     0   :  { %s7968_s15 = smov 0   ;;  %s7970_s16 = smov 0   ;;  %s11569_s0 = inlined_call_operand.vmem [shape: s32[1,1024], index: 0, kind: input, shape index: {}]   ;;  %s11570_s1 = inlined_call_operand.vmem [shape: f32[1024,32], index: 1, kind: input, shape index: {}]   ;;  %s11571_s2 = inlined_call_operand.vmem [shape: f32[1,32], index: 2, kind: input, shape index: {}]   ;;  %s11572_s3 = inlined_call_operand.vmem [shape: f32[1,32], index: 3, kind: input, shape index: {}]   ;;  %s11573_s4 = inlined_call_operand.vmem [shape: f32[32,32], index: 4, kind: input, shape index: {}]   ;;  %s11574_s5 = inlined_call_operand.vmem [shape: f32[1,32], index: 5, kind: input, shape index: {}]   ;;  %s11575_s6 = inlined_call_operand.vmem [shape: f32[1,32], index: 6, kind: input, shape index: {}]   ;;  %s11576_s7 = inlined_call_operand.vmem [shape: f32[1,32], index: 7, kind: input, shape index: {}]   ;;  %s11577_s8 = inlined_call_operand.vmem [shape: f32[32,32], index: 8, kind: input, shape index: {}]   ;;  %s11578_s9 = inlined_call_operand.vmem [shape: f32[1,32], index: 9, kind: input, shape index: {}]   ;;  %s11579_s10 = inlined_call_operand.vmem [shape: f32[32,32], index: 10, kind: input, shape index: {}]   ;;  %s11580_s11 = inlined_call_operand.vmem [shape: f32[1,32], index: 11, kind: input, shape index: {}]   ;;  %s11581_s12 = inlined_call_operand.vmem [shape: f32[1,32], index: 12, kind: input, shape index: {}]   ;;  %s11582_s13 = inlined_call_operand.<no memory space> [shape: f32[1,1], index: 13, kind: input, shape index: {}]   ;;  %s11583_s14 = inlined_call_operand.vmem [shape: f32[64,32], index: 14, kind: output, shape index: {}]  }
   0x1   :  { %v19_v0 = vstv %s11582_s13  ;;  %s7972_s17 = smov 0  }
   0x2   :  { %20 = vst [vmem:[#allocation2] sm:$0x1] %v19_v0 }
   0x3 LB: > { %s35_s13 = sadd.s32 1, %s7881_s16  ;;  %p6214_p0 = scmp.ge.s32.totalorder %s7885_s17, 1  ;;  %s7885_s17 = sphi %s7972_s17, %s26_s17   ;;  %s7881_s16 = sphi %s7970_s16, %s11890_s16   ;;  %s7877_s15 = sphi %s7968_s15, %s11889_s15  }
   0x4   : > { %p36_p1 = scmp.ge.s32.totalorder %s35_s13, 2  ;;  %p437_p2 = scmp.lt.s32.totalorder %s7885_s17, 3 }
   0x6   : > { %s11892_s13 = smov (%p36_p1, %s35_s13), 0  ;;  %p438_p3 = pnand %p6214_p0, %p437_p2 }
   0x8   : > { %441 = sbr.rel (%p438_p3) target bundleno = 1962 (0x7aa), region = 76 }
   0xd   : > { %s6215_s18 = sshll.u32 %s7877_s15, 2  ;;  %s6216_s19 = sshll.u32 %s7877_s15, 6 }
   0xe   : > { %p488_p4 = scmp.lt.s32.totalorder %s6215_s18, 7  ;;  %p493_p5 = scmp.lt.s32.totalorder %s6216_s19, 127 }
   0xf   : > { %p6218_p6 = scmp.ne.s32.totalorder %s7877_s15, 0 }
  0x10   : > { %s11894_s18 = smov (!%p488_p4, %s6215_s18), 7  ;;  %s11896_s19 = smov (!%p493_p5, %s6216_s19), 127 }
  0x11   : > { %s6217_s23 = sshll.u32 %s11896_s19, 3  ;;  %507 = sbr.rel (%p6218_p6) target bundleno = 27 (0x1b), region = 80 }
  0x12   : > { %s7995_s26 = scalar_lea.vmem %s11570_s1, %s6217_s23 }
  0x16   : > { %vm508_vm0 = vcmask 261120   ;;  %v7887_v1 = vmov 0.0  }
  0x17   : > { %509 = vst.msk [vmem:[%s11583_s14] sm:$0xff] %vm508_vm0, %v7887_v1  ;;  %510 = vst.msk [vmem:[%s11583_s14 + $0x8] sm:$0xff] %vm508_vm0, %v7887_v1 }
  0x18   : > { %511 = vst.msk [vmem:[%s11583_s14 + $0x10] sm:$0xff] %vm508_vm0, %v7887_v1  ;;  %512 = vst.msk [vmem:[%s11583_s14 + $0x18] sm:$0xff] %vm508_vm0, %v7887_v1 }
  0x19   : > { %513 = vst.msk [vmem:[%s11583_s14 + $0x20] sm:$0xff] %vm508_vm0, %v7887_v1  ;;  %514 = vst.msk [vmem:[%s11583_s14 + $0x28] sm:$0xff] %vm508_vm0, %v7887_v1 }
  0x1a   : > { %515 = vst.msk [vmem:[%s11583_s14 + $0x30] sm:$0xff] %vm508_vm0, %v7887_v1  ;;  %516 = vst.msk [vmem:[%s11583_s14 + $0x38] sm:$0xff] %vm508_vm0, %v7887_v1 }
  0x1b PF: > { %v8022_v2 = vld [vmem:[%s7995_s26] sm:$0xff]  ;;  %vm11651_vm1 = vcmask 261120   ;;  %v8025_v3 = vld [vmem:[%s7995_s26 + $0x10] sm:$0xff]  ;;  %v8028_v4 = vld [vmem:[%s7995_s26 + $0x8] sm:$0xff]  ;;  %s11808_s22 = scalar_lea.vmem %s11569_s0, %s11894_s18 }
  0x1c   : > { %v584_v5 = vsel %vm11651_vm1, %v8022_v2, 0.0  ;;  %v590_v6 = vsel %vm11651_vm1, %v8025_v3, 0.0  ;;  %v8035_v7 = vld [vmem:[%s7995_s26 + $0x18] sm:$0xff]  ;;  %v587_v8 = vsel %vm11651_vm1, %v8028_v4, 0.0  ;;  %v8042_v10 = vld [vmem:[%s7995_s26 + $0x20] sm:$0xff]  ;;  %v8045_v11 = vld [vmem:[%s7995_s26 + $0x28] sm:$0xff] }
  0x1d   : > { %585 = vadd.xlane.f32.xlu0 %v584_v5  ;;  %591 = vadd.xlane.f32.xlu1 %v590_v6  ;;  %v593_v9 = vsel %vm11651_vm1, %v8035_v7, 0.0  ;;  %v596_v12 = vsel %vm11651_vm1, %v8042_v10, 0.0  ;;  %v599_v13 = vsel %vm11651_vm1, %v8045_v11, 0.0  ;;  %v8052_v14 = vld [vmem:[%s7995_s26 + $0x30] sm:$0xff]  ;;  %v8055_v15 = vld [vmem:[%s7995_s26 + $0x38] sm:$0xff]  ;;  %v8062_v18 = vld [vmem:[%s7995_s26 + $0x40] sm:$0xff] }
  0x1e   : > { %v602_v16 = vsel %vm11651_vm1, %v8052_v14, 0.0  ;;  %v605_v17 = vsel %vm11651_vm1, %v8055_v15, 0.0  ;;  %v8065_v19 = vld [vmem:[%s7995_s26 + $0x48] sm:$0xff]  ;;  %v608_v20 = vsel %vm11651_vm1, %v8062_v18, 0.0  ;;  %v8072_v22 = vld [vmem:[%s7995_s26 + $0x50] sm:$0xff]  ;;  %v8075_v23 = vld [vmem:[%s7995_s26 + $0x58] sm:$0xff] }
  0x1f   : > { %v611_v21 = vsel %vm11651_vm1, %v8065_v19, 0.0  ;;  %v614_v24 = vsel %vm11651_vm1, %v8072_v22, 0.0  ;;  %v617_v25 = vsel %vm11651_vm1, %v8075_v23, 0.0  ;;  %v8082_v26 = vld [vmem:[%s7995_s26 + $0x60] sm:$0xff]  ;;  %v8085_v27 = vld [vmem:[%s7995_s26 + $0x68] sm:$0xff]  ;;  %v8092_v30 = vld [vmem:[%s7995_s26 + $0x70] sm:$0xff] }
  0x20   : > { %v620_v28 = vsel %vm11651_vm1, %v8082_v26, 0.0  ;;  %v623_v29 = vsel %vm11651_vm1, %v8085_v27, 0.0  ;;  %v8095_v31 = vld [vmem:[%s7995_s26 + $0x78] sm:$0xff]  ;;  %v626_v32 = vsel %vm11651_vm1, %v8092_v30, 0.0  ;;  %v8102_v34 = vld [vmem:[%s7995_s26 + $0x80] sm:$0xff]  ;;  %v8105_v35 = vld [vmem:[%s7995_s26 + $0x88] sm:$0xff] }
  0x21   : > { %588 = vadd.xlane.f32.xlu0 %v587_v8  ;;  %594 = vadd.xlane.f32.xlu1 %v593_v9  ;;  %v629_v33 = vsel %vm11651_vm1, %v8095_v31, 0.0  ;;  %v632_v36 = vsel %vm11651_vm1, %v8102_v34, 0.0  ;;  %v635_v37 = vsel %vm11651_vm1, %v8105_v35, 0.0  ;;  %v8112_v38 = vld [vmem:[%s7995_s26 + $0x90] sm:$0xff]  ;;  %v8115_v39 = vld [vmem:[%s7995_s26 + $0x98] sm:$0xff]  ;;  %v8122_v42 = vld [vmem:[%s7995_s26 + $0xa0] sm:$0xff] }
  0x22   : > { %v638_v40 = vsel %vm11651_vm1, %v8112_v38, 0.0  ;;  %v641_v41 = vsel %vm11651_vm1, %v8115_v39, 0.0  ;;  %v8125_v43 = vld [vmem:[%s7995_s26 + $0xa8] sm:$0xff]  ;;  %v644_v44 = vsel %vm11651_vm1, %v8122_v42, 0.0  ;;  %v8132_v46 = vld [vmem:[%s7995_s26 + $0xb0] sm:$0xff]  ;;  %v8135_v47 = vld [vmem:[%s7995_s26 + $0xb8] sm:$0xff] }
  0x23   : > { %v647_v45 = vsel %vm11651_vm1, %v8125_v43, 0.0  ;;  %v650_v48 = vsel %vm11651_vm1, %v8132_v46, 0.0  ;;  %v653_v49 = vsel %vm11651_vm1, %v8135_v47, 0.0  ;;  %v8142_v50 = vld [vmem:[%s7995_s26 + $0xc0] sm:$0xff]  ;;  %v8145_v51 = vld [vmem:[%s7995_s26 + $0xc8] sm:$0xff]  ;;  %v8152_v54 = vld [vmem:[%s7995_s26 + $0xd0] sm:$0xff] }
  0x24   : > { %v656_v52 = vsel %vm11651_vm1, %v8142_v50, 0.0  ;;  %v659_v53 = vsel %vm11651_vm1, %v8145_v51, 0.0  ;;  %v8155_v55 = vld [vmem:[%s7995_s26 + $0xd8] sm:$0xff]  ;;  %v662_v56 = vsel %vm11651_vm1, %v8152_v54, 0.0  ;;  %v8162_v58 = vld [vmem:[%s7995_s26 + $0xe0] sm:$0xff]  ;;  %v8165_v59 = vld [vmem:[%s7995_s26 + $0xe8] sm:$0xff] }
  0x25   : > { %597 = vadd.xlane.f32.xlu0 %v596_v12  ;;  %600 = vadd.xlane.f32.xlu1 %v599_v13  ;;  %v665_v57 = vsel %vm11651_vm1, %v8155_v55, 0.0  ;;  %v668_v60 = vsel %vm11651_vm1, %v8162_v58, 0.0  ;;  %v671_v61 = vsel %vm11651_vm1, %v8165_v59, 0.0  ;;  %v8172_v62 = vld [vmem:[%s7995_s26 + $0xf0] sm:$0xff]  ;;  %v8175_v63 = vld [vmem:[%s7995_s26 + $0xf8] sm:$0xff]  ;;  %v8182_v5 = vld [vmem:[%s7995_s26 + $0x100] sm:$0xff] }
  0x26   : > { %v674_v0 = vsel %vm11651_vm1, %v8172_v62, 0.0  ;;  %v677_v1 = vsel %vm11651_vm1, %v8175_v63, 0.0  ;;  %v8185_v6 = vld [vmem:[%s7995_s26 + $0x108] sm:$0xff]  ;;  %v680_v8 = vsel %vm11651_vm1, %v8182_v5, 0.0  ;;  %v8192_v12 = vld [vmem:[%s7995_s26 + $0x110] sm:$0xff]  ;;  %v8195_v13 = vld [vmem:[%s7995_s26 + $0x118] sm:$0xff] }
  0x27   : > { %v683_v9 = vsel %vm11651_vm1, %v8185_v6, 0.0 }
  0x29   : > { %603 = vadd.xlane.f32.xlu0 %v602_v16  ;;  %606 = vadd.xlane.f32.xlu1 %v605_v17  ;;  %v686_v16 = vsel %vm11651_vm1, %v8192_v12, 0.0  ;;  %v689_v17 = vsel %vm11651_vm1, %v8195_v13, 0.0 }
  0x2d   : > { %609 = vadd.xlane.f32.xlu0 %v608_v20  ;;  %612 = vadd.xlane.f32.xlu1 %v611_v21  ;;  %v8202_v20 = vld [vmem:[%s7995_s26 + $0x120] sm:$0xff]  ;;  %v8205_v21 = vld [vmem:[%s7995_s26 + $0x128] sm:$0xff] }
  0x31   : > { %615 = vadd.xlane.f32.xlu0 %v614_v24  ;;  %618 = vadd.xlane.f32.xlu1 %v617_v25  ;;  %v692_v24 = vsel %vm11651_vm1, %v8202_v20, 0.0  ;;  %v695_v25 = vsel %vm11651_vm1, %v8205_v21, 0.0 }
  0x35   : > { %621 = vadd.xlane.f32.xlu0 %v620_v28  ;;  %624 = vadd.xlane.f32.xlu1 %v623_v29  ;;  %v8212_v28 = vld [vmem:[%s7995_s26 + $0x130] sm:$0xff]  ;;  %v8215_v29 = vld [vmem:[%s7995_s26 + $0x138] sm:$0xff] }
  0x39   : > { %627 = vadd.xlane.f32.xlu0 %v626_v32  ;;  %630 = vadd.xlane.f32.xlu1 %v629_v33  ;;  %v698_v32 = vsel %vm11651_vm1, %v8212_v28, 0.0  ;;  %v701_v33 = vsel %vm11651_vm1, %v8215_v29, 0.0 }
  0x3d   : > { %633 = vadd.xlane.f32.xlu0 %v632_v36  ;;  %636 = vadd.xlane.f32.xlu1 %v635_v37  ;;  %v8222_v36 = vld [vmem:[%s7995_s26 + $0x140] sm:$0xff]  ;;  %v8225_v37 = vld [vmem:[%s7995_s26 + $0x148] sm:$0xff] }
  0x41   : > { %639 = vadd.xlane.f32.xlu0 %v638_v40  ;;  %642 = vadd.xlane.f32.xlu1 %v641_v41  ;;  %v704_v40 = vsel %vm11651_vm1, %v8222_v36, 0.0  ;;  %v707_v41 = vsel %vm11651_vm1, %v8225_v37, 0.0 }
  0x45   : > { %645 = vadd.xlane.f32.xlu0 %v644_v44  ;;  %648 = vadd.xlane.f32.xlu1 %v647_v45  ;;  %v8232_v44 = vld [vmem:[%s7995_s26 + $0x150] sm:$0xff]  ;;  %v8235_v45 = vld [vmem:[%s7995_s26 + $0x158] sm:$0xff] }
  0x49   : > { %651 = vadd.xlane.f32.xlu0 %v650_v48  ;;  %654 = vadd.xlane.f32.xlu1 %v653_v49  ;;  %v710_v48 = vsel %vm11651_vm1, %v8232_v44, 0.0  ;;  %v713_v49 = vsel %vm11651_vm1, %v8235_v45, 0.0 }
  0x4d   : > { %657 = vadd.xlane.f32.xlu0 %v656_v52  ;;  %660 = vadd.xlane.f32.xlu1 %v659_v53  ;;  %v8242_v52 = vld [vmem:[%s7995_s26 + $0x160] sm:$0xff]  ;;  %v8245_v53 = vld [vmem:[%s7995_s26 + $0x168] sm:$0xff] }
  0x51   : > { %663 = vadd.xlane.f32.xlu0 %v662_v56  ;;  %666 = vadd.xlane.f32.xlu1 %v665_v57  ;;  %v716_v56 = vsel %vm11651_vm1, %v8242_v52, 0.0  ;;  %v719_v57 = vsel %vm11651_vm1, %v8245_v53, 0.0 }
  0x55   : > { %669 = vadd.xlane.f32.xlu0 %v668_v60  ;;  %672 = vadd.xlane.f32.xlu1 %v671_v61  ;;  %v8252_v60 = vld [vmem:[%s7995_s26 + $0x170] sm:$0xff]  ;;  %v8255_v61 = vld [vmem:[%s7995_s26 + $0x178] sm:$0xff] }
  0x59   : > { %675 = vadd.xlane.f32.xlu0 %v674_v0  ;;  %678 = vadd.xlane.f32.xlu1 %v677_v1  ;;  %v722_v0 = vsel %vm11651_vm1, %v8252_v60, 0.0  ;;  %v725_v1 = vsel %vm11651_vm1, %v8255_v61, 0.0 }
  0x5d   : > { %681 = vadd.xlane.f32.xlu0 %v680_v8  ;;  %684 = vadd.xlane.f32.xlu1 %v683_v9  ;;  %v8262_v8 = vld [vmem:[%s7995_s26 + $0x180] sm:$0xff]  ;;  %v8265_v9 = vld [vmem:[%s7995_s26 + $0x188] sm:$0xff] }
  0x61   : > { %687 = vadd.xlane.f32.xlu0 %v686_v16  ;;  %690 = vadd.xlane.f32.xlu1 %v689_v17  ;;  %v728_v16 = vsel %vm11651_vm1, %v8262_v8, 0.0  ;;  %v731_v17 = vsel %vm11651_vm1, %v8265_v9, 0.0 }
  0x65   : > { %693 = vadd.xlane.f32.xlu0 %v692_v24  ;;  %696 = vadd.xlane.f32.xlu1 %v695_v25  ;;  %v8272_v24 = vld [vmem:[%s7995_s26 + $0x190] sm:$0xff]  ;;  %v8275_v25 = vld [vmem:[%s7995_s26 + $0x198] sm:$0xff] }
  0x66   : > { %11670 = vst [vmem:[#allocation3_spill] sm:$0xff] %v8272_v24  ;;  %11671 = vst [vmem:[#allocation4_spill] sm:$0xff] %v8275_v25 }
  0x69   : > { %699 = vadd.xlane.f32.xlu0 %v698_v32  ;;  %702 = vadd.xlane.f32.xlu1 %v701_v33  ;;  %v734_v32 = vsel %vm11651_vm1, %v8272_v24, 0.0  ;;  %v737_v33 = vsel %vm11651_vm1, %v8275_v25, 0.0 }
  0x6d   : > { %705 = vadd.xlane.f32.xlu0 %v704_v40  ;;  %708 = vadd.xlane.f32.xlu1 %v707_v41  ;;  %v8282_v40 = vld [vmem:[%s7995_s26 + $0x1a0] sm:$0xff]  ;;  %v8285_v41 = vld [vmem:[%s7995_s26 + $0x1a8] sm:$0xff] }
  0x6e   : > { %11672 = vst [vmem:[#allocation5_spill] sm:$0xff] %v8282_v40  ;;  %11673 = vst [vmem:[#allocation6_spill] sm:$0xff] %v8285_v41 }
  0x71   : > { %711 = vadd.xlane.f32.xlu0 %v710_v48  ;;  %714 = vadd.xlane.f32.xlu1 %v713_v49  ;;  %v740_v48 = vsel %vm11651_vm1, %v8282_v40, 0.0  ;;  %v743_v49 = vsel %vm11651_vm1, %v8285_v41, 0.0 }
  0x75   : > { %717 = vadd.xlane.f32.xlu0 %v716_v56  ;;  %720 = vadd.xlane.f32.xlu1 %v719_v57  ;;  %v8292_v56 = vld [vmem:[%s7995_s26 + $0x1b0] sm:$0xff]  ;;  %v8295_v57 = vld [vmem:[%s7995_s26 + $0x1b8] sm:$0xff] }
  0x76   : > { %11674 = vst [vmem:[#allocation7_spill] sm:$0xff] %v8292_v56 }
  0x79   : > { %723 = vadd.xlane.f32.xlu0 %v722_v0  ;;  %726 = vadd.xlane.f32.xlu1 %v725_v1  ;;  %v746_v0 = vsel %vm11651_vm1, %v8292_v56, 0.0  ;;  %v749_v1 = vsel %vm11651_vm1, %v8295_v57, 0.0 }
  0x7d   : > { %729 = vadd.xlane.f32.xlu0 %v728_v16  ;;  %732 = vadd.xlane.f32.xlu1 %v731_v17 }
  0x81   : > { %735 = vadd.xlane.f32.xlu0 %v734_v32  ;;  %738 = vadd.xlane.f32.xlu1 %v737_v33 }
  0x85   : > { %741 = vadd.xlane.f32.xlu0 %v740_v48  ;;  %744 = vadd.xlane.f32.xlu1 %v743_v49 }
  0x89   : > { %747 = vadd.xlane.f32.xlu0 %v746_v0  ;;  %750 = vadd.xlane.f32.xlu1 %v749_v1 }
  0xa6   : > { %v586_v16 = vpop.xlane.xlu0 %585  ;;  %v592_v17 = vpop.xlane.xlu1 %591 }
  0xa7   : > { %v777_v32 = vmul.f32 0.03125, %v586_v16  ;;  %v779_v33 = vmul.f32 0.03125, %v592_v17 }
  0xa9   : > { %v8302_v41 = vsub.f32 %v8022_v2, %v777_v32  ;;  %v8305_v40 = vsub.f32 %v8025_v3, %v779_v33 }
  0xaa   : > { %v589_v48 = vpop.xlane.xlu0 %588  ;;  %v595_v49 = vpop.xlane.xlu1 %594 }
  0xab   : > { %11675 = vst [vmem:[#allocation8_spill] sm:$0xff] %v8305_v40  ;;  %v778_v25 = vmul.f32 0.03125, %v589_v48  ;;  %v780_v24 = vmul.f32 0.03125, %v595_v49  ;;  %v905_v56 = vmul.f32 %v8302_v41, %v8302_v41  ;;  %v907_v0 = vmul.f32 %v8305_v40, %v8305_v40 }
  0xad   : > { %v8312_v1 = vsub.f32 %v8028_v4, %v778_v25  ;;  %v8315_v16 = vsub.f32 %v8035_v7, %v780_v24  ;;  %v969_v2 = vsel %vm11651_vm1, %v905_v56, 0.0  ;;  %v975_v32 = vsel %vm11651_vm1, %v907_v0, 0.0 }
  0xae   : > { %970 = vadd.xlane.f32.xlu0 %v969_v2  ;;  %v598_v3 = vpop.xlane.xlu0 %597  ;;  %v601_v17 = vpop.xlane.xlu1 %600 }
  0xaf   : > { %v781_v33 = vmul.f32 0.03125, %v598_v3  ;;  %v782_v48 = vmul.f32 0.03125, %v601_v17  ;;  %v906_v49 = vmul.f32 %v8312_v1, %v8312_v1  ;;  %v908_v40 = vmul.f32 %v8315_v16, %v8315_v16 }
  0xb1   : > { %v8324_v4 = vsub.f32 %v8042_v10, %v781_v33  ;;  %v8327_v7 = vsub.f32 %v8045_v11, %v782_v48  ;;  %v972_v24 = vsel %vm11651_vm1, %v906_v49, 0.0  ;;  %v978_v0 = vsel %vm11651_vm1, %v908_v40, 0.0 }
  0xb2   : > { %976 = vadd.xlane.f32.xlu0 %v975_v32  ;;  %973 = vadd.xlane.f32.xlu1 %v972_v24  ;;  %v604_v25 = vpop.xlane.xlu0 %603  ;;  %v607_v56 = vpop.xlane.xlu1 %606 }
  0xb3   : > { %v783_v2 = vmul.f32 0.03125, %v604_v25  ;;  %v784_v3 = vmul.f32 0.03125, %v607_v56  ;;  %v909_v17 = vmul.f32 %v8324_v4, %v8324_v4  ;;  %v910_v10 = vmul.f32 %v8327_v7, %v8327_v7 }
  0xb5   : > { %v8336_v33 = vsub.f32 %v8052_v14, %v783_v2  ;;  %v8339_v11 = vsub.f32 %v8055_v15, %v784_v3  ;;  %v981_v32 = vsel %vm11651_vm1, %v909_v17, 0.0  ;;  %v984_v49 = vsel %vm11651_vm1, %v910_v10, 0.0 }
  0xb6   : > { %979 = vadd.xlane.f32.xlu1 %v978_v0  ;;  %982 = vadd.xlane.f32.xlu0 %v981_v32  ;;  %v610_v48 = vpop.xlane.xlu0 %609  ;;  %v613_v40 = vpop.xlane.xlu1 %612 }
  0xb7   : > { %v785_v24 = vmul.f32 0.03125, %v610_v48  ;;  %v786_v25 = vmul.f32 0.03125, %v613_v40  ;;  %v911_v56 = vmul.f32 %v8336_v33, %v8336_v33  ;;  %v912_v14 = vmul.f32 %v8339_v11, %v8339_v11 }
  0xb9   : > { %v8348_v2 = vsub.f32 %v8062_v18, %v785_v24  ;;  %v8351_v15 = vsub.f32 %v8065_v19, %v786_v25  ;;  %v987_v0 = vsel %vm11651_vm1, %v911_v56, 0.0  ;;  %v990_v10 = vsel %vm11651_vm1, %v912_v14, 0.0 }
  0xba   : > { %985 = vadd.xlane.f32.xlu1 %v984_v49  ;;  %988 = vadd.xlane.f32.xlu0 %v987_v0  ;;  %v616_v3 = vpop.xlane.xlu0 %615  ;;  %v619_v17 = vpop.xlane.xlu1 %618 }
  0xbb   : > { %v787_v32 = vmul.f32 0.03125, %v616_v3  ;;  %v788_v48 = vmul.f32 0.03125, %v619_v17  ;;  %v913_v40 = vmul.f32 %v8348_v2, %v8348_v2  ;;  %v914_v18 = vmul.f32 %v8351_v15, %v8351_v15 }
  0xbd   : > { %v8360_v24 = vsub.f32 %v8072_v22, %v787_v32  ;;  %v8363_v19 = vsub.f32 %v8075_v23, %v788_v48  ;;  %v993_v49 = vsel %vm11651_vm1, %v913_v40, 0.0  ;;  %v996_v14 = vsel %vm11651_vm1, %v914_v18, 0.0 }
  0xbe   : > { %991 = vadd.xlane.f32.xlu1 %v990_v10  ;;  %994 = vadd.xlane.f32.xlu0 %v993_v49  ;;  %v622_v25 = vpop.xlane.xlu0 %621  ;;  %v625_v56 = vpop.xlane.xlu1 %624 }
  0xbf   : > { %v789_v0 = vmul.f32 0.03125, %v622_v25  ;;  %v790_v3 = vmul.f32 0.03125, %v625_v56  ;;  %v915_v17 = vmul.f32 %v8360_v24, %v8360_v24  ;;  %v916_v22 = vmul.f32 %v8363_v19, %v8363_v19 }
  0xc1   : > { %v8372_v32 = vsub.f32 %v8082_v26, %v789_v0  ;;  %v8375_v23 = vsub.f32 %v8085_v27, %v790_v3  ;;  %v999_v10 = vsel %vm11651_vm1, %v915_v17, 0.0  ;;  %v1002_v18 = vsel %vm11651_vm1, %v916_v22, 0.0 }
  0xc2   : > { %997 = vadd.xlane.f32.xlu1 %v996_v14  ;;  %1000 = vadd.xlane.f32.xlu0 %v999_v10  ;;  %v628_v48 = vpop.xlane.xlu0 %627  ;;  %v631_v40 = vpop.xlane.xlu1 %630 }
  0xc3   : > { %v791_v49 = vmul.f32 0.03125, %v628_v48  ;;  %v792_v25 = vmul.f32 0.03125, %v631_v40  ;;  %v917_v56 = vmul.f32 %v8372_v32, %v8372_v32  ;;  %v918_v26 = vmul.f32 %v8375_v23, %v8375_v23 }
  0xc5   : > { %v8384_v0 = vsub.f32 %v8092_v30, %v791_v49  ;;  %v8387_v27 = vsub.f32 %v8095_v31, %v792_v25  ;;  %v1005_v14 = vsel %vm11651_vm1, %v917_v56, 0.0  ;;  %v1008_v22 = vsel %vm11651_vm1, %v918_v26, 0.0 }
  0xc6   : > { %1003 = vadd.xlane.f32.xlu1 %v1002_v18  ;;  %1006 = vadd.xlane.f32.xlu0 %v1005_v14  ;;  %v634_v3 = vpop.xlane.xlu0 %633  ;;  %v637_v17 = vpop.xlane.xlu1 %636 }
  0xc7   : > { %11676 = vst [vmem:[#allocation9_spill] sm:$0xff] %v8384_v0  ;;  %11677 = vst [vmem:[#allocation10_spill] sm:$0xff] %v8387_v27  ;;  %v793_v10 = vmul.f32 0.03125, %v634_v3  ;;  %v794_v48 = vmul.f32 0.03125, %v637_v17  ;;  %v919_v40 = vmul.f32 %v8384_v0, %v8384_v0  ;;  %v920_v30 = vmul.f32 %v8387_v27, %v8387_v27  ;;  %v8490_v0 = vld [vmem:[%s7995_s26 + $0x1f0] sm:$0xff] }
  0xc8   : > { %11688 = vst [vmem:[#allocation21_spill] sm:$0xff] %v8490_v0 }
  0xc9   : > { %v8396_v31 = vsub.f32 %v8102_v34, %v793_v10  ;;  %v8399_v49 = vsub.f32 %v8105_v35, %v794_v48  ;;  %v1011_v18 = vsel %vm11651_vm1, %v919_v40, 0.0  ;;  %v1014_v25 = vsel %vm11651_vm1, %v920_v30, 0.0  ;;  %v8408_v10 = vld [vmem:[%s7995_s26 + $0x1c0] sm:$0xff]  ;;  %v1560_v35 = vld [vmem:[%s11573_s4 + $0x18] sm:$0xff] }
  0xca   : > { %1009 = vadd.xlane.f32.xlu1 %v1008_v22  ;;  %1012 = vadd.xlane.f32.xlu0 %v1011_v18  ;;  %v640_v56 = vpop.xlane.xlu0 %639  ;;  %v643_v26 = vpop.xlane.xlu1 %642  ;;  %v752_v40 = vsel %vm11651_vm1, %v8408_v10, 0.0 }
  0xcb   : > { %11678 = vst [vmem:[#allocation11_spill] sm:$0xff] %v8396_v31  ;;  %11679 = vst [vmem:[#allocation12_spill] sm:$0xff] %v8399_v49  ;;  %v921_v14 = vmul.f32 %v8396_v31, %v8396_v31  ;;  %v795_v3 = vmul.f32 0.03125, %v640_v56  ;;  %v796_v17 = vmul.f32 0.03125, %v643_v26  ;;  %v922_v34 = vmul.f32 %v8399_v49, %v8399_v49  ;;  %6868 = vmatprep.subr.mxu0 %v1560_v35  ;;  %v1559_v56 = vld [vmem:[%s11573_s4 + $0x10] sm:$0xff] }
  0xcc   : > { %7180 = vmatprep.subr.mxu1 %v1560_v35  ;;  %6869 = vmatpush3.msra.mxu0 %v1560_v35 }
  0xcd   : > { %v1017_v22 = vsel %vm11651_vm1, %v921_v14, 0.0  ;;  %v8415_v48 = vsub.f32 %v8112_v38, %v795_v3  ;;  %v8423_v26 = vsub.f32 %v8115_v39, %v796_v17  ;;  %v1020_v14 = vsel %vm11651_vm1, %v922_v34, 0.0  ;;  %v8427_v38 = vld [vmem:[%s7995_s26 + $0x1c8] sm:$0xff]  ;;  %7184 = vmatpush3.msra.mxu1 %v1560_v35  ;;  %6870 = vmatprep.subr.mxu0 %v1559_v56  ;;  %v1557_v35 = vld [vmem:[%s11573_s4] sm:$0xff] }
  0xce   : > { %1015 = vadd.xlane.f32.xlu1 %v1014_v25  ;;  %1018 = vadd.xlane.f32.xlu0 %v1017_v22  ;;  %v646_v30 = vpop.xlane.xlu0 %645  ;;  %v649_v18 = vpop.xlane.xlu1 %648  ;;  %v1558_v22 = vld [vmem:[%s11573_s4 + $0x8] sm:$0xff]  ;;  %v755_v39 = vsel %vm11651_vm1, %v8427_v38, 0.0 }
  0xcf   : > { %11680 = vst [vmem:[#allocation13_spill] sm:$0xff] %v8415_v48  ;;  %11681 = vst [vmem:[#allocation14_spill] sm:$0xff] %v8423_v26  ;;  %v923_v25 = vmul.f32 %v8415_v48, %v8415_v48  ;;  %v797_v3 = vmul.f32 0.03125, %v646_v30  ;;  %7181 = vmatprep.subr.mxu1 %v1559_v56  ;;  %6871 = vmatpush3.msra.mxu0 %v1559_v56  ;;  %v798_v49 = vmul.f32 0.03125, %v649_v18 }
  0xd0   : > { %7185 = vmatpush3.msra.mxu1 %v1559_v56  ;;  %v924_v56 = vmul.f32 %v8423_v26, %v8423_v26  ;;  %6872 = vmatprep.subr.mxu0 %v1558_v22  ;;  %v8455_v26 = vld [vmem:[%s7995_s26 + $0x1d8] sm:$0xff] }
  0xd1   : > { %v1023_v30 = vsel %vm11651_vm1, %v923_v25, 0.0  ;;  %v8441_v48 = vsub.f32 %v8122_v42, %v797_v3  ;;  %7182 = vmatprep.subr.mxu1 %v1558_v22  ;;  %6873 = vmatpush3.msra.mxu0 %v1558_v22  ;;  %v8451_v18 = vsub.f32 %v8125_v43, %v798_v49  ;;  %11684 = vst [vmem:[#allocation17_spill] sm:$0xff] %v8455_v26 }
  0xd2   : > { %1021 = vadd.xlane.f32.xlu1 %v1020_v14  ;;  %753 = vadd.xlane.f32.xlu0 %v752_v40  ;;  %v652_v17 = vpop.xlane.xlu0 %651  ;;  %v655_v34 = vpop.xlane.xlu1 %654  ;;  %v8446_v40 = vld [vmem:[%s7995_s26 + $0x1d0] sm:$0xff]  ;;  %v1026_v3 = vsel %vm11651_vm1, %v924_v56, 0.0 }
  0xd3   : > { %11682 = vst [vmem:[#allocation15_spill] sm:$0xff] %v8441_v48  ;;  %7186 = vmatpush3.msra.mxu1 %v1558_v22  ;;  %6874 = vmatprep.subr.mxu0 %v1557_v35  ;;  %v758_v14 = vsel %vm11651_vm1, %v8446_v40, 0.0  ;;  %11683 = vst [vmem:[#allocation16_spill] sm:$0xff] %v8451_v18  ;;  %v925_v22 = vmul.f32 %v8441_v48, %v8441_v48  ;;  %v799_v31 = vmul.f32 0.03125, %v652_v17  ;;  %v800_v27 = vmul.f32 0.03125, %v655_v34  ;;  %v8468_v17 = vld [vmem:[%s7995_s26 + $0x1e0] sm:$0xff] }
  0xd4   : > { %7183 = vmatprep.subr.mxu1 %v1557_v35  ;;  %6875 = vmatpush3.msra.mxu0 %v1557_v35  ;;  %v926_v48 = vmul.f32 %v8451_v18, %v8451_v18  ;;  %11686 = vst [vmem:[#allocation19_spill] sm:$0xff] %v8468_v17 }
  0xd5   : > { %7187 = vmatpush3.msra.mxu1 %v1557_v35  ;;  %v1029_v49 = vsel %vm11651_vm1, %v925_v22, 0.0  ;;  %v8463_v56 = vsub.f32 %v8132_v46, %v799_v31  ;;  %v764_v35 = vsel %vm11651_vm1, %v8468_v17, 0.0  ;;  %v8477_v31 = vld [vmem:[%s7995_s26 + $0x1e8] sm:$0xff] }
  0xd6   : > { %756 = vadd.xlane.f32.xlu1 %v755_v39  ;;  %1024 = vadd.xlane.f32.xlu0 %v1023_v30  ;;  %v658_v42 = vpop.xlane.xlu0 %657  ;;  %v661_v25 = vpop.xlane.xlu1 %660  ;;  %v761_v39 = vsel %vm11651_vm1, %v8455_v26, 0.0  ;;  %v8473_v26 = vsub.f32 %v8135_v47, %v800_v27  ;;  %v1032_v46 = vsel %vm11651_vm1, %v926_v48, 0.0 }
  0xd7   : > { %11685 = vst [vmem:[#allocation18_spill] sm:$0xff] %v8463_v56  ;;  %v927_v34 = vmul.f32 %v8463_v56, %v8463_v56  ;;  %v801_v22 = vmul.f32 0.03125, %v658_v42 }
  0xd8   : > { %11687 = vst [vmem:[#allocation20_spill] sm:$0xff] %v8473_v26  ;;  %v928_v48 = vmul.f32 %v8473_v26, %v8473_v26  ;;  %v8502_v26 = vld [vmem:[%s7995_s26 + $0x1f8] sm:$0xff] }
  0xd9   : > { %v1035_v47 = vsel %vm11651_vm1, %v927_v34, 0.0  ;;  %v8485_v27 = vsub.f32 %v8142_v50, %v801_v22 }
  0xda   : > { %1027 = vadd.xlane.f32.xlu1 %v1026_v3  ;;  %759 = vadd.xlane.f32.xlu0 %v758_v14  ;;  %v664_v30 = vpop.xlane.xlu0 %663  ;;  %v667_v43 = vpop.xlane.xlu1 %666  ;;  %v1038_v50 = vsel %vm11651_vm1, %v928_v48, 0.0 }
  0xdb   : > { %v803_v42 = vmul.f32 0.03125, %v664_v30  ;;  %v929_v30 = vmul.f32 %v8485_v27, %v8485_v27 }
  0xdd   : > { %v8499_v22 = vsub.f32 %v8152_v54, %v803_v42  ;;  %v1041_v42 = vsel %vm11651_vm1, %v929_v30, 0.0 }
  0xde   : > { %762 = vadd.xlane.f32.xlu1 %v761_v39  ;;  %1030 = vadd.xlane.f32.xlu0 %v1029_v49  ;;  %v670_v14 = vpop.xlane.xlu0 %669  ;;  %v673_v3 = vpop.xlane.xlu1 %672  ;;  %v767_v39 = vsel %vm11651_vm1, %v8477_v31, 0.0  ;;  %v802_v49 = vmul.f32 0.03125, %v661_v25  ;;  %v770_v25 = vsel %vm11651_vm1, %v8490_v0, 0.0 }
  0xe2   : > { %1033 = vadd.xlane.f32.xlu1 %v1032_v46  ;;  %765 = vadd.xlane.f32.xlu0 %v764_v35  ;;  %v676_v18 = vpop.xlane.xlu0 %675  ;;  %v679_v17 = vpop.xlane.xlu1 %678  ;;  %v8493_v35 = vsub.f32 %v8145_v51, %v802_v49  ;;  %v804_v46 = vmul.f32 0.03125, %v667_v43  ;;  %v773_v43 = vsel %vm11651_vm1, %v8502_v26, 0.0  ;;  %v806_v49 = vmul.f32 0.03125, %v673_v3 }
  0xe4   : > { %11689 = vst [vmem:[#allocation22_spill] sm:$0xff] %v8493_v35  ;;  %v8507_v51 = vsub.f32 %v8155_v55, %v804_v46  ;;  %v8520_v55 = vsub.f32 %v8165_v59, %v806_v49  ;;  %v808_v46 = vmul.f32 0.03125, %v679_v17 }
  0xe6   : > { %768 = vadd.xlane.f32.xlu1 %v767_v39  ;;  %1036 = vadd.xlane.f32.xlu0 %v1035_v47  ;;  %v682_v56 = vpop.xlane.xlu0 %681  ;;  %v685_v34 = vpop.xlane.xlu1 %684  ;;  %v805_v39 = vmul.f32 0.03125, %v670_v14  ;;  %v930_v47 = vmul.f32 %v8493_v35, %v8493_v35  ;;  %v931_v14 = vmul.f32 %v8499_v22, %v8499_v22  ;;  %v8532_v59 = vsub.f32 %v8175_v63, %v808_v46 }
  0xe7   : > { %v810_v49 = vmul.f32 0.03125, %v685_v34 }
  0xe8   : > { %v8515_v0 = vsub.f32 %v8162_v58, %v805_v39  ;;  %v1044_v3 = vsel %vm11651_vm1, %v930_v47, 0.0  ;;  %v1047_v58 = vsel %vm11651_vm1, %v931_v14, 0.0  ;;  %v934_v47 = vmul.f32 %v8520_v55, %v8520_v55 }
  0xe9   : > { %v8544_v63 = vsub.f32 %v8185_v6, %v810_v49 }
  0xea   : > { %1039 = vadd.xlane.f32.xlu1 %v1038_v50  ;;  %771 = vadd.xlane.f32.xlu0 %v770_v25  ;;  %v688_v54 = vpop.xlane.xlu0 %687  ;;  %v691_v48 = vpop.xlane.xlu1 %690  ;;  %v807_v25 = vmul.f32 0.03125, %v676_v18  ;;  %v932_v50 = vmul.f32 %v8507_v51, %v8507_v51  ;;  %v933_v18 = vmul.f32 %v8515_v0, %v8515_v0  ;;  %v1056_v34 = vsel %vm11651_vm1, %v934_v47, 0.0 }
  0xeb   : > { %v812_v46 = vmul.f32 0.03125, %v691_v48  ;;  %v938_v47 = vmul.f32 %v8544_v63, %v8544_v63 }
  0xec   : > { %v8527_v39 = vsub.f32 %v8172_v62, %v807_v25  ;;  %v1050_v17 = vsel %vm11651_vm1, %v932_v50, 0.0  ;;  %v1053_v62 = vsel %vm11651_vm1, %v933_v18, 0.0  ;;  %v936_v50 = vmul.f32 %v8532_v59, %v8532_v59 }
  0xed   : > { %v8556_v6 = vsub.f32 %v8195_v13, %v812_v46 }
  0xee   : > { %774 = vadd.xlane.f32.xlu1 %v773_v43  ;;  %1042 = vadd.xlane.f32.xlu0 %v1041_v42  ;;  %v694_v35 = vpop.xlane.xlu0 %693  ;;  %v697_v30 = vpop.xlane.xlu1 %696  ;;  %v809_v43 = vmul.f32 0.03125, %v682_v56  ;;  %v935_v56 = vmul.f32 %v8527_v39, %v8527_v39  ;;  %v1062_v48 = vsel %vm11651_vm1, %v936_v50, 0.0 }
  0xef   : > { %v814_v49 = vmul.f32 0.03125, %v697_v30  ;;  %v1068_v30 = vsel %vm11651_vm1, %v938_v47, 0.0  ;;  %v940_v50 = vmul.f32 %v8556_v6, %v8556_v6 }
  0xf0   : > { %v8539_v25 = vsub.f32 %v8182_v5, %v809_v43  ;;  %v1059_v5 = vsel %vm11651_vm1, %v935_v56, 0.0 }
  0xf1   : > { %v8568_v13 = vsub.f32 %v8205_v21, %v814_v49 }
  0xf2   : > { %1045 = vadd.xlane.f32.xlu1 %v1044_v3  ;;  %1048 = vadd.xlane.f32.xlu0 %v1047_v58  ;;  %v700_v42 = vpop.xlane.xlu0 %699  ;;  %v703_v14 = vpop.xlane.xlu1 %702  ;;  %v811_v3 = vmul.f32 0.03125, %v688_v54  ;;  %v937_v54 = vmul.f32 %v8539_v25, %v8539_v25 }
  0xf3   : > { %v816_v46 = vmul.f32 0.03125, %v703_v14  ;;  %v1074_v14 = vsel %vm11651_vm1, %v940_v50, 0.0  ;;  %v942_v47 = vmul.f32 %v8568_v13, %v8568_v13 }
  0xf4   : > { %v8551_v43 = vsub.f32 %v8192_v12, %v811_v3  ;;  %v1065_v12 = vsel %vm11651_vm1, %v937_v54, 0.0 }
  0xf5   : > { %v8580_v21 = vsub.f32 %v8215_v29, %v816_v46 }
  0xf6   : > { %1051 = vadd.xlane.f32.xlu1 %v1050_v17  ;;  %1054 = vadd.xlane.f32.xlu0 %v1053_v62  ;;  %v706_v58 = vpop.xlane.xlu0 %705  ;;  %v709_v18 = vpop.xlane.xlu1 %708  ;;  %v813_v17 = vmul.f32 0.03125, %v694_v35  ;;  %v939_v35 = vmul.f32 %v8551_v43, %v8551_v43 }
  0xf7   : > { %v818_v49 = vmul.f32 0.03125, %v709_v18  ;;  %v1080_v18 = vsel %vm11651_vm1, %v942_v47, 0.0  ;;  %v944_v50 = vmul.f32 %v8580_v21, %v8580_v21 }
  0xf8   : > { %v8563_v3 = vsub.f32 %v8202_v20, %v813_v17  ;;  %v1071_v20 = vsel %vm11651_vm1, %v939_v35, 0.0 }
  0xf9   : > { %v8592_v29 = vsub.f32 %v8225_v37, %v818_v49 }
  0xfa   : > { %1057 = vadd.xlane.f32.xlu1 %v1056_v34  ;;  %1060 = vadd.xlane.f32.xlu0 %v1059_v5  ;;  %v712_v62 = vpop.xlane.xlu0 %711  ;;  %v715_v56 = vpop.xlane.xlu1 %714  ;;  %v815_v34 = vmul.f32 0.03125, %v700_v42  ;;  %v941_v42 = vmul.f32 %v8563_v3, %v8563_v3 }
  0xfb   : > { %v820_v46 = vmul.f32 0.03125, %v715_v56  ;;  %v1086_v56 = vsel %vm11651_vm1, %v944_v50, 0.0  ;;  %v946_v49 = vmul.f32 %v8592_v29, %v8592_v29 }
  0xfc   : > { %v8575_v17 = vsub.f32 %v8212_v28, %v815_v34  ;;  %v1077_v35 = vsel %vm11651_vm1, %v941_v42, 0.0  ;;  %v819_v34 = vmul.f32 0.03125, %v712_v62 }
  0xfd   : > { %v8604_v37 = vsub.f32 %v8235_v45, %v820_v46 }
  0xfe   : > { %1063 = vadd.xlane.f32.xlu1 %v1062_v48  ;;  %1066 = vadd.xlane.f32.xlu0 %v1065_v12  ;;  %v718_v5 = vpop.xlane.xlu0 %717  ;;  %v721_v54 = vpop.xlane.xlu1 %720  ;;  %v817_v48 = vmul.f32 0.03125, %v706_v58  ;;  %v943_v58 = vmul.f32 %v8575_v17, %v8575_v17  ;;  %v8599_v42 = vsub.f32 %v8232_v44, %v819_v34 }
  0xff   : > { %v948_v46 = vmul.f32 %v8604_v37, %v8604_v37 }
 0x100   : > { %v8587_v28 = vsub.f32 %v8222_v36, %v817_v48  ;;  %v1083_v36 = vsel %vm11651_vm1, %v943_v58, 0.0  ;;  %v821_v48 = vmul.f32 0.03125, %v718_v5  ;;  %v947_v5 = vmul.f32 %v8599_v42, %v8599_v42 }
 0x102   : > { %1069 = vadd.xlane.f32.xlu1 %v1068_v30  ;;  %1072 = vadd.xlane.f32.xlu0 %v1071_v20  ;;  %v724_v12 = vpop.xlane.xlu0 %723  ;;  %v727_v30 = vpop.xlane.xlu1 %726  ;;  %v945_v62 = vmul.f32 %v8587_v28, %v8587_v28  ;;  %v8611_v44 = vsub.f32 %v8242_v52, %v821_v48  ;;  %v1095_v50 = vsel %vm11651_vm1, %v947_v5, 0.0 }
 0x103   : > { %v823_v58 = vmul.f32 0.03125, %v724_v12 }
 0x104   : > { %v949_v12 = vmul.f32 %v8611_v44, %v8611_v44 }
 0x105   : > { %v8623_v52 = vsub.f32 %v8252_v60, %v823_v58 }
 0x106   : > { %1075 = vadd.xlane.f32.xlu1 %v1074_v14  ;;  %1078 = vadd.xlane.f32.xlu0 %v1077_v35  ;;  %v730_v20 = vpop.xlane.xlu0 %729  ;;  %v822_v14 = vmul.f32 0.03125, %v721_v54  ;;  %v733_v47 = vpop.xlane.xlu1 %732  ;;  %v1089_v35 = vsel %vm11651_vm1, %v945_v62, 0.0  ;;  %v1092_v54 = vsel %vm11651_vm1, %v946_v49, 0.0  ;;  %v1101_v60 = vsel %vm11651_vm1, %v949_v12, 0.0 }
 0x107   : > { %v826_v48 = vmul.f32 0.03125, %v733_v47 }
 0x108   : > { %v8616_v45 = vsub.f32 %v8245_v53, %v822_v14 }
 0x10a   : > { %1081 = vadd.xlane.f32.xlu1 %v1080_v18  ;;  %1084 = vadd.xlane.f32.xlu0 %v1083_v36  ;;  %v736_v34 = vpop.xlane.xlu0 %735  ;;  %v824_v18 = vmul.f32 0.03125, %v727_v30  ;;  %v825_v36 = vmul.f32 0.03125, %v730_v20  ;;  %v739_v62 = vpop.xlane.xlu1 %738  ;;  %v1098_v30 = vsel %vm11651_vm1, %v948_v46, 0.0  ;;  %v951_v20 = vmul.f32 %v8623_v52, %v8623_v52 }
 0x10b   : > { %v828_v5 = vmul.f32 0.03125, %v739_v62 }
 0x10c   : > { %v8628_v53 = vsub.f32 %v8255_v61, %v824_v18  ;;  %v8635_v49 = vsub.f32 %v8262_v8, %v825_v36  ;;  %v8640_v61 = vsub.f32 %v8265_v9, %v826_v48  ;;  %v1107_v18 = vsel %vm11651_vm1, %v951_v20, 0.0  ;;  %v11690_v8 = vld [vmem:[#allocation3_spill] sm:$0xff]  ;;  %v11691_v9 = vld [vmem:[#allocation4_spill] sm:$0xff] }
 0x10d   : > { %v8652_v36 = vsub.f32 %v11691_v9, %v828_v5  ;;  %v11695_v5 = vld [vmem:[#allocation6_spill] sm:$0xff] }
 0x10e   : > { %1087 = vadd.xlane.f32.xlu1 %v1086_v56  ;;  %1090 = vadd.xlane.f32.xlu0 %v1089_v35  ;;  %v950_v56 = vmul.f32 %v8616_v45, %v8616_v45  ;;  %v742_v14 = vpop.xlane.xlu0 %741  ;;  %v827_v35 = vmul.f32 0.03125, %v736_v34  ;;  %v952_v58 = vmul.f32 %v8628_v53, %v8628_v53  ;;  %v953_v34 = vmul.f32 %v8635_v49, %v8635_v49 }
 0x10f   : > { %11692 = vst [vmem:[#allocation3_spill] sm:$0xff] %v8652_v36  ;;  %v954_v48 = vmul.f32 %v8640_v61, %v8640_v61 }
 0x110   : > { %v1104_v47 = vsel %vm11651_vm1, %v950_v56, 0.0  ;;  %v8647_v46 = vsub.f32 %v11690_v8, %v827_v35  ;;  %v1110_v62 = vsel %vm11651_vm1, %v952_v58, 0.0  ;;  %v1113_v56 = vsel %vm11651_vm1, %v953_v34, 0.0  ;;  %v11697_v34 = vld [vmem:[#allocation7_spill] sm:$0xff] }
 0x111   : > { %v1116_v58 = vsel %vm11651_vm1, %v954_v48, 0.0 }
 0x112   : > { %1093 = vadd.xlane.f32.xlu1 %v1092_v54  ;;  %1096 = vadd.xlane.f32.xlu0 %v1095_v50  ;;  %v745_v54 = vpop.xlane.xlu1 %744  ;;  %v829_v50 = vmul.f32 0.03125, %v742_v14  ;;  %v748_v12 = vpop.xlane.xlu0 %747  ;;  %v955_v14 = vmul.f32 %v8647_v46, %v8647_v46 }
 0x113   : > { %v831_v35 = vmul.f32 0.03125, %v748_v12 }
 0x114   : > { %v1119_v8 = vsel %vm11651_vm1, %v955_v14, 0.0 }
 0x116   : > { %1099 = vadd.xlane.f32.xlu1 %v1098_v30  ;;  %1102 = vadd.xlane.f32.xlu0 %v1101_v60  ;;  %v830_v30 = vmul.f32 0.03125, %v745_v54  ;;  %v11693_v60 = vld [vmem:[#allocation5_spill] sm:$0xff]  ;;  %v956_v54 = vmul.f32 %v8652_v36, %v8652_v36 }
 0x117   : > { %v8659_v20 = vsub.f32 %v11693_v60, %v829_v50  ;;  %v8671_v50 = vsub.f32 %v11697_v34, %v831_v35 }
 0x119   : > { %11694 = vst [vmem:[#allocation4_spill] sm:$0xff] %v8659_v20  ;;  %11698 = vst [vmem:[#allocation6_spill] sm:$0xff] %v8671_v50  ;;  %v957_v12 = vmul.f32 %v8659_v20, %v8659_v20  ;;  %v959_v60 = vmul.f32 %v8671_v50, %v8671_v50 }
 0x11a   : > { %1105 = vadd.xlane.f32.xlu1 %v1104_v47  ;;  %1108 = vadd.xlane.f32.xlu0 %v1107_v18  ;;  %v751_v47 = vpop.xlane.xlu1 %750  ;;  %v8664_v18 = vsub.f32 %v11695_v5, %v830_v30 }
 0x11b   : > { %v832_v9 = vmul.f32 0.03125, %v751_v47  ;;  %v1125_v48 = vsel %vm11651_vm1, %v957_v12, 0.0  ;;  %v1131_v35 = vsel %vm11651_vm1, %v959_v60, 0.0 }
 0x11c   : > { %11696 = vst [vmem:[#allocation5_spill] sm:$0xff] %v8664_v18 }
 0x11d   : > { %v8677_v30 = vsub.f32 %v8295_v57, %v832_v9 }
 0x11e   : > { %1111 = vadd.xlane.f32.xlu1 %v1110_v62  ;;  %1114 = vadd.xlane.f32.xlu0 %v1113_v56  ;;  %v1122_v62 = vsel %vm11651_vm1, %v956_v54, 0.0  ;;  %v958_v56 = vmul.f32 %v8664_v18, %v8664_v18 }
 0x11f   : > { %11699 = vst [vmem:[#allocation7_spill] sm:$0xff] %v8677_v30  ;;  %v960_v47 = vmul.f32 %v8677_v30, %v8677_v30 }
 0x120   : > { %v1128_v14 = vsel %vm11651_vm1, %v958_v56, 0.0 }
 0x121   : > { %v1134_v57 = vsel %vm11651_vm1, %v960_v47, 0.0 }
 0x122   : > { %1117 = vadd.xlane.f32.xlu1 %v1116_v58  ;;  %1120 = vadd.xlane.f32.xlu0 %v1119_v8 }
 0x126   : > { %1123 = vadd.xlane.f32.xlu1 %v1122_v62  ;;  %1126 = vadd.xlane.f32.xlu0 %v1125_v48 }
 0x12a   : > { %1129 = vadd.xlane.f32.xlu1 %v1128_v14  ;;  %1132 = vadd.xlane.f32.xlu0 %v1131_v35 }
 0x12e   : > { %1135 = vadd.xlane.f32.xlu1 %v1134_v57 }
 0x137   : > { %v971_v5 = vpop.xlane.xlu0 %970 }
 0x138   : > { %v1161_v58 = vmul.f32 0.03125, %v971_v5 }
 0x13a   : > { %v1225_v54 = vadd.f32 1e-05, %v1161_v58 }
 0x13b   : > { %v974_v8 = vpop.xlane.xlu1 %973  ;;  %v977_v34 = vpop.xlane.xlu0 %976 }
 0x13c   : > { %7217 = vrsqrt.f32 %v1225_v54  ;;  %v1162_v9 = vmul.f32 0.03125, %v974_v8  ;;  %v1163_v12 = vmul.f32 0.03125, %v977_v34 }
 0x13e   : > { %v1226_v62 = vadd.f32 1e-05, %v1162_v9  ;;  %v1227_v48 = vadd.f32 1e-05, %v1163_v12 }
 0x13f   : > { %v980_v56 = vpop.xlane.xlu1 %979  ;;  %v983_v60 = vpop.xlane.xlu0 %982 }
 0x140   : > { %7219 = vrsqrt.f32 %v1226_v62  ;;  %v1164_v50 = vmul.f32 0.03125, %v980_v56  ;;  %v1165_v30 = vmul.f32 0.03125, %v983_v60 }
 0x141   : > { %7221 = vrsqrt.f32 %v1227_v48 }
 0x142   : > { %v1228_v14 = vadd.f32 1e-05, %v1164_v50  ;;  %v1229_v35 = vadd.f32 1e-05, %v1165_v30  ;;  %v8692_v50 = vld [vmem:[%s11571_s2] ss:$0 sm:$0xff] }
 0x143   : > { %v986_v47 = vpop.xlane.xlu1 %985  ;;  %v989_v57 = vpop.xlane.xlu0 %988 }
 0x144   : > { %7223 = vrsqrt.f32 %v1228_v14  ;;  %v1166_v5 = vmul.f32 0.03125, %v986_v47  ;;  %v1167_v58 = vmul.f32 0.03125, %v989_v57  ;;  %v8698_v14 = vld [vmem:[%s11572_s3] ss:$0 sm:$0xff] }
 0x145   : > { %7225 = vrsqrt.f32 %v1229_v35 }
 0x146   : > { %v1230_v18 = vadd.f32 1e-05, %v1166_v5  ;;  %v1231_v54 = vadd.f32 1e-05, %v1167_v58 }
 0x147   : > { %v992_v8 = vpop.xlane.xlu1 %991  ;;  %v995_v34 = vpop.xlane.xlu0 %994 }
 0x148   : > { %7227 = vrsqrt.f32 %v1230_v18  ;;  %v1168_v9 = vmul.f32 0.03125, %v992_v8  ;;  %v1169_v12 = vmul.f32 0.03125, %v995_v34 }
 0x149   : > { %v7218_v20 = vpop.eup %7217  ;;  %7229 = vrsqrt.f32 %v1231_v54 }
 0x14a   : > { %v1232_v30 = vadd.f32 1e-05, %v1168_v9  ;;  %v1233_v62 = vadd.f32 1e-05, %v1169_v12  ;;  %v1353_v48 = vmul.f32 %v7218_v20, %v8302_v41  ;;  %v11700_v9 = vld [vmem:[#allocation8_spill] sm:$0xff] }
 0x14b   : > { %v998_v56 = vpop.xlane.xlu1 %997  ;;  %v1001_v60 = vpop.xlane.xlu0 %1000 }
 0x14c   : > { %7231 = vrsqrt.f32 %v1232_v30  ;;  %v1170_v18 = vmul.f32 0.03125, %v998_v56  ;;  %v1171_v35 = vmul.f32 0.03125, %v1001_v60  ;;  %v1423_v47 = vmul.f32 %v8692_v50, %v1353_v48 }
 0x14d   : > { %v7220_v57 = vpop.eup %7219  ;;  %7233 = vrsqrt.f32 %v1233_v62 }
 0x14e   : > { %v7222_v5 = vpop.eup %7221  ;;  %v1234_v58 = vadd.f32 1e-05, %v1170_v18  ;;  %v1235_v54 = vadd.f32 1e-05, %v1171_v35  ;;  %v1493_v8 = vadd.f32 %v8698_v14, %v1423_v47  ;;  %v1354_v41 = vmul.f32 %v7220_v57, %v8312_v1 }
 0x14f   : > { %v1004_v20 = vpop.xlane.xlu1 %1003  ;;  %v1007_v34 = vpop.xlane.xlu0 %1006  ;;  %v1355_v12 = vmul.f32 %v7222_v5, %v11700_v9 }
 0x150   : > { %7235 = vrsqrt.f32 %v1234_v58  ;;  %v1172_v36 = vmul.f32 0.03125, %v1004_v20  ;;  %v1173_v30 = vmul.f32 0.03125, %v1007_v34  ;;  %6876 = vmatprep.mubr.msk.f32.mxu0 %vm11651_vm1, %v1493_v8  ;;  %v1424_v48 = vmul.f32 %v8692_v50, %v1354_v41 }
 0x151   : > { %v7224_v56 = vpop.eup %7223  ;;  %7237 = vrsqrt.f32 %v1235_v54  ;;  %v1425_v62 = vmul.f32 %v8692_v50, %v1355_v12 }
 0x152   : > { %v7226_v60 = vpop.eup %7225  ;;  %v1236_v18 = vadd.f32 1e-05, %v1172_v36  ;;  %v1237_v35 = vadd.f32 1e-05, %v1173_v30  ;;  %v1494_v1 = vadd.f32 %v8698_v14, %v1424_v48  ;;  %v1356_v47 = vmul.f32 %v7224_v56, %v8315_v16 }
 0x153   : > { %v1010_v57 = vpop.xlane.xlu1 %1009  ;;  %v1013_v5 = vpop.xlane.xlu0 %1012  ;;  %v1495_v58 = vadd.f32 %v8698_v14, %v1425_v62  ;;  %v1357_v20 = vmul.f32 %v7226_v60, %v8324_v4 }
 0x154   : > { %7239 = vrsqrt.f32 %v1236_v18  ;;  %v1174_v8 = vmul.f32 0.03125, %v1010_v57  ;;  %v1175_v41 = vmul.f32 0.03125, %v1013_v5  ;;  %6877 = vmatmul.mubr.msk.f32.vlgmr.msra.gmra.mxu0 %vm11651_vm1, %v1494_v1  ;;  %v1426_v54 = vmul.f32 %v8692_v50, %v1356_v47 }
 0x155   : > { %v7228_v34 = vpop.eup %7227  ;;  %7241 = vrsqrt.f32 %v1237_v35  ;;  %6879 = vmatprep.mubr.msk.f32.mxu0 %vm11651_vm1, %v1495_v58  ;;  %v1427_v36 = vmul.f32 %v8692_v50, %v1357_v20 }
 0x156   : > { %v7230_v16 = vpop.eup %7229  ;;  %v1238_v9 = vadd.f32 1e-05, %v1174_v8  ;;  %v1239_v12 = vadd.f32 1e-05, %v1175_v41  ;;  %v1496_v30 = vadd.f32 %v8698_v14, %v1426_v54  ;;  %v1358_v4 = vmul.f32 %v7228_v34, %v8327_v7 }
 0x157   : > { %v1016_v48 = vpop.xlane.xlu1 %1015  ;;  %v1019_v56 = vpop.xlane.xlu0 %1018  ;;  %v1497_v62 = vadd.f32 %v8698_v14, %v1427_v36  ;;  %v1359_v60 = vmul.f32 %v7230_v16, %v8336_v33 }
 0x158   : > { %7243 = vrsqrt.f32 %v1238_v9  ;;  %v1176_v18 = vmul.f32 0.03125, %v1016_v48  ;;  %v1177_v35 = vmul.f32 0.03125, %v1019_v56  ;;  %6880 = vmatmul.mubr.msk.f32.gmra.mxu0 %vm11651_vm1, %v1496_v30  ;;  %v1428_v1 = vmul.f32 %v8692_v50, %v1358_v4 }
 0x159   : > { %v7232_v47 = vpop.eup %7231  ;;  %7245 = vrsqrt.f32 %v1239_v12  ;;  %6882 = vmatprep.mubr.msk.f32.mxu0 %vm11651_vm1, %v1497_v62  ;;  %v1429_v57 = vmul.f32 %v8692_v50, %v1359_v60 }
 0x15a   : > { %v7234_v7 = vpop.eup %7233  ;;  %v1240_v5 = vadd.f32 1e-05, %v1176_v18  ;;  %v1241_v58 = vadd.f32 1e-05, %v1177_v35  ;;  %v1498_v20 = vadd.f32 %v8698_v14, %v1428_v1  ;;  %v1360_v33 = vmul.f32 %v7232_v47, %v8339_v11 }
 0x15b   : > { %v1022_v8 = vpop.xlane.xlu1 %1021  ;;  %v754_v41 = vpop.xlane.xlu0 %753  ;;  %v1499_v54 = vadd.f32 %v8698_v14, %v1429_v57  ;;  %v1361_v34 = vmul.f32 %v7234_v7, %v8348_v2 }
 0x15c   : > { %7247 = vrsqrt.f32 %v1240_v5  ;;  %v1178_v36 = vmul.f32 0.03125, %v1022_v8  ;;  %v833_v16 = vmul.f32 0.03125, %v754_v41  ;;  %6883 = vmatmul.mubr.msk.f32.gmra.mxu0 %vm11651_vm1, %v1498_v20  ;;  %v1430_v9 = vmul.f32 %v8692_v50, %v1360_v33 }
 0x15d   : > { %v7236_v12 = vpop.eup %7235  ;;  %7249 = vrsqrt.f32 %v1241_v58  ;;  %6885 = vmatprep.mubr.msk.f32.mxu0 %vm11651_vm1, %v1499_v54  ;;  %v1431_v30 = vmul.f32 %v8692_v50, %v1361_v34 }
 0x15e   : > { %v7238_v11 = vpop.eup %7237  ;;  %v1242_v4 = vadd.f32 1e-05, %v1178_v36  ;;  %v8732_v48 = vsub.f32 %v8408_v10, %v833_v16  ;;  %v1500_v2 = vadd.f32 %v8698_v14, %v1430_v9  ;;  %v1362_v56 = vmul.f32 %v7236_v12, %v8351_v15 }
 0x15f   : > { %v757_v62 = vpop.xlane.xlu1 %756  ;;  %v1025_v60 = vpop.xlane.xlu0 %1024  ;;  %v1501_v18 = vadd.f32 %v8698_v14, %v1431_v30  ;;  %v1363_v35 = vmul.f32 %v7238_v11, %v8360_v24 }
 0x160   : > { %7251 = vrsqrt.f32 %v1242_v4  ;;  %v834_v1 = vmul.f32 0.03125, %v757_v62  ;;  %v1179_v47 = vmul.f32 0.03125, %v1025_v60  ;;  %6886 = vmatmul.mubr.msk.f32.gmra.mxu0 %vm11651_vm1, %v1500_v2  ;;  %v961_v57 = vmul.f32 %v8732_v48, %v8732_v48 }
 0x161   : > { %v7240_v10 = vpop.eup %7239  ;;  %6888 = vmatprep.mubr.msk.f32.mxu0 %vm11651_vm1, %v1501_v18  ;;  %v1432_v7 = vmul.f32 %v8692_v50, %v1362_v56  ;;  %v1433_v15 = vmul.f32 %v8692_v50, %v1363_v35 }
 0x162   : > { %v7242_v5 = vpop.eup %7241  ;;  %v8745_v58 = vsub.f32 %v8427_v38, %v834_v1  ;;  %v1243_v24 = vadd.f32 1e-05, %v1179_v47  ;;  %v1137_v20 = vsel %vm11651_vm1, %v961_v57, 0.0  ;;  %v1364_v33 = vmul.f32 %v7240_v10, %v8363_v19  ;;  %v11701_v1 = vld [vmem:[#allocation9_spill] sm:$0xff] }
 0x163   : > { %v1028_v8 = vpop.xlane.xlu1 %1027  ;;  %1138 = vadd.xlane.f32.xlu0 %v1137_v20  ;;  %v760_v41 = vpop.xlane.xlu0 %759  ;;  %v1502_v54 = vadd.f32 %v8698_v14, %v1432_v7  ;;  %v1503_v34 = vadd.f32 %v8698_v14, %v1433_v15  ;;  %v1365_v36 = vmul.f32 %v7242_v5, %v8372_v32 }
 0x164   : > { %7253 = vrsqrt.f32 %v1243_v24  ;;  %v1180_v16 = vmul.f32 0.03125, %v1028_v8  ;;  %v835_v9 = vmul.f32 0.03125, %v760_v41  ;;  %v962_v38 = vmul.f32 %v8745_v58, %v8745_v58  ;;  %v11702_v24 = vld [vmem:[#allocation17_spill] sm:$0xff]  ;;  %v11703_v41 = vld [vmem:[#allocation10_spill] sm:$0xff] }
 0x165   : > { %v7244_v12 = vpop.eup %7243  ;;  %6889 = vmatmul.mubr.msk.f32.gmra.mxu0 %vm11651_vm1, %v1502_v54  ;;  %v1434_v19 = vmul.f32 %v8692_v50, %v1364_v33  ;;  %v1435_v30 = vmul.f32 %v8692_v50, %v1365_v36 }
 0x166   : > { %v7246_v11 = vpop.eup %7245  ;;  %v1244_v4 = vadd.f32 1e-05, %v1180_v16  ;;  %v8758_v2 = vsub.f32 %v8446_v40, %v835_v9  ;;  %6891 = vmatprep.mubr.msk.f32.mxu0 %vm11651_vm1, %v1503_v34  ;;  %v1140_v32 = vsel %vm11651_vm1, %v962_v38, 0.0  ;;  %v1366_v56 = vmul.f32 %v7244_v12, %v8375_v23  ;;  %v11704_v38 = vld [vmem:[#allocation11_spill] sm:$0xff] }
 0x167   : > { %1141 = vadd.xlane.f32.xlu1 %v1140_v32  ;;  %v763_v62 = vpop.xlane.xlu1 %762  ;;  %v1031_v60 = vpop.xlane.xlu0 %1030  ;;  %v1504_v18 = vadd.f32 %v8698_v14, %v1434_v19  ;;  %v1505_v35 = vadd.f32 %v8698_v14, %v1435_v30  ;;  %v1367_v47 = vmul.f32 %v7246_v11, %v11701_v1  ;;  %v11706_v1 = vld [vmem:[#allocation12_spill] sm:$0xff] }
 0x168   : > { %7255 = vrsqrt.f32 %v1244_v4  ;;  %v836_v57 = vmul.f32 0.03125, %v763_v62  ;;  %v1181_v10 = vmul.f32 0.03125, %v1031_v60  ;;  %v963_v40 = vmul.f32 %v8758_v2, %v8758_v2  ;;  %v11705_v60 = vld [vmem:[#allocation19_spill] sm:$0xff] }
 0x169   : > { %v7248_v7 = vpop.eup %7247  ;;  %6892 = vmatmul.mubr.msk.f32.gmra.mxu0 %vm11651_vm1, %v1504_v18  ;;  %v1436_v23 = vmul.f32 %v8692_v50, %v1366_v56  ;;  %v1437_v15 = vmul.f32 %v8692_v50, %v1367_v47 }
 0x16a   : > { %v7250_v5 = vpop.eup %7249  ;;  %v8772_v20 = vsub.f32 %v11702_v24, %v836_v57  ;;  %v1245_v33 = vadd.f32 1e-05, %v1181_v10  ;;  %6894 = vmatprep.mubr.msk.f32.mxu0 %vm11651_vm1, %v1505_v35  ;;  %v1143_v8 = vsel %vm11651_vm1, %v963_v40, 0.0  ;;  %v1368_v54 = vmul.f32 %v7248_v7, %v11703_v41 }
 0x16b   : > { %v1034_v34 = vpop.xlane.xlu1 %1033  ;;  %1144 = vadd.xlane.f32.xlu0 %v1143_v8  ;;  %v766_v36 = vpop.xlane.xlu0 %765  ;;  %v1506_v16 = vadd.f32 %v8698_v14, %v1436_v23  ;;  %v1507_v9 = vadd.f32 %v8698_v14, %v1437_v15  ;;  %v1369_v12 = vmul.f32 %v7250_v5, %v11704_v38 }
 0x16c   : > { %7257 = vrsqrt.f32 %v1245_v33  ;;  %v1182_v19 = vmul.f32 0.03125, %v1034_v34  ;;  %v837_v30 = vmul.f32 0.03125, %v766_v36  ;;  %v964_v11 = vmul.f32 %v8772_v20, %v8772_v20  ;;  %v11707_v34 = vld [vmem:[#allocation13_spill] sm:$0xff] }
 0x16d   : > { %v7252_v4 = vpop.eup %7251  ;;  %6895 = vmatmul.mubr.msk.f32.gmra.mxu0 %vm11651_vm1, %v1506_v16  ;;  %v1438_v32 = vmul.f32 %v8692_v50, %v1368_v54  ;;  %v1439_v56 = vmul.f32 %v8692_v50, %v1369_v12 }
 0x16e   : > { %v1246_v62 = vadd.f32 1e-05, %v1182_v19  ;;  %v8786_v18 = vsub.f32 %v11705_v60, %v837_v30  ;;  %6897 = vmatprep.mubr.msk.f32.mxu0 %vm11651_vm1, %v1507_v9  ;;  %v1146_v35 = vsel %vm11651_vm1, %v964_v11, 0.0  ;;  %v1370_v47 = vmul.f32 %v7252_v4, %v11706_v1  ;;  %v11709_v60 = vld [vmem:[#allocation14_spill] sm:$0xff] }
 0x16f   : > { %1147 = vadd.xlane.f32.xlu1 %v1146_v35  ;;  %v769_v57 = vpop.xlane.xlu1 %768  ;;  %v1037_v10 = vpop.xlane.xlu0 %1036  ;;  %v1508_v40 = vadd.f32 %v8698_v14, %v1438_v32  ;;  %v1509_v7 = vadd.f32 %v8698_v14, %v1439_v56  ;;  %v11708_v32 = vld [vmem:[#allocation21_spill] sm:$0xff] }
 0x170   : > { %7259 = vrsqrt.f32 %v1246_v62  ;;  %v838_v23 = vmul.f32 0.03125, %v769_v57  ;;  %v1183_v15 = vmul.f32 0.03125, %v1037_v10  ;;  %v965_v5 = vmul.f32 %v8786_v18, %v8786_v18 }
 0x171   : > { %v7254_v24 = vpop.eup %7253  ;;  %6898 = vmatmul.mubr.msk.f32.gmra.mxu0 %vm11651_vm1, %v1508_v40  ;;  %v1440_v33 = vmul.f32 %v8692_v50, %v1370_v47 }
 0x172   : > { %v8798_v8 = vsub.f32 %v8477_v31, %v838_v23  ;;  %v1247_v41 = vadd.f32 1e-05, %v1183_v15  ;;  %6900 = vmatprep.mubr.msk.f32.mxu0 %vm11651_vm1, %v1509_v7  ;;  %v1149_v54 = vsel %vm11651_vm1, %v965_v5, 0.0  ;;  %v1371_v36 = vmul.f32 %v7254_v24, %v11707_v34 }
 0x173   : > { %v1040_v16 = vpop.xlane.xlu1 %1039  ;;  %1150 = vadd.xlane.f32.xlu0 %v1149_v54  ;;  %v772_v9 = vpop.xlane.xlu0 %771  ;;  %v1510_v38 = vadd.f32 %v8698_v14, %v1440_v33 }
 0x174   : > { %7261 = vrsqrt.f32 %v1247_v41  ;;  %v1184_v12 = vmul.f32 0.03125, %v1040_v16  ;;  %v839_v19 = vmul.f32 0.03125, %v772_v9  ;;  %v966_v30 = vmul.f32 %v8798_v8, %v8798_v8  ;;  %v11710_v41 = vld [vmem:[#allocation15_spill] sm:$0xff] }
 0x175   : > { %v7256_v31 = vpop.eup %7255  ;;  %6901 = vmatmul.mubr.msk.f32.gmra.mxu0 %vm11651_vm1, %v1510_v38  ;;  %v1441_v11 = vmul.f32 %v8692_v50, %v1371_v36 }
 0x176   : > { %v1248_v4 = vadd.f32 1e-05, %v1184_v12  ;;  %v8809_v56 = vsub.f32 %v11708_v32, %v839_v19  ;;  %v1152_v62 = vsel %vm11651_vm1, %v966_v30, 0.0  ;;  %v1372_v35 = vmul.f32 %v7256_v31, %v11709_v60 }
 0x177   : > { %1153 = vadd.xlane.f32.xlu1 %v1152_v62  ;;  %v775_v1 = vpop.xlane.xlu1 %774  ;;  %v1043_v47 = vpop.xlane.xlu0 %1042  ;;  %v1511_v57 = vadd.f32 %v8698_v14, %v1441_v11 }
 0x178   : > { %7263 = vrsqrt.f32 %v1248_v4  ;;  %v840_v10 = vmul.f32 0.03125, %v775_v1  ;;  %v1185_v40 = vmul.f32 0.03125, %v1043_v47  ;;  %v967_v7 = vmul.f32 %v8809_v56, %v8809_v56  ;;  %v11711_v4 = vld [vmem:[#allocation16_spill] sm:$0xff] }
 0x179   : > { %v7258_v23 = vpop.eup %7257  ;;  %6903 = vmatprep.mubr.msk.f32.mxu0 %vm11651_vm1, %v1511_v57  ;;  %v1442_v15 = vmul.f32 %v8692_v50, %v1372_v35 }
 0x17a   : > { %v8819_v5 = vsub.f32 %v8502_v26, %v840_v10  ;;  %v1249_v24 = vadd.f32 1e-05, %v1185_v40  ;;  %v1155_v33 = vsel %vm11651_vm1, %v967_v7, 0.0  ;;  %v1373_v54 = vmul.f32 %v7258_v23, %v11710_v41 }
 0x17b   : > { %v1046_v34 = vpop.xlane.xlu1 %1045  ;;  %1156 = vadd.xlane.f32.xlu0 %v1155_v33  ;;  %v1049_v36 = vpop.xlane.xlu0 %1048  ;;  %v1512_v16 = vadd.f32 %v8698_v14, %v1442_v15  ;;  %v11712_v15 = vld [vmem:[#allocation18_spill] sm:$0xff] }
 0x17c   : > { %7265 = vrsqrt.f32 %v1249_v24  ;;  %v1186_v9 = vmul.f32 0.03125, %v1046_v34  ;;  %v1187_v38 = vmul.f32 0.03125, %v1049_v36  ;;  %v968_v12 = vmul.f32 %v8819_v5, %v8819_v5 }
 0x17d   : > { %v7260_v19 = vpop.eup %7259  ;;  %6904 = vmatmul.mubr.msk.f32.gmra.mxu0 %vm11651_vm1, %v1512_v16  ;;  %v1443_v26 = vmul.f32 %v8692_v50, %v1373_v54 }
 0x17e   : > { %v1250_v30 = vadd.f32 1e-05, %v1186_v9  ;;  %v1251_v31 = vadd.f32 1e-05, %v1187_v38  ;;  %v1158_v11 = vsel %vm11651_vm1, %v968_v12, 0.0  ;;  %v1374_v32 = vmul.f32 %v7260_v19, %v11711_v4  ;;  %v11713_v19 = vld [vmem:[#allocation20_spill] sm:$0xff] }
 0x17f   : > { %1159 = vadd.xlane.f32.xlu1 %v1158_v11  ;;  %v1052_v62 = vpop.xlane.xlu1 %1051  ;;  %v1055_v60 = vpop.xlane.xlu0 %1054  ;;  %v1513_v35 = vadd.f32 %v8698_v14, %v1443_v26 }
 0x180   : > { %7267 = vrsqrt.f32 %v1250_v30  ;;  %v1188_v1 = vmul.f32 0.03125, %v1052_v62  ;;  %v1189_v47 = vmul.f32 0.03125, %v1055_v60  ;;  %v1444_v57 = vmul.f32 %v8692_v50, %v1374_v32 }
 0x181   : > { %v7262_v10 = vpop.eup %7261  ;;  %7269 = vrsqrt.f32 %v1251_v31  ;;  %6906 = vmatprep.mubr.msk.f32.mxu0 %vm11651_vm1, %v1513_v35 }
 0x182   : > { %v1252_v40 = vadd.f32 1e-05, %v1188_v1  ;;  %v1253_v7 = vadd.f32 1e-05, %v1189_v47  ;;  %v1514_v23 = vadd.f32 %v8698_v14, %v1444_v57  ;;  %v1375_v24 = vmul.f32 %v7262_v10, %v11712_v15 }
 0x183   : > { %v1058_v33 = vpop.xlane.xlu1 %1057  ;;  %v1061_v41 = vpop.xlane.xlu0 %1060 }
 0x184   : > { %7271 = vrsqrt.f32 %v1252_v40  ;;  %v1190_v54 = vmul.f32 0.03125, %v1058_v33  ;;  %v1191_v34 = vmul.f32 0.03125, %v1061_v41  ;;  %6907 = vmatmul.mubr.msk.f32.gmra.mxu0 %vm11651_vm1, %v1514_v23  ;;  %v1445_v36 = vmul.f32 %v8692_v50, %v1375_v24 }
 0x185   : > { %v7264_v16 = vpop.eup %7263  ;;  %7273 = vrsqrt.f32 %v1253_v7 }
 0x186   : > { %v1254_v9 = vadd.f32 1e-05, %v1190_v54  ;;  %v1255_v38 = vadd.f32 1e-05, %v1191_v34  ;;  %v1515_v12 = vadd.f32 %v8698_v14, %v1445_v36  ;;  %v1376_v26 = vmul.f32 %v7264_v16, %v11713_v19  ;;  %v11714_v34 = vld [vmem:[#allocation22_spill] sm:$0xff] }
 0x187   : > { %v1064_v30 = vpop.xlane.xlu1 %1063  ;;  %v1067_v31 = vpop.xlane.xlu0 %1066 }
 0x188   : > { %7275 = vrsqrt.f32 %v1254_v9  ;;  %v1192_v11 = vmul.f32 0.03125, %v1064_v30  ;;  %v1193_v4 = vmul.f32 0.03125, %v1067_v31  ;;  %6909 = vmatprep.mubr.msk.f32.mxu0 %vm11651_vm1, %v1515_v12  ;;  %v1446_v32 = vmul.f32 %v8692_v50, %v1376_v26 }
 0x189   : > { %v7266_v62 = vpop.eup %7265  ;;  %7277 = vrsqrt.f32 %v1255_v38 }
 0x18a   : > { %v1256_v60 = vadd.f32 1e-05, %v1192_v11  ;;  %v1257_v35 = vadd.f32 1e-05, %v1193_v4  ;;  %v1516_v1 = vadd.f32 %v8698_v14, %v1446_v32  ;;  %v1377_v47 = vmul.f32 %v7266_v62, %v8485_v27 }
 0x18b   : > { %v1070_v57 = vpop.xlane.xlu1 %1069  ;;  %v1073_v10 = vpop.xlane.xlu0 %1072 }
 0x18c   : > { %7279 = vrsqrt.f32 %v1256_v60  ;;  %v1194_v40 = vmul.f32 0.03125, %v1070_v57  ;;  %v1195_v7 = vmul.f32 0.03125, %v1073_v10  ;;  %6910 = vmatmul.mubr.msk.f32.gmra.mxu0 %vm11651_vm1, %v1516_v1  ;;  %v1447_v23 = vmul.f32 %v8692_v50, %v1377_v47 }
 0x18d   : > { %v7268_v15 = vpop.eup %7267  ;;  %7281 = vrsqrt.f32 %v1257_v35 }
 0x18e   : > { %v7270_v24 = vpop.eup %7269  ;;  %v1258_v33 = vadd.f32 1e-05, %v1194_v40  ;;  %v1259_v41 = vadd.f32 1e-05, %v1195_v7  ;;  %v1517_v54 = vadd.f32 %v8698_v14, %v1447_v23  ;;  %v1378_v36 = vmul.f32 %v7268_v15, %v11714_v34 }
 0x18f   : > { %v1076_v16 = vpop.xlane.xlu1 %1075  ;;  %v1079_v27 = vpop.xlane.xlu0 %1078  ;;  %v1379_v9 = vmul.f32 %v7270_v24, %v8499_v22 }
 0x190   : > { %7283 = vrsqrt.f32 %v1258_v33  ;;  %v1196_v38 = vmul.f32 0.03125, %v1076_v16  ;;  %v1197_v12 = vmul.f32 0.03125, %v1079_v27  ;;  %6912 = vmatprep.mubr.msk.f32.mxu0 %vm11651_vm1, %v1517_v54  ;;  %v1448_v19 = vmul.f32 %v8692_v50, %v1378_v36 }
 0x191   : > { %v7272_v26 = vpop.eup %7271  ;;  %7285 = vrsqrt.f32 %v1259_v41  ;;  %v1449_v30 = vmul.f32 %v8692_v50, %v1379_v9 }
 0x192   : > { %v7274_v31 = vpop.eup %7273  ;;  %v1260_v11 = vadd.f32 1e-05, %v1196_v38  ;;  %v1261_v4 = vadd.f32 1e-05, %v1197_v12  ;;  %v1518_v32 = vadd.f32 %v8698_v14, %v1448_v19  ;;  %v1380_v62 = vmul.f32 %v7272_v26, %v8507_v51 }
 0x193   : > { %v1082_v60 = vpop.xlane.xlu1 %1081  ;;  %v1085_v22 = vpop.xlane.xlu0 %1084  ;;  %v1519_v35 = vadd.f32 %v8698_v14, %v1449_v30  ;;  %v1381_v1 = vmul.f32 %v7274_v31, %v8515_v0 }
 0x194   : > { %7287 = vrsqrt.f32 %v1260_v11  ;;  %v1198_v47 = vmul.f32 0.03125, %v1082_v60  ;;  %v1199_v57 = vmul.f32 0.03125, %v1085_v22  ;;  %6913 = vmatmul.mubr.msk.f32.gmra.mxu0 %vm11651_vm1, %v1518_v32  ;;  %v1450_v10 = vmul.f32 %v8692_v50, %v1380_v62 }
 0x195   : > { %v7276_v40 = vpop.eup %7275  ;;  %7289 = vrsqrt.f32 %v1261_v4  ;;  %6915 = vmatprep.mubr.msk.f32.mxu0 %vm11651_vm1, %v1519_v35  ;;  %v1451_v7 = vmul.f32 %v8692_v50, %v1381_v1 }
 0x196   : > { %v7278_v51 = vpop.eup %7277  ;;  %v1262_v23 = vadd.f32 1e-05, %v1198_v47  ;;  %v1263_v15 = vadd.f32 1e-05, %v1199_v57  ;;  %v1520_v24 = vadd.f32 %v8698_v14, %v1450_v10  ;;  %v1382_v0 = vmul.f32 %v7276_v40, %v8520_v55 }
 0x197   : > { %v1088_v33 = vpop.xlane.xlu1 %1087  ;;  %v1091_v41 = vpop.xlane.xlu0 %1090  ;;  %v1521_v54 = vadd.f32 %v8698_v14, %v1451_v7  ;;  %v1383_v34 = vmul.f32 %v7278_v51, %v8527_v39 }
 0x198   : > { %7291 = vrsqrt.f32 %v1262_v23  ;;  %v1200_v36 = vmul.f32 0.03125, %v1088_v33  ;;  %v1201_v16 = vmul.f32 0.03125, %v1091_v41  ;;  %6916 = vmatmul.mubr.msk.f32.gmra.mxu0 %vm11651_vm1, %v1520_v24  ;;  %v1452_v27 = vmul.f32 %v8692_v50, %v1382_v0 }
 0x199   : > { %v7280_v9 = vpop.eup %7279  ;;  %7293 = vrsqrt.f32 %v1263_v15  ;;  %6918 = vmatprep.mubr.msk.f32.mxu0 %vm11651_vm1, %v1521_v54  ;;  %v1453_v38 = vmul.f32 %v8692_v50, %v1383_v34 }
 0x19a   : > { %v7282_v55 = vpop.eup %7281  ;;  %v1264_v12 = vadd.f32 1e-05, %v1200_v36  ;;  %v1265_v19 = vadd.f32 1e-05, %v1201_v16  ;;  %v1522_v26 = vadd.f32 %v8698_v14, %v1452_v27  ;;  %v1384_v39 = vmul.f32 %v7280_v9, %v8532_v59 }
 0x19b   : > { %v1094_v30 = vpop.xlane.xlu1 %1093  ;;  %v1097_v31 = vpop.xlane.xlu0 %1096  ;;  %v1523_v11 = vadd.f32 %v8698_v14, %v1453_v38  ;;  %v1385_v4 = vmul.f32 %v7282_v55, %v8539_v25 }
 0x19c   : > { %7295 = vrsqrt.f32 %v1264_v12  ;;  %v1202_v32 = vmul.f32 0.03125, %v1094_v30  ;;  %v1203_v62 = vmul.f32 0.03125, %v1097_v31  ;;  %6919 = vmatmul.mubr.msk.f32.gmra.mxu0 %vm11651_vm1, %v1522_v26  ;;  %v1454_v60 = vmul.f32 %v8692_v50, %v1384_v39 }
 0x19d   : > { %v7284_v22 = vpop.eup %7283  ;;  %7297 = vrsqrt.f32 %v1265_v19  ;;  %6921 = vmatprep.mubr.msk.f32.mxu0 %vm11651_vm1, %v1523_v11  ;;  %v1455_v35 = vmul.f32 %v8692_v50, %v1385_v4 }
 0x19e   : > { %v7286_v59 = vpop.eup %7285  ;;  %v1266_v1 = vadd.f32 1e-05, %v1202_v32  ;;  %v1267_v47 = vadd.f32 1e-05, %v1203_v62  ;;  %v1524_v57 = vadd.f32 %v8698_v14, %v1454_v60  ;;  %v1386_v25 = vmul.f32 %v7284_v22, %v8544_v63 }
 0x19f   : > { %v1100_v10 = vpop.xlane.xlu1 %1099  ;;  %v1103_v40 = vpop.xlane.xlu0 %1102  ;;  %v1525_v7 = vadd.f32 %v8698_v14, %v1455_v35  ;;  %v1387_v51 = vmul.f32 %v7286_v59, %v8551_v43 }
 0x1a0   : > { %7299 = vrsqrt.f32 %v1266_v1  ;;  %v1204_v23 = vmul.f32 0.03125, %v1100_v10  ;;  %v1205_v15 = vmul.f32 0.03125, %v1103_v40  ;;  %6922 = vmatmul.mubr.msk.f32.gmra.mxu0 %vm11651_vm1, %v1524_v57  ;;  %v1456_v24 = vmul.f32 %v8692_v50, %v1386_v25 }
 0x1a1   : > { %v7288_v0 = vpop.eup %7287  ;;  %7301 = vrsqrt.f32 %v1267_v47  ;;  %6924 = vmatprep.mubr.msk.f32.mxu0 %vm11651_vm1, %v1525_v7  ;;  %v1457_v33 = vmul.f32 %v8692_v50, %v1387_v51 }
 0x1a2   : > { %v7290_v63 = vpop.eup %7289  ;;  %v1268_v41 = vadd.f32 1e-05, %v1204_v23  ;;  %v1269_v54 = vadd.f32 1e-05, %v1205_v15  ;;  %v1526_v34 = vadd.f32 %v8698_v14, %v1456_v24  ;;  %v1388_v43 = vmul.f32 %v7288_v0, %v8556_v6 }
 0x1a3   : > { %v1106_v36 = vpop.xlane.xlu1 %1105  ;;  %v1109_v16 = vpop.xlane.xlu0 %1108  ;;  %v1527_v27 = vadd.f32 %v8698_v14, %v1457_v33  ;;  %v1389_v9 = vmul.f32 %v7290_v63, %v8563_v3 }
 0x1a4   : > { %7303 = vrsqrt.f32 %v1268_v41  ;;  %v1206_v38 = vmul.f32 0.03125, %v1106_v36  ;;  %v1207_v55 = vmul.f32 0.03125, %v1109_v16  ;;  %6925 = vmatmul.mubr.msk.f32.gmra.mxu0 %vm11651_vm1, %v1526_v34  ;;  %v1458_v12 = vmul.f32 %v8692_v50, %v1388_v43 }
 0x1a5   : > { %v7292_v19 = vpop.eup %7291  ;;  %7305 = vrsqrt.f32 %v1269_v54  ;;  %6927 = vmatprep.mubr.msk.f32.mxu0 %vm11651_vm1, %v1527_v27  ;;  %v1459_v26 = vmul.f32 %v8692_v50, %v1389_v9 }
 0x1a6   : > { %v7294_v6 = vpop.eup %7293  ;;  %v1270_v39 = vadd.f32 1e-05, %v1206_v38  ;;  %v1271_v30 = vadd.f32 1e-05, %v1207_v55  ;;  %v1528_v31 = vadd.f32 %v8698_v14, %v1458_v12  ;;  %v1390_v3 = vmul.f32 %v7292_v19, %v8568_v13 }
 0x1a7   : > { %v1112_v11 = vpop.xlane.xlu1 %1111  ;;  %v1115_v4 = vpop.xlane.xlu0 %1114  ;;  %v1529_v32 = vadd.f32 %v8698_v14, %v1459_v26  ;;  %v1391_v62 = vmul.f32 %v7294_v6, %v8575_v17 }
 0x1a8   : > { %7307 = vrsqrt.f32 %v1270_v39  ;;  %v1208_v60 = vmul.f32 0.03125, %v1112_v11  ;;  %v1209_v22 = vmul.f32 0.03125, %v1115_v4  ;;  %6928 = vmatmul.mubr.msk.f32.gmra.mxu0 %vm11651_vm1, %v1528_v31  ;;  %v1460_v35 = vmul.f32 %v8692_v50, %v1390_v3 }
 0x1a9   : > { %v7296_v59 = vpop.eup %7295  ;;  %7309 = vrsqrt.f32 %v1271_v30  ;;  %6930 = vmatprep.mubr.msk.f32.mxu0 %vm11651_vm1, %v1529_v32  ;;  %v1461_v1 = vmul.f32 %v8692_v50, %v1391_v62 }
 0x1aa   : > { %v7298_v13 = vpop.eup %7297  ;;  %v1272_v47 = vadd.f32 1e-05, %v1208_v60  ;;  %v1273_v57 = vadd.f32 1e-05, %v1209_v22  ;;  %v1530_v25 = vadd.f32 %v8698_v14, %v1460_v35  ;;  %v1392_v17 = vmul.f32 %v7296_v59, %v8580_v21 }
 0x1ab   : > { %v1118_v10 = vpop.xlane.xlu1 %1117  ;;  %v1121_v40 = vpop.xlane.xlu0 %1120  ;;  %v1531_v7 = vadd.f32 %v8698_v14, %v1461_v1  ;;  %v1393_v51 = vmul.f32 %v7298_v13, %v8587_v28 }
 0x1ac   : > { %7311 = vrsqrt.f32 %v1272_v47  ;;  %v1210_v23 = vmul.f32 0.03125, %v1118_v10  ;;  %v1211_v15 = vmul.f32 0.03125, %v1121_v40  ;;  %6931 = vmatmul.mubr.msk.f32.gmra.mxu0 %vm11651_vm1, %v1530_v25  ;;  %v1462_v24 = vmul.f32 %v8692_v50, %v1392_v17 }
 0x1ad   : > { %v7300_v0 = vpop.eup %7299  ;;  %7313 = vrsqrt.f32 %v1273_v57  ;;  %6933 = vmatprep.mubr.msk.f32.mxu0 %vm11651_vm1, %v1531_v7  ;;  %v1463_v33 = vmul.f32 %v8692_v50, %v1393_v51 }
 0x1ae   : > { %v7302_v21 = vpop.eup %7301  ;;  %v1274_v63 = vadd.f32 1e-05, %v1210_v23  ;;  %v1275_v41 = vadd.f32 1e-05, %v1211_v15  ;;  %v1532_v54 = vadd.f32 %v8698_v14, %v1462_v24  ;;  %v1394_v28 = vmul.f32 %v7300_v0, %v8592_v29 }
 0x1af   : > { %v1124_v34 = vpop.xlane.xlu1 %1123  ;;  %v1127_v43 = vpop.xlane.xlu0 %1126  ;;  %v1533_v36 = vadd.f32 %v8698_v14, %v1463_v33  ;;  %v1395_v16 = vmul.f32 %v7302_v21, %v8599_v42 }
 0x1b0   : > { %7315 = vrsqrt.f32 %v1274_v63  ;;  %v1212_v27 = vmul.f32 0.03125, %v1124_v34  ;;  %v1213_v9 = vmul.f32 0.03125, %v1127_v43  ;;  %6934 = vmatmul.mubr.msk.f32.gmra.mxu0 %vm11651_vm1, %v1532_v54  ;;  %v1464_v38 = vmul.f32 %v8692_v50, %v1394_v28 }
 0x1b1   : > { %v7304_v55 = vpop.eup %7303  ;;  %7317 = vrsqrt.f32 %v1275_v41  ;;  %6936 = vmatprep.mubr.msk.f32.mxu0 %vm11651_vm1, %v1533_v36  ;;  %v1465_v12 = vmul.f32 %v8692_v50, %v1395_v16  ;;  %v11715_v36 = vld [vmem:[#allocation3_spill] sm:$0xff] }
 0x1b2   : > { %v7306_v29 = vpop.eup %7305  ;;  %v1276_v19 = vadd.f32 1e-05, %v1212_v27  ;;  %v1277_v26 = vadd.f32 1e-05, %v1213_v9  ;;  %v1534_v6 = vadd.f32 %v8698_v14, %v1464_v38  ;;  %v1396_v42 = vmul.f32 %v7304_v55, %v8604_v37  ;;  %v11716_v27 = vld [vmem:[#allocation4_spill] sm:$0xff] }
 0x1b3   : > { %v1130_v39 = vpop.xlane.xlu1 %1129  ;;  %v1133_v30 = vpop.xlane.xlu0 %1132  ;;  %v1535_v31 = vadd.f32 %v8698_v14, %v1465_v12  ;;  %v1397_v3 = vmul.f32 %v7306_v29, %v8611_v44 }
 0x1b4   : > { %7319 = vrsqrt.f32 %v1276_v19  ;;  %v1214_v11 = vmul.f32 0.03125, %v1130_v39  ;;  %v1215_v4 = vmul.f32 0.03125, %v1133_v30  ;;  %6937 = vmatmul.mubr.msk.f32.gmra.mxu0 %vm11651_vm1, %v1534_v6  ;;  %v1466_v32 = vmul.f32 %v8692_v50, %v1396_v42  ;;  %v11717_v19 = vld [vmem:[#allocation5_spill] sm:$0xff]  ;;  %v11718_v42 = vld [vmem:[#allocation6_spill] sm:$0xff] }
 0x1b5   : > { %v7308_v62 = vpop.eup %7307  ;;  %7321 = vrsqrt.f32 %v1277_v26  ;;  %6939 = vmatprep.mubr.msk.f32.mxu0 %vm11651_vm1, %v1535_v31  ;;  %v1467_v60 = vmul.f32 %v8692_v50, %v1397_v3  ;;  %v8965_v3 = vld [vmem:[%s11571_s2] ss:$0 sm:$0xff] }
 0x1b6   : > { %v7310_v37 = vpop.eup %7309  ;;  %v1278_v22 = vadd.f32 1e-05, %v1214_v11  ;;  %v1279_v35 = vadd.f32 1e-05, %v1215_v4  ;;  %v1536_v59 = vadd.f32 %v8698_v14, %v1466_v32  ;;  %v1398_v44 = vmul.f32 %v7308_v62, %v8616_v45  ;;  %v11719_v32 = vld [vmem:[#allocation7_spill] sm:$0xff] }
 0x1b7   : > { %v1136_v1 = vpop.xlane.xlu1 %1135  ;;  %v1537_v13 = vadd.f32 %v8698_v14, %v1467_v60  ;;  %v1399_v47 = vmul.f32 %v7310_v37, %v8623_v52  ;;  %v8977_v37 = vld [vmem:[%s11572_s3] ss:$0 sm:$0xff] }
 0x1b8   : > { %7323 = vrsqrt.f32 %v1278_v22  ;;  %v1216_v57 = vmul.f32 0.03125, %v1136_v1  ;;  %6940 = vmatmul.mubr.msk.f32.gmra.mxu0 %vm11651_vm1, %v1536_v59  ;;  %v1468_v25 = vmul.f32 %v8692_v50, %v1398_v44 }
 0x1b9   : > { %v7312_v17 = vpop.eup %7311  ;;  %7325 = vrsqrt.f32 %v1279_v35  ;;  %6942 = vmatprep.mubr.msk.f32.mxu0 %vm11651_vm1, %v1537_v13  ;;  %v1469_v10 = vmul.f32 %v8692_v50, %v1399_v47 }
 0x1ba   : > { %v7314_v40 = vpop.eup %7313  ;;  %v1280_v7 = vadd.f32 1e-05, %v1216_v57  ;;  %v1538_v45 = vadd.f32 %v8698_v14, %v1468_v25  ;;  %v1400_v51 = vmul.f32 %v7312_v17, %v8628_v53 }
 0x1bb   : > { %v1539_v52 = vadd.f32 %v8698_v14, %v1469_v10  ;;  %v1401_v23 = vmul.f32 %v7314_v40, %v8635_v49 }
 0x1bc   : > { %7327 = vrsqrt.f32 %v1280_v7  ;;  %6943 = vmatmul.mubr.msk.f32.gmra.mxu0 %vm11651_vm1, %v1538_v45  ;;  %v1470_v15 = vmul.f32 %v8692_v50, %v1400_v51 }
 0x1bd   : > { %v7316_v24 = vpop.eup %7315  ;;  %6945 = vmatprep.mubr.msk.f32.mxu0 %vm11651_vm1, %v1539_v52  ;;  %v1471_v0 = vmul.f32 %v8692_v50, %v1401_v23 }
 0x1be   : > { %v7318_v33 = vpop.eup %7317  ;;  %v1540_v21 = vadd.f32 %v8698_v14, %v1470_v15  ;;  %v1402_v63 = vmul.f32 %v7316_v24, %v8640_v61 }
 0x1bf   : > { %v1541_v53 = vadd.f32 %v8698_v14, %v1471_v0  ;;  %v1403_v41 = vmul.f32 %v7318_v33, %v8647_v46 }
 0x1c0   : > { %6946 = vmatmul.mubr.msk.f32.gmra.mxu0 %vm11651_vm1, %v1540_v21  ;;  %v1472_v49 = vmul.f32 %v8692_v50, %v1402_v63 }
 0x1c1   : > { %v7320_v54 = vpop.eup %7319  ;;  %6948 = vmatprep.mubr.msk.f32.mxu1 %vm11651_vm1, %v1541_v53  ;;  %v1473_v28 = vmul.f32 %v8692_v50, %v1403_v41 }
 0x1c2   : > { %v7322_v34 = vpop.eup %7321  ;;  %v1542_v43 = vadd.f32 %v8698_v14, %v1472_v49  ;;  %v1404_v16 = vmul.f32 %v7320_v54, %v11715_v36 }
 0x1c3   : > { %v1543_v61 = vadd.f32 %v8698_v14, %v1473_v28  ;;  %v1405_v9 = vmul.f32 %v7322_v34, %v11716_v27 }
 0x1c4   : > { %6949 = vmatmul.mubr.msk.f32.vlgmr.msra.gmra.mxu1 %vm11651_vm1, %v1542_v43  ;;  %v1474_v46 = vmul.f32 %v8692_v50, %v1404_v16 }
 0x1c5   : > { %v7324_v38 = vpop.eup %7323  ;;  %6951 = vmatprep.mubr.msk.f32.mxu1 %vm11651_vm1, %v1543_v61  ;;  %v1475_v55 = vmul.f32 %v8692_v50, %v1405_v9 }
 0x1c6   : > { %v7326_v12 = vpop.eup %7325  ;;  %v1544_v29 = vadd.f32 %v8698_v14, %v1474_v46  ;;  %v1406_v26 = vmul.f32 %v7324_v38, %v11717_v19 }
 0x1c7   : > { %v1545_v6 = vadd.f32 %v8698_v14, %v1475_v55  ;;  %v1407_v39 = vmul.f32 %v7326_v12, %v11718_v42 }
 0x1c8   : > { %6952 = vmatmul.mubr.msk.f32.gmra.mxu1 %vm11651_vm1, %v1544_v29  ;;  %v1476_v30 = vmul.f32 %v8692_v50, %v1406_v26  ;;  %v9002_v26 = vld [vmem:[%s11574_s5] ss:$0 sm:$0xff] }
 0x1c9   : > { %v7328_v31 = vpop.eup %7327  ;;  %6954 = vmatprep.mubr.msk.f32.mxu1 %vm11651_vm1, %v1545_v6  ;;  %v1477_v11 = vmul.f32 %v8965_v3, %v1407_v39 }
 0x1ca   : > { %v1546_v4 = vadd.f32 %v8698_v14, %v1476_v30  ;;  %v1408_v62 = vmul.f32 %v7328_v31, %v11719_v32 }
 0x1cb   : > { %v1547_v60 = vadd.f32 %v8698_v14, %v1477_v11 }
 0x1cc   : > { %6955 = vmatmul.mubr.msk.f32.gmra.mxu1 %vm11651_vm1, %v1546_v4  ;;  %v1478_v50 = vmul.f32 %v8965_v3, %v1408_v62 }
 0x1cd   : > { %6957 = vmatprep.mubr.msk.f32.mxu1 %vm11651_vm1, %v1547_v60 }
 0x1ce   : > { %v1548_v22 = vadd.f32 %v8977_v37, %v1478_v50 }
 0x1d0   : > { %6958 = vmatmul.mubr.msk.f32.gmra.mxu1 %vm11651_vm1, %v1548_v22 }
 0x1ec   : > { %v1139_v35 = vpop.xlane.xlu0 %1138 }
 0x1ed   : > { %v1217_v59 = vmul.f32 0.03125, %v1139_v35 }
 0x1ef   : > { %v1281_v44 = vadd.f32 1e-05, %v1217_v59 }
 0x1f0   : > { %v1142_v1 = vpop.xlane.xlu1 %1141 }
 0x1f1   : > { %7329 = vrsqrt.f32 %v1281_v44  ;;  %v1218_v14 = vmul.f32 0.03125, %v1142_v1 }
 0x1f3   : > { %v1282_v13 = vadd.f32 1e-05, %v1218_v14 }
 0x1f4   : > { %v1145_v47 = vpop.xlane.xlu0 %1144 }
 0x1f5   : > { %7331 = vrsqrt.f32 %v1282_v13  ;;  %v1219_v57 = vmul.f32 0.03125, %v1145_v47 }
 0x1f7   : > { %v1283_v25 = vadd.f32 1e-05, %v1219_v57 }
 0x1f8   : > { %v1148_v17 = vpop.xlane.xlu1 %1147 }
 0x1f9   : > { %7333 = vrsqrt.f32 %v1283_v25  ;;  %v1220_v10 = vmul.f32 0.03125, %v1148_v17 }
 0x1fb   : > { %v1284_v40 = vadd.f32 1e-05, %v1220_v10 }
 0x1fc   : > { %v1151_v7 = vpop.xlane.xlu0 %1150 }
 0x1fd   : > { %7335 = vrsqrt.f32 %v1284_v40  ;;  %v1221_v45 = vmul.f32 0.03125, %v1151_v7 }
 0x1fe   : > { %v7330_v51 = vpop.eup %7329 }
 0x1ff   : > { %v1285_v52 = vadd.f32 1e-05, %v1221_v45  ;;  %v1409_v23 = vmul.f32 %v7330_v51, %v8732_v48 }
 0x200   : > { %v1154_v15 = vpop.xlane.xlu1 %1153 }
 0x201   : > { %7337 = vrsqrt.f32 %v1285_v52  ;;  %v1222_v24 = vmul.f32 0.03125, %v1154_v15  ;;  %v1479_v0 = vmul.f32 %v8965_v3, %v1409_v23 }
 0x202   : > { %v7332_v33 = vpop.eup %7331 }
 0x203   : > { %v1286_v21 = vadd.f32 1e-05, %v1222_v24  ;;  %v1549_v63 = vadd.f32 %v8977_v37, %v1479_v0  ;;  %v1410_v53 = vmul.f32 %v7332_v33, %v8745_v58 }
 0x204   : > { %v1157_v41 = vpop.xlane.xlu0 %1156 }
 0x205   : > { %7339 = vrsqrt.f32 %v1286_v21  ;;  %v1223_v49 = vmul.f32 0.03125, %v1157_v41  ;;  %6960 = vmatprep.mubr.msk.f32.mxu1 %vm11651_vm1, %v1549_v63  ;;  %v1480_v54 = vmul.f32 %v8965_v3, %v1410_v53 }
 0x206   : > { %v7334_v28 = vpop.eup %7333 }
 0x207   : > { %v1287_v48 = vadd.f32 1e-05, %v1223_v49  ;;  %v1550_v34 = vadd.f32 %v8977_v37, %v1480_v54  ;;  %v1411_v43 = vmul.f32 %v7334_v28, %v8758_v2 }
 0x208   : > { %v1160_v36 = vpop.xlane.xlu1 %1159 }
 0x209   : > { %7341 = vrsqrt.f32 %v1287_v48  ;;  %v1224_v16 = vmul.f32 0.03125, %v1160_v36  ;;  %6961 = vmatmul.mubr.msk.f32.gmra.mxu1 %vm11651_vm1, %v1550_v34  ;;  %v1481_v58 = vmul.f32 %v8965_v3, %v1411_v43 }
 0x20a   : > { %v7336_v61 = vpop.eup %7335 }
 0x20b   : > { %v1288_v27 = vadd.f32 1e-05, %v1224_v16  ;;  %v1551_v9 = vadd.f32 %v8977_v37, %v1481_v58  ;;  %v1412_v46 = vmul.f32 %v7336_v61, %v8772_v20 }
 0x20d   : > { %7343 = vrsqrt.f32 %v1288_v27  ;;  %6963 = vmatprep.mubr.msk.f32.mxu1 %vm11651_vm1, %v1551_v9  ;;  %v1482_v38 = vmul.f32 %v8965_v3, %v1412_v46 }
 0x20e   : > { %v7338_v55 = vpop.eup %7337 }
 0x20f   : > { %v1552_v2 = vadd.f32 %v8977_v37, %v1482_v38  ;;  %v1413_v12 = vmul.f32 %v7338_v55, %v8786_v18 }
 0x211   : > { %6964 = vmatmul.mubr.msk.f32.gmra.mxu1 %vm11651_vm1, %v1552_v2  ;;  %v1483_v29 = vmul.f32 %v8965_v3, %v1413_v12 }
 0x212   : > { %v7340_v19 = vpop.eup %7339 }
 0x213   : > { %v1553_v20 = vadd.f32 %v8977_v37, %v1483_v29  ;;  %v1414_v6 = vmul.f32 %v7340_v19, %v8798_v8 }
 0x214   : > { %v6878_v42 = vpop.f32.mrf.mxu0 }
 0x215   : > { %v1832_v39 = vadd.f32 %v6878_v42, %v9002_v26  ;;  %6966 = vmatprep.mubr.msk.f32.mxu1 %vm11651_vm1, %v1553_v20  ;;  %v1484_v18 = vmul.f32 %v8965_v3, %v1414_v6 }
 0x216   : > { %v7342_v30 = vpop.eup %7341  ;;  %v1826_v31 = vpop.f32.mrf.mxu0 }
 0x217   : > { %v2210_v11 = vmin.f32 %v1832_v39, 0.0  ;;  %v1827_v4 = vadd.f32 %v9002_v26, %v1826_v31  ;;  %v1554_v32 = vadd.f32 %v8977_v37, %v1484_v18  ;;  %v1415_v62 = vmul.f32 %v7342_v30, %v8809_v56 }
 0x218   : > { %vm2146_vm2 = vcmp.gt.f32.partialorder %v1832_v39, 0.0 }
 0x219   : > { %v2275_v60 = vmul.f32 1.442695, %v2210_v11  ;;  %v2209_v50 = vmin.f32 %v1827_v4, 0.0  ;;  %6967 = vmatmul.mubr.msk.f32.gmra.mxu1 %vm11651_vm1, %v1554_v32  ;;  %v1485_v8 = vmul.f32 %v8965_v3, %v1415_v62  ;;  %vm2145_vm3 = vcmp.gt.f32.partialorder %v1827_v4, 0.0 }
 0x21a   : > { %v7344_v22 = vpop.eup %7343 }
 0x21b   : > { %7345 = vpow2.f32 %v2275_v60  ;;  %v2273_v35 = vmul.f32 1.442695, %v2209_v50  ;;  %v1555_v59 = vadd.f32 %v8977_v37, %v1485_v8  ;;  %v1416_v44 = vmul.f32 %v7344_v22, %v8819_v5 }
 0x21d   : > { %7347 = vpow2.f32 %v2273_v35  ;;  %6969 = vmatprep.mubr.msk.f32.mxu1 %vm11651_vm1, %v1555_v59  ;;  %v1486_v1 = vmul.f32 %v8965_v3, %v1416_v44 }
 0x21f   : > { %v1556_v56 = vadd.f32 %v8977_v37, %v1486_v1  ;;  %v6881_v37 = vpop.f32.mrf.mxu0 }
 0x220   : > { %v9029_v51 = vadd.f32 %v6881_v37, %v9002_v26 }
 0x221   : > { %6970 = vmatmul.mubr.msk.f32.gmra.mxu1 %vm11651_vm1, %v1556_v56  ;;  %v1836_v10 = vpop.f32.mrf.mxu0 }
 0x222   : > { %v9032_v52 = vadd.f32 %v9002_v26, %v1836_v10  ;;  %v2212_v15 = vmin.f32 %v9029_v51, 0.0  ;;  %vm2148_vm6 = vcmp.gt.f32.partialorder %v9029_v51, 0.0 }
 0x223   : > { %v6884_v40 = vpop.f32.mrf.mxu0 }
 0x224   : > { %v2211_v24 = vmin.f32 %v9032_v52, 0.0  ;;  %v9037_v33 = vadd.f32 %v6884_v40, %v9002_v26  ;;  %v2279_v63 = vmul.f32 1.442695, %v2212_v15  ;;  %vm2147_vm7 = vcmp.gt.f32.partialorder %v9032_v52, 0.0 }
 0x225   : > { %v1846_v7 = vpop.f32.mrf.mxu0 }
 0x226   : > { %v2277_v41 = vmul.f32 1.442695, %v2211_v24  ;;  %v9043_v49 = vadd.f32 %v9002_v26, %v1846_v7  ;;  %v2214_v43 = vmin.f32 %v9037_v33, 0.0  ;;  %7349 = vpow2.f32 %v2279_v63 }
 0x227   : > { %v6887_v45 = vpop.f32.mrf.mxu0  ;;  %vm2150_vm10 = vcmp.gt.f32.partialorder %v9037_v33, 0.0 }
 0x228   : > { %v7346_v14 = vpop.eup %7345  ;;  %7351 = vpow2.f32 %v2277_v41  ;;  %v2213_v27 = vmin.f32 %v9043_v49, 0.0  ;;  %v2283_v12 = vmul.f32 1.442695, %v2214_v43  ;;  %v9062_v29 = vadd.f32 %v6887_v45, %v9002_v26 }
 0x229   : > { %v6287_v13 = vadd.f32 -1.0, %v7346_v14  ;;  %v1856_v23 = vpop.f32.mrf.mxu0  ;;  %vm2149_vm11 = vcmp.gt.f32.partialorder %v9043_v49, 0.0 }
 0x22a   : > { %v7348_v47 = vpop.eup %7347  ;;  %v9069_v18 = vadd.f32 %v9002_v26, %v1856_v23  ;;  %v2216_v62 = vmin.f32 %v9062_v29, 0.0  ;;  %vm2152_vm14 = vcmp.gt.f32.partialorder %v9062_v29, 0.0 }
 0x22b   : > { %v9020_v57 = vsel %vm2146_vm2, %v1832_v39, %v6287_v13  ;;  %v6286_v25 = vadd.f32 -1.0, %v7348_v47  ;;  %v6890_v0 = vpop.f32.mrf.mxu0  ;;  %v2281_v39 = vmul.f32 1.442695, %v2213_v27 }
 0x22c   : > { %v2534_v5 = vsel %vm11651_vm1, %v9020_v57, 0.0  ;;  %v2215_v35 = vmin.f32 %v9069_v18, 0.0  ;;  %v9089_v14 = vadd.f32 %v6890_v0, %v9002_v26  ;;  %v2287_v13 = vmul.f32 1.442695, %v2216_v62 }
 0x22d   : > { %v9024_v17 = vsel %vm2145_vm3, %v1827_v4, %v6286_v25  ;;  %2535 = vadd.xlane.f32.xlu1 %v2534_v5  ;;  %v1866_v54 = vpop.f32.mrf.mxu0  ;;  %vm2151_vm15 = vcmp.gt.f32.partialorder %v9069_v18, 0.0 }
 0x22e   : > { %v2531_v3 = vsel %vm11651_vm1, %v9024_v17, 0.0  ;;  %v2285_v5 = vmul.f32 1.442695, %v2215_v35  ;;  %v2218_v45 = vmin.f32 %v9089_v14, 0.0  ;;  %vm2154_vm3 = vcmp.gt.f32.partialorder %v9089_v14, 0.0 }
 0x22f   : > { %2532 = vadd.xlane.f32.xlu0 %v2531_v3  ;;  %v9055_v9 = vpop.f32.mrf.mxu0  ;;  %v9093_v3 = vadd.f32 %v9002_v26, %v1866_v54 }
 0x231   : > { %v9071_v30 = vpop.f32.mrf.mxu0 }
 0x233   : > { %v9083_v59 = vpop.f32.mrf.mxu0  ;;  %v7350_v25 = vpop.eup %7349 }
 0x234   : > { %v6289_v24 = vadd.f32 -1.0, %v7350_v25 }
 0x235   : > { %v9095_v37 = vpop.f32.mrf.mxu0  ;;  %v7352_v10 = vpop.eup %7351 }
 0x237   : > { %v9100_v63 = vpop.f32.mrf.mxu0 }
 0x284   : > { %v6950_v21 = vpop.f32.mrf.mxu1 }
 0x285   : > { %v9040_v53 = vadd.f32 %v6950_v21, %v9002_v26  ;;  %v2217_v21 = vmin.f32 %v9093_v3, 0.0 }
 0x286   : > { %v2066_v28 = vpop.f32.mrf.mxu1 }
 0x287   : > { %v2258_v48 = vmin.f32 %v9040_v53, 0.0  ;;  %v9047_v34 = vadd.f32 %v9002_v26, %v2066_v28  ;;  %vm2194_vm4 = vcmp.gt.f32.partialorder %v9040_v53, 0.0 }
 0x288   : > { %v6953_v36 = vpop.f32.mrf.mxu1 }
 0x289   : > { %v2371_v16 = vmul.f32 1.442695, %v2258_v48  ;;  %v2257_v58 = vmin.f32 %v9047_v34, 0.0  ;;  %v9052_v61 = vadd.f32 %v6953_v36, %v9002_v26  ;;  %v6288_v48 = vadd.f32 -1.0, %v7352_v10 }
 0x28a   : > { %v2076_v46 = vpop.f32.mrf.mxu1  ;;  %v2291_v36 = vmul.f32 1.442695, %v2218_v45  ;;  %vm2193_vm5 = vcmp.gt.f32.partialorder %v9047_v34, 0.0 }
 0x28b   : > { %7353 = vpow2.f32 %v2371_v16  ;;  %v2369_v38 = vmul.f32 1.442695, %v2257_v58  ;;  %v2260_v55 = vmin.f32 %v9052_v61, 0.0  ;;  %v9059_v2 = vadd.f32 %v9002_v26, %v2076_v46 }
 0x28c   : > { %v6956_v19 = vpop.f32.mrf.mxu1  ;;  %vm2196_vm8 = vcmp.gt.f32.partialorder %v9052_v61, 0.0 }
 0x28d   : > { %7355 = vpow2.f32 %v2369_v38  ;;  %v2375_v20 = vmul.f32 1.442695, %v2260_v55  ;;  %v2259_v6 = vmin.f32 %v9059_v2, 0.0  ;;  %v9066_v42 = vadd.f32 %v6956_v19, %v9002_v26  ;;  %v9116_v55 = vpop.f32.mrf.mxu0 }
 0x28e   : > { %v2086_v31 = vpop.f32.mrf.mxu1  ;;  %v2289_v19 = vmul.f32 1.442695, %v2217_v21  ;;  %vm2195_vm9 = vcmp.gt.f32.partialorder %v9059_v2, 0.0 }
 0x28f   : > { %7357 = vpow2.f32 %v2375_v20  ;;  %v2373_v11 = vmul.f32 1.442695, %v2259_v6  ;;  %v2262_v4 = vmin.f32 %v9066_v42, 0.0  ;;  %v9075_v32 = vadd.f32 %v9002_v26, %v2086_v31 }
 0x290   : > { %7359 = vpow2.f32 %v2283_v12  ;;  %v6959_v60 = vpop.f32.mrf.mxu1  ;;  %v9122_v20 = vsel %vm2147_vm7, %v9032_v52, %v6288_v48  ;;  %vm2198_vm12 = vcmp.gt.f32.partialorder %v9066_v42, 0.0 }
 0x291   : > { %7361 = vpow2.f32 %v2373_v11  ;;  %v2379_v50 = vmul.f32 1.442695, %v2262_v4  ;;  %v2261_v8 = vmin.f32 %v9075_v32, 0.0  ;;  %v9080_v22 = vadd.f32 %v6959_v60, %v9002_v26  ;;  %v9130_v4 = vpop.f32.mrf.mxu0 }
 0x292   : > { %v2096_v44 = vpop.f32.mrf.mxu1  ;;  %7363 = vpow2.f32 %v2281_v39  ;;  %v2537_v52 = vsel %vm11651_vm1, %v9122_v20, 0.0  ;;  %vm2197_vm13 = vcmp.gt.f32.partialorder %v9075_v32, 0.0 }
 0x293   : > { %v2377_v1 = vmul.f32 1.442695, %v2261_v8  ;;  %v9086_v56 = vadd.f32 %v9002_v26, %v2096_v44  ;;  %7365 = vpow2.f32 %v2379_v50  ;;  %v2264_v47 = vmin.f32 %v9080_v22, 0.0 }
 0x294   : > { %vm2200_vm0 = vcmp.gt.f32.partialorder %v9080_v22, 0.0 }
 0x295   : > { %7367 = vpow2.f32 %v2377_v1  ;;  %v2263_v40 = vmin.f32 %v9086_v56, 0.0  ;;  %v2383_v23 = vmul.f32 1.442695, %v2264_v47  ;;  %v9144_v1 = vpop.f32.mrf.mxu0  ;;  %vm2199_vm2 = vcmp.gt.f32.partialorder %v9086_v56, 0.0 }
 0x296   : > { %7369 = vpow2.f32 %v2287_v13 }
 0x297   : > { %7371 = vpow2.f32 %v2285_v5  ;;  %v2381_v41 = vmul.f32 1.442695, %v2263_v40  ;;  %v9152_v5 = vpop.f32.mrf.mxu0 }
 0x298   : > { %v7354_v7 = vpop.eup %7353  ;;  %7373 = vpow2.f32 %v2383_v23 }
 0x299   : > { %v6335_v15 = vadd.f32 -1.0, %v7354_v7  ;;  %7375 = vpow2.f32 %v2381_v41 }
 0x29a   : > { %v7356_v0 = vpop.eup %7355  ;;  %7377 = vpow2.f32 %v2291_v36 }
 0x29b   : > { %v9104_v54 = vsel %vm2194_vm4, %v9040_v53, %v6335_v15  ;;  %v6334_v28 = vadd.f32 -1.0, %v7356_v0  ;;  %v9114_v53 = vsel %vm2148_vm6, %v9029_v51, %v6289_v24  ;;  %7379 = vpow2.f32 %v2289_v19  ;;  %v9166_v24 = vpop.f32.mrf.mxu0 }
 0x29c   : > { %11720 = vst [vmem:[#allocation8_spill] sm:$0xff] %v9104_v54  ;;  %v7358_v43 = vpop.eup %7357  ;;  %v2678_v16 = vsel %vm11651_vm1, %v9104_v54, 0.0  ;;  %v2540_v51 = vsel %vm11651_vm1, %v9114_v53, 0.0  ;;  %vm2153_vm4 = vcmp.gt.f32.partialorder %v9093_v3, 0.0 }
 0x29d   : > { %v7360_v58 = vpop.eup %7359  ;;  %2679 = vadd.xlane.f32.xlu1 %v2678_v16  ;;  %v9111_v27 = vsel %vm2193_vm5, %v9047_v34, %v6334_v28  ;;  %v6337_v46 = vadd.f32 -1.0, %v7358_v43  ;;  %v9174_v28 = vpop.f32.mrf.mxu0 }
 0x29e   : > { %11721 = vst [vmem:[#allocation9_spill] sm:$0xff] %v9111_v27  ;;  %v7362_v38 = vpop.eup %7361  ;;  %v2675_v12 = vsel %vm11651_vm1, %v9111_v27, 0.0  ;;  %v6291_v31 = vadd.f32 -1.0, %v7360_v58 }
 0x29f   : > { %2676 = vadd.xlane.f32.xlu0 %v2675_v12  ;;  %v6336_v34 = vadd.f32 -1.0, %v7362_v38  ;;  %v7364_v6 = vpop.eup %7363  ;;  %v9128_v39 = vsel %vm2196_vm8, %v9052_v61, %v6337_v46  ;;  %v9188_v46 = vpop.f32.mrf.mxu0 }
 0x2a0   : > { %11722 = vst [vmem:[#allocation17_spill] sm:$0xff] %v9128_v39  ;;  %v7366_v11 = vpop.eup %7365  ;;  %v6290_v60 = vadd.f32 -1.0, %v7364_v6  ;;  %v2684_v61 = vsel %vm11651_vm1, %v9128_v39, 0.0  ;;  %v9142_v8 = vsel %vm2150_vm10, %v9037_v33, %v6291_v31 }
 0x2a1   : > { %2541 = vadd.xlane.f32.xlu1 %v2540_v51  ;;  %v9136_v62 = vsel %vm2195_vm9, %v9059_v2, %v6336_v34  ;;  %v6339_v35 = vadd.f32 -1.0, %v7366_v11  ;;  %v2546_v33 = vsel %vm11651_vm1, %v9142_v8, 0.0  ;;  %v9196_v19 = vpop.f32.mrf.mxu0 }
 0x2a2   : > { %11723 = vst [vmem:[#allocation10_spill] sm:$0xff] %v9136_v62  ;;  %v7368_v50 = vpop.eup %7367  ;;  %v2681_v13 = vsel %vm11651_vm1, %v9136_v62, 0.0  ;;  %v9150_v47 = vsel %vm2149_vm11, %v9043_v49, %v6290_v60  ;;  %v9222_v60 = vadd.f32 %v9055_v9, %v9002_v26 }
 0x2a3   : > { %2538 = vadd.xlane.f32.xlu0 %v2537_v52  ;;  %v7370_v44 = vpop.eup %7369  ;;  %v6338_v25 = vadd.f32 -1.0, %v7368_v50  ;;  %v9158_v10 = vsel %vm2198_vm12, %v9066_v42, %v6339_v35  ;;  %v2543_v45 = vsel %vm11651_vm1, %v9150_v47, 0.0  ;;  %v9210_v51 = vpop.f32.mrf.mxu0 }
 0x2a4   : > { %v7372_v2 = vpop.eup %7371  ;;  %11724 = vst [vmem:[#allocation11_spill] sm:$0xff] %v9158_v10  ;;  %v6293_v40 = vadd.f32 -1.0, %v7370_v44  ;;  %v2690_v0 = vsel %vm11651_vm1, %v9158_v10, 0.0  ;;  %vm2156_vm5 = vcmp.gt.f32.partialorder %v9222_v60, 0.0 }
 0x2a5   : > { %2685 = vadd.xlane.f32.xlu1 %v2684_v61  ;;  %v7374_v7 = vpop.eup %7373  ;;  %v9164_v49 = vsel %vm2197_vm13, %v9075_v32, %v6338_v25  ;;  %v6292_v23 = vadd.f32 -1.0, %v7372_v2  ;;  %v9214_v11 = vpop.f32.mrf.mxu0  ;;  %v2220_v61 = vmin.f32 %v9222_v60, 0.0  ;;  %v9236_v2 = vadd.f32 %v9083_v59, %v9002_v26 }
 0x2a6   : > { %11725 = vst [vmem:[#allocation19_spill] sm:$0xff] %v9164_v49  ;;  %v7376_v15 = vpop.eup %7375  ;;  %v9172_v42 = vsel %vm2152_vm14, %v9062_v29, %v6293_v40  ;;  %v6341_v21 = vadd.f32 -1.0, %v7374_v7  ;;  %v2687_v32 = vsel %vm11651_vm1, %v9164_v49, 0.0 }
 0x2a7   : > { %2682 = vadd.xlane.f32.xlu0 %v2681_v13  ;;  %v7378_v41 = vpop.eup %7377  ;;  %v9180_v48 = vsel %vm2151_vm15, %v9069_v18, %v6292_v23  ;;  %v6340_v43 = vadd.f32 -1.0, %v7376_v15  ;;  %v2552_v16 = vsel %vm11651_vm1, %v9172_v42, 0.0  ;;  %v9218_v52 = vpop.f32.mrf.mxu0  ;;  %v2295_v13 = vmul.f32 1.442695, %v2220_v61 }
 0x2a8   : > { %v7380_v36 = vpop.eup %7379  ;;  %v9186_v29 = vsel %vm2200_vm0, %v9080_v22, %v6341_v21  ;;  %v6295_v58 = vadd.f32 -1.0, %v7378_v41  ;;  %v2549_v38 = vsel %vm11651_vm1, %v9180_v48, 0.0  ;;  %vm2158_vm8 = vcmp.gt.f32.partialorder %v9236_v2, 0.0 }
 0x2a9   : > { %2547 = vadd.xlane.f32.xlu1 %v2546_v33  ;;  %11726 = vst [vmem:[#allocation12_spill] sm:$0xff] %v9186_v29  ;;  %v9194_v18 = vsel %vm2199_vm2, %v9086_v56, %v6340_v43  ;;  %v6294_v12 = vadd.f32 -1.0, %v7380_v36  ;;  %v2696_v34 = vsel %vm11651_vm1, %v9186_v29, 0.0  ;;  %v9228_v50 = vpop.f32.mrf.mxu0  ;;  %v9240_v33 = vadd.f32 %v9002_v26, %v9095_v37 }
 0x2aa   : > { %11727 = vst [vmem:[#allocation13_spill] sm:$0xff] %v9194_v18  ;;  %v9202_v22 = vsel %vm2154_vm3, %v9089_v14, %v6295_v58  ;;  %v2693_v6 = vsel %vm11651_vm1, %v9194_v18, 0.0  ;;  %7381 = vpow2.f32 %v2295_v13  ;;  %v9262_v36 = vadd.f32 %v9002_v26, %v9116_v55 }
 0x2ab   : > { %2544 = vadd.xlane.f32.xlu0 %v2543_v45  ;;  %v9208_v56 = vsel %vm2153_vm4, %v9093_v3, %v6294_v12  ;;  %v2558_v31 = vsel %vm11651_vm1, %v9202_v22, 0.0  ;;  %v9226_v3 = vadd.f32 %v9002_v26, %v9071_v30  ;;  %v9232_v44 = vpop.f32.mrf.mxu0  ;;  %v2222_v45 = vmin.f32 %v9236_v2, 0.0 }
 0x2ac   : > { %v2555_v14 = vsel %vm11651_vm1, %v9208_v56, 0.0  ;;  %v2221_v15 = vmin.f32 %v9240_v33, 0.0  ;;  %v2223_v55 = vmin.f32 %v9262_v36, 0.0  ;;  %vm2157_vm10 = vcmp.gt.f32.partialorder %v9240_v33, 0.0 }
 0x2ad   : > { %2691 = vadd.xlane.f32.xlu1 %v2690_v0  ;;  %v2219_v35 = vmin.f32 %v9226_v3, 0.0  ;;  %v9242_v30 = vpop.f32.mrf.mxu0  ;;  %v2299_v41 = vmul.f32 1.442695, %v2222_v45  ;;  %vm2155_vm6 = vcmp.gt.f32.partialorder %v9226_v3, 0.0  ;;  %vm2159_vm0 = vcmp.gt.f32.partialorder %v9262_v36, 0.0 }
 0x2ae   : > { %v2297_v58 = vmul.f32 1.442695, %v2221_v15  ;;  %v2301_v15 = vmul.f32 1.442695, %v2223_v55  ;;  %v9305_v55 = vadd.f32 %v9002_v26, %v9166_v24 }
 0x2af   : > { %2688 = vadd.xlane.f32.xlu0 %v2687_v32  ;;  %v2293_v25 = vmul.f32 1.442695, %v2219_v35  ;;  %v9253_v0 = vpop.f32.mrf.mxu0  ;;  %v9258_v32 = vadd.f32 %v9100_v63, %v9002_v26 }
 0x2b0   : > { %v2227_v49 = vmin.f32 %v9305_v55, 0.0 }
 0x2b1   : > { %2553 = vadd.xlane.f32.xlu1 %v2552_v16  ;;  %7383 = vpow2.f32 %v2293_v25  ;;  %v9284_v25 = vadd.f32 %v9002_v26, %v9144_v1  ;;  %vm2160_vm13 = vcmp.gt.f32.partialorder %v9258_v32, 0.0 }
 0x2b3   : > { %2550 = vadd.xlane.f32.xlu0 %v2549_v38  ;;  %v9264_v38 = vpop.f32.mrf.mxu0  ;;  %v2225_v1 = vmin.f32 %v9284_v25, 0.0  ;;  %vm2161_vm3 = vcmp.gt.f32.partialorder %v9284_v25, 0.0 }
 0x2b5   : > { %2697 = vadd.xlane.f32.xlu1 %v2696_v34  ;;  %v9279_v61 = vpop.f32.mrf.mxu0  ;;  %v2305_v18 = vmul.f32 1.442695, %v2225_v1 }
 0x2b7   : > { %2694 = vadd.xlane.f32.xlu0 %v2693_v6  ;;  %v2224_v6 = vmin.f32 %v9258_v32, 0.0 }
 0x2b9   : > { %2559 = vadd.xlane.f32.xlu1 %v2558_v31  ;;  %v2303_v45 = vmul.f32 1.442695, %v2224_v6 }
 0x2bb   : > { %2556 = vadd.xlane.f32.xlu0 %v2555_v14  ;;  %v9277_v14 = vadd.f32 %v9130_v4, %v9002_v26 }
 0x2bd   : > { %vm2162_vm2 = vcmp.gt.f32.partialorder %v9277_v14, 0.0 }
 0x2c9   : > { %v6962_v9 = vpop.f32.mrf.mxu1 }
 0x2ca   : > { %v9245_v40 = vadd.f32 %v6962_v9, %v9002_v26  ;;  %v9288_v9 = vadd.f32 %v9152_v5, %v9002_v26 }
 0x2cb   : > { %v2106_v7 = vpop.f32.mrf.mxu1 }
 0x2cc   : > { %v2266_v23 = vmin.f32 %v9245_v40, 0.0  ;;  %v9250_v59 = vadd.f32 %v9002_v26, %v2106_v7  ;;  %v7382_v7 = vpop.eup %7381  ;;  %v2228_v5 = vmin.f32 %v9288_v9, 0.0  ;;  %vm2202_vm7 = vcmp.gt.f32.partialorder %v9245_v40, 0.0 }
 0x2ce   : > { %v2387_v37 = vmul.f32 1.442695, %v2266_v23  ;;  %v2265_v21 = vmin.f32 %v9250_v59, 0.0  ;;  %v2311_v29 = vmul.f32 1.442695, %v2228_v5  ;;  %vm2201_vm9 = vcmp.gt.f32.partialorder %v9250_v59, 0.0 }
 0x2cf   : > { %v9330_v5 = vadd.f32 %v9174_v28, %v9002_v26 }
 0x2d0   : > { %7385 = vpow2.f32 %v2387_v37  ;;  %v2385_v43 = vmul.f32 1.442695, %v2265_v21  ;;  %v7384_v37 = vpop.eup %7383  ;;  %v2226_v21 = vmin.f32 %v9277_v14, 0.0 }
 0x2d1   : > { %v6965_v16 = vpop.f32.mrf.mxu1 }
 0x2d2   : > { %7387 = vpow2.f32 %v2385_v43  ;;  %v9267_v12 = vadd.f32 %v6965_v16, %v9002_v26 }
 0x2d3   : > { %v2116_v34 = vpop.f32.mrf.mxu1  ;;  %7389 = vpow2.f32 %v2299_v41  ;;  %v9291_v41 = vpop.f32.mrf.mxu0 }
 0x2d4   : > { %v2268_v63 = vmin.f32 %v9267_v12, 0.0  ;;  %v9272_v31 = vadd.f32 %v9002_v26, %v2116_v34  ;;  %7391 = vpow2.f32 %v2297_v58  ;;  %v6297_v58 = vadd.f32 -1.0, %v7382_v7 }
 0x2d5   : > { %vm2204_vm11 = vcmp.gt.f32.partialorder %v9267_v12, 0.0 }
 0x2d6   : > { %v2391_v35 = vmul.f32 1.442695, %v2268_v63  ;;  %v2267_v13 = vmin.f32 %v9272_v31, 0.0  ;;  %vm2203_vm12 = vcmp.gt.f32.partialorder %v9272_v31, 0.0 }
 0x2d8   : > { %7393 = vpow2.f32 %v2391_v35  ;;  %v2389_v23 = vmul.f32 1.442695, %v2267_v13  ;;  %v6296_v35 = vadd.f32 -1.0, %v7384_v37  ;;  %v2307_v13 = vmul.f32 1.442695, %v2226_v21 }
 0x2d9   : > { %v6968_v4 = vpop.f32.mrf.mxu1 }
 0x2da   : > { %7395 = vpow2.f32 %v2389_v23  ;;  %v9294_v43 = vadd.f32 %v6968_v4, %v9002_v26  ;;  %v9308_v23 = vpop.f32.mrf.mxu0 }
 0x2db   : > { %v2126_v16 = vpop.f32.mrf.mxu1  ;;  %7397 = vpow2.f32 %v2303_v45 }
 0x2dc   : > { %v2270_v34 = vmin.f32 %v9294_v43, 0.0  ;;  %v9300_v6 = vadd.f32 %v9002_v26, %v2126_v16  ;;  %7399 = vpow2.f32 %v2301_v15  ;;  %v9313_v15 = vsel %vm2156_vm5, %v9222_v60, %v6297_v58  ;;  %v9336_v58 = vpop.f32.mrf.mxu0 }
 0x2dd   : > { %v7386_v63 = vpop.eup %7385  ;;  %v9326_v60 = vsel %vm2155_vm6, %v9226_v3, %v6296_v35  ;;  %v2564_v35 = vsel %vm11651_vm1, %v9313_v15, 0.0  ;;  %vm2206_vm14 = vcmp.gt.f32.partialorder %v9294_v43, 0.0  ;;  %vm2164_vm6 = vcmp.gt.f32.partialorder %v9288_v9, 0.0 }
 0x2de   : > { %v2395_v7 = vmul.f32 1.442695, %v2270_v34  ;;  %v2269_v45 = vmin.f32 %v9300_v6, 0.0  ;;  %v6343_v4 = vadd.f32 -1.0, %v7386_v63  ;;  %vm2205_vm15 = vcmp.gt.f32.partialorder %v9300_v6, 0.0 }
 0x2df   : > { %v7388_v16 = vpop.eup %7387 }
 0x2e0   : > { %7401 = vpow2.f32 %v2395_v7  ;;  %v2393_v24 = vmul.f32 1.442695, %v2269_v45  ;;  %v9317_v37 = vsel %vm2202_vm7, %v9245_v40, %v6343_v4  ;;  %v6342_v21 = vadd.f32 -1.0, %v7388_v16  ;;  %v7390_v34 = vpop.eup %7389 }
 0x2e1   : > { %11728 = vst [vmem:[#allocation21_spill] sm:$0xff] %v9317_v37  ;;  %v2702_v1 = vsel %vm11651_vm1, %v9317_v37, 0.0  ;;  %v9334_v40 = vadd.f32 %v9002_v26, %v9188_v46  ;;  %v6971_v63 = vpop.f32.mrf.mxu1  ;;  %v7392_v45 = vpop.eup %7391  ;;  %v6299_v4 = vadd.f32 -1.0, %v7390_v34  ;;  %v9361_v34 = vadd.f32 %v9196_v19, %v9002_v26 }
 0x2e2   : > { %7403 = vpow2.f32 %v2393_v24  ;;  %2703 = vadd.xlane.f32.xlu1 %v2702_v1  ;;  %v9339_v7 = vsel %vm2201_vm9, %v9250_v59, %v6342_v21  ;;  %v9342_v3 = vadd.f32 %v6971_v63, %v9002_v26  ;;  %v2561_v59 = vsel %vm11651_vm1, %v9326_v60, 0.0  ;;  %v9357_v63 = vpop.f32.mrf.mxu0 }
 0x2e3   : > { %11729 = vst [vmem:[#allocation14_spill] sm:$0xff] %v9339_v7  ;;  %7405 = vpow2.f32 %v2307_v13  ;;  %v2699_v28 = vsel %vm11651_vm1, %v9339_v7, 0.0  ;;  %v2136_v46 = vpop.f32.mrf.mxu1  ;;  %v2309_v13 = vmul.f32 1.442695, %v2227_v49  ;;  %v2230_v1 = vmin.f32 %v9330_v5, 0.0 }
 0x2e4   : > { %7407 = vpow2.f32 %v2305_v18  ;;  %2700 = vadd.xlane.f32.xlu0 %v2699_v28  ;;  %v2272_v24 = vmin.f32 %v9342_v3, 0.0  ;;  %v9353_v21 = vadd.f32 %v9002_v26, %v2136_v46  ;;  %v2229_v18 = vmin.f32 %v9334_v40, 0.0 }
 0x2e5   : > { %v7394_v16 = vpop.eup %7393  ;;  %7409 = vpow2.f32 %v2311_v29  ;;  %v6298_v7 = vadd.f32 -1.0, %v7392_v45  ;;  %v9367_v46 = vadd.f32 %v9002_v26, %v9210_v51  ;;  %v9375_v45 = vsel %vm2158_vm8, %v9236_v2, %v6299_v4 }
 0x2e6   : > { %2565 = vadd.xlane.f32.xlu1 %v2564_v35  ;;  %v6345_v28 = vadd.f32 -1.0, %v7394_v16  ;;  %v2399_v49 = vmul.f32 1.442695, %v2272_v24  ;;  %v2271_v29 = vmin.f32 %v9353_v21, 0.0  ;;  %v2315_v62 = vmul.f32 1.442695, %v2230_v1 }
 0x2e7   : > { %v7396_v37 = vpop.eup %7395  ;;  %v2313_v4 = vmul.f32 1.442695, %v2229_v18  ;;  %vm2208_vm4 = vcmp.gt.f32.partialorder %v9342_v3, 0.0  ;;  %vm2207_vm5 = vcmp.gt.f32.partialorder %v9353_v21, 0.0  ;;  %vm2163_vm7 = vcmp.gt.f32.partialorder %v9305_v55, 0.0 }
 0x2e8   : > { %2562 = vadd.xlane.f32.xlu0 %v2561_v59  ;;  %v9370_v10 = vsel %vm2204_vm11, %v9267_v12, %v6345_v28  ;;  %v6344_v35 = vadd.f32 -1.0, %v7396_v37  ;;  %v7398_v19 = vpop.eup %7397  ;;  %7411 = vpow2.f32 %v2399_v49  ;;  %v2397_v16 = vmul.f32 1.442695, %v2271_v29  ;;  %v9384_v37 = vpop.f32.mrf.mxu0 }
 0x2e9   : > { %11730 = vst [vmem:[#allocation15_spill] sm:$0xff] %v9370_v10  ;;  %v2708_v24 = vsel %vm11651_vm1, %v9370_v10, 0.0  ;;  %v7400_v51 = vpop.eup %7399  ;;  %v9382_v12 = vadd.f32 %v9214_v11, %v9002_v26  ;;  %v9392_v59 = vsel %vm2157_vm10, %v9240_v33, %v6298_v7  ;;  %v2232_v28 = vmin.f32 %v9361_v34, 0.0 }
 0x2ea   : > { %2709 = vadd.xlane.f32.xlu1 %v2708_v24  ;;  %v9387_v2 = vsel %vm2203_vm12, %v9272_v31, %v6344_v35  ;;  %7413 = vpow2.f32 %v2397_v16  ;;  %v2231_v11 = vmin.f32 %v9367_v46, 0.0  ;;  %v9400_v49 = vadd.f32 %v9002_v26, %v9218_v52  ;;  %v9412_v52 = vpop.f32.mrf.mxu0 }
 0x2eb   : > { %11731 = vst [vmem:[#allocation16_spill] sm:$0xff] %v9387_v2  ;;  %v2705_v1 = vsel %vm11651_vm1, %v9387_v2, 0.0  ;;  %7415 = vpow2.f32 %v2309_v13  ;;  %v9405_v33 = vadd.f32 %v9228_v50, %v9002_v26  ;;  %v2570_v7 = vsel %vm11651_vm1, %v9375_v45, 0.0 }
 0x2ec   : > { %2706 = vadd.xlane.f32.xlu0 %v2705_v1  ;;  %v2567_v13 = vsel %vm11651_vm1, %v9392_v59, 0.0  ;;  %v6301_v18 = vadd.f32 -1.0, %v7398_v19  ;;  %7417 = vpow2.f32 %v2315_v62  ;;  %v2234_v29 = vmin.f32 %v9382_v12, 0.0  ;;  %v9431_v39 = vpop.f32.mrf.mxu0 }
 0x2ed   : > { %v7402_v31 = vpop.eup %7401  ;;  %v6300_v16 = vadd.f32 -1.0, %v7400_v51  ;;  %7419 = vpow2.f32 %v2313_v4  ;;  %v2319_v1 = vmul.f32 1.442695, %v2232_v28  ;;  %v9416_v50 = vadd.f32 %v9002_v26, %v9232_v44 }
 0x2ee   : > { %2571 = vadd.xlane.f32.xlu1 %v2570_v7  ;;  %v6347_v35 = vadd.f32 -1.0, %v7402_v31  ;;  %v2317_v10 = vmul.f32 1.442695, %v2231_v11  ;;  %v2233_v62 = vmin.f32 %v9400_v49, 0.0  ;;  %v2236_v51 = vmin.f32 %v9405_v33, 0.0 }
 0x2ef   : > { %v7404_v24 = vpop.eup %7403  ;;  %v9426_v4 = vadd.f32 %v9242_v30, %v9002_v26  ;;  %v2323_v11 = vmul.f32 1.442695, %v2234_v29  ;;  %7421 = vpow2.f32 %v2319_v1  ;;  %v2235_v30 = vmin.f32 %v9416_v50, 0.0 }
 0x2f0   : > { %v7406_v2 = vpop.eup %7405  ;;  %2568 = vadd.xlane.f32.xlu0 %v2567_v13  ;;  %v9421_v19 = vsel %vm2206_vm14, %v9294_v43, %v6347_v35  ;;  %v6346_v7 = vadd.f32 -1.0, %v7404_v24  ;;  %v9439_v13 = vsel %vm2160_vm13, %v9258_v32, %v6301_v18  ;;  %v2321_v29 = vmul.f32 1.442695, %v2233_v62 }
 0x2f1   : > { %11732 = vst [vmem:[#allocation18_spill] sm:$0xff] %v9421_v19  ;;  %v7408_v31 = vpop.eup %7407  ;;  %v2714_v44 = vsel %vm11651_vm1, %v9421_v19, 0.0  ;;  %v9447_v24 = vadd.f32 %v9002_v26, %v9253_v0  ;;  %7423 = vpow2.f32 %v2317_v10  ;;  %v2327_v32 = vmul.f32 1.442695, %v2236_v51  ;;  %v9460_v0 = vpop.f32.mrf.mxu0 }
 0x2f2   : > { %v7410_v28 = vpop.eup %7409  ;;  %2715 = vadd.xlane.f32.xlu1 %v2714_v44  ;;  %v9434_v43 = vsel %vm2205_vm15, %v9300_v6, %v6346_v7  ;;  %v9450_v6 = vsel %vm2159_vm0, %v9262_v36, %v6300_v16  ;;  %v2238_v18 = vmin.f32 %v9426_v4, 0.0  ;;  %v2576_v1 = vsel %vm11651_vm1, %v9439_v13, 0.0 }
 0x2f3   : > { %11733 = vst [vmem:[#allocation20_spill] sm:$0xff] %v9434_v43  ;;  %v2711_v35 = vsel %vm11651_vm1, %v9434_v43, 0.0  ;;  %7425 = vpow2.f32 %v2323_v11  ;;  %v9458_v62 = vadd.f32 %v9264_v38, %v9002_v26  ;;  %v6303_v36 = vadd.f32 -1.0, %v7406_v2 }
 0x2f4   : > { %2712 = vadd.xlane.f32.xlu0 %v2711_v35  ;;  %v2325_v16 = vmul.f32 1.442695, %v2235_v30  ;;  %v2573_v10 = vsel %vm11651_vm1, %v9450_v6, 0.0  ;;  %v6302_v44 = vadd.f32 -1.0, %v7408_v31  ;;  %7427 = vpow2.f32 %v2321_v29 }
 0x2f5   : > { %v7412_v7 = vpop.eup %7411  ;;  %v2237_v11 = vmin.f32 %v9447_v24, 0.0  ;;  %v9468_v38 = vadd.f32 %v9002_v26, %v9279_v61  ;;  %7429 = vpow2.f32 %v2327_v32  ;;  %v2240_v31 = vmin.f32 %v9458_v62, 0.0 }
 0x2f6   : > { %2577 = vadd.xlane.f32.xlu1 %v2576_v1  ;;  %v6349_v51 = vadd.f32 -1.0, %v7412_v7  ;;  %v2331_v1 = vmul.f32 1.442695, %v2238_v18  ;;  %v9477_v29 = vadd.f32 %v9291_v41, %v9002_v26  ;;  %v9479_v7 = vpop.f32.mrf.mxu0  ;;  %7431 = vpow2.f32 %v2325_v16 }
 0x2f7   : > { %v7414_v35 = vpop.eup %7413  ;;  %v9490_v32 = vsel %vm2162_vm2, %v9277_v14, %v6303_v36  ;;  %v6305_v41 = vadd.f32 -1.0, %v7410_v28  ;;  %v2335_v28 = vmul.f32 1.442695, %v2240_v31  ;;  %vm2166_vm8 = vcmp.gt.f32.partialorder %v9330_v5, 0.0 }
 0x2f8   : > { %2574 = vadd.xlane.f32.xlu0 %v2573_v10  ;;  %v7416_v2 = vpop.eup %7415  ;;  %v9472_v30 = vsel %vm2208_vm4, %v9342_v3, %v6349_v51  ;;  %v6348_v43 = vadd.f32 -1.0, %v7414_v35  ;;  %v2329_v51 = vmul.f32 1.442695, %v2237_v11  ;;  %v2239_v35 = vmin.f32 %v9468_v38, 0.0  ;;  %v9506_v36 = vpop.f32.mrf.mxu0 }
 0x2f9   : > { %11734 = vst [vmem:[#allocation22_spill] sm:$0xff] %v9472_v30  ;;  %v2720_v61 = vsel %vm11651_vm1, %v9472_v30, 0.0  ;;  %v7418_v10 = vpop.eup %7417  ;;  %v9495_v30 = vadd.f32 %v9002_v26, %v9308_v23  ;;  %v6304_v14 = vadd.f32 -1.0, %v7416_v2  ;;  %7433 = vpow2.f32 %v2331_v1 }
 0x2fa   : > { %2721 = vadd.xlane.f32.xlu1 %v2720_v61  ;;  %v9485_v3 = vsel %vm2207_vm5, %v9353_v21, %v6348_v43  ;;  %v7420_v18 = vpop.eup %7419  ;;  %v9502_v21 = vsel %vm2161_vm3, %v9284_v25, %v6302_v44  ;;  %v2242_v43 = vmin.f32 %v9477_v29, 0.0  ;;  %v2582_v23 = vsel %vm11651_vm1, %v9490_v32, 0.0 }
 0x2fb   : > { %11735 = vst [vmem:[#allocation3_spill] sm:$0xff] %v9485_v3  ;;  %v2717_v16 = vsel %vm11651_vm1, %v9485_v3, 0.0  ;;  %v9512_v11 = vadd.f32 %v9336_v58, %v9002_v26  ;;  %v9515_v25 = vsel %vm2164_vm6, %v9288_v9, %v6305_v41  ;;  %v6307_v44 = vadd.f32 -1.0, %v7418_v10 }
 0x2fc   : > { %2718 = vadd.xlane.f32.xlu0 %v2717_v16  ;;  %v7422_v2 = vpop.eup %7421  ;;  %7435 = vpow2.f32 %v2329_v51  ;;  %v2333_v1 = vmul.f32 1.442695, %v2239_v35  ;;  %v2241_v31 = vmin.f32 %v9495_v30, 0.0  ;;  %v2579_v61 = vsel %vm11651_vm1, %v9502_v21, 0.0  ;;  %v9529_v51 = vpop.f32.mrf.mxu0 }
 0x2fd   : > { %v9523_v16 = vadd.f32 %v9002_v26, %v9357_v63  ;;  %v9526_v58 = vsel %vm2163_vm7, %v9305_v55, %v6304_v14  ;;  %v6306_v9 = vadd.f32 -1.0, %v7420_v18  ;;  %7437 = vpow2.f32 %v2335_v28 }
 0x2fe   : > { %2583 = vadd.xlane.f32.xlu1 %v2582_v23  ;;  %v7424_v10 = vpop.eup %7423  ;;  %v2339_v41 = vmul.f32 1.442695, %v2242_v43  ;;  %v2588_v35 = vsel %vm11651_vm1, %v9515_v25, 0.0  ;;  %vm2165_vm9 = vcmp.gt.f32.partialorder %v9334_v40, 0.0  ;;  %v2244_v63 = vmin.f32 %v9512_v11, 0.0 }
 0x2ff   : > { %v9537_v55 = vadd.f32 %v9384_v37, %v9002_v26  ;;  %v9540_v18 = vsel %vm2166_vm8, %v9330_v5, %v6307_v44  ;;  %v6309_v14 = vadd.f32 -1.0, %v7422_v2  ;;  %7439 = vpow2.f32 %v2333_v1  ;;  %v2036_v2 = vpop.f32.mrf.mxu0 }
 0x300   : > { %2580 = vadd.xlane.f32.xlu0 %v2579_v61  ;;  %v7426_v23 = vpop.eup %7425  ;;  %v2337_v28 = vmul.f32 1.442695, %v2241_v31  ;;  %v2585_v43 = vsel %vm11651_vm1, %v9526_v58, 0.0  ;;  %vm2168_vm10 = vcmp.gt.f32.partialorder %v9361_v34, 0.0  ;;  %v2243_v3 = vmin.f32 %v9523_v16, 0.0 }
 0x301   : > { %v7428_v61 = vpop.eup %7427  ;;  %v9548_v19 = vadd.f32 %v9002_v26, %v9412_v52  ;;  %v9551_v37 = vsel %vm2165_vm9, %v9334_v40, %v6306_v9  ;;  %v6308_v5 = vadd.f32 -1.0, %v7424_v10  ;;  %7441 = vpow2.f32 %v2339_v41  ;;  %v9560_v26 = vld [vmem:[%s11574_s5] ss:$0 sm:$0xff] }
 0x302   : > { %2589 = vadd.xlane.f32.xlu1 %v2588_v35  ;;  %v7430_v44 = vpop.eup %7429  ;;  %v2594_v1 = vsel %vm11651_vm1, %v9540_v18, 0.0  ;;  %vm2167_vm11 = vcmp.gt.f32.partialorder %v9367_v46, 0.0  ;;  %v6311_v31 = vadd.f32 -1.0, %v7426_v23  ;;  %v2343_v35 = vmul.f32 1.442695, %v2244_v63 }
 0x303   : > { %v2246_v27 = vmin.f32 %v9537_v55, 0.0  ;;  %v9564_v40 = vadd.f32 %v9560_v26, %v9431_v39  ;;  %v9569_v52 = vsel %vm2168_vm10, %v9361_v34, %v6309_v14  ;;  %v7432_v9 = vpop.eup %7431  ;;  %7443 = vpow2.f32 %v2337_v28  ;;  %v6944_v14 = vpop.f32.mrf.mxu0 }
 0x304   : > { %2586 = vadd.xlane.f32.xlu0 %v2585_v43  ;;  %v2591_v10 = vsel %vm11651_vm1, %v9551_v37, 0.0  ;;  %vm2170_vm12 = vcmp.gt.f32.partialorder %v9382_v12, 0.0  ;;  %v6310_v41 = vadd.f32 -1.0, %v7428_v61  ;;  %v2341_v23 = vmul.f32 1.442695, %v2243_v3 }
 0x305   : > { %v2245_v63 = vmin.f32 %v9548_v19, 0.0  ;;  %v9577_v39 = vadd.f32 %v9560_v26, %v9460_v0  ;;  %v9582_v34 = vsel %vm2167_vm11, %v9367_v46, %v6308_v5  ;;  %v2600_v28 = vsel %vm11651_vm1, %v9569_v52, 0.0 }
 0x306   : > { %2595 = vadd.xlane.f32.xlu1 %v2594_v1  ;;  %v9587_v43 = vsel %vm2170_vm12, %v9382_v12, %v6311_v31  ;;  %vm2169_vm13 = vcmp.gt.f32.partialorder %v9400_v49, 0.0  ;;  %v6313_v3 = vadd.f32 -1.0, %v7430_v44  ;;  %v7434_v61 = vpop.eup %7433  ;;  %7445 = vpow2.f32 %v2343_v35 }
 0x307   : > { %v2347_v0 = vmul.f32 1.442695, %v2246_v27  ;;  %v2248_v1 = vmin.f32 %v9564_v40, 0.0  ;;  %v2597_v46 = vsel %vm11651_vm1, %v9582_v34, 0.0  ;;  %v9598_v5 = vsel %vm2169_vm13, %v9400_v49, %v6310_v41 }
 0x308   : > { %2592 = vadd.xlane.f32.xlu0 %v2591_v10  ;;  %v9593_v10 = vadd.f32 %v9560_v26, %v9479_v7  ;;  %11736 = vst [vmem:[#allocation4_spill] sm:$0xff] %v9598_v5  ;;  %vm2172_vm14 = vcmp.gt.f32.partialorder %v9405_v33, 0.0  ;;  %v6312_v12 = vadd.f32 -1.0, %v7432_v9  ;;  %7447 = vpow2.f32 %v2341_v23  ;;  %v2046_v7 = vpop.f32.mrf.mxu0 }
 0x309   : > { %v7436_v44 = vpop.eup %7435  ;;  %v2345_v31 = vmul.f32 1.442695, %v2245_v63  ;;  %v2247_v27 = vmin.f32 %v9577_v39, 0.0  ;;  %v9604_v35 = vadd.f32 %v9560_v26, %v9506_v36  ;;  %v9609_v49 = vsel %vm2172_vm14, %v9405_v33, %v6313_v3 }
 0x30a   : > { %2601 = vadd.xlane.f32.xlu1 %v2600_v28  ;;  %v2606_v28 = vsel %vm11651_vm1, %v9587_v43, 0.0  ;;  %vm2171_vm15 = vcmp.gt.f32.partialorder %v9416_v50, 0.0  ;;  %v6315_v9 = vadd.f32 -1.0, %v7434_v61  ;;  %v7438_v41 = vpop.eup %7437  ;;  %7449 = vpow2.f32 %v2347_v0 }
 0x30b   : > { %v2351_v23 = vmul.f32 1.442695, %v2248_v1  ;;  %v2250_v63 = vmin.f32 %v9593_v10, 0.0  ;;  %v9615_v36 = vadd.f32 %v9560_v26, %v9529_v51  ;;  %v9620_v54 = vsel %vm2171_vm15, %v9416_v50, %v6312_v12  ;;  %v6947_v51 = vpop.f32.mrf.mxu0 }
 0x30c   : > { %2598 = vadd.xlane.f32.xlu0 %v2597_v46  ;;  %v2603_v46 = vsel %vm11651_vm1, %v9598_v5, 0.0  ;;  %11737 = vst [vmem:[#allocation5_spill] sm:$0xff] %v9620_v54  ;;  %vm2174_vm0 = vcmp.gt.f32.partialorder %v9426_v4, 0.0  ;;  %v6314_v33 = vadd.f32 -1.0, %v7436_v44  ;;  %v7440_v3 = vpop.eup %7439  ;;  %7451 = vpow2.f32 %v2345_v31 }
 0x30d   : > { %v2349_v61 = vmul.f32 1.442695, %v2247_v27  ;;  %v2249_v0 = vmin.f32 %v9604_v35, 0.0  ;;  %v9625_v1 = vadd.f32 %v9560_v26, %v2036_v2  ;;  %v9630_v5 = vsel %vm2174_vm0, %v9426_v4, %v6315_v9 }
 0x30e   : > { %2607 = vadd.xlane.f32.xlu1 %v2606_v28  ;;  %v2612_v28 = vsel %vm11651_vm1, %v9609_v49, 0.0  ;;  %vm2173_vm2 = vcmp.gt.f32.partialorder %v9447_v24, 0.0  ;;  %v6317_v50 = vadd.f32 -1.0, %v7438_v41  ;;  %v7442_v12 = vpop.eup %7441  ;;  %7453 = vpow2.f32 %v2351_v23 }
 0x30f   : > { %v2355_v44 = vmul.f32 1.442695, %v2250_v63  ;;  %v2252_v31 = vmin.f32 %v9615_v36, 0.0  ;;  %v9635_v27 = vadd.f32 %v9560_v26, %v6944_v14  ;;  %v2609_v2 = vsel %vm11651_vm1, %v9620_v54, 0.0  ;;  %v2056_v14 = vpop.f32.mrf.mxu0 }
 0x310   : > { %2604 = vadd.xlane.f32.xlu0 %v2603_v46  ;;  %v9640_v46 = vsel %vm2173_vm2, %v9447_v24, %v6314_v33  ;;  %vm2176_vm3 = vcmp.gt.f32.partialorder %v9458_v62, 0.0  ;;  %v6316_v4 = vadd.f32 -1.0, %v7440_v3  ;;  %v7444_v9 = vpop.eup %7443  ;;  %7455 = vpow2.f32 %v2349_v61 }
 0x311   : > { %v2353_v41 = vmul.f32 1.442695, %v2249_v0  ;;  %v2251_v23 = vmin.f32 %v9625_v1, 0.0  ;;  %v9645_v63 = vadd.f32 %v9560_v26, %v2046_v7  ;;  %v9650_v54 = vsel %vm2176_vm3, %v9458_v62, %v6317_v50 }
 0x312   : > { %2613 = vadd.xlane.f32.xlu1 %v2612_v28  ;;  %v2618_v28 = vsel %vm11651_vm1, %v9630_v5, 0.0  ;;  %vm2175_vm4 = vcmp.gt.f32.partialorder %v9468_v38, 0.0  ;;  %v6319_v24 = vadd.f32 -1.0, %v7442_v12  ;;  %7457 = vpow2.f32 %v2355_v44 }
 0x313   : > { %v2359_v33 = vmul.f32 1.442695, %v2252_v31  ;;  %v2254_v3 = vmin.f32 %v9635_v27, 0.0  ;;  %v9655_v61 = vadd.f32 %v9560_v26, %v6947_v51  ;;  %v7446_v7 = vpop.eup %7445  ;;  %v2615_v0 = vsel %vm11651_vm1, %v9640_v46, 0.0 }
 0x314   : > { %2610 = vadd.xlane.f32.xlu0 %v2609_v2  ;;  %v9660_v2 = vsel %vm2175_vm4, %v9468_v38, %v6316_v4  ;;  %vm2178_vm5 = vcmp.gt.f32.partialorder %v9477_v29, 0.0  ;;  %v6318_v62 = vadd.f32 -1.0, %v7444_v9  ;;  %7459 = vpow2.f32 %v2353_v41 }
 0x315   : > { %v2357_v50 = vmul.f32 1.442695, %v2251_v23  ;;  %v2253_v12 = vmin.f32 %v9645_v63, 0.0  ;;  %v9665_v44 = vadd.f32 %v9560_v26, %v2056_v14  ;;  %v7448_v51 = vpop.eup %7447  ;;  %v2624_v31 = vsel %vm11651_vm1, %v9650_v54, 0.0 }
 0x316   : > { %2619 = vadd.xlane.f32.xlu1 %v2618_v28  ;;  %v9670_v28 = vsel %vm2178_vm5, %v9477_v29, %v6319_v24  ;;  %vm2177_vm6 = vcmp.gt.f32.partialorder %v9495_v30, 0.0  ;;  %7461 = vpow2.f32 %v2359_v33  ;;  %v2363_v38 = vmul.f32 1.442695, %v2254_v3 }
 0x317   : > { %v2256_v4 = vmin.f32 %v9655_v61, 0.0  ;;  %v6321_v9 = vadd.f32 -1.0, %v7446_v7  ;;  %v7450_v41 = vpop.eup %7449  ;;  %v2621_v26 = vsel %vm11651_vm1, %v9660_v2, 0.0  ;;  %v9677_v23 = vsel %vm2177_vm6, %v9495_v30, %v6318_v62 }
 0x318   : > { %2616 = vadd.xlane.f32.xlu0 %v2615_v0  ;;  %7463 = vpow2.f32 %v2357_v50  ;;  %v2361_v14 = vmul.f32 1.442695, %v2253_v12  ;;  %v2255_v29 = vmin.f32 %v9665_v44, 0.0  ;;  %v6320_v24 = vadd.f32 -1.0, %v7448_v51 }
 0x319   : > { %v7452_v0 = vpop.eup %7451  ;;  %v2630_v33 = vsel %vm11651_vm1, %v9670_v28, 0.0  ;;  %vm2180_vm7 = vcmp.gt.f32.partialorder %v9512_v11, 0.0  ;;  %7465 = vpow2.f32 %v2363_v38  ;;  %v2367_v3 = vmul.f32 1.442695, %v2256_v4  ;;  %v2536_v4 = vpop.xlane.xlu1 %2535 }
 0x31a   : > { %2625 = vadd.xlane.f32.xlu1 %v2624_v31  ;;  %v9684_v7 = vsel %vm2180_vm7, %v9512_v11, %v6321_v9  ;;  %v6323_v30 = vadd.f32 -1.0, %v7450_v41  ;;  %v2627_v50 = vsel %vm11651_vm1, %v9677_v23, 0.0  ;;  %vm2179_vm8 = vcmp.gt.f32.partialorder %v9523_v16, 0.0 }
 0x31b   : > { %v7454_v62 = vpop.eup %7453  ;;  %7467 = vpow2.f32 %v2361_v14  ;;  %v2365_v12 = vmul.f32 1.442695, %v2255_v29  ;;  %v9690_v51 = vsel %vm2179_vm8, %v9523_v16, %v6320_v24  ;;  %v6322_v31 = vadd.f32 -1.0, %v7452_v0  ;;  %v2533_v14 = vpop.xlane.xlu0 %2532 }
 0x31c   : > { %2622 = vadd.xlane.f32.xlu0 %v2621_v26  ;;  %v2636_v11 = vsel %vm11651_vm1, %v9684_v7, 0.0  ;;  %vm2182_vm9 = vcmp.gt.f32.partialorder %v9537_v55, 0.0  ;;  %7469 = vpow2.f32 %v2367_v3  ;;  %v6325_v41 = vadd.f32 -1.0, %v7454_v62 }
 0x31d   : > { %v7456_v38 = vpop.eup %7455  ;;  %v9696_v9 = vsel %vm2182_vm9, %v9537_v55, %v6323_v30  ;;  %v2633_v16 = vsel %vm11651_vm1, %v9690_v51, 0.0  ;;  %vm2181_vm10 = vcmp.gt.f32.partialorder %v9548_v19, 0.0  ;;  %7471 = vpow2.f32 %v2365_v12 }
 0x31e   : > { %2631 = vadd.xlane.f32.xlu1 %v2630_v33  ;;  %v9702_v29 = vsel %vm2181_vm10, %v9548_v19, %v6322_v31  ;;  %v6324_v24 = vadd.f32 -1.0, %v7456_v38  ;;  %v2642_v55 = vsel %vm11651_vm1, %v9696_v9, 0.0  ;;  %vm2184_vm11 = vcmp.gt.f32.partialorder %v9564_v40, 0.0 }
 0x31f   : > { %v7458_v26 = vpop.eup %7457  ;;  %v9710_v3 = vsel %vm2184_vm11, %v9564_v40, %v6325_v41  ;;  %vm2183_vm12 = vcmp.gt.f32.partialorder %v9577_v39, 0.0  ;;  %vm2186_vm13 = vcmp.gt.f32.partialorder %v9593_v10, 0.0  ;;  %vm2185_vm14 = vcmp.gt.f32.partialorder %v9604_v35, 0.0 }
 0x320   : > { %2628 = vadd.xlane.f32.xlu0 %v2627_v50  ;;  %v6327_v30 = vadd.f32 -1.0, %v7458_v26  ;;  %v2639_v50 = vsel %vm11651_vm1, %v9702_v29, 0.0  ;;  %v9718_v12 = vsel %vm2183_vm12, %v9577_v39, %v6324_v24  ;;  %v2648_v40 = vsel %vm11651_vm1, %v9710_v3, 0.0 }
 0x321   : > { %v7460_v0 = vpop.eup %7459  ;;  %vm2188_vm15 = vcmp.gt.f32.partialorder %v9615_v36, 0.0  ;;  %vm2187_vm0 = vcmp.gt.f32.partialorder %v9625_v1, 0.0  ;;  %vm2190_vm2 = vcmp.gt.f32.partialorder %v9635_v27, 0.0  ;;  %vm2189_vm3 = vcmp.gt.f32.partialorder %v9645_v63, 0.0 }
 0x322   : > { %2637 = vadd.xlane.f32.xlu1 %v2636_v11  ;;  %v6326_v31 = vadd.f32 -1.0, %v7460_v0  ;;  %v9724_v41 = vsel %vm2186_vm13, %v9593_v10, %v6327_v30  ;;  %vm2192_vm4 = vcmp.gt.f32.partialorder %v9655_v61, 0.0  ;;  %vm2191_vm5 = vcmp.gt.f32.partialorder %v9665_v44, 0.0 }
 0x323   : > { %v7462_v62 = vpop.eup %7461  ;;  %v2654_v10 = vsel %vm11651_vm1, %v9724_v41, 0.0 }
 0x324   : > { %2634 = vadd.xlane.f32.xlu0 %v2633_v16  ;;  %v6329_v26 = vadd.f32 -1.0, %v7462_v62  ;;  %v9730_v39 = vsel %vm2185_vm14, %v9604_v35, %v6326_v31 }
 0x325   : > { %v7464_v38 = vpop.eup %7463 }
 0x326   : > { %v9704_v33 = vpop.xlane.xlu1 %2679  ;;  %2643 = vadd.xlane.f32.xlu1 %v2642_v55  ;;  %v7466_v16 = vpop.eup %7465  ;;  %v2645_v55 = vsel %vm11651_vm1, %v9718_v12, 0.0  ;;  %v6328_v24 = vadd.f32 -1.0, %v7464_v38  ;;  %v9738_v30 = vsel %vm2188_vm15, %v9615_v36, %v6329_v26 }
 0x327   : > { %11738 = vst [vmem:[#allocation6_spill] sm:$0xff] %v9704_v33  ;;  %11741 = vst [vmem:[#allocation24_spill] sm:$0xff] %v9738_v30  ;;  %v6331_v62 = vadd.f32 -1.0, %v7466_v16  ;;  %v2724_v33 = vmul.f32 0.03125, %v2536_v4  ;;  %v2660_v36 = vsel %vm11651_vm1, %v9738_v30, 0.0 }
 0x328   : > { %v9714_v19 = vpop.xlane.xlu0 %2676  ;;  %2640 = vadd.xlane.f32.xlu0 %v2639_v50  ;;  %v7468_v0 = vpop.eup %7467  ;;  %v9746_v31 = vsel %vm2187_vm0, %v9625_v1, %v6328_v24 }
 0x329   : > { %11739 = vst [vmem:[#allocation7_spill] sm:$0xff] %v9714_v19  ;;  %v6330_v38 = vadd.f32 -1.0, %v7468_v0  ;;  %v9752_v26 = vsel %vm2190_vm2, %v9635_v27, %v6331_v62  ;;  %v9761_v0 = vsub.f32 %v9020_v57, %v2724_v33 }
 0x32a   : > { %v2542_v11 = vpop.xlane.xlu1 %2541  ;;  %2649 = vadd.xlane.f32.xlu1 %v2648_v40  ;;  %v7470_v40 = vpop.eup %7469  ;;  %v2666_v27 = vsel %vm11651_vm1, %v9752_v26, 0.0 }
 0x32b   : > { %v6333_v16 = vadd.f32 -1.0, %v7470_v40  ;;  %v9758_v4 = vsel %vm2189_vm3, %v9645_v63, %v6330_v38 }
 0x32c   : > { %v2539_v50 = vpop.xlane.xlu0 %2538  ;;  %2646 = vadd.xlane.f32.xlu0 %v2645_v55  ;;  %v2651_v55 = vsel %vm11651_vm1, %v9730_v39, 0.0  ;;  %v2663_v57 = vsel %vm11651_vm1, %v9758_v4, 0.0 }
 0x32d   : > { %v2725_v63 = vmul.f32 0.03125, %v2539_v50  ;;  %v2852_v50 = vmul.f32 %v9761_v0, %v9761_v0 }
 0x32e   : > { %v9732_v19 = vpop.xlane.xlu1 %2685  ;;  %2655 = vadd.xlane.f32.xlu1 %v2654_v10 }
 0x32f   : > { %11740 = vst [vmem:[#allocation23_spill] sm:$0xff] %v9732_v19  ;;  %v7472_v19 = vpop.eup %7471 }
 0x330   : > { %v9742_v35 = vpop.xlane.xlu0 %2682  ;;  %2652 = vadd.xlane.f32.xlu0 %v2651_v55  ;;  %v2657_v55 = vsel %vm11651_vm1, %v9746_v31, 0.0  ;;  %v6332_v24 = vadd.f32 -1.0, %v7472_v19 }
 0x331   : > { %11742 = vst [vmem:[#allocation25_spill] sm:$0xff] %v9742_v35  ;;  %v2723_v35 = vmul.f32 0.03125, %v2533_v14  ;;  %v9769_v14 = vsel %vm2192_vm4, %v9655_v61, %v6333_v16 }
 0x332   : > { %v2548_v10 = vpop.xlane.xlu1 %2547  ;;  %2661 = vadd.xlane.f32.xlu1 %v2660_v36  ;;  %v2726_v36 = vmul.f32 0.03125, %v2542_v11  ;;  %v9780_v19 = vsel %vm2191_vm5, %v9665_v44, %v6332_v24 }
 0x333   : > { %v9772_v62 = vsub.f32 %v9024_v17, %v2723_v35  ;;  %v2728_v61 = vmul.f32 0.03125, %v2548_v10  ;;  %v2672_v17 = vsel %vm11651_vm1, %v9769_v14, 0.0  ;;  %v9790_v35 = vsub.f32 %v9122_v20, %v2725_v63 }
 0x334   : > { %v2545_v1 = vpop.xlane.xlu0 %2544  ;;  %2658 = vadd.xlane.f32.xlu0 %v2657_v55  ;;  %v9783_v11 = vsub.f32 %v9114_v53, %v2726_v36  ;;  %v2669_v44 = vsel %vm11651_vm1, %v9780_v19, 0.0  ;;  %v2918_v36 = vsel %vm11651_vm1, %v2852_v50, 0.0 }
 0x335   : > { %v2727_v38 = vmul.f32 0.03125, %v2545_v1  ;;  %v2851_v53 = vmul.f32 %v9772_v62, %v9772_v62  ;;  %v9797_v10 = vsub.f32 %v9142_v8, %v2728_v61  ;;  %v2853_v8 = vmul.f32 %v9790_v35, %v9790_v35 }
 0x336   : > { %v9763_v30 = vpop.xlane.xlu1 %2691  ;;  %2667 = vadd.xlane.f32.xlu1 %v2666_v27  ;;  %v2854_v20 = vmul.f32 %v9783_v11, %v9783_v11 }
 0x337   : > { %v9805_v1 = vsub.f32 %v9150_v47, %v2727_v38  ;;  %v2915_v63 = vsel %vm11651_vm1, %v2851_v53, 0.0  ;;  %v2856_v50 = vmul.f32 %v9797_v10, %v9797_v10 }
 0x338   : > { %v9776_v33 = vpop.xlane.xlu0 %2688  ;;  %2664 = vadd.xlane.f32.xlu0 %v2663_v57 }
 0x339   : > { %v2855_v53 = vmul.f32 %v9805_v1, %v9805_v1 }
 0x33a   : > { %v2554_v40 = vpop.xlane.xlu1 %2553  ;;  %2673 = vadd.xlane.f32.xlu1 %v2672_v17  ;;  %v2924_v17 = vsel %vm11651_vm1, %v2854_v20, 0.0 }
 0x33b   : > { %v2730_v55 = vmul.f32 0.03125, %v2554_v40 }
 0x33c   : > { %v2551_v16 = vpop.xlane.xlu0 %2550  ;;  %2670 = vadd.xlane.f32.xlu0 %v2669_v44  ;;  %v2921_v44 = vsel %vm11651_vm1, %v2853_v8, 0.0 }
 0x33d   : > { %v2729_v27 = vmul.f32 0.03125, %v2551_v16  ;;  %v9813_v61 = vsub.f32 %v9172_v42, %v2730_v55 }
 0x33e   : > { %v9799_v24 = vpop.xlane.xlu1 %2697  ;;  %2919 = vadd.xlane.f32.xlu1 %v2918_v36  ;;  %v2930_v36 = vsel %vm11651_vm1, %v2856_v50, 0.0 }
 0x33f   : > { %v9819_v38 = vsub.f32 %v9180_v48, %v2729_v27  ;;  %v2858_v20 = vmul.f32 %v9813_v61, %v9813_v61  ;;  %v2927_v27 = vsel %vm11651_vm1, %v2855_v53, 0.0  ;;  %v3503_v53 = vld [vmem:[%s11577_s8] sm:$0xff] }
 0x340   : > { %v9808_v57 = vpop.xlane.xlu0 %2694  ;;  %2916 = vadd.xlane.f32.xlu0 %v2915_v63 }
 0x341   : > { %v2857_v63 = vmul.f32 %v9819_v38, %v9819_v38  ;;  %v2936_v8 = vsel %vm11651_vm1, %v2858_v20, 0.0 }
 0x342   : > { %v2560_v40 = vpop.xlane.xlu1 %2559  ;;  %2925 = vadd.xlane.f32.xlu1 %v2924_v17 }
 0x343   : > { %v2732_v47 = vmul.f32 0.03125, %v2560_v40  ;;  %v2933_v40 = vsel %vm11651_vm1, %v2857_v63, 0.0 }
 0x344   : > { %v2557_v16 = vpop.xlane.xlu0 %2556  ;;  %2922 = vadd.xlane.f32.xlu0 %v2921_v44  ;;  %v3505_v44 = vld [vmem:[%s11577_s8 + $0x10] sm:$0xff] }
 0x345   : > { %v2731_v42 = vmul.f32 0.03125, %v2557_v16  ;;  %v9825_v55 = vsub.f32 %v9202_v22, %v2732_v47  ;;  %v3506_v47 = vld [vmem:[%s11577_s8 + $0x18] sm:$0xff]  ;;  %v3504_v16 = vld [vmem:[%s11577_s8 + $0x8] sm:$0xff] }
 0x346   : > { %2931 = vadd.xlane.f32.xlu1 %v2930_v36  ;;  %6972 = vmatprep.subr.mxu1 %v3506_v47 }
 0x347   : > { %v9831_v48 = vsub.f32 %v9208_v56, %v2731_v42  ;;  %v2860_v22 = vmul.f32 %v9825_v55, %v9825_v55  ;;  %6973 = vmatpush3.msra.mxu1 %v3506_v47 }
 0x348   : > { %2928 = vadd.xlane.f32.xlu0 %v2927_v27  ;;  %6974 = vmatprep.subr.mxu1 %v3505_v44 }
 0x349   : > { %v2859_v17 = vmul.f32 %v9831_v48, %v9831_v48  ;;  %v2942_v56 = vsel %vm11651_vm1, %v2860_v22, 0.0  ;;  %6975 = vmatpush3.msra.mxu1 %v3505_v44 }
 0x34a   : > { %2937 = vadd.xlane.f32.xlu1 %v2936_v8  ;;  %6976 = vmatprep.subr.mxu1 %v3504_v16 }
 0x34b   : > { %v2939_v50 = vsel %vm11651_vm1, %v2859_v17, 0.0  ;;  %6977 = vmatpush3.msra.mxu1 %v3504_v16 }
 0x34c   : > { %2934 = vadd.xlane.f32.xlu0 %v2933_v40  ;;  %6978 = vmatprep.subr.mxu1 %v3503_v53 }
 0x34d   : > { %6979 = vmatpush3.msra.mxu1 %v3503_v53 }
 0x34e   : > { %2943 = vadd.xlane.f32.xlu1 %v2942_v56 }
 0x350   : > { %2940 = vadd.xlane.f32.xlu0 %v2939_v50 }
 0x36b   : > { %v9856_v42 = vpop.xlane.xlu1 %2703 }
 0x36d   : > { %v9858_v36 = vpop.xlane.xlu0 %2700 }
 0x36f   : > { %v2566_v20 = vpop.xlane.xlu1 %2565 }
 0x370   : > { %v2734_v27 = vmul.f32 0.03125, %v2566_v20 }
 0x371   : > { %v2563_v63 = vpop.xlane.xlu0 %2562 }
 0x372   : > { %v9861_v8 = vsub.f32 %v9313_v15, %v2734_v27  ;;  %v2733_v22 = vmul.f32 0.03125, %v2563_v63 }
 0x373   : > { %v9863_v40 = vpop.xlane.xlu1 %2709 }
 0x374   : > { %11743 = vst [vmem:[#allocation26_spill] sm:$0xff] %v9861_v8  ;;  %v9866_v17 = vsub.f32 %v9326_v60, %v2733_v22  ;;  %v2862_v56 = vmul.f32 %v9861_v8, %v9861_v8 }
 0x375   : > { %v9870_v50 = vpop.xlane.xlu0 %2706 }
 0x376   : > { %11744 = vst [vmem:[#allocation27_spill] sm:$0xff] %v9866_v17  ;;  %v2948_v47 = vsel %vm11651_vm1, %v2862_v56, 0.0  ;;  %v2861_v44 = vmul.f32 %v9866_v17, %v9866_v17 }
 0x377   : > { %v2572_v16 = vpop.xlane.xlu1 %2571  ;;  %2949 = vadd.xlane.f32.xlu1 %v2948_v47 }
 0x378   : > { %v2736_v15 = vmul.f32 0.03125, %v2572_v16  ;;  %v2945_v53 = vsel %vm11651_vm1, %v2861_v44, 0.0 }
 0x379   : > { %2946 = vadd.xlane.f32.xlu0 %v2945_v53  ;;  %v2569_v20 = vpop.xlane.xlu0 %2568 }
 0x37a   : > { %v9877_v60 = vsub.f32 %v9375_v45, %v2736_v15  ;;  %v2735_v27 = vmul.f32 0.03125, %v2569_v20 }
 0x37b   : > { %v9879_v63 = vpop.xlane.xlu1 %2715 }
 0x37c   : > { %11745 = vst [vmem:[#allocation28_spill] sm:$0xff] %v9877_v60  ;;  %v9882_v22 = vsub.f32 %v9392_v59, %v2735_v27  ;;  %v2864_v56 = vmul.f32 %v9877_v60, %v9877_v60 }
 0x37d   : > { %v9886_v17 = vpop.xlane.xlu0 %2712 }
 0x37e   : > { %11746 = vst [vmem:[#allocation29_spill] sm:$0xff] %v9882_v22  ;;  %v2954_v47 = vsel %vm11651_vm1, %v2864_v56, 0.0  ;;  %v2863_v44 = vmul.f32 %v9882_v22, %v9882_v22 }
 0x37f   : > { %v2578_v16 = vpop.xlane.xlu1 %2577  ;;  %2955 = vadd.xlane.f32.xlu1 %v2954_v47 }
 0x380   : > { %v2738_v45 = vmul.f32 0.03125, %v2578_v16  ;;  %v2951_v15 = vsel %vm11651_vm1, %v2863_v44, 0.0 }
 0x381   : > { %2952 = vadd.xlane.f32.xlu0 %v2951_v15  ;;  %v2575_v53 = vpop.xlane.xlu0 %2574 }
 0x382   : > { %v9893_v59 = vsub.f32 %v9439_v13, %v2738_v45  ;;  %v2737_v20 = vmul.f32 0.03125, %v2575_v53 }
 0x383   : > { %v9898_v60 = vpop.xlane.xlu1 %2721 }
 0x384   : > { %11747 = vst [vmem:[#allocation30_spill] sm:$0xff] %v9893_v59  ;;  %v9896_v27 = vsub.f32 %v9450_v6, %v2737_v20  ;;  %v2866_v56 = vmul.f32 %v9893_v59, %v9893_v59 }
 0x385   : > { %v9902_v22 = vpop.xlane.xlu0 %2718 }
 0x386   : > { %11748 = vst [vmem:[#allocation31_spill] sm:$0xff] %v9896_v27  ;;  %v2960_v47 = vsel %vm11651_vm1, %v2866_v56, 0.0  ;;  %v2865_v44 = vmul.f32 %v9896_v27, %v9896_v27 }
 0x387   : > { %2961 = vadd.xlane.f32.xlu1 %v2960_v47  ;;  %v2584_v16 = vpop.xlane.xlu1 %2583 }
 0x388   : > { %v2957_v13 = vsel %vm11651_vm1, %v2865_v44, 0.0  ;;  %v2740_v45 = vmul.f32 0.03125, %v2584_v16 }
 0x389   : > { %2958 = vadd.xlane.f32.xlu0 %v2957_v13  ;;  %v2581_v6 = vpop.xlane.xlu0 %2580 }
 0x38a   : > { %v9909_v15 = vsub.f32 %v9490_v32, %v2740_v45  ;;  %v2739_v53 = vmul.f32 0.03125, %v2581_v6 }
 0x38b   : > { %v2590_v20 = vpop.xlane.xlu1 %2589 }
 0x38c   : > { %v9912_v59 = vsub.f32 %v9502_v21, %v2739_v53  ;;  %v2742_v8 = vmul.f32 0.03125, %v2590_v20  ;;  %v2868_v56 = vmul.f32 %v9909_v15, %v9909_v15 }
 0x38d   : > { %v2587_v27 = vpop.xlane.xlu0 %2586 }
 0x38e   : > { %v9917_v47 = vsub.f32 %v9515_v25, %v2742_v8  ;;  %v2741_v44 = vmul.f32 0.03125, %v2587_v27  ;;  %v2966_v16 = vsel %vm11651_vm1, %v2868_v56, 0.0  ;;  %v2867_v32 = vmul.f32 %v9912_v59, %v9912_v59 }
 0x38f   : > { %2967 = vadd.xlane.f32.xlu1 %v2966_v16  ;;  %v2596_v13 = vpop.xlane.xlu1 %2595 }
 0x390   : > { %v9923_v45 = vsub.f32 %v9526_v58, %v2741_v44  ;;  %v2744_v21 = vmul.f32 0.03125, %v2596_v13  ;;  %v2963_v6 = vsel %vm11651_vm1, %v2867_v32, 0.0  ;;  %v2870_v53 = vmul.f32 %v9917_v47, %v9917_v47 }
 0x391   : > { %2964 = vadd.xlane.f32.xlu0 %v2963_v6  ;;  %v2593_v25 = vpop.xlane.xlu0 %2592 }
 0x392   : > { %v9929_v8 = vsub.f32 %v9540_v18, %v2744_v21  ;;  %v2743_v27 = vmul.f32 0.03125, %v2593_v25  ;;  %v2972_v20 = vsel %vm11651_vm1, %v2870_v53, 0.0  ;;  %v2869_v56 = vmul.f32 %v9923_v45, %v9923_v45 }
 0x393   : > { %2973 = vadd.xlane.f32.xlu1 %v2972_v20  ;;  %v2602_v58 = vpop.xlane.xlu1 %2601 }
 0x394   : > { %v9935_v44 = vsub.f32 %v9551_v37, %v2743_v27  ;;  %v2746_v16 = vmul.f32 0.03125, %v2602_v58  ;;  %v2969_v32 = vsel %vm11651_vm1, %v2869_v56, 0.0  ;;  %v2872_v13 = vmul.f32 %v9929_v8, %v9929_v8 }
 0x395   : > { %2970 = vadd.xlane.f32.xlu0 %v2969_v32  ;;  %v2599_v18 = vpop.xlane.xlu0 %2598 }
 0x396   : > { %v9941_v21 = vsub.f32 %v9569_v52, %v2746_v16  ;;  %v2745_v6 = vmul.f32 0.03125, %v2599_v18  ;;  %v2978_v53 = vsel %vm11651_vm1, %v2872_v13, 0.0  ;;  %v2871_v25 = vmul.f32 %v9935_v44, %v9935_v44 }
 0x397   : > { %2979 = vadd.xlane.f32.xlu1 %v2978_v53  ;;  %v2608_v37 = vpop.xlane.xlu1 %2607 }
 0x398   : > { %v9947_v27 = vsub.f32 %v9582_v34, %v2745_v6  ;;  %v2748_v20 = vmul.f32 0.03125, %v2608_v37  ;;  %v2975_v56 = vsel %vm11651_vm1, %v2871_v25, 0.0  ;;  %v2874_v58 = vmul.f32 %v9941_v21, %v9941_v21  ;;  %v11750_v6 = vld [vmem:[#allocation4_spill] sm:$0xff] }
 0x399   : > { %2976 = vadd.xlane.f32.xlu0 %v2975_v56  ;;  %v2605_v52 = vpop.xlane.xlu0 %2604 }
 0x39a   : > { %11749 = vst [vmem:[#allocation32_spill] sm:$0xff] %v9947_v27  ;;  %v9953_v16 = vsub.f32 %v9587_v43, %v2748_v20  ;;  %v2747_v32 = vmul.f32 0.03125, %v2605_v52  ;;  %v2984_v13 = vsel %vm11651_vm1, %v2874_v58, 0.0  ;;  %v2873_v18 = vmul.f32 %v9947_v27, %v9947_v27 }
 0x39b   : > { %2985 = vadd.xlane.f32.xlu1 %v2984_v13  ;;  %v2614_v34 = vpop.xlane.xlu1 %2613 }
 0x39c   : > { %v9959_v53 = vsub.f32 %v11750_v6, %v2747_v32  ;;  %v2750_v25 = vmul.f32 0.03125, %v2614_v34  ;;  %v2981_v37 = vsel %vm11651_vm1, %v2873_v18, 0.0  ;;  %v2876_v56 = vmul.f32 %v9953_v16, %v9953_v16  ;;  %v11751_v6 = vld [vmem:[#allocation5_spill] sm:$0xff] }
 0x39d   : > { %2982 = vadd.xlane.f32.xlu0 %v2981_v37  ;;  %v2611_v43 = vpop.xlane.xlu0 %2610 }
 0x39e   : > { %v9965_v20 = vsub.f32 %v9609_v49, %v2750_v25  ;;  %v2749_v58 = vmul.f32 0.03125, %v2611_v43  ;;  %v2990_v52 = vsel %vm11651_vm1, %v2876_v56, 0.0  ;;  %v2875_v13 = vmul.f32 %v9959_v53, %v9959_v53 }
 0x39f   : > { %2991 = vadd.xlane.f32.xlu1 %v2990_v52  ;;  %v2620_v32 = vpop.xlane.xlu1 %2619 }
 0x3a0   : > { %v9971_v34 = vsub.f32 %v11751_v6, %v2749_v58  ;;  %v2752_v18 = vmul.f32 0.03125, %v2620_v32  ;;  %v2987_v27 = vsel %vm11651_vm1, %v2875_v13, 0.0  ;;  %v2878_v37 = vmul.f32 %v9965_v20, %v9965_v20 }
 0x3a1   : > { %2988 = vadd.xlane.f32.xlu0 %v2987_v27  ;;  %v2617_v49 = vpop.xlane.xlu0 %2616 }
 0x3a2   : > { %v9977_v25 = vsub.f32 %v9630_v5, %v2752_v18  ;;  %v2751_v56 = vmul.f32 0.03125, %v2617_v49  ;;  %v2996_v43 = vsel %vm11651_vm1, %v2878_v37, 0.0  ;;  %v2877_v52 = vmul.f32 %v9971_v34, %v9971_v34 }
 0x3a3   : > { %2997 = vadd.xlane.f32.xlu1 %v2996_v43  ;;  %v2626_v58 = vpop.xlane.xlu1 %2625 }
 0x3a4   : > { %v9983_v32 = vsub.f32 %v9640_v46, %v2751_v56  ;;  %v2754_v13 = vmul.f32 0.03125, %v2626_v58  ;;  %v2993_v6 = vsel %vm11651_vm1, %v2877_v52, 0.0  ;;  %v2880_v27 = vmul.f32 %v9977_v25, %v9977_v25 }
 0x3a5   : > { %2994 = vadd.xlane.f32.xlu0 %v2993_v6  ;;  %v2623_v5 = vpop.xlane.xlu0 %2622 }
 0x3a6   : > { %v9989_v18 = vsub.f32 %v9650_v54, %v2754_v13  ;;  %v2753_v37 = vmul.f32 0.03125, %v2623_v5  ;;  %v3002_v49 = vsel %vm11651_vm1, %v2880_v27, 0.0  ;;  %v2879_v43 = vmul.f32 %v9983_v32, %v9983_v32 }
 0x3a7   : > { %3003 = vadd.xlane.f32.xlu1 %v3002_v49  ;;  %v2632_v46 = vpop.xlane.xlu1 %2631 }
 0x3a8   : > { %v9995_v56 = vsub.f32 %v9660_v2, %v2753_v37  ;;  %v2756_v52 = vmul.f32 0.03125, %v2632_v46  ;;  %v2999_v58 = vsel %vm11651_vm1, %v2879_v43, 0.0  ;;  %v2882_v6 = vmul.f32 %v9989_v18, %v9989_v18 }
 0x3a9   : > { %3000 = vadd.xlane.f32.xlu0 %v2999_v58  ;;  %v2629_v54 = vpop.xlane.xlu0 %2628 }
 0x3aa   : > { %v10001_v13 = vsub.f32 %v9670_v28, %v2756_v52  ;;  %v2755_v27 = vmul.f32 0.03125, %v2629_v54  ;;  %v3008_v5 = vsel %vm11651_vm1, %v2882_v6, 0.0  ;;  %v2881_v49 = vmul.f32 %v9995_v56, %v9995_v56 }
 0x3ab   : > { %3009 = vadd.xlane.f32.xlu1 %v3008_v5  ;;  %v2638_v2 = vpop.xlane.xlu1 %2637 }
 0x3ac   : > { %v10007_v37 = vsub.f32 %v9677_v23, %v2755_v27  ;;  %v2758_v43 = vmul.f32 0.03125, %v2638_v2  ;;  %v3005_v46 = vsel %vm11651_vm1, %v2881_v49, 0.0  ;;  %v2884_v58 = vmul.f32 %v10001_v13, %v10001_v13 }
 0x3ad   : > { %3006 = vadd.xlane.f32.xlu0 %v3005_v46  ;;  %v2635_v28 = vpop.xlane.xlu0 %2634 }
 0x3ae   : > { %v10013_v52 = vsub.f32 %v9684_v7, %v2758_v43  ;;  %v2757_v6 = vmul.f32 0.03125, %v2635_v28  ;;  %v3014_v54 = vsel %vm11651_vm1, %v2884_v58, 0.0  ;;  %v2883_v5 = vmul.f32 %v10007_v37, %v10007_v37 }
 0x3af   : > { %3015 = vadd.xlane.f32.xlu1 %v3014_v54  ;;  %v2644_v23 = vpop.xlane.xlu1 %2643 }
 0x3b0   : > { %v10019_v27 = vsub.f32 %v9690_v51, %v2757_v6  ;;  %v2760_v49 = vmul.f32 0.03125, %v2644_v23  ;;  %v3011_v2 = vsel %vm11651_vm1, %v2883_v5, 0.0  ;;  %v2886_v46 = vmul.f32 %v10013_v52, %v10013_v52 }
 0x3b1   : > { %3012 = vadd.xlane.f32.xlu0 %v3011_v2  ;;  %v2641_v7 = vpop.xlane.xlu0 %2640 }
 0x3b2   : > { %v10025_v43 = vsub.f32 %v9696_v9, %v2760_v49  ;;  %v2759_v58 = vmul.f32 0.03125, %v2641_v7  ;;  %v3020_v28 = vsel %vm11651_vm1, %v2886_v46, 0.0  ;;  %v2885_v54 = vmul.f32 %v10019_v27, %v10019_v27 }
 0x3b3   : > { %3021 = vadd.xlane.f32.xlu1 %v3020_v28  ;;  %v2650_v51 = vpop.xlane.xlu1 %2649 }
 0x3b4   : > { %v10031_v6 = vsub.f32 %v9702_v29, %v2759_v58  ;;  %v2762_v5 = vmul.f32 0.03125, %v2650_v51  ;;  %v3017_v23 = vsel %vm11651_vm1, %v2885_v54, 0.0  ;;  %v2888_v2 = vmul.f32 %v10025_v43, %v10025_v43 }
 0x3b5   : > { %3018 = vadd.xlane.f32.xlu0 %v3017_v23  ;;  %v2647_v9 = vpop.xlane.xlu0 %2646 }
 0x3b6   : > { %v10037_v49 = vsub.f32 %v9710_v3, %v2762_v5  ;;  %v2761_v46 = vmul.f32 0.03125, %v2647_v9  ;;  %v3026_v7 = vsel %vm11651_vm1, %v2888_v2, 0.0  ;;  %v2887_v28 = vmul.f32 %v10031_v6, %v10031_v6 }
 0x3b7   : > { %3027 = vadd.xlane.f32.xlu1 %v3026_v7  ;;  %v2656_v29 = vpop.xlane.xlu1 %2655 }
 0x3b8   : > { %11752 = vst [vmem:[#allocation4_spill] sm:$0xff] %v10037_v49  ;;  %v10043_v58 = vsub.f32 %v9718_v12, %v2761_v46  ;;  %v2764_v54 = vmul.f32 0.03125, %v2656_v29  ;;  %v3023_v51 = vsel %vm11651_vm1, %v2887_v28, 0.0  ;;  %v2890_v23 = vmul.f32 %v10037_v49, %v10037_v49 }
 0x3b9   : > { %3024 = vadd.xlane.f32.xlu0 %v3023_v51  ;;  %v2653_v3 = vpop.xlane.xlu0 %2652 }
 0x3ba   : > { %11753 = vst [vmem:[#allocation5_spill] sm:$0xff] %v10043_v58  ;;  %v10049_v5 = vsub.f32 %v9724_v41, %v2764_v54  ;;  %v2763_v2 = vmul.f32 0.03125, %v2653_v3  ;;  %v3032_v9 = vsel %vm11651_vm1, %v2890_v23, 0.0  ;;  %v2889_v7 = vmul.f32 %v10043_v58, %v10043_v58  ;;  %v11756_v54 = vld [vmem:[#allocation24_spill] sm:$0xff] }
 0x3bb   : > { %3033 = vadd.xlane.f32.xlu1 %v3032_v9  ;;  %v2662_v12 = vpop.xlane.xlu1 %2661 }
 0x3bc   : > { %11754 = vst [vmem:[#allocation33_spill] sm:$0xff] %v10049_v5  ;;  %v10055_v46 = vsub.f32 %v9730_v39, %v2763_v2  ;;  %v2766_v28 = vmul.f32 0.03125, %v2662_v12  ;;  %v3029_v29 = vsel %vm11651_vm1, %v2889_v7, 0.0  ;;  %v2892_v51 = vmul.f32 %v10049_v5, %v10049_v5  ;;  %v11759_v5 = vld [vmem:[#allocation6_spill] sm:$0xff] }
 0x3bd   : > { %3030 = vadd.xlane.f32.xlu0 %v3029_v29  ;;  %v2659_v41 = vpop.xlane.xlu0 %2658 }
 0x3be   : > { %11755 = vst [vmem:[#allocation34_spill] sm:$0xff] %v10055_v46  ;;  %v10061_v3 = vsub.f32 %v11756_v54, %v2766_v28  ;;  %v2765_v23 = vmul.f32 0.03125, %v2659_v41  ;;  %v3038_v49 = vsel %vm11651_vm1, %v2892_v51, 0.0  ;;  %v2891_v9 = vmul.f32 %v10055_v46, %v10055_v46 }
 0x3bf   : > { %3039 = vadd.xlane.f32.xlu1 %v3038_v49  ;;  %v2668_v39 = vpop.xlane.xlu1 %2667  ;;  %v2772_v28 = vmul.f32 0.03125, %v11759_v5 }
 0x3c0   : > { %11757 = vst [vmem:[#allocation24_spill] sm:$0xff] %v10061_v3  ;;  %v10067_v2 = vsub.f32 %v9746_v31, %v2765_v23  ;;  %v2768_v7 = vmul.f32 0.03125, %v2668_v39  ;;  %v3035_v12 = vsel %vm11651_vm1, %v2891_v9, 0.0  ;;  %v2894_v29 = vmul.f32 %v10061_v3, %v10061_v3  ;;  %v11761_v23 = vld [vmem:[#allocation7_spill] sm:$0xff] }
 0x3c1   : > { %3036 = vadd.xlane.f32.xlu0 %v3035_v12  ;;  %v2665_v41 = vpop.xlane.xlu0 %2664  ;;  %v2771_v39 = vmul.f32 0.03125, %v11761_v23 }
 0x3c2   : > { %11758 = vst [vmem:[#allocation35_spill] sm:$0xff] %v10067_v2  ;;  %v10074_v51 = vsub.f32 %v9752_v26, %v2768_v7  ;;  %v2767_v54 = vmul.f32 0.03125, %v2665_v41  ;;  %v3044_v49 = vsel %vm11651_vm1, %v2894_v29, 0.0  ;;  %v2893_v31 = vmul.f32 %v10067_v2, %v10067_v2  ;;  %v11762_v7 = vld [vmem:[#allocation8_spill] sm:$0xff]  ;;  %v11764_v29 = vld [vmem:[#allocation23_spill] sm:$0xff] }
 0x3c3   : > { %3045 = vadd.xlane.f32.xlu1 %v3044_v49  ;;  %v2674_v9 = vpop.xlane.xlu1 %2673  ;;  %v10087_v12 = vsub.f32 %v11762_v7, %v2772_v28  ;;  %v2774_v41 = vmul.f32 0.03125, %v11764_v29  ;;  %v2776_v29 = vmul.f32 0.03125, %v9763_v30 }
 0x3c4   : > { %11760 = vst [vmem:[#allocation6_spill] sm:$0xff] %v10074_v51  ;;  %v10081_v46 = vsub.f32 %v9758_v4, %v2767_v54  ;;  %v2770_v3 = vmul.f32 0.03125, %v2674_v9  ;;  %v3041_v5 = vsel %vm11651_vm1, %v2893_v31, 0.0  ;;  %v2896_v26 = vmul.f32 %v10074_v51, %v10074_v51  ;;  %v11765_v31 = vld [vmem:[#allocation9_spill] sm:$0xff] }
 0x3c5   : > { %11763 = vst [vmem:[#allocation7_spill] sm:$0xff] %v10087_v12  ;;  %3042 = vadd.xlane.f32.xlu0 %v3041_v5  ;;  %v2671_v2 = vpop.xlane.xlu0 %2670  ;;  %v10097_v9 = vsub.f32 %v11765_v31, %v2771_v39  ;;  %v11767_v51 = vld [vmem:[#allocation25_spill] sm:$0xff] }
 0x3c6   : > { %v10091_v23 = vsub.f32 %v9769_v14, %v2770_v3  ;;  %v2769_v49 = vmul.f32 0.03125, %v2671_v2  ;;  %v3050_v4 = vsel %vm11651_vm1, %v2896_v26, 0.0  ;;  %v2895_v54 = vmul.f32 %v10081_v46, %v10081_v46  ;;  %v11769_v2 = vld [vmem:[#allocation17_spill] sm:$0xff] }
 0x3c7   : > { %11766 = vst [vmem:[#allocation8_spill] sm:$0xff] %v10097_v9  ;;  %v2773_v58 = vmul.f32 0.03125, %v11767_v51  ;;  %3051 = vadd.xlane.f32.xlu1 %v3050_v4  ;;  %v2920_v28 = vpop.xlane.xlu1 %2919  ;;  %v10107_v26 = vsub.f32 %v11769_v2, %v2774_v41  ;;  %v2900_v51 = vmul.f32 %v10087_v12, %v10087_v12  ;;  %v2775_v41 = vmul.f32 0.03125, %v9776_v33  ;;  %v11772_v33 = vld [vmem:[#allocation11_spill] sm:$0xff] }
 0x3c8   : > { %v10101_v7 = vsub.f32 %v9780_v19, %v2769_v49  ;;  %v3108_v5 = vmul.f32 0.03125, %v2920_v28  ;;  %v3047_v14 = vsel %vm11651_vm1, %v2895_v54, 0.0  ;;  %v2898_v3 = vmul.f32 %v10091_v23, %v10091_v23  ;;  %v11771_v54 = vld [vmem:[#allocation10_spill] sm:$0xff] }
 0x3c9   : > { %11770 = vst [vmem:[#allocation9_spill] sm:$0xff] %v10107_v26  ;;  %3048 = vadd.xlane.f32.xlu0 %v3047_v14  ;;  %v2917_v39 = vpop.xlane.xlu0 %2916  ;;  %v10116_v28 = vsub.f32 %v11771_v54, %v2773_v58  ;;  %v2899_v30 = vmul.f32 %v10097_v9, %v10097_v9  ;;  %v2902_v58 = vmul.f32 %v10107_v26, %v10107_v26 }
 0x3ca   : > { %11768 = vst [vmem:[#allocation23_spill] sm:$0xff] %v10101_v7  ;;  %v3172_v4 = vadd.f32 1e-05, %v3108_v5  ;;  %v3107_v31 = vmul.f32 0.03125, %v2917_v39  ;;  %v3056_v19 = vsel %vm11651_vm1, %v2898_v3, 0.0  ;;  %v2897_v49 = vmul.f32 %v10101_v7, %v10101_v7 }
 0x3cb   : > { %3057 = vadd.xlane.f32.xlu1 %v3056_v19  ;;  %v2926_v2 = vpop.xlane.xlu1 %2925  ;;  %v2778_v3 = vmul.f32 0.03125, %v9799_v24  ;;  %v3062_v7 = vsel %vm11651_vm1, %v2900_v51, 0.0  ;;  %v10127_v19 = vsub.f32 %v11772_v33, %v2776_v29  ;;  %v2901_v24 = vmul.f32 %v10116_v28, %v10116_v28  ;;  %v11774_v29 = vld [vmem:[#allocation12_spill] sm:$0xff] }
 0x3cc   : > { %7473 = vrsqrt.f32 %v3172_v4  ;;  %v3171_v14 = vadd.f32 1e-05, %v3107_v31  ;;  %v3110_v12 = vmul.f32 0.03125, %v2926_v2  ;;  %v3053_v5 = vsel %vm11651_vm1, %v2897_v49, 0.0  ;;  %v11773_v2 = vld [vmem:[#allocation19_spill] sm:$0xff] }
 0x3cd   : > { %3054 = vadd.xlane.f32.xlu0 %v3053_v5  ;;  %v2923_v39 = vpop.xlane.xlu0 %2922  ;;  %v2777_v4 = vmul.f32 0.03125, %v9808_v57  ;;  %v3059_v49 = vsel %vm11651_vm1, %v2899_v30, 0.0  ;;  %v10134_v51 = vsub.f32 %v11773_v2, %v2775_v41  ;;  %v10137_v33 = vsub.f32 %v11774_v29, %v2778_v3  ;;  %v11775_v41 = vld [vmem:[#allocation13_spill] sm:$0xff] }
 0x3ce   : > { %7475 = vrsqrt.f32 %v3171_v14  ;;  %v3174_v54 = vadd.f32 1e-05, %v3110_v12  ;;  %v3109_v9 = vmul.f32 0.03125, %v2923_v39  ;;  %v2780_v12 = vmul.f32 0.03125, %v9856_v42 }
 0x3cf   : > { %3063 = vadd.xlane.f32.xlu1 %v3062_v7  ;;  %v2932_v31 = vpop.xlane.xlu1 %2931  ;;  %v3068_v7 = vsel %vm11651_vm1, %v2902_v58, 0.0  ;;  %v2904_v39 = vmul.f32 %v10127_v19, %v10127_v19  ;;  %v10144_v2 = vsub.f32 %v11775_v41, %v2777_v4  ;;  %v2903_v58 = vmul.f32 %v10134_v51, %v10134_v51 }
 0x3d0   : > { %7477 = vrsqrt.f32 %v3174_v54  ;;  %v3173_v5 = vadd.f32 1e-05, %v3109_v9  ;;  %v3112_v26 = vmul.f32 0.03125, %v2932_v31  ;;  %v2779_v9 = vmul.f32 0.03125, %v9858_v36 }
 0x3d1   : > { %3060 = vadd.xlane.f32.xlu0 %v3059_v49  ;;  %v2929_v57 = vpop.xlane.xlu0 %2928  ;;  %v3065_v54 = vsel %vm11651_vm1, %v2901_v24, 0.0  ;;  %v2906_v36 = vmul.f32 %v10137_v33, %v10137_v33  ;;  %v3074_v24 = vsel %vm11651_vm1, %v2904_v39, 0.0  ;;  %v2784_v39 = vmul.f32 0.03125, %v9879_v63 }
 0x3d2   : > { %7479 = vrsqrt.f32 %v3173_v5  ;;  %v3176_v30 = vadd.f32 1e-05, %v3112_v26  ;;  %v3111_v14 = vmul.f32 0.03125, %v2929_v57  ;;  %v11776_v26 = vld [vmem:[#allocation21_spill] sm:$0xff]  ;;  %v2782_v5 = vmul.f32 0.03125, %v9863_v40 }
 0x3d3   : > { %3069 = vadd.xlane.f32.xlu1 %v3068_v7  ;;  %v2938_v3 = vpop.xlane.xlu1 %2937  ;;  %v10151_v49 = vsub.f32 %v11776_v26, %v2780_v12  ;;  %v11778_v7 = vld [vmem:[#allocation14_spill] sm:$0xff]  ;;  %v2905_v40 = vmul.f32 %v10144_v2, %v10144_v2 }
 0x3d4   : > { %7481 = vrsqrt.f32 %v3176_v30  ;;  %v3175_v42 = vadd.f32 1e-05, %v3111_v14  ;;  %v3114_v31 = vmul.f32 0.03125, %v2938_v3  ;;  %v10158_v30 = vsub.f32 %v11778_v7, %v2779_v9  ;;  %v11780_v7 = vld [vmem:[#allocation16_spill] sm:$0xff] }
 0x3d5   : > { %11777 = vst [vmem:[#allocation25_spill] sm:$0xff] %v10151_v49  ;;  %3066 = vadd.xlane.f32.xlu0 %v3065_v54  ;;  %v2935_v4 = vpop.xlane.xlu0 %2934  ;;  %v2781_v14 = vmul.f32 0.03125, %v9870_v50  ;;  %v3071_v54 = vsel %vm11651_vm1, %v2903_v58, 0.0  ;;  %v3080_v50 = vsel %vm11651_vm1, %v2906_v36, 0.0  ;;  %v3077_v36 = vsel %vm11651_vm1, %v2905_v40, 0.0 }
 0x3d6   : > { %7483 = vrsqrt.f32 %v3175_v42  ;;  %v3178_v29 = vadd.f32 1e-05, %v3114_v31  ;;  %v3113_v57 = vmul.f32 0.03125, %v2935_v4  ;;  %v11779_v31 = vld [vmem:[#allocation15_spill] sm:$0xff]  ;;  %v2908_v4 = vmul.f32 %v10151_v49, %v10151_v49 }
 0x3d7   : > { %3075 = vadd.xlane.f32.xlu1 %v3074_v24  ;;  %v2944_v12 = vpop.xlane.xlu1 %2943  ;;  %v10165_v26 = vsub.f32 %v11779_v31, %v2782_v5  ;;  %v10178_v63 = vsub.f32 %v11780_v7, %v2781_v14 }
 0x3d8   : > { %7485 = vrsqrt.f32 %v3178_v29  ;;  %v3177_v41 = vadd.f32 1e-05, %v3113_v57  ;;  %v3116_v3 = vmul.f32 0.03125, %v2944_v12  ;;  %v10174_v29 = vld [vmem:[%s11575_s6] ss:$0 sm:$0xff]  ;;  %v2907_v12 = vmul.f32 %v10158_v30, %v10158_v30 }
 0x3d9   : > { %v7474_v42 = vpop.eup %7473  ;;  %3072 = vadd.xlane.f32.xlu0 %v3071_v54  ;;  %v2941_v9 = vpop.xlane.xlu0 %2940  ;;  %v2783_v54 = vmul.f32 0.03125, %v9886_v17  ;;  %v3086_v14 = vsel %vm11651_vm1, %v2908_v4, 0.0  ;;  %v2910_v40 = vmul.f32 %v10165_v26, %v10165_v26  ;;  %v10196_v17 = vld [vmem:[%s11576_s7] ss:$0 sm:$0xff]  ;;  %v2909_v4 = vmul.f32 %v10178_v63, %v10178_v63 }
 0x3da   : > { %v3300_v58 = vmul.f32 %v7474_v42, %v9761_v0  ;;  %7487 = vrsqrt.f32 %v3177_v41  ;;  %v3180_v57 = vadd.f32 1e-05, %v3116_v3  ;;  %v3115_v5 = vmul.f32 0.03125, %v2941_v9  ;;  %v11781_v41 = vld [vmem:[#allocation18_spill] sm:$0xff] }
 0x3db   : > { %v7476_v24 = vpop.eup %7475  ;;  %3081 = vadd.xlane.f32.xlu1 %v3080_v50  ;;  %v10186_v3 = vsub.f32 %v11781_v41, %v2784_v39  ;;  %v2786_v9 = vmul.f32 0.03125, %v9898_v60  ;;  %v2785_v60 = vmul.f32 0.03125, %v9902_v22 }
 0x3dc   : > { %7489 = vrsqrt.f32 %v3180_v57  ;;  %v3179_v31 = vadd.f32 1e-05, %v3115_v5  ;;  %v3299_v49 = vmul.f32 %v7476_v24, %v9772_v62  ;;  %v3370_v42 = vmul.f32 %v10174_v29, %v3300_v58  ;;  %v11782_v57 = vld [vmem:[#allocation20_spill] sm:$0xff] }
 0x3dd   : > { %v7478_v0 = vpop.eup %7477  ;;  %3078 = vadd.xlane.f32.xlu0 %v3077_v36  ;;  %v3083_v58 = vsel %vm11651_vm1, %v2907_v12, 0.0  ;;  %v10204_v5 = vsub.f32 %v11782_v57, %v2783_v54  ;;  %v2912_v22 = vmul.f32 %v10186_v3, %v10186_v3 }
 0x3de   : > { %7491 = vrsqrt.f32 %v3179_v31  ;;  %v3369_v62 = vmul.f32 %v10174_v29, %v3299_v49  ;;  %v3302_v39 = vmul.f32 %v7478_v0, %v9783_v11  ;;  %v3092_v11 = vsel %vm11651_vm1, %v2910_v40, 0.0  ;;  %v11783_v31 = vld [vmem:[#allocation22_spill] sm:$0xff] }
 0x3df   : > { %v7480_v50 = vpop.eup %7479  ;;  %3087 = vadd.xlane.f32.xlu1 %v3086_v14  ;;  %v3440_v49 = vadd.f32 %v10196_v17, %v3370_v42  ;;  %v10213_v0 = vsub.f32 %v11783_v31, %v2786_v9  ;;  %v3089_v42 = vsel %vm11651_vm1, %v2909_v4, 0.0  ;;  %v11784_v14 = vld [vmem:[#allocation3_spill] sm:$0xff]  ;;  %v3098_v4 = vsel %vm11651_vm1, %v2912_v22, 0.0 }
 0x3e0   : > { %v3439_v24 = vadd.f32 %v10196_v17, %v3369_v62  ;;  %v3301_v7 = vmul.f32 %v7480_v50, %v9790_v35  ;;  %v3372_v12 = vmul.f32 %v10174_v29, %v3302_v39  ;;  %v10223_v40 = vsub.f32 %v11784_v14, %v2785_v60 }
 0x3e1   : > { %v7482_v36 = vpop.eup %7481  ;;  %3084 = vadd.xlane.f32.xlu0 %v3083_v58  ;;  %v2911_v62 = vmul.f32 %v10204_v5, %v10204_v5  ;;  %v2914_v60 = vmul.f32 %v10213_v0, %v10213_v0 }
 0x3e2   : > { %6980 = vmatprep.mubr.msk.f32.mxu1 %vm11651_vm1, %v3439_v24  ;;  %v3371_v54 = vmul.f32 %v10174_v29, %v3301_v7  ;;  %v3304_v35 = vmul.f32 %v7482_v36, %v9797_v10  ;;  %v3442_v10 = vadd.f32 %v10196_v17, %v3372_v12 }
 0x3e3   : > { %v7484_v41 = vpop.eup %7483  ;;  %3093 = vadd.xlane.f32.xlu1 %v3092_v11  ;;  %6981 = vmatmul.mubr.msk.f32.vlgmr.msra.gmra.mxu1 %vm11651_vm1, %v3440_v49  ;;  %v2913_v11 = vmul.f32 %v10223_v40, %v10223_v40 }
 0x3e4   : > { %v3441_v9 = vadd.f32 %v10196_v17, %v3371_v54  ;;  %v3303_v39 = vmul.f32 %v7484_v41, %v9805_v1  ;;  %v3374_v58 = vmul.f32 %v10174_v29, %v3304_v35  ;;  %v3095_v1 = vsel %vm11651_vm1, %v2911_v62, 0.0 }
 0x3e5   : > { %v7486_v50 = vpop.eup %7485  ;;  %3090 = vadd.xlane.f32.xlu0 %v3089_v42 }
 0x3e6   : > { %6983 = vmatprep.mubr.msk.f32.mxu1 %vm11651_vm1, %v3441_v9  ;;  %v3373_v57 = vmul.f32 %v10174_v29, %v3303_v39  ;;  %v3306_v24 = vmul.f32 %v7486_v50, %v9813_v61  ;;  %v3444_v31 = vadd.f32 %v10196_v17, %v3374_v58  ;;  %v3104_v61 = vsel %vm11651_vm1, %v2914_v60, 0.0 }
 0x3e7   : > { %v7488_v7 = vpop.eup %7487  ;;  %3099 = vadd.xlane.f32.xlu1 %v3098_v4  ;;  %6984 = vmatmul.mubr.msk.f32.gmra.mxu1 %vm11651_vm1, %v3442_v10 }
 0x3e8   : > { %v3443_v36 = vadd.f32 %v10196_v17, %v3373_v57  ;;  %v3305_v49 = vmul.f32 %v7488_v7, %v9819_v38  ;;  %v3376_v54 = vmul.f32 %v10174_v29, %v3306_v24  ;;  %v3101_v38 = vsel %vm11651_vm1, %v2913_v11, 0.0 }
 0x3e9   : > { %v7490_v12 = vpop.eup %7489  ;;  %3096 = vadd.xlane.f32.xlu0 %v3095_v1 }
 0x3ea   : > { %6986 = vmatprep.mubr.msk.f32.mxu1 %vm11651_vm1, %v3443_v36  ;;  %v3375_v22 = vmul.f32 %v10174_v29, %v3305_v49  ;;  %v3308_v35 = vmul.f32 %v7490_v12, %v9825_v55  ;;  %v3446_v9 = vadd.f32 %v10196_v17, %v3376_v54 }
 0x3eb   : > { %v7492_v41 = vpop.eup %7491  ;;  %3105 = vadd.xlane.f32.xlu1 %v3104_v61  ;;  %6987 = vmatmul.mubr.msk.f32.gmra.mxu1 %vm11651_vm1, %v3444_v31 }
 0x3ec   : > { %v3445_v42 = vadd.f32 %v10196_v17, %v3375_v22  ;;  %v3307_v14 = vmul.f32 %v7492_v41, %v9831_v48  ;;  %v3378_v62 = vmul.f32 %v10174_v29, %v3308_v35  ;;  %v4094_v22 = vld [vmem:[%s11579_s10 + $0x18] sm:$0xff] }
 0x3ed   : > { %3102 = vadd.xlane.f32.xlu0 %v3101_v38  ;;  %v11785_v38 = vld [vmem:[#allocation26_spill] sm:$0xff]  ;;  %7076 = vmatprep.subr.mxu0 %v4094_v22 }
 0x3ee   : > { %6989 = vmatprep.mubr.msk.f32.mxu1 %vm11651_vm1, %v3445_v42  ;;  %v3377_v39 = vmul.f32 %v10174_v29, %v3307_v14  ;;  %v3448_v50 = vadd.f32 %v10196_v17, %v3378_v62  ;;  %7077 = vmatpush3.msra.mxu0 %v4094_v22  ;;  %v11786_v62 = vld [vmem:[#allocation27_spill] sm:$0xff] }
 0x3ef   : > { %6990 = vmatmul.mubr.msk.f32.gmra.mxu1 %vm11651_vm1, %v3446_v9 }
 0x3f0   : > { %v3447_v55 = vadd.f32 %v10196_v17, %v3377_v39 }
 0x3f2   : > { %6992 = vmatprep.mubr.msk.f32.mxu1 %vm11651_vm1, %v3447_v55 }
 0x3f3   : > { %6993 = vmatmul.mubr.msk.f32.gmra.mxu1 %vm11651_vm1, %v3448_v50 }
 0x400   : > { %v2950_v48 = vpop.xlane.xlu1 %2949 }
 0x401   : > { %v3118_v10 = vmul.f32 0.03125, %v2950_v48 }
 0x402   : > { %v2947_v58 = vpop.xlane.xlu0 %2946 }
 0x403   : > { %v3182_v4 = vadd.f32 1e-05, %v3118_v10  ;;  %v3117_v57 = vmul.f32 0.03125, %v2947_v58 }
 0x405   : > { %7493 = vrsqrt.f32 %v3182_v4  ;;  %v3181_v60 = vadd.f32 1e-05, %v3117_v57 }
 0x407   : > { %7495 = vrsqrt.f32 %v3181_v60 }
 0x408   : > { %v2956_v24 = vpop.xlane.xlu1 %2955 }
 0x409   : > { %v3120_v7 = vmul.f32 0.03125, %v2956_v24  ;;  %v11787_v24 = vld [vmem:[#allocation28_spill] sm:$0xff] }
 0x40a   : > { %v2953_v1 = vpop.xlane.xlu0 %2952 }
 0x40b   : > { %v3184_v36 = vadd.f32 1e-05, %v3120_v7  ;;  %v3119_v11 = vmul.f32 0.03125, %v2953_v1 }
 0x40d   : > { %7497 = vrsqrt.f32 %v3184_v36  ;;  %v3183_v49 = vadd.f32 1e-05, %v3119_v11 }
 0x40f   : > { %7499 = vrsqrt.f32 %v3183_v49 }
 0x410   : > { %v2962_v12 = vpop.xlane.xlu1 %2961 }
 0x411   : > { %v3122_v31 = vmul.f32 0.03125, %v2962_v12  ;;  %v11788_v12 = vld [vmem:[#allocation29_spill] sm:$0xff] }
 0x412   : > { %v7494_v54 = vpop.eup %7493  ;;  %v2959_v61 = vpop.xlane.xlu0 %2958 }
 0x413   : > { %v3186_v35 = vadd.f32 1e-05, %v3122_v31  ;;  %v3121_v41 = vmul.f32 0.03125, %v2959_v61  ;;  %v3310_v42 = vmul.f32 %v7494_v54, %v11785_v38 }
 0x414   : > { %v7496_v14 = vpop.eup %7495 }
 0x415   : > { %7501 = vrsqrt.f32 %v3186_v35  ;;  %v3185_v9 = vadd.f32 1e-05, %v3121_v41  ;;  %v3309_v39 = vmul.f32 %v7496_v14, %v11786_v62  ;;  %v3380_v55 = vmul.f32 %v10174_v29, %v3310_v42 }
 0x417   : > { %7503 = vrsqrt.f32 %v3185_v9  ;;  %v3379_v50 = vmul.f32 %v10174_v29, %v3309_v39  ;;  %v3450_v57 = vadd.f32 %v10196_v17, %v3380_v55 }
 0x418   : > { %v2968_v48 = vpop.xlane.xlu1 %2967 }
 0x419   : > { %v3449_v10 = vadd.f32 %v10196_v17, %v3379_v50  ;;  %v3124_v4 = vmul.f32 0.03125, %v2968_v48 }
 0x41a   : > { %v7498_v58 = vpop.eup %7497  ;;  %v2965_v60 = vpop.xlane.xlu0 %2964 }
 0x41b   : > { %6995 = vmatprep.mubr.msk.f32.mxu1 %vm11651_vm1, %v3449_v10  ;;  %v3312_v7 = vmul.f32 %v7498_v58, %v11787_v24  ;;  %v3188_v36 = vadd.f32 1e-05, %v3124_v4  ;;  %v3123_v11 = vmul.f32 0.03125, %v2965_v60  ;;  %v11789_v10 = vld [vmem:[#allocation30_spill] sm:$0xff]  ;;  %v4093_v24 = vld [vmem:[%s11579_s10 + $0x10] sm:$0xff] }
 0x41c   : > { %v7500_v1 = vpop.eup %7499  ;;  %6996 = vmatmul.mubr.msk.f32.gmra.mxu1 %vm11651_vm1, %v3450_v57  ;;  %v2974_v49 = vpop.xlane.xlu1 %2973  ;;  %7078 = vmatprep.subr.mxu0 %v4093_v24 }
 0x41d   : > { %v3311_v31 = vmul.f32 %v7500_v1, %v11788_v12  ;;  %7505 = vrsqrt.f32 %v3188_v36  ;;  %v3187_v54 = vadd.f32 1e-05, %v3123_v11  ;;  %v3126_v61 = vmul.f32 0.03125, %v2974_v49  ;;  %v11790_v1 = vld [vmem:[#allocation31_spill] sm:$0xff]  ;;  %7079 = vmatpush3.msra.mxu0 %v4093_v24 }
 0x41e   : > { %v3382_v22 = vmul.f32 %v10174_v29, %v3312_v7  ;;  %v2971_v35 = vpop.xlane.xlu0 %2970 }
 0x41f   : > { %v3381_v41 = vmul.f32 %v10174_v29, %v3311_v31  ;;  %7507 = vrsqrt.f32 %v3187_v54  ;;  %v3190_v38 = vadd.f32 1e-05, %v3126_v61  ;;  %v3125_v42 = vmul.f32 0.03125, %v2971_v35  ;;  %v4092_v31 = vld [vmem:[%s11579_s10 + $0x8] sm:$0xff] }
 0x420   : > { %v2980_v14 = vpop.xlane.xlu1 %2979  ;;  %v3452_v50 = vadd.f32 %v10196_v17, %v3382_v22  ;;  %7080 = vmatprep.subr.mxu0 %v4092_v31 }
 0x421   : > { %v3451_v9 = vadd.f32 %v10196_v17, %v3381_v41  ;;  %7509 = vrsqrt.f32 %v3190_v38  ;;  %v3189_v39 = vadd.f32 1e-05, %v3125_v42  ;;  %v3128_v55 = vmul.f32 0.03125, %v2980_v14  ;;  %7081 = vmatpush3.msra.mxu0 %v4092_v31  ;;  %v4091_v41 = vld [vmem:[%s11579_s10] sm:$0xff] }
 0x422   : > { %v7502_v62 = vpop.eup %7501  ;;  %v2977_v48 = vpop.xlane.xlu0 %2976  ;;  %7082 = vmatprep.subr.mxu0 %v4091_v41 }
 0x423   : > { %6998 = vmatprep.mubr.msk.f32.mxu1 %vm11651_vm1, %v3451_v9  ;;  %v3314_v58 = vmul.f32 %v7502_v62, %v11789_v10  ;;  %7511 = vrsqrt.f32 %v3189_v39  ;;  %v3192_v57 = vadd.f32 1e-05, %v3128_v55  ;;  %v3127_v60 = vmul.f32 0.03125, %v2977_v48  ;;  %7083 = vmatpush3.msra.mxu0 %v4091_v41 }
 0x424   : > { %v7504_v4 = vpop.eup %7503  ;;  %6999 = vmatmul.mubr.msk.f32.gmra.mxu1 %vm11651_vm1, %v3452_v50  ;;  %v2986_v7 = vpop.xlane.xlu1 %2985 }
 0x425   : > { %v3313_v36 = vmul.f32 %v7504_v4, %v11790_v1  ;;  %7513 = vrsqrt.f32 %v3192_v57  ;;  %v3191_v11 = vadd.f32 1e-05, %v3127_v60  ;;  %v3130_v49 = vmul.f32 0.03125, %v2986_v7 }
 0x426   : > { %v3384_v12 = vmul.f32 %v10174_v29, %v3314_v58  ;;  %v2983_v54 = vpop.xlane.xlu0 %2982 }
 0x427   : > { %v3383_v61 = vmul.f32 %v10174_v29, %v3313_v36  ;;  %7515 = vrsqrt.f32 %v3191_v11  ;;  %v3194_v22 = vadd.f32 1e-05, %v3130_v49  ;;  %v3129_v35 = vmul.f32 0.03125, %v2983_v54 }
 0x428   : > { %v2992_v38 = vpop.xlane.xlu1 %2991  ;;  %v3454_v62 = vadd.f32 %v10196_v17, %v3384_v12 }
 0x429   : > { %v3453_v42 = vadd.f32 %v10196_v17, %v3383_v61  ;;  %7517 = vrsqrt.f32 %v3194_v22  ;;  %v3193_v14 = vadd.f32 1e-05, %v3129_v35  ;;  %v3132_v9 = vmul.f32 0.03125, %v2992_v38 }
 0x42a   : > { %v7506_v39 = vpop.eup %7505  ;;  %v2989_v55 = vpop.xlane.xlu0 %2988 }
 0x42b   : > { %7001 = vmatprep.mubr.msk.f32.mxu1 %vm11651_vm1, %v3453_v42  ;;  %7519 = vrsqrt.f32 %v3193_v14  ;;  %v3196_v50 = vadd.f32 1e-05, %v3132_v9  ;;  %v3131_v48 = vmul.f32 0.03125, %v2989_v55  ;;  %v3316_v10 = vmul.f32 %v7506_v39, %v9909_v15 }
 0x42c   : > { %7002 = vmatmul.mubr.msk.f32.gmra.mxu1 %vm11651_vm1, %v3454_v62  ;;  %v7508_v58 = vpop.eup %7507  ;;  %v2998_v4 = vpop.xlane.xlu1 %2997 }
 0x42d   : > { %7521 = vrsqrt.f32 %v3196_v50  ;;  %v3195_v57 = vadd.f32 1e-05, %v3131_v48  ;;  %v3134_v60 = vmul.f32 0.03125, %v2998_v4  ;;  %v3315_v24 = vmul.f32 %v7508_v58, %v9912_v59 }
 0x42e   : > { %v7510_v7 = vpop.eup %7509  ;;  %v2995_v1 = vpop.xlane.xlu0 %2994  ;;  %v3386_v36 = vmul.f32 %v10174_v29, %v3316_v10 }
 0x42f   : > { %7523 = vrsqrt.f32 %v3195_v57  ;;  %v3198_v11 = vadd.f32 1e-05, %v3134_v60  ;;  %v3133_v49 = vmul.f32 0.03125, %v2995_v1  ;;  %v3385_v12 = vmul.f32 %v10174_v29, %v3315_v24 }
 0x430   : > { %v7512_v31 = vpop.eup %7511  ;;  %v3004_v54 = vpop.xlane.xlu1 %3003  ;;  %v3318_v15 = vmul.f32 %v7510_v7, %v9917_v47  ;;  %v3456_v38 = vadd.f32 %v10196_v17, %v3386_v36 }
 0x431   : > { %7525 = vrsqrt.f32 %v3198_v11  ;;  %v3197_v61 = vadd.f32 1e-05, %v3133_v49  ;;  %v3136_v22 = vmul.f32 0.03125, %v3004_v54  ;;  %v3455_v35 = vadd.f32 %v10196_v17, %v3385_v12 }
 0x432   : > { %v7514_v41 = vpop.eup %7513  ;;  %v3001_v59 = vpop.xlane.xlu0 %3000  ;;  %v3317_v42 = vmul.f32 %v7512_v31, %v9923_v45  ;;  %v3388_v14 = vmul.f32 %v10174_v29, %v3318_v15 }
 0x433   : > { %7527 = vrsqrt.f32 %v3197_v61  ;;  %v3200_v9 = vadd.f32 1e-05, %v3136_v22  ;;  %v3135_v62 = vmul.f32 0.03125, %v3001_v59  ;;  %7004 = vmatprep.mubr.msk.f32.mxu1 %vm11651_vm1, %v3455_v35  ;;  %v3320_v47 = vmul.f32 %v7514_v41, %v9929_v8  ;;  %v11791_v22 = vld [vmem:[#allocation32_spill] sm:$0xff] }
 0x434   : > { %v7516_v39 = vpop.eup %7515  ;;  %v3010_v55 = vpop.xlane.xlu1 %3009  ;;  %7005 = vmatmul.mubr.msk.f32.gmra.mxu1 %vm11651_vm1, %v3456_v38  ;;  %v3387_v50 = vmul.f32 %v10174_v29, %v3317_v42  ;;  %v3458_v60 = vadd.f32 %v10196_v17, %v3388_v14 }
 0x435   : > { %7529 = vrsqrt.f32 %v3200_v9  ;;  %v3199_v48 = vadd.f32 1e-05, %v3135_v62  ;;  %v3138_v10 = vmul.f32 0.03125, %v3010_v55  ;;  %v3319_v45 = vmul.f32 %v7516_v39, %v9935_v44 }
 0x436   : > { %v7518_v58 = vpop.eup %7517  ;;  %v3007_v4 = vpop.xlane.xlu0 %3006  ;;  %v3457_v57 = vadd.f32 %v10196_v17, %v3387_v50  ;;  %v3390_v24 = vmul.f32 %v10174_v29, %v3320_v47 }
 0x437   : > { %7531 = vrsqrt.f32 %v3199_v48  ;;  %v3202_v8 = vadd.f32 1e-05, %v3138_v10  ;;  %v3137_v7 = vmul.f32 0.03125, %v3007_v4  ;;  %v3389_v1 = vmul.f32 %v10174_v29, %v3319_v45 }
 0x438   : > { %v7520_v36 = vpop.eup %7519  ;;  %7007 = vmatprep.mubr.msk.f32.mxu1 %vm11651_vm1, %v3457_v57  ;;  %v3016_v11 = vpop.xlane.xlu1 %3015  ;;  %v3322_v49 = vmul.f32 %v7518_v58, %v9941_v21  ;;  %v3460_v61 = vadd.f32 %v10196_v17, %v3390_v24 }
 0x439   : > { %7533 = vrsqrt.f32 %v3202_v8  ;;  %v3201_v44 = vadd.f32 1e-05, %v3137_v7  ;;  %v3140_v12 = vmul.f32 0.03125, %v3016_v11  ;;  %7008 = vmatmul.mubr.msk.f32.gmra.mxu1 %vm11651_vm1, %v3458_v60  ;;  %v3459_v31 = vadd.f32 %v10196_v17, %v3389_v1 }
 0x43a   : > { %v7522_v54 = vpop.eup %7521  ;;  %v3013_v15 = vpop.xlane.xlu0 %3012  ;;  %v3321_v35 = vmul.f32 %v7520_v36, %v11791_v22  ;;  %v3392_v41 = vmul.f32 %v10174_v29, %v3322_v49 }
 0x43b   : > { %7535 = vrsqrt.f32 %v3201_v44  ;;  %v3204_v59 = vadd.f32 1e-05, %v3140_v12  ;;  %v3139_v38 = vmul.f32 0.03125, %v3013_v15  ;;  %7010 = vmatprep.mubr.msk.f32.mxu1 %vm11651_vm1, %v3459_v31  ;;  %v3324_v21 = vmul.f32 %v7522_v54, %v9953_v16 }
 0x43c   : > { %v7524_v42 = vpop.eup %7523  ;;  %v3022_v14 = vpop.xlane.xlu1 %3021  ;;  %v3391_v9 = vmul.f32 %v10174_v29, %v3321_v35  ;;  %v3462_v10 = vadd.f32 %v10196_v17, %v3392_v41 }
 0x43d   : > { %7537 = vrsqrt.f32 %v3204_v59  ;;  %v3203_v62 = vadd.f32 1e-05, %v3139_v38  ;;  %v3142_v47 = vmul.f32 0.03125, %v3022_v14  ;;  %7011 = vmatmul.mubr.msk.f32.gmra.mxu1 %vm11651_vm1, %v3460_v61  ;;  %v3323_v39 = vmul.f32 %v7524_v42, %v9959_v53 }
 0x43e   : > { %v7526_v55 = vpop.eup %7525  ;;  %v3019_v50 = vpop.xlane.xlu0 %3018  ;;  %v3461_v48 = vadd.f32 %v10196_v17, %v3391_v9  ;;  %v3394_v45 = vmul.f32 %v10174_v29, %v3324_v21 }
 0x43f   : > { %7539 = vrsqrt.f32 %v3203_v62  ;;  %v3206_v16 = vadd.f32 1e-05, %v3142_v47  ;;  %v3141_v58 = vmul.f32 0.03125, %v3019_v50  ;;  %v3393_v4 = vmul.f32 %v10174_v29, %v3323_v39 }
 0x440   : > { %v7528_v57 = vpop.eup %7527  ;;  %7013 = vmatprep.mubr.msk.f32.mxu1 %vm11651_vm1, %v3461_v48  ;;  %v3028_v60 = vpop.xlane.xlu1 %3027  ;;  %v3326_v24 = vmul.f32 %v7526_v55, %v9965_v20  ;;  %v3464_v11 = vadd.f32 %v10196_v17, %v3394_v45 }
 0x441   : > { %7541 = vrsqrt.f32 %v3206_v16  ;;  %v3205_v53 = vadd.f32 1e-05, %v3141_v58  ;;  %v3144_v8 = vmul.f32 0.03125, %v3028_v60  ;;  %7014 = vmatmul.mubr.msk.f32.gmra.mxu1 %vm11651_vm1, %v3462_v10  ;;  %v3463_v7 = vadd.f32 %v10196_v17, %v3393_v4 }
 0x442   : > { %v7530_v1 = vpop.eup %7529  ;;  %v3025_v36 = vpop.xlane.xlu0 %3024  ;;  %v3325_v49 = vmul.f32 %v7528_v57, %v9971_v34  ;;  %v3396_v44 = vmul.f32 %v10174_v29, %v3326_v24 }
 0x443   : > { %7543 = vrsqrt.f32 %v3205_v53  ;;  %v3208_v12 = vadd.f32 1e-05, %v3144_v8  ;;  %v3143_v31 = vmul.f32 0.03125, %v3025_v36  ;;  %7016 = vmatprep.mubr.msk.f32.mxu1 %vm11651_vm1, %v3463_v7  ;;  %v3328_v20 = vmul.f32 %v7530_v1, %v9977_v25 }
 0x444   : > { %v7532_v54 = vpop.eup %7531  ;;  %v3034_v15 = vpop.xlane.xlu1 %3033  ;;  %v3395_v61 = vmul.f32 %v10174_v29, %v3325_v49  ;;  %v3466_v21 = vadd.f32 %v10196_v17, %v3396_v44 }
 0x445   : > { %7545 = vrsqrt.f32 %v3208_v12  ;;  %v3207_v22 = vadd.f32 1e-05, %v3143_v31  ;;  %v3146_v35 = vmul.f32 0.03125, %v3034_v15  ;;  %7017 = vmatmul.mubr.msk.f32.gmra.mxu1 %vm11651_vm1, %v3464_v11  ;;  %v3327_v34 = vmul.f32 %v7532_v54, %v9983_v32 }
 0x446   : > { %v7534_v41 = vpop.eup %7533  ;;  %v3031_v59 = vpop.xlane.xlu0 %3030  ;;  %v3465_v38 = vadd.f32 %v10196_v17, %v3395_v61  ;;  %v3398_v42 = vmul.f32 %v10174_v29, %v3328_v20 }
 0x447   : > { %7547 = vrsqrt.f32 %v3207_v22  ;;  %v3210_v25 = vadd.f32 1e-05, %v3146_v35  ;;  %v3145_v14 = vmul.f32 0.03125, %v3031_v59  ;;  %v3397_v9 = vmul.f32 %v10174_v29, %v3327_v34 }
 0x448   : > { %v7536_v62 = vpop.eup %7535  ;;  %7019 = vmatprep.mubr.msk.f32.mxu1 %vm11651_vm1, %v3465_v38  ;;  %v3040_v47 = vpop.xlane.xlu1 %3039  ;;  %v3330_v39 = vmul.f32 %v7534_v41, %v9989_v18  ;;  %v3468_v45 = vadd.f32 %v10196_v17, %v3398_v42 }
 0x449   : > { %7549 = vrsqrt.f32 %v3210_v25  ;;  %v3209_v32 = vadd.f32 1e-05, %v3145_v14  ;;  %v3148_v55 = vmul.f32 0.03125, %v3040_v47  ;;  %7020 = vmatmul.mubr.msk.f32.gmra.mxu1 %vm11651_vm1, %v3466_v21  ;;  %v3467_v50 = vadd.f32 %v10196_v17, %v3397_v9 }
 0x44a   : > { %v7538_v48 = vpop.eup %7537  ;;  %v3037_v10 = vpop.xlane.xlu0 %3036  ;;  %v3329_v16 = vmul.f32 %v7536_v62, %v9995_v56  ;;  %v3400_v58 = vmul.f32 %v10174_v29, %v3330_v39 }
 0x44b   : > { %7551 = vrsqrt.f32 %v3209_v32  ;;  %v3212_v4 = vadd.f32 1e-05, %v3148_v55  ;;  %v3147_v57 = vmul.f32 0.03125, %v3037_v10  ;;  %7022 = vmatprep.mubr.msk.f32.mxu1 %vm11651_vm1, %v3467_v50  ;;  %v3332_v18 = vmul.f32 %v7538_v48, %v10001_v13 }
 0x44c   : > { %v7540_v60 = vpop.eup %7539  ;;  %v3046_v24 = vpop.xlane.xlu1 %3045  ;;  %v3399_v53 = vmul.f32 %v10174_v29, %v3329_v16  ;;  %v3470_v49 = vadd.f32 %v10196_v17, %v3400_v58 }
 0x44d   : > { %7553 = vrsqrt.f32 %v3212_v4  ;;  %v3211_v8 = vadd.f32 1e-05, %v3147_v57  ;;  %v3150_v7 = vmul.f32 0.03125, %v3046_v24  ;;  %7023 = vmatmul.mubr.msk.f32.gmra.mxu1 %vm11651_vm1, %v3468_v45  ;;  %v3331_v56 = vmul.f32 %v7540_v60, %v10007_v37  ;;  %v11792_v4 = vld [vmem:[#allocation4_spill] sm:$0xff] }
 0x44e   : > { %v7542_v1 = vpop.eup %7541  ;;  %v3043_v36 = vpop.xlane.xlu0 %3042  ;;  %v3469_v11 = vadd.f32 %v10196_v17, %v3399_v53  ;;  %v3402_v44 = vmul.f32 %v10174_v29, %v3332_v18 }
 0x44f   : > { %7555 = vrsqrt.f32 %v3211_v8  ;;  %v3214_v13 = vadd.f32 1e-05, %v3150_v7  ;;  %v3149_v12 = vmul.f32 0.03125, %v3043_v36  ;;  %v3401_v31 = vmul.f32 %v10174_v29, %v3331_v56  ;;  %v11793_v7 = vld [vmem:[#allocation5_spill] sm:$0xff] }
 0x450   : > { %v7544_v20 = vpop.eup %7543  ;;  %7025 = vmatprep.mubr.msk.f32.mxu1 %vm11651_vm1, %v3469_v11  ;;  %v3052_v54 = vpop.xlane.xlu1 %3051  ;;  %v3334_v15 = vmul.f32 %v7542_v1, %v10013_v52  ;;  %v3472_v41 = vadd.f32 %v10196_v17, %v3402_v44 }
 0x451   : > { %7557 = vrsqrt.f32 %v3214_v13  ;;  %v3213_v37 = vadd.f32 1e-05, %v3149_v12  ;;  %v3152_v61 = vmul.f32 0.03125, %v3052_v54  ;;  %7026 = vmatmul.mubr.msk.f32.gmra.mxu1 %vm11651_vm1, %v3470_v49  ;;  %v3471_v22 = vadd.f32 %v10196_v17, %v3401_v31  ;;  %v11794_v49 = vld [vmem:[#allocation33_spill] sm:$0xff] }
 0x452   : > { %v7546_v35 = vpop.eup %7545  ;;  %v3049_v34 = vpop.xlane.xlu0 %3048  ;;  %v3333_v59 = vmul.f32 %v7544_v20, %v10019_v27  ;;  %v3404_v38 = vmul.f32 %v10174_v29, %v3334_v15  ;;  %v11795_v15 = vld [vmem:[#allocation34_spill] sm:$0xff] }
 0x453   : > { %7559 = vrsqrt.f32 %v3213_v37  ;;  %v3216_v21 = vadd.f32 1e-05, %v3152_v61  ;;  %v3151_v42 = vmul.f32 0.03125, %v3049_v34  ;;  %7028 = vmatprep.mubr.msk.f32.mxu1 %vm11651_vm1, %v3471_v22  ;;  %v3336_v52 = vmul.f32 %v7546_v35, %v10025_v43 }
 0x454   : > { %v7548_v25 = vpop.eup %7547  ;;  %v3058_v14 = vpop.xlane.xlu1 %3057  ;;  %v3403_v9 = vmul.f32 %v10174_v29, %v3333_v59  ;;  %v3474_v50 = vadd.f32 %v10196_v17, %v3404_v38 }
 0x455   : > { %7561 = vrsqrt.f32 %v3216_v21  ;;  %v3215_v62 = vadd.f32 1e-05, %v3151_v42  ;;  %v3154_v47 = vmul.f32 0.03125, %v3058_v14  ;;  %7029 = vmatmul.mubr.msk.f32.gmra.mxu1 %vm11651_vm1, %v3472_v41  ;;  %v3335_v27 = vmul.f32 %v7548_v25, %v10031_v6  ;;  %v11796_v25 = vld [vmem:[#allocation24_spill] sm:$0xff] }
 0x456   : > { %v7550_v39 = vpop.eup %7549  ;;  %v3055_v32 = vpop.xlane.xlu0 %3054  ;;  %v3473_v55 = vadd.f32 %v10196_v17, %v3403_v9  ;;  %v3406_v48 = vmul.f32 %v10174_v29, %v3336_v52 }
 0x457   : > { %7563 = vrsqrt.f32 %v3215_v62  ;;  %v3218_v43 = vadd.f32 1e-05, %v3154_v47  ;;  %v3153_v10 = vmul.f32 0.03125, %v3055_v32  ;;  %v3405_v45 = vmul.f32 %v10174_v29, %v3335_v27 }
 0x458   : > { %v7552_v16 = vpop.eup %7551  ;;  %7031 = vmatprep.mubr.msk.f32.mxu1 %vm11651_vm1, %v3473_v55  ;;  %v3064_v58 = vpop.xlane.xlu1 %3063  ;;  %v3338_v57 = vmul.f32 %v7550_v39, %v11792_v4  ;;  %v3476_v8 = vadd.f32 %v10196_v17, %v3406_v48  ;;  %v11797_v55 = vld [vmem:[#allocation35_spill] sm:$0xff] }
 0x459   : > { %7565 = vrsqrt.f32 %v3218_v43  ;;  %v3217_v6 = vadd.f32 1e-05, %v3153_v10  ;;  %v3156_v18 = vmul.f32 0.03125, %v3064_v58  ;;  %7032 = vmatmul.mubr.msk.f32.gmra.mxu1 %vm11651_vm1, %v3474_v50  ;;  %v3475_v60 = vadd.f32 %v10196_v17, %v3405_v45  ;;  %v11798_v45 = vld [vmem:[#allocation6_spill] sm:$0xff] }
 0x45a   : > { %v7554_v24 = vpop.eup %7553  ;;  %v3061_v53 = vpop.xlane.xlu0 %3060  ;;  %v3337_v56 = vmul.f32 %v7552_v16, %v11793_v7  ;;  %v3408_v1 = vmul.f32 %v10174_v29, %v3338_v57 }
 0x45b   : > { %7567 = vrsqrt.f32 %v3217_v6  ;;  %v3220_v36 = vadd.f32 1e-05, %v3156_v18  ;;  %v3155_v11 = vmul.f32 0.03125, %v3061_v53  ;;  %7034 = vmatprep.mubr.msk.f32.mxu1 %vm11651_vm1, %v3475_v60  ;;  %v3340_v44 = vmul.f32 %v7554_v24, %v11794_v49 }
 0x45c   : > { %v7556_v13 = vpop.eup %7555  ;;  %v3070_v12 = vpop.xlane.xlu1 %3069  ;;  %v3407_v31 = vmul.f32 %v10174_v29, %v3337_v56  ;;  %v3478_v34 = vadd.f32 %v10196_v17, %v3408_v1 }
 0x45d   : > { %7569 = vrsqrt.f32 %v3220_v36  ;;  %v3219_v20 = vadd.f32 1e-05, %v3155_v11  ;;  %v3158_v54 = vmul.f32 0.03125, %v3070_v12  ;;  %7035 = vmatmul.mubr.msk.f32.gmra.mxu1 %vm11651_vm1, %v3476_v8  ;;  %v3339_v37 = vmul.f32 %v7556_v13, %v11795_v15 }
 0x45e   : > { %v7558_v61 = vpop.eup %7557  ;;  %v3067_v22 = vpop.xlane.xlu0 %3066  ;;  %v3477_v35 = vadd.f32 %v10196_v17, %v3407_v31  ;;  %v3410_v41 = vmul.f32 %v10174_v29, %v3340_v44 }
 0x45f   : > { %7571 = vrsqrt.f32 %v3219_v20  ;;  %v3222_v59 = vadd.f32 1e-05, %v3158_v54  ;;  %v3157_v38 = vmul.f32 0.03125, %v3067_v22  ;;  %v3409_v21 = vmul.f32 %v10174_v29, %v3339_v37  ;;  %v11799_v37 = vld [vmem:[#allocation23_spill] sm:$0xff] }
 0x460   : > { %v7560_v42 = vpop.eup %7559  ;;  %7037 = vmatprep.mubr.msk.f32.mxu1 %vm11651_vm1, %v3477_v35  ;;  %v3076_v52 = vpop.xlane.xlu1 %3075  ;;  %v3342_v14 = vmul.f32 %v7558_v61, %v11796_v25  ;;  %v3480_v32 = vadd.f32 %v10196_v17, %v3410_v41  ;;  %v11801_v25 = vld [vmem:[#allocation8_spill] sm:$0xff] }
 0x461   : > { %7573 = vrsqrt.f32 %v3222_v59  ;;  %v3221_v9 = vadd.f32 1e-05, %v3157_v38  ;;  %v3160_v62 = vmul.f32 0.03125, %v3076_v52  ;;  %7038 = vmatmul.mubr.msk.f32.gmra.mxu1 %vm11651_vm1, %v3478_v34  ;;  %v3479_v47 = vadd.f32 %v10196_v17, %v3409_v21 }
 0x462   : > { %v7562_v27 = vpop.eup %7561  ;;  %v3073_v39 = vpop.xlane.xlu0 %3072  ;;  %v3341_v50 = vmul.f32 %v7560_v42, %v11797_v55  ;;  %v3412_v48 = vmul.f32 %v10174_v29, %v3342_v14 }
 0x463   : > { %7575 = vrsqrt.f32 %v3221_v9  ;;  %v3224_v43 = vadd.f32 1e-05, %v3160_v62  ;;  %v3159_v10 = vmul.f32 0.03125, %v3073_v39  ;;  %7040 = vmatprep.mubr.msk.f32.mxu1 %vm11651_vm1, %v3479_v47  ;;  %v3344_v16 = vmul.f32 %v7562_v27, %v11798_v45 }
 0x464   : > { %v7564_v58 = vpop.eup %7563  ;;  %v3082_v4 = vpop.xlane.xlu1 %3081  ;;  %v3411_v57 = vmul.f32 %v10174_v29, %v3341_v50  ;;  %v3482_v7 = vadd.f32 %v10196_v17, %v3412_v48 }
 0x465   : > { %7577 = vrsqrt.f32 %v3224_v43  ;;  %v3223_v6 = vadd.f32 1e-05, %v3159_v10  ;;  %v3162_v18 = vmul.f32 0.03125, %v3082_v4  ;;  %7041 = vmatmul.mubr.msk.f32.gmra.mxu1 %vm11651_vm1, %v3480_v32  ;;  %v3343_v60 = vmul.f32 %v7564_v58, %v10081_v46  ;;  %v11802_v10 = vld [vmem:[#allocation9_spill] sm:$0xff] }
 0x466   : > { %v7566_v24 = vpop.eup %7565  ;;  %v3079_v53 = vpop.xlane.xlu0 %3078  ;;  %v3481_v8 = vadd.f32 %v10196_v17, %v3411_v57  ;;  %v3414_v56 = vmul.f32 %v10174_v29, %v3344_v16 }
 0x467   : > { %7579 = vrsqrt.f32 %v3223_v6  ;;  %v3226_v1 = vadd.f32 1e-05, %v3162_v18  ;;  %v3161_v36 = vmul.f32 0.03125, %v3079_v53  ;;  %v3413_v11 = vmul.f32 %v10174_v29, %v3343_v60 }
 0x468   : > { %v7568_v49 = vpop.eup %7567  ;;  %7043 = vmatprep.mubr.msk.f32.mxu1 %vm11651_vm1, %v3481_v8  ;;  %v3088_v44 = vpop.xlane.xlu1 %3087  ;;  %v3346_v13 = vmul.f32 %v7566_v24, %v10091_v23  ;;  %v3484_v15 = vadd.f32 %v10196_v17, %v3414_v56  ;;  %v11800_v23 = vld [vmem:[#allocation7_spill] sm:$0xff] }
 0x469   : > { %7581 = vrsqrt.f32 %v3226_v1  ;;  %v3225_v46 = vadd.f32 1e-05, %v3161_v36  ;;  %v3164_v12 = vmul.f32 0.03125, %v3088_v44  ;;  %7044 = vmatmul.mubr.msk.f32.gmra.mxu1 %vm11651_vm1, %v3482_v7  ;;  %v3483_v31 = vadd.f32 %v10196_v17, %v3413_v11  ;;  %v10440_v36 = vld [vmem:[%s11575_s6] ss:$0 sm:$0xff] }
 0x46a   : > { %v7570_v20 = vpop.eup %7569  ;;  %v3085_v54 = vpop.xlane.xlu0 %3084  ;;  %v3345_v61 = vmul.f32 %v7568_v49, %v11799_v37  ;;  %v3416_v22 = vmul.f32 %v10174_v29, %v3346_v13 }
 0x46b   : > { %7583 = vrsqrt.f32 %v3225_v46  ;;  %v3228_v35 = vadd.f32 1e-05, %v3164_v12  ;;  %v3163_v34 = vmul.f32 0.03125, %v3085_v54  ;;  %7046 = vmatprep.mubr.msk.f32.mxu1 %vm11651_vm1, %v3483_v31  ;;  %v3348_v41 = vmul.f32 %v7570_v20, %v11800_v23 }
 0x46c   : > { %v7572_v59 = vpop.eup %7571  ;;  %v3094_v38 = vpop.xlane.xlu1 %3093  ;;  %v3415_v21 = vmul.f32 %v10174_v29, %v3345_v61  ;;  %v3486_v27 = vadd.f32 %v10196_v17, %v3416_v22 }
 0x46d   : > { %7585 = vrsqrt.f32 %v3228_v35  ;;  %v3227_v42 = vadd.f32 1e-05, %v3163_v34  ;;  %v3166_v52 = vmul.f32 0.03125, %v3094_v38  ;;  %7047 = vmatmul.mubr.msk.f32.gmra.mxu1 %vm11651_vm1, %v3484_v15  ;;  %v3347_v14 = vmul.f32 %v7572_v59, %v11801_v25 }
 0x46e   : > { %v7574_v9 = vpop.eup %7573  ;;  %v3091_v62 = vpop.xlane.xlu0 %3090  ;;  %v3485_v47 = vadd.f32 %v10196_v17, %v3415_v21  ;;  %v3418_v39 = vmul.f32 %v10174_v29, %v3348_v41  ;;  %v11803_v41 = vld [vmem:[#allocation25_spill] sm:$0xff] }
 0x46f   : > { %7587 = vrsqrt.f32 %v3227_v42  ;;  %v3230_v32 = vadd.f32 1e-05, %v3166_v52  ;;  %v3165_v55 = vmul.f32 0.03125, %v3091_v62  ;;  %v3417_v50 = vmul.f32 %v10174_v29, %v3347_v14 }
 0x470   : > { %v7576_v48 = vpop.eup %7575  ;;  %7049 = vmatprep.mubr.msk.f32.mxu1 %vm11651_vm1, %v3485_v47  ;;  %v3100_v43 = vpop.xlane.xlu1 %3099  ;;  %v3350_v45 = vmul.f32 %v7574_v9, %v11802_v10  ;;  %v3488_v18 = vadd.f32 %v10196_v17, %v3418_v39 }
 0x471   : > { %7589 = vrsqrt.f32 %v3230_v32  ;;  %v3229_v16 = vadd.f32 1e-05, %v3165_v55  ;;  %v3168_v58 = vmul.f32 0.03125, %v3100_v43  ;;  %7050 = vmatmul.mubr.msk.f32.gmra.mxu1 %vm11651_vm1, %v3486_v27  ;;  %v3487_v4 = vadd.f32 %v10196_v17, %v3417_v50 }
 0x472   : > { %v7578_v57 = vpop.eup %7577  ;;  %v3097_v6 = vpop.xlane.xlu0 %3096  ;;  %v3349_v60 = vmul.f32 %v7576_v48, %v10116_v28  ;;  %v3420_v24 = vmul.f32 %v10174_v29, %v3350_v45 }
 0x473   : > { %7591 = vrsqrt.f32 %v3229_v16  ;;  %v3232_v53 = vadd.f32 1e-05, %v3168_v58  ;;  %v3167_v8 = vmul.f32 0.03125, %v3097_v6  ;;  %7052 = vmatprep.mubr.msk.f32.mxu1 %vm11651_vm1, %v3487_v4  ;;  %v3352_v7 = vmul.f32 %v7578_v57, %v10127_v19 }
 0x474   : > { %v7580_v56 = vpop.eup %7579  ;;  %v3106_v1 = vpop.xlane.xlu1 %3105  ;;  %v3419_v11 = vmul.f32 %v10440_v36, %v3349_v60  ;;  %v3490_v46 = vadd.f32 %v10196_v17, %v3420_v24 }
 0x475   : > { %7593 = vrsqrt.f32 %v3232_v53  ;;  %v3231_v28 = vadd.f32 1e-05, %v3167_v8  ;;  %v3170_v49 = vmul.f32 0.03125, %v3106_v1  ;;  %7053 = vmatmul.mubr.msk.f32.gmra.mxu1 %vm11651_vm1, %v3488_v18  ;;  %v3351_v29 = vmul.f32 %v7580_v56, %v10134_v51  ;;  %v10494_v53 = vld [vmem:[%s11581_s12] ss:$0 sm:$0xff] }
 0x476   : > { %v7582_v44 = vpop.eup %7581  ;;  %v3103_v13 = vpop.xlane.xlu0 %3102  ;;  %v3489_v19 = vadd.f32 %v10196_v17, %v3419_v11  ;;  %v3422_v12 = vmul.f32 %v10440_v36, %v3352_v7  ;;  %v7861_v17 = vld [vmem:[%s11576_s7] ss:$0 sm:$0xff] }
 0x477   : > { %7595 = vrsqrt.f32 %v3231_v28  ;;  %v3234_v31 = vadd.f32 1e-05, %v3170_v49  ;;  %v3169_v20 = vmul.f32 0.03125, %v3103_v13  ;;  %v3421_v54 = vmul.f32 %v10440_v36, %v3351_v29 }
 0x478   : > { %v7584_v15 = vpop.eup %7583  ;;  %7055 = vmatprep.mubr.msk.f32.mxu1 %vm11651_vm1, %v3489_v19  ;;  %v3354_v37 = vmul.f32 %v7582_v44, %v10137_v33  ;;  %v3492_v34 = vadd.f32 %v7861_v17, %v3422_v12 }
 0x479   : > { %7597 = vrsqrt.f32 %v3234_v31  ;;  %v3233_v51 = vadd.f32 1e-05, %v3169_v20  ;;  %7056 = vmatmul.mubr.msk.f32.gmra.mxu1 %vm11651_vm1, %v3490_v46  ;;  %v3491_v61 = vadd.f32 %v7861_v17, %v3421_v54  ;;  %v3353_v22 = vmul.f32 %v7584_v15, %v10144_v2 }
 0x47a   : > { %v7586_v35 = vpop.eup %7585  ;;  %v3424_v33 = vmul.f32 %v10440_v36, %v3354_v37 }
 0x47b   : > { %7599 = vrsqrt.f32 %v3233_v51  ;;  %7058 = vmatprep.mubr.msk.f32.mxu1 %vm11651_vm1, %v3491_v61  ;;  %v3423_v23 = vmul.f32 %v10440_v36, %v3353_v22  ;;  %v3356_v59 = vmul.f32 %v7586_v35, %v11803_v41 }
 0x47c   : > { %v7588_v38 = vpop.eup %7587  ;;  %v3494_v2 = vadd.f32 %v7861_v17, %v3424_v33 }
 0x47d   : > { %7059 = vmatmul.mubr.msk.f32.gmra.mxu1 %vm11651_vm1, %v3492_v34  ;;  %v3493_v21 = vadd.f32 %v7861_v17, %v3423_v23  ;;  %v3355_v42 = vmul.f32 %v7588_v38, %v10158_v30  ;;  %v3426_v14 = vmul.f32 %v10440_v36, %v3356_v59 }
 0x47e   : > { %v7590_v52 = vpop.eup %7589 }
 0x47f   : > { %7061 = vmatprep.mubr.msk.f32.mxu1 %vm11651_vm1, %v3493_v21  ;;  %v3425_v25 = vmul.f32 %v10440_v36, %v3355_v42  ;;  %v3358_v9 = vmul.f32 %v7590_v52, %v10165_v26  ;;  %v3496_v30 = vadd.f32 %v7861_v17, %v3426_v14 }
 0x480   : > { %v7592_v62 = vpop.eup %7591 }
 0x481   : > { %7062 = vmatmul.mubr.msk.f32.gmra.mxu1 %vm11651_vm1, %v3494_v2  ;;  %v3495_v47 = vadd.f32 %v7861_v17, %v3425_v25  ;;  %v3357_v27 = vmul.f32 %v7592_v62, %v10178_v63  ;;  %v3428_v55 = vmul.f32 %v10440_v36, %v3358_v9 }
 0x482   : > { %v7594_v39 = vpop.eup %7593 }
 0x483   : > { %7064 = vmatprep.mubr.msk.f32.mxu1 %vm11651_vm1, %v3495_v47  ;;  %v3427_v32 = vmul.f32 %v10440_v36, %v3357_v27  ;;  %v3360_v50 = vmul.f32 %v7594_v39, %v10186_v3  ;;  %v3498_v63 = vadd.f32 %v7861_v17, %v3428_v55 }
 0x484   : > { %v7596_v48 = vpop.eup %7595 }
 0x485   : > { %7065 = vmatmul.mubr.msk.f32.gmra.mxu1 %vm11651_vm1, %v3496_v30  ;;  %v3497_v26 = vadd.f32 %v7861_v17, %v3427_v32  ;;  %v3359_v43 = vmul.f32 %v7596_v48, %v10204_v5  ;;  %v3430_v16 = vmul.f32 %v10440_v36, %v3360_v50 }
 0x486   : > { %v7598_v10 = vpop.eup %7597 }
 0x487   : > { %7067 = vmatprep.mubr.msk.f32.mxu1 %vm11651_vm1, %v3497_v26  ;;  %v3429_v45 = vmul.f32 %v10440_v36, %v3359_v43  ;;  %v3362_v58 = vmul.f32 %v7598_v10, %v10213_v0  ;;  %v3500_v6 = vadd.f32 %v7861_v17, %v3430_v16  ;;  %v10489_v0 = vld [vmem:[%s11578_s9] ss:$0 sm:$0xff] }
 0x488   : > { %v7600_v4 = vpop.eup %7599 }
 0x489   : > { %7068 = vmatmul.mubr.msk.f32.gmra.mxu1 %vm11651_vm1, %v3498_v63  ;;  %v3499_v3 = vadd.f32 %v7861_v17, %v3429_v45  ;;  %v3361_v57 = vmul.f32 %v7600_v4, %v10223_v40  ;;  %v3432_v18 = vmul.f32 %v10440_v36, %v3362_v58 }
 0x48b   : > { %7070 = vmatprep.mubr.msk.f32.mxu1 %vm11651_vm1, %v3499_v3  ;;  %v3431_v5 = vmul.f32 %v10440_v36, %v3361_v57  ;;  %v3502_v24 = vadd.f32 %v7861_v17, %v3432_v18 }
 0x48d   : > { %7071 = vmatmul.mubr.msk.f32.gmra.mxu1 %vm11651_vm1, %v3500_v6  ;;  %v3501_v60 = vadd.f32 %v7861_v17, %v3431_v5 }
 0x48f   : > { %7073 = vmatprep.mubr.msk.f32.mxu1 %vm11651_vm1, %v3501_v60 }
 0x491   : > { %7074 = vmatmul.mubr.msk.f32.gmra.mxu1 %vm11651_vm1, %v3502_v24 }
 0x4a3   : > { %v6982_v40 = vpop.f32.mrf.mxu1 }
 0x4a4   : > { %v3778_v8 = vadd.f32 %v6982_v40, %v10489_v0 }
 0x4a5   : > { %v3772_v7 = vpop.f32.mrf.mxu1 }
 0x4a6   : > { %v4687_v56 = vmul.f32 %v10494_v53, %v3778_v8  ;;  %v3773_v1 = vadd.f32 %v10489_v0, %v3772_v7 }
 0x4a7   : > { %v6985_v36 = vpop.f32.mrf.mxu1 }
 0x4a8   : > { %v4686_v11 = vmul.f32 %v10494_v53, %v3773_v1  ;;  %v3788_v28 = vadd.f32 %v6985_v36, %v10489_v0  ;;  %7084 = vmatprep.mubr.msk.f32.mxu0 %vm11651_vm1, %v3773_v1  ;;  %v4753_v49 = vsel %vm11651_vm1, %v4687_v56, 0.0 }
 0x4a9   : > { %4754 = vadd.xlane.f32.xlu1 %v4753_v49  ;;  %v3782_v29 = vpop.f32.mrf.mxu1  ;;  %7085 = vmatmul.mubr.msk.f32.vlgmr.msra.gmra.mxu0 %vm11651_vm1, %v3778_v8 }
 0x4aa   : > { %v3783_v44 = vadd.f32 %v10489_v0, %v3782_v29  ;;  %v4689_v19 = vmul.f32 %v10494_v53, %v3788_v28  ;;  %v4750_v46 = vsel %vm11651_vm1, %v4686_v11, 0.0 }
 0x4ab   : > { %v6988_v13 = vpop.f32.mrf.mxu1 }
 0x4ac   : > { %7087 = vmatprep.mubr.msk.f32.mxu0 %vm11651_vm1, %v3783_v44  ;;  %v3798_v20 = vadd.f32 %v6988_v13, %v10489_v0  ;;  %v4688_v15 = vmul.f32 %v10494_v53, %v3783_v44  ;;  %v4759_v37 = vsel %vm11651_vm1, %v4689_v19, 0.0 }
 0x4ad   : > { %4751 = vadd.xlane.f32.xlu1 %v4750_v46  ;;  %v3792_v12 = vpop.f32.mrf.mxu1  ;;  %7088 = vmatmul.mubr.msk.f32.gmra.mxu0 %vm11651_vm1, %v3788_v28 }
 0x4ae   : > { %v3793_v31 = vadd.f32 %v10489_v0, %v3792_v12  ;;  %v4691_v35 = vmul.f32 %v10494_v53, %v3798_v20  ;;  %v4756_v34 = vsel %vm11651_vm1, %v4688_v15, 0.0 }
 0x4af   : > { %v6991_v54 = vpop.f32.mrf.mxu1 }
 0x4b0   : > { %7090 = vmatprep.mubr.msk.f32.mxu0 %vm11651_vm1, %v3793_v31  ;;  %v3808_v61 = vadd.f32 %v6991_v54, %v10489_v0  ;;  %v4690_v59 = vmul.f32 %v10494_v53, %v3793_v31  ;;  %v4765_v38 = vsel %vm11651_vm1, %v4691_v35, 0.0 }
 0x4b1   : > { %4760 = vadd.xlane.f32.xlu1 %v4759_v37  ;;  %v3802_v51 = vpop.f32.mrf.mxu1  ;;  %7091 = vmatmul.mubr.msk.f32.gmra.mxu0 %vm11651_vm1, %v3798_v20 }
 0x4b2   : > { %v3803_v17 = vadd.f32 %v10489_v0, %v3802_v51  ;;  %v4693_v21 = vmul.f32 %v10494_v53, %v3808_v61  ;;  %v4762_v42 = vsel %vm11651_vm1, %v4690_v59, 0.0 }
 0x4b3   : > { %v6994_v22 = vpop.f32.mrf.mxu1 }
 0x4b4   : > { %7093 = vmatprep.mubr.msk.f32.mxu0 %vm11651_vm1, %v3803_v17  ;;  %v3818_v41 = vadd.f32 %v6994_v22, %v10489_v0  ;;  %v4692_v52 = vmul.f32 %v10494_v53, %v3803_v17  ;;  %v4771_v2 = vsel %vm11651_vm1, %v4693_v21, 0.0 }
 0x4b5   : > { %4757 = vadd.xlane.f32.xlu1 %v4756_v34  ;;  %v3812_v23 = vpop.f32.mrf.mxu1  ;;  %7094 = vmatmul.mubr.msk.f32.gmra.mxu0 %vm11651_vm1, %v3808_v61 }
 0x4b6   : > { %v3813_v33 = vadd.f32 %v10489_v0, %v3812_v23  ;;  %v4695_v25 = vmul.f32 %v10494_v53, %v3818_v41  ;;  %v4768_v14 = vsel %vm11651_vm1, %v4692_v52, 0.0 }
 0x4b8   : > { %7096 = vmatprep.mubr.msk.f32.mxu0 %vm11651_vm1, %v3813_v33  ;;  %v4694_v9 = vmul.f32 %v10494_v53, %v3813_v33  ;;  %v4777_v62 = vsel %vm11651_vm1, %v4695_v25, 0.0 }
 0x4b9   : > { %4766 = vadd.xlane.f32.xlu1 %v4765_v38  ;;  %7097 = vmatmul.mubr.msk.f32.gmra.mxu0 %vm11651_vm1, %v3818_v41 }
 0x4ba   : > { %v4774_v47 = vsel %vm11651_vm1, %v4694_v9, 0.0 }
 0x4bd   : > { %4763 = vadd.xlane.f32.xlu1 %v4762_v42 }
 0x4c1   : > { %4772 = vadd.xlane.f32.xlu1 %v4771_v2 }
 0x4c5   : > { %4769 = vadd.xlane.f32.xlu1 %v4768_v14 }
 0x4c9   : > { %4778 = vadd.xlane.f32.xlu1 %v4777_v62 }
 0x4cd   : > { %4775 = vadd.xlane.f32.xlu1 %v4774_v47 }
 0x4dc   : > { %v6997_v27 = vpop.f32.mrf.mxu1 }
 0x4dd   : > { %v3828_v39 = vadd.f32 %v6997_v27, %v10489_v0  ;;  %v7888_v27 = vmov 0  }
 0x4de   : > { %v3822_v30 = vpop.f32.mrf.mxu1  ;;  %7215 = vset.pattern.permute.xlu0 %v7888_v27  ;;  %7216 = vset.pattern.permute.xlu1 %v7888_v27 }
 0x4df   : > { %v4697_v32 = vmul.f32 %v10494_v53, %v3828_v39  ;;  %v3823_v55 = vadd.f32 %v10489_v0, %v3822_v30 }
 0x4e1   : > { %v4696_v50 = vmul.f32 %v10494_v53, %v3823_v55  ;;  %7099 = vmatprep.mubr.msk.f32.mxu0 %vm11651_vm1, %v3823_v55  ;;  %v4783_v48 = vsel %vm11651_vm1, %v4697_v32, 0.0 }
 0x4e2   : > { %4784 = vadd.xlane.f32.xlu1 %v4783_v48  ;;  %7100 = vmatmul.mubr.msk.f32.gmra.mxu0 %vm11651_vm1, %v3828_v39 }
 0x4e3   : > { %v4780_v10 = vsel %vm11651_vm1, %v4696_v50, 0.0 }
 0x4e4   : > { %v7000_v26 = vpop.f32.mrf.mxu1 }
 0x4e5   : > { %v3838_v43 = vadd.f32 %v7000_v26, %v10489_v0 }
 0x4e6   : > { %4781 = vadd.xlane.f32.xlu1 %v4780_v10  ;;  %v3832_v63 = vpop.f32.mrf.mxu1 }
 0x4e7   : > { %v4699_v45 = vmul.f32 %v10494_v53, %v3838_v43  ;;  %v3833_v16 = vadd.f32 %v10489_v0, %v3832_v63 }
 0x4e9   : > { %v4698_v58 = vmul.f32 %v10494_v53, %v3833_v16  ;;  %7102 = vmatprep.mubr.msk.f32.mxu0 %vm11651_vm1, %v3833_v16  ;;  %v4789_v4 = vsel %vm11651_vm1, %v4699_v45, 0.0 }
 0x4ea   : > { %4790 = vadd.xlane.f32.xlu1 %v4789_v4  ;;  %7103 = vmatmul.mubr.msk.f32.gmra.mxu0 %vm11651_vm1, %v3838_v43 }
 0x4eb   : > { %v4786_v6 = vsel %vm11651_vm1, %v4698_v58, 0.0 }
 0x4ec   : > { %v7003_v3 = vpop.f32.mrf.mxu1 }
 0x4ed   : > { %v3848_v57 = vadd.f32 %v7003_v3, %v10489_v0 }
 0x4ee   : > { %4787 = vadd.xlane.f32.xlu1 %v4786_v6  ;;  %v3842_v5 = vpop.f32.mrf.mxu1 }
 0x4ef   : > { %v4701_v18 = vmul.f32 %v10494_v53, %v3848_v57  ;;  %v3843_v60 = vadd.f32 %v10489_v0, %v3842_v5 }
 0x4f1   : > { %v4700_v24 = vmul.f32 %v10494_v53, %v3843_v60  ;;  %7105 = vmatprep.mubr.msk.f32.mxu0 %vm11651_vm1, %v3843_v60  ;;  %v4795_v40 = vsel %vm11651_vm1, %v4701_v18, 0.0 }
 0x4f2   : > { %4796 = vadd.xlane.f32.xlu1 %v4795_v40  ;;  %7106 = vmatmul.mubr.msk.f32.gmra.mxu0 %vm11651_vm1, %v3848_v57 }
 0x4f3   : > { %v4792_v7 = vsel %vm11651_vm1, %v4700_v24, 0.0 }
 0x4f4   : > { %v7006_v8 = vpop.f32.mrf.mxu1 }
 0x4f5   : > { %v3858_v56 = vadd.f32 %v7006_v8, %v10489_v0 }
 0x4f6   : > { %4793 = vadd.xlane.f32.xlu1 %v4792_v7  ;;  %v3852_v1 = vpop.f32.mrf.mxu1 }
 0x4f7   : > { %v4703_v36 = vmul.f32 %v10494_v53, %v3858_v56  ;;  %v3853_v11 = vadd.f32 %v10489_v0, %v3852_v1 }
 0x4f9   : > { %v4702_v28 = vmul.f32 %v10494_v53, %v3853_v11  ;;  %v7009_v49 = vpop.f32.mrf.mxu1  ;;  %7108 = vmatprep.mubr.msk.f32.mxu0 %vm11651_vm1, %v3853_v11  ;;  %v4801_v29 = vsel %vm11651_vm1, %v4703_v36, 0.0 }
 0x4fa   : > { %v3868_v44 = vadd.f32 %v7009_v49, %v10489_v0  ;;  %4802 = vadd.xlane.f32.xlu0 %v4801_v29  ;;  %7109 = vmatmul.mubr.msk.f32.gmra.mxu0 %vm11651_vm1, %v3858_v56 }
 0x4fb   : > { %v3862_v13 = vpop.f32.mrf.mxu1  ;;  %v4798_v31 = vsel %vm11651_vm1, %v4702_v28, 0.0 }
 0x4fc   : > { %v3863_v19 = vadd.f32 %v10489_v0, %v3862_v13  ;;  %v4705_v46 = vmul.f32 %v10494_v53, %v3868_v44 }
 0x4fd   : > { %v7012_v12 = vpop.f32.mrf.mxu1 }
 0x4fe   : > { %7111 = vmatprep.mubr.msk.f32.mxu0 %vm11651_vm1, %v3863_v19  ;;  %4799 = vadd.xlane.f32.xlu0 %v4798_v31  ;;  %v4704_v15 = vmul.f32 %v10494_v53, %v3863_v19  ;;  %v3878_v37 = vadd.f32 %v7012_v12, %v10489_v0  ;;  %v4807_v17 = vsel %vm11651_vm1, %v4705_v46, 0.0 }
 0x4ff   : > { %v3872_v20 = vpop.f32.mrf.mxu1  ;;  %7112 = vmatmul.mubr.msk.f32.gmra.mxu0 %vm11651_vm1, %v3868_v44 }
 0x500   : > { %v3873_v54 = vadd.f32 %v10489_v0, %v3872_v20  ;;  %v4707_v35 = vmul.f32 %v10494_v53, %v3878_v37  ;;  %v4804_v33 = vsel %vm11651_vm1, %v4704_v15, 0.0 }
 0x501   : > { %v7015_v51 = vpop.f32.mrf.mxu1 }
 0x502   : > { %7114 = vmatprep.mubr.msk.f32.mxu0 %vm11651_vm1, %v3873_v54  ;;  %4808 = vadd.xlane.f32.xlu0 %v4807_v17  ;;  %v3888_v34 = vadd.f32 %v7015_v51, %v10489_v0  ;;  %v4706_v38 = vmul.f32 %v10494_v53, %v3873_v54  ;;  %v4813_v52 = vsel %vm11651_vm1, %v4707_v35, 0.0 }
 0x503   : > { %v3882_v61 = vpop.f32.mrf.mxu1  ;;  %7115 = vmatmul.mubr.msk.f32.gmra.mxu0 %vm11651_vm1, %v3878_v37 }
 0x504   : > { %v3883_v22 = vadd.f32 %v10489_v0, %v3882_v61  ;;  %v4709_v14 = vmul.f32 %v10494_v53, %v3888_v34  ;;  %v4810_v47 = vsel %vm11651_vm1, %v4706_v38, 0.0 }
 0x505   : > { %v7018_v23 = vpop.f32.mrf.mxu1 }
 0x506   : > { %7117 = vmatprep.mubr.msk.f32.mxu0 %vm11651_vm1, %v3883_v22  ;;  %4805 = vadd.xlane.f32.xlu0 %v4804_v33  ;;  %v3898_v21 = vadd.f32 %v7018_v23, %v10489_v0  ;;  %v4708_v32 = vmul.f32 %v10494_v53, %v3883_v22  ;;  %v4819_v48 = vsel %vm11651_vm1, %v4709_v14, 0.0 }
 0x507   : > { %v3892_v41 = vpop.f32.mrf.mxu1  ;;  %7118 = vmatmul.mubr.msk.f32.gmra.mxu0 %vm11651_vm1, %v3888_v34 }
 0x508   : > { %v3893_v59 = vadd.f32 %v10489_v0, %v3892_v41  ;;  %v4711_v10 = vmul.f32 %v10494_v53, %v3898_v21  ;;  %v4816_v16 = vsel %vm11651_vm1, %v4708_v32, 0.0 }
 0x509   : > { %v7021_v42 = vpop.f32.mrf.mxu1 }
 0x50a   : > { %7120 = vmatprep.mubr.msk.f32.mxu0 %vm11651_vm1, %v3893_v59  ;;  %4814 = vadd.xlane.f32.xlu0 %v4813_v52  ;;  %v3908_v9 = vadd.f32 %v7021_v42, %v10489_v0  ;;  %v4710_v6 = vmul.f32 %v10494_v53, %v3893_v59  ;;  %v4825_v18 = vsel %vm11651_vm1, %v4711_v10, 0.0 }
 0x50b   : > { %v3902_v2 = vpop.f32.mrf.mxu1  ;;  %7121 = vmatmul.mubr.msk.f32.gmra.mxu0 %vm11651_vm1, %v3898_v21 }
 0x50c   : > { %v3903_v25 = vadd.f32 %v10489_v0, %v3902_v2  ;;  %v4713_v56 = vmul.f32 %v10494_v53, %v3908_v9  ;;  %v4822_v36 = vsel %vm11651_vm1, %v4710_v6, 0.0 }
 0x50d   : > { %v7024_v62 = vpop.f32.mrf.mxu1 }
 0x50e   : > { %7123 = vmatprep.mubr.msk.f32.mxu0 %vm11651_vm1, %v3903_v25  ;;  %4811 = vadd.xlane.f32.xlu0 %v4810_v47  ;;  %v3918_v55 = vadd.f32 %v7024_v62, %v10489_v0  ;;  %v4712_v44 = vmul.f32 %v10494_v53, %v3903_v25  ;;  %v4831_v46 = vsel %vm11651_vm1, %v4713_v56, 0.0 }
 0x50f   : > { %v3912_v39 = vpop.f32.mrf.mxu1  ;;  %7124 = vmatmul.mubr.msk.f32.gmra.mxu0 %vm11651_vm1, %v3908_v9 }
 0x510   : > { %v10598_v30 = vadd.f32 %v10489_v0, %v3912_v39  ;;  %v4715_v15 = vmul.f32 %v10494_v53, %v3918_v55  ;;  %v4828_v17 = vsel %vm11651_vm1, %v4712_v44, 0.0 }
 0x511   : > { %v7027_v50 = vpop.f32.mrf.mxu1 }
 0x512   : > { %7126 = vmatprep.mubr.msk.f32.mxu0 %vm11651_vm1, %v10598_v30  ;;  %4820 = vadd.xlane.f32.xlu0 %v4819_v48  ;;  %v10611_v63 = vadd.f32 %v7027_v50, %v10489_v0  ;;  %v4714_v23 = vmul.f32 %v10494_v53, %v10598_v30  ;;  %v4837_v59 = vsel %vm11651_vm1, %v4715_v15, 0.0 }
 0x513   : > { %v3922_v26 = vpop.f32.mrf.mxu1  ;;  %7127 = vmatmul.mubr.msk.f32.gmra.mxu0 %vm11651_vm1, %v3918_v55 }
 0x514   : > { %v10607_v43 = vadd.f32 %v10489_v0, %v3922_v26  ;;  %v4717_v2 = vmul.f32 %v10494_v53, %v10611_v63  ;;  %v4834_v9 = vsel %vm11651_vm1, %v4714_v23, 0.0 }
 0x515   : > { %v7030_v45 = vpop.f32.mrf.mxu1 }
 0x516   : > { %v3938_v58 = vadd.f32 %v7030_v45, %v10489_v0  ;;  %7129 = vmatprep.mubr.msk.f32.mxu0 %vm11651_vm1, %v10607_v43  ;;  %4817 = vadd.xlane.f32.xlu0 %v4816_v16  ;;  %v4716_v30 = vmul.f32 %v10494_v53, %v10607_v43  ;;  %v4843_v50 = vsel %vm11651_vm1, %v4717_v2, 0.0 }
 0x517   : > { %v3932_v4 = vpop.f32.mrf.mxu1  ;;  %7130 = vmatmul.mubr.msk.f32.gmra.mxu0 %vm11651_vm1, %v10611_v63 }
 0x518   : > { %v4719_v3 = vmul.f32 %v10494_v53, %v3938_v58  ;;  %v3933_v57 = vadd.f32 %v10489_v0, %v3932_v4 }
 0x519   : > { %v7033_v5 = vpop.f32.mrf.mxu1 }
 0x51a   : > { %v4718_v60 = vmul.f32 %v10494_v53, %v3933_v57  ;;  %v3948_v24 = vadd.f32 %v7033_v5, %v10489_v0  ;;  %7132 = vmatprep.mubr.msk.f32.mxu0 %vm11651_vm1, %v3933_v57  ;;  %4826 = vadd.xlane.f32.xlu0 %v4825_v18  ;;  %v4849_v40 = vsel %vm11651_vm1, %v4719_v3, 0.0 }
 0x51b   : > { %4850 = vadd.xlane.f32.xlu1 %v4849_v40  ;;  %v3942_v8 = vpop.f32.mrf.mxu1  ;;  %7133 = vmatmul.mubr.msk.f32.gmra.mxu0 %vm11651_vm1, %v3938_v58  ;;  %v4840_v58 = vsel %vm11651_vm1, %v4716_v30, 0.0 }
 0x51c   : > { %v3943_v7 = vadd.f32 %v10489_v0, %v3942_v8  ;;  %v4721_v11 = vmul.f32 %v10494_v53, %v3948_v24  ;;  %v4846_v28 = vsel %vm11651_vm1, %v4718_v60, 0.0 }
 0x51d   : > { %v7036_v1 = vpop.f32.mrf.mxu1 }
 0x51e   : > { %7135 = vmatprep.mubr.msk.f32.mxu0 %vm11651_vm1, %v3943_v7  ;;  %4823 = vadd.xlane.f32.xlu0 %v4822_v36  ;;  %v3958_v13 = vadd.f32 %v7036_v1, %v10489_v0  ;;  %v4720_v12 = vmul.f32 %v10494_v53, %v3943_v7  ;;  %v4855_v31 = vsel %vm11651_vm1, %v4721_v11, 0.0 }
 0x51f   : > { %4847 = vadd.xlane.f32.xlu1 %v4846_v28  ;;  %v3952_v49 = vpop.f32.mrf.mxu1  ;;  %7136 = vmatmul.mubr.msk.f32.gmra.mxu0 %vm11651_vm1, %v3948_v24 }
 0x520   : > { %v3953_v29 = vadd.f32 %v10489_v0, %v3952_v49  ;;  %v4723_v61 = vmul.f32 %v10494_v53, %v3958_v13  ;;  %v4852_v22 = vsel %vm11651_vm1, %v4720_v12, 0.0 }
 0x521   : > { %v7039_v19 = vpop.f32.mrf.mxu1 }
 0x522   : > { %7138 = vmatprep.mubr.msk.f32.mxu0 %vm11651_vm1, %v3953_v29  ;;  %4832 = vadd.xlane.f32.xlu0 %v4831_v46  ;;  %v3968_v37 = vadd.f32 %v7039_v19, %v10489_v0  ;;  %v4722_v38 = vmul.f32 %v10494_v53, %v3953_v29  ;;  %v4861_v21 = vsel %vm11651_vm1, %v4723_v61, 0.0 }
 0x523   : > { %4856 = vadd.xlane.f32.xlu1 %v4855_v31  ;;  %v3962_v20 = vpop.f32.mrf.mxu1  ;;  %7139 = vmatmul.mubr.msk.f32.gmra.mxu0 %vm11651_vm1, %v3958_v13 }
 0x524   : > { %v3963_v54 = vadd.f32 %v10489_v0, %v3962_v20  ;;  %v4725_v62 = vmul.f32 %v10494_v53, %v3968_v37  ;;  %v4858_v47 = vsel %vm11651_vm1, %v4722_v38, 0.0 }
 0x525   : > { %v7042_v51 = vpop.f32.mrf.mxu1 }
 0x526   : > { %7141 = vmatprep.mubr.msk.f32.mxu0 %vm11651_vm1, %v3963_v54  ;;  %4829 = vadd.xlane.f32.xlu0 %v4828_v17  ;;  %v3978_v33 = vadd.f32 %v7042_v51, %v10489_v0  ;;  %v4724_v48 = vmul.f32 %v10494_v53, %v3963_v54  ;;  %v4867_v10 = vsel %vm11651_vm1, %v4725_v62, 0.0 }
 0x527   : > { %4853 = vadd.xlane.f32.xlu1 %v4852_v22  ;;  %v3972_v35 = vpop.f32.mrf.mxu1  ;;  %7142 = vmatmul.mubr.msk.f32.gmra.mxu0 %vm11651_vm1, %v3968_v37 }
 0x528   : > { %v3973_v34 = vadd.f32 %v10489_v0, %v3972_v35  ;;  %v4727_v4 = vmul.f32 %v10494_v53, %v3978_v33  ;;  %v4864_v6 = vsel %vm11651_vm1, %v4724_v48, 0.0 }
 0x529   : > { %v7045_v41 = vpop.f32.mrf.mxu1 }
 0x52a   : > { %7144 = vmatprep.mubr.msk.f32.mxu0 %vm11651_vm1, %v3973_v34  ;;  %4838 = vadd.xlane.f32.xlu0 %v4837_v59  ;;  %v3988_v25 = vadd.f32 %v7045_v41, %v10489_v0  ;;  %v4726_v24 = vmul.f32 %v10494_v53, %v3973_v34  ;;  %v4873_v56 = vsel %vm11651_vm1, %v4727_v4, 0.0 }
 0x52b   : > { %4862 = vadd.xlane.f32.xlu1 %v4861_v21  ;;  %v3982_v42 = vpop.f32.mrf.mxu1  ;;  %7145 = vmatmul.mubr.msk.f32.gmra.mxu0 %vm11651_vm1, %v3978_v33 }
 0x52c   : > { %v10661_v52 = vadd.f32 %v10489_v0, %v3982_v42  ;;  %v4729_v29 = vmul.f32 %v10494_v53, %v3988_v25  ;;  %v4870_v13 = vsel %vm11651_vm1, %v4726_v24, 0.0 }
 0x52d   : > { %v7048_v14 = vpop.f32.mrf.mxu1 }
 0x52e   : > { %7147 = vmatprep.mubr.msk.f32.mxu0 %vm11651_vm1, %v10661_v52  ;;  %4835 = vadd.xlane.f32.xlu0 %v4834_v9  ;;  %v10678_v32 = vadd.f32 %v7048_v14, %v10489_v0  ;;  %v4728_v31 = vmul.f32 %v10494_v53, %v10661_v52  ;;  %v4879_v51 = vsel %vm11651_vm1, %v4729_v29, 0.0 }
 0x52f   : > { %4859 = vadd.xlane.f32.xlu1 %v4858_v47  ;;  %v3992_v27 = vpop.f32.mrf.mxu1  ;;  %7148 = vmatmul.mubr.msk.f32.gmra.mxu0 %vm11651_vm1, %v3988_v25 }
 0x530   : > { %v10673_v39 = vadd.f32 %v10489_v0, %v3992_v27  ;;  %v4731_v35 = vmul.f32 %v10494_v53, %v10678_v32  ;;  %v4876_v41 = vsel %vm11651_vm1, %v4728_v31, 0.0 }
 0x531   : > { %v7051_v55 = vpop.f32.mrf.mxu1 }
 0x532   : > { %7150 = vmatprep.mubr.msk.f32.mxu0 %vm11651_vm1, %v10673_v39  ;;  %v10684_v26 = vpop.xlane.xlu1 %4754  ;;  %4844 = vadd.xlane.f32.xlu0 %v4843_v50  ;;  %v10693_v45 = vadd.f32 %v7051_v55, %v10489_v0  ;;  %v4730_v52 = vmul.f32 %v10494_v53, %v10673_v39  ;;  %v4885_v9 = vsel %vm11651_vm1, %v4731_v35, 0.0 }
 0x533   : > { %4868 = vadd.xlane.f32.xlu1 %v4867_v10  ;;  %v4002_v63 = vpop.f32.mrf.mxu1  ;;  %7151 = vmatmul.mubr.msk.f32.gmra.mxu0 %vm11651_vm1, %v10678_v32 }
 0x534   : > { %v10690_v43 = vadd.f32 %v10489_v0, %v4002_v63  ;;  %v4733_v39 = vmul.f32 %v10494_v53, %v10693_v45  ;;  %v4882_v48 = vsel %vm11651_vm1, %v4730_v52, 0.0 }
 0x535   : > { %v7054_v16 = vpop.f32.mrf.mxu1 }
 0x536   : > { %v4018_v3 = vadd.f32 %v7054_v16, %v10489_v0  ;;  %7153 = vmatprep.mubr.msk.f32.mxu0 %vm11651_vm1, %v10690_v43  ;;  %v10700_v57 = vpop.xlane.xlu1 %4751  ;;  %4841 = vadd.xlane.f32.xlu0 %v4840_v58 }
 0x537   : > { %4865 = vadd.xlane.f32.xlu1 %v4864_v6  ;;  %v4012_v5 = vpop.f32.mrf.mxu1  ;;  %7154 = vmatmul.mubr.msk.f32.gmra.mxu0 %vm11651_vm1, %v10693_v45  ;;  %v4732_v45 = vmul.f32 %v10494_v53, %v10690_v43  ;;  %v4891_v6 = vsel %vm11651_vm1, %v4733_v39, 0.0 }
 0x538   : > { %v4735_v18 = vmul.f32 %v10494_v53, %v4018_v3  ;;  %v4013_v60 = vadd.f32 %v10489_v0, %v4012_v5 }
 0x539   : > { %v7057_v40 = vpop.f32.mrf.mxu1 }
 0x53a   : > { %v4734_v8 = vmul.f32 %v10494_v53, %v4013_v60  ;;  %v4028_v7 = vadd.f32 %v7057_v40, %v10489_v0  ;;  %7156 = vmatprep.mubr.msk.f32.mxu0 %vm11651_vm1, %v4013_v60  ;;  %v4897_v1 = vsel %vm11651_vm1, %v4735_v18, 0.0  ;;  %v10713_v11 = vpop.xlane.xlu1 %4760 }
 0x53b   : > { %4874 = vadd.xlane.f32.xlu1 %v4873_v56  ;;  %4898 = vadd.xlane.f32.xlu0 %v4897_v1  ;;  %v4022_v36 = vpop.f32.mrf.mxu1 }
 0x53c   : > { %v4023_v28 = vadd.f32 %v10489_v0, %v4022_v36  ;;  %7157 = vmatmul.mubr.msk.f32.gmra.mxu0 %vm11651_vm1, %v4018_v3  ;;  %v4737_v44 = vmul.f32 %v10494_v53, %v4028_v7  ;;  %v4894_v19 = vsel %vm11651_vm1, %v4734_v8, 0.0  ;;  %v4888_v8 = vsel %vm11651_vm1, %v4732_v45, 0.0 }
 0x53d   : > { %v7060_v49 = vpop.f32.mrf.mxu1 }
 0x53e   : > { %7159 = vmatprep.mubr.msk.f32.mxu0 %vm11651_vm1, %v4023_v28  ;;  %v4736_v54 = vmul.f32 %v10494_v53, %v4023_v28  ;;  %v4038_v15 = vadd.f32 %v7060_v49, %v10489_v0  ;;  %v10728_v37 = vpop.xlane.xlu1 %4757  ;;  %v4903_v17 = vsel %vm11651_vm1, %v4737_v44, 0.0  ;;  %v10783_v28 = vld [vmem:[#allocation2] ss:$0 sm:$0xff] }
 0x53f   : > { %4871 = vadd.xlane.f32.xlu1 %v4870_v13  ;;  %4895 = vadd.xlane.f32.xlu0 %v4894_v19  ;;  %v4032_v46 = vpop.f32.mrf.mxu1  ;;  %v4950_v29 = vadd.f32 %v10783_v28, %v10684_v26  ;;  %v4952_v31 = vadd.f32 %v10783_v28, %v10713_v11 }
 0x540   : > { %v4033_v12 = vadd.f32 %v10489_v0, %v4032_v46  ;;  %7160 = vmatmul.mubr.msk.f32.gmra.mxu0 %vm11651_vm1, %v4028_v7  ;;  %v4739_v23 = vmul.f32 %v10494_v53, %v4038_v15  ;;  %v4900_v59 = vsel %vm11651_vm1, %v4736_v54, 0.0 }
 0x541   : > { %v7063_v20 = vpop.f32.mrf.mxu1  ;;  %v5014_v46 = vsub.f32 0.0, %v4950_v29 }
 0x542   : > { %7162 = vmatprep.mubr.msk.f32.mxu0 %vm11651_vm1, %v4033_v12  ;;  %v4048_v33 = vadd.f32 %v7063_v20, %v10489_v0  ;;  %v10742_v21 = vpop.xlane.xlu1 %4766  ;;  %v4738_v25 = vmul.f32 %v10494_v53, %v4033_v12  ;;  %v4909_v62 = vsel %vm11651_vm1, %v4739_v23, 0.0  ;;  %v4949_v12 = vadd.f32 %v10783_v28, %v10700_v57 }
 0x543   : > { %4880 = vadd.xlane.f32.xlu1 %v4879_v51  ;;  %4904 = vadd.xlane.f32.xlu0 %v4903_v17  ;;  %v4042_v61 = vpop.f32.mrf.mxu1  ;;  %v4951_v17 = vadd.f32 %v10783_v28, %v10728_v37  ;;  %v4954_v23 = vadd.f32 %v10783_v28, %v10742_v21 }
 0x544   : > { %v4043_v22 = vadd.f32 %v10489_v0, %v4042_v61  ;;  %7163 = vmatmul.mubr.msk.f32.gmra.mxu0 %vm11651_vm1, %v4038_v15  ;;  %v4741_v32 = vmul.f32 %v10494_v53, %v4048_v33  ;;  %v4906_v10 = vsel %vm11651_vm1, %v4738_v25, 0.0  ;;  %v5079_v15 = vmul.f32 1.442695, %v5014_v46 }
 0x545   : > { %v7066_v34 = vpop.f32.mrf.mxu1  ;;  %v5013_v51 = vsub.f32 0.0, %v4949_v12  ;;  %v5016_v61 = vsub.f32 0.0, %v4952_v31 }
 0x546   : > { %7165 = vmatprep.mubr.msk.f32.mxu0 %vm11651_vm1, %v4043_v22  ;;  %v4058_v14 = vadd.f32 %v7066_v34, %v10489_v0  ;;  %v10758_v55 = vpop.xlane.xlu1 %4763  ;;  %v4740_v4 = vmul.f32 %v10494_v53, %v4043_v22  ;;  %v4915_v5 = vsel %vm11651_vm1, %v4741_v32, 0.0  ;;  %7601 = vpow2.f32 %v5079_v15 }
 0x547   : > { %4877 = vadd.xlane.f32.xlu1 %v4876_v41  ;;  %4901 = vadd.xlane.f32.xlu0 %v4900_v59  ;;  %v4052_v38 = vpop.f32.mrf.mxu1  ;;  %v5077_v11 = vmul.f32 1.442695, %v5013_v51  ;;  %v5015_v34 = vsub.f32 0.0, %v4951_v17  ;;  %v4953_v52 = vadd.f32 %v10783_v28, %v10758_v55 }
 0x548   : > { %v4053_v42 = vadd.f32 %v10489_v0, %v4052_v38  ;;  %7166 = vmatmul.mubr.msk.f32.gmra.mxu0 %vm11651_vm1, %v4048_v33  ;;  %v4743_v43 = vmul.f32 %v10494_v53, %v4058_v14  ;;  %v4912_v7 = vsel %vm11651_vm1, %v4740_v4, 0.0  ;;  %v5083_v33 = vmul.f32 1.442695, %v5016_v61 }
 0x549   : > { %v7069_v2 = vpop.f32.mrf.mxu1  ;;  %7603 = vpow2.f32 %v5077_v11  ;;  %v5081_v38 = vmul.f32 1.442695, %v5015_v34 }
 0x54a   : > { %7168 = vmatprep.mubr.msk.f32.mxu0 %vm11651_vm1, %v4053_v42  ;;  %v4068_v50 = vadd.f32 %v7069_v2, %v10489_v0  ;;  %v4773_v60 = vpop.xlane.xlu1 %4772  ;;  %v4742_v56 = vmul.f32 %v10494_v53, %v4053_v42  ;;  %v4921_v36 = vsel %vm11651_vm1, %v4743_v43, 0.0  ;;  %v5018_v42 = vsub.f32 0.0, %v4954_v23 }
 0x54b   : > { %4886 = vadd.xlane.f32.xlu1 %v4885_v9  ;;  %4910 = vadd.xlane.f32.xlu0 %v4909_v62  ;;  %v4062_v47 = vpop.f32.mrf.mxu1  ;;  %7605 = vpow2.f32 %v5083_v33  ;;  %v5017_v9 = vsub.f32 0.0, %v4953_v52 }
 0x54c   : > { %v4063_v27 = vadd.f32 %v10489_v0, %v4062_v47  ;;  %7169 = vmatmul.mubr.msk.f32.gmra.mxu0 %vm11651_vm1, %v4058_v14  ;;  %v4918_v49 = vsel %vm11651_vm1, %v4742_v56, 0.0  ;;  %7607 = vpow2.f32 %v5081_v38  ;;  %v5087_v14 = vmul.f32 1.442695, %v5018_v42 }
 0x54d   : > { %v7072_v30 = vpop.f32.mrf.mxu1  ;;  %v4956_v47 = vadd.f32 %v10783_v28, %v4773_v60  ;;  %v5085_v32 = vmul.f32 1.442695, %v5017_v9 }
 0x54e   : > { %7171 = vmatprep.mubr.msk.f32.mxu0 %vm11651_vm1, %v4063_v27  ;;  %v4078_v3 = vadd.f32 %v7072_v30, %v10489_v0  ;;  %v4770_v1 = vpop.xlane.xlu1 %4769  ;;  %v4744_v13 = vmul.f32 %v10494_v53, %v4063_v27  ;;  %7609 = vpow2.f32 %v5087_v14 }
 0x54f   : > { %4883 = vadd.xlane.f32.xlu1 %v4882_v48  ;;  %4907 = vadd.xlane.f32.xlu0 %v4906_v10  ;;  %v4072_v63 = vpop.f32.mrf.mxu1  ;;  %v5020_v48 = vsub.f32 0.0, %v4956_v47  ;;  %v4955_v10 = vadd.f32 %v10783_v28, %v4770_v1 }
 0x550   : > { %v4073_v16 = vadd.f32 %v10489_v0, %v4072_v63  ;;  %7172 = vmatmul.mubr.msk.f32.gmra.mxu0 %vm11651_vm1, %v4068_v50  ;;  %v4747_v20 = vmul.f32 %v10494_v53, %v4078_v3  ;;  %v4924_v26 = vsel %vm11651_vm1, %v4744_v13, 0.0 }
 0x551   : > { %v7075_v58 = vpop.f32.mrf.mxu1  ;;  %v5019_v60 = vsub.f32 0.0, %v4955_v10 }
 0x552   : > { %7174 = vmatprep.mubr.msk.f32.mxu0 %vm11651_vm1, %v4073_v16  ;;  %v4088_v40 = vadd.f32 %v7075_v58, %v10489_v0  ;;  %v4779_v44 = vpop.xlane.xlu1 %4778  ;;  %v4746_v22 = vmul.f32 %v10494_v53, %v4073_v16  ;;  %v4933_v57 = vsel %vm11651_vm1, %v4747_v20, 0.0 }
 0x553   : > { %4892 = vadd.xlane.f32.xlu1 %v4891_v6  ;;  %4916 = vadd.xlane.f32.xlu0 %v4915_v5  ;;  %v4082_v18 = vpop.f32.mrf.mxu1  ;;  %v5091_v6 = vmul.f32 1.442695, %v5020_v48  ;;  %v4958_v5 = vadd.f32 %v10783_v28, %v4779_v44 }
 0x554   : > { %v4083_v24 = vadd.f32 %v10489_v0, %v4082_v18  ;;  %7175 = vmatmul.mubr.msk.f32.gmra.mxu0 %vm11651_vm1, %v4078_v3  ;;  %v4745_v0 = vmul.f32 %v10494_v53, %v4068_v50  ;;  %v4749_v41 = vmul.f32 %v10494_v53, %v4088_v40  ;;  %v4930_v37 = vsel %vm11651_vm1, %v4746_v22, 0.0  ;;  %v7602_v50 = vpop.eup %7601 }
 0x555   : > { %v5206_v45 = vadd.f32 1.0, %v7602_v50 }
 0x556   : > { %7177 = vmatprep.mubr.msk.f32.mxu0 %vm11651_vm1, %v4083_v24  ;;  %v4927_v19 = vsel %vm11651_vm1, %v4745_v0, 0.0  ;;  %v10796_v54 = vpop.xlane.xlu1 %4775  ;;  %v4748_v2 = vmul.f32 %v10494_v53, %v4083_v24  ;;  %v4939_v21 = vsel %vm11651_vm1, %v4749_v41, 0.0  ;;  %v7604_v3 = vpop.eup %7603 }
 0x557   : > { %4889 = vadd.xlane.f32.xlu1 %v4888_v8  ;;  %4913 = vadd.xlane.f32.xlu0 %v4912_v7  ;;  %v4957_v0 = vadd.f32 %v10783_v28, %v10796_v54 }
 0x558   : > { %7178 = vmatmul.mubr.msk.f32.gmra.mxu0 %vm11651_vm1, %v4088_v40  ;;  %v4936_v39 = vsel %vm11651_vm1, %v4748_v2, 0.0  ;;  %v7606_v18 = vpop.eup %7605  ;;  %v5205_v40 = vadd.f32 1.0, %v7604_v3 }
 0x559   : > { %v7608_v56 = vpop.eup %7607  ;;  %v5208_v1 = vadd.f32 1.0, %v7606_v18  ;;  %v5021_v31 = vsub.f32 0.0, %v4957_v0 }
 0x55a   : > { %v5207_v44 = vadd.f32 1.0, %v7608_v56 }
 0x55b   : > { %4922 = vadd.xlane.f32.xlu0 %v4921_v36  ;;  %v5022_v36 = vsub.f32 0.0, %v4958_v5  ;;  %v7610_v46 = vpop.eup %7609 }
 0x55c   : > { %v5210_v51 = vadd.f32 1.0, %v7610_v46 }
 0x55d   : > { %v5095_v12 = vmul.f32 1.442695, %v5022_v36 }
 0x55f   : > { %4919 = vadd.xlane.f32.xlu0 %v4918_v49  ;;  %v5089_v49 = vmul.f32 1.442695, %v5019_v60 }
 0x563   : > { %4928 = vadd.xlane.f32.xlu0 %v4927_v19 }
 0x567   : > { %4925 = vadd.xlane.f32.xlu0 %v4924_v26 }
 0x56b   : > { %v10803_v35 = vpop.xlane.xlu1 %4784  ;;  %4934 = vadd.xlane.f32.xlu0 %v4933_v57  ;;  %v5093_v57 = vmul.f32 1.442695, %v5021_v31 }
 0x56c   : > { %v4960_v26 = vadd.f32 %v10783_v28, %v10803_v35 }
 0x56e   : > { %v5024_v23 = vsub.f32 0.0, %v4960_v26 }
 0x56f   : > { %v10809_v59 = vpop.xlane.xlu1 %4781  ;;  %4931 = vadd.xlane.f32.xlu0 %v4930_v37 }
 0x570   : > { %v4959_v33 = vadd.f32 %v10783_v28, %v10809_v59  ;;  %v5099_v14 = vmul.f32 1.442695, %v5024_v23 }
 0x572   : > { %v5023_v9 = vsub.f32 0.0, %v4959_v33 }
 0x573   : > { %v4791_v25 = vpop.xlane.xlu1 %4790  ;;  %4940 = vadd.xlane.f32.xlu0 %v4939_v21 }
 0x574   : > { %v4962_v62 = vadd.f32 %v10783_v28, %v4791_v25  ;;  %v5097_v50 = vmul.f32 1.442695, %v5023_v9 }
 0x576   : > { %v5026_v27 = vsub.f32 0.0, %v4962_v62 }
 0x577   : > { %v4788_v30 = vpop.xlane.xlu1 %4787  ;;  %4937 = vadd.xlane.f32.xlu0 %v4936_v39 }
 0x578   : > { %v5103_v55 = vmul.f32 1.442695, %v5026_v27  ;;  %v4961_v53 = vadd.f32 %v10783_v28, %v4788_v30 }
 0x57a   : > { %7611 = vpow2.f32 %v5103_v55  ;;  %v5025_v63 = vsub.f32 0.0, %v4961_v53 }
 0x57b   : > { %v4797_v16 = vpop.xlane.xlu1 %4796  ;;  %7613 = vpow2.f32 %v5085_v32 }
 0x57c   : > { %v5101_v58 = vmul.f32 1.442695, %v5025_v63  ;;  %v4964_v4 = vadd.f32 %v10783_v28, %v4797_v16 }
 0x57e   : > { %7615 = vpow2.f32 %v5101_v58  ;;  %v5028_v24 = vsub.f32 0.0, %v4964_v4 }
 0x57f   : > { %v4794_v43 = vpop.xlane.xlu1 %4793  ;;  %7617 = vrcp.f32 %v5206_v45 }
 0x580   : > { %v5107_v8 = vmul.f32 1.442695, %v5028_v24  ;;  %v4963_v7 = vadd.f32 %v10783_v28, %v4794_v43  ;;  %7619 = vpow2.f32 %v5091_v6 }
 0x582   : > { %v5027_v29 = vsub.f32 0.0, %v4963_v7  ;;  %7621 = vpow2.f32 %v5107_v8 }
 0x583   : > { %7623 = vrcp.f32 %v5205_v40  ;;  %v4803_v19 = vpop.xlane.xlu0 %4802 }
 0x584   : > { %v5105_v13 = vmul.f32 1.442695, %v5027_v29  ;;  %7625 = vrcp.f32 %v5208_v1  ;;  %v4966_v20 = vadd.f32 %v10783_v28, %v4803_v19 }
 0x585   : > { %7627 = vpow2.f32 %v5089_v49 }
 0x586   : > { %7629 = vpow2.f32 %v5105_v13  ;;  %v5030_v54 = vsub.f32 0.0, %v4966_v20 }
 0x587   : > { %v7612_v15 = vpop.eup %7611  ;;  %7631 = vrcp.f32 %v5207_v44  ;;  %v4800_v61 = vpop.xlane.xlu0 %4799 }
 0x588   : > { %v5218_v17 = vadd.f32 1.0, %v7612_v15  ;;  %v7614_v22 = vpop.eup %7613  ;;  %7633 = vpow2.f32 %v5095_v12  ;;  %v5111_v11 = vmul.f32 1.442695, %v5030_v54  ;;  %v4965_v34 = vadd.f32 %v10783_v28, %v4800_v61 }
 0x589   : > { %v5209_v37 = vadd.f32 1.0, %v7614_v22 }
 0x58a   : > { %7635 = vrcp.f32 %v5218_v17  ;;  %v5029_v35 = vsub.f32 0.0, %v4965_v34 }
 0x58b   : > { %v7616_v41 = vpop.eup %7615  ;;  %7637 = vpow2.f32 %v5111_v11  ;;  %v4809_v42 = vpop.xlane.xlu0 %4808 }
 0x58c   : > { %7639 = vrcp.f32 %v5210_v51  ;;  %v5217_v38 = vadd.f32 1.0, %v7616_v41  ;;  %v7618_v52 = vpop.eup %7617  ;;  %v5109_v2 = vmul.f32 1.442695, %v5029_v35  ;;  %v4968_v21 = vadd.f32 %v10783_v28, %v4809_v42 }
 0x58d   : > { %7641 = vpow2.f32 %v5093_v57  ;;  %v7620_v25 = vpop.eup %7619  ;;  %5404 = vperm.xlu0 %7215, %v7618_v52  }
 0x58e   : > { %7643 = vrcp.f32 %v5217_v38  ;;  %v5032_v59 = vsub.f32 0.0, %v4968_v21  ;;  %v5212_v39 = vadd.f32 1.0, %v7620_v25 }
 0x58f   : > { %7645 = vpow2.f32 %v5109_v2  ;;  %v7622_v62 = vpop.eup %7621  ;;  %v4806_v47 = vpop.xlane.xlu0 %4805 }
 0x590   : > { %7647 = vrcp.f32 %v5209_v37  ;;  %v7624_v27 = vpop.eup %7623  ;;  %v5220_v30 = vadd.f32 1.0, %v7622_v62  ;;  %v5115_v32 = vmul.f32 1.442695, %v5032_v59  ;;  %v4967_v55 = vadd.f32 %v10783_v28, %v4806_v47 }
 0x591   : > { %v7626_v53 = vpop.eup %7625  ;;  %7649 = vpow2.f32 %v5099_v14  ;;  %5399 = vperm.xlu0 %7215, %v7624_v27  }
 0x592   : > { %v7628_v48 = vpop.eup %7627  ;;  %7651 = vrcp.f32 %v5220_v30  ;;  %v5031_v10 = vsub.f32 0.0, %v4967_v55 }
 0x593   : > { %v7630_v63 = vpop.eup %7629  ;;  %7653 = vpow2.f32 %v5115_v32  ;;  %v4815_v16 = vpop.xlane.xlu0 %4814  ;;  %v5211_v5 = vadd.f32 1.0, %v7628_v48 }
 0x594   : > { %v7632_v45 = vpop.eup %7631  ;;  %7655 = vrcp.f32 %v5212_v39  ;;  %v5219_v58 = vadd.f32 1.0, %v7630_v63  ;;  %v5113_v4 = vmul.f32 1.442695, %v5031_v10  ;;  %v4970_v3 = vadd.f32 %v10783_v28, %v4815_v16  ;;  %v10843_v39 = vpop.f32.mrf.mxu0 }
 0x595   : > { %v7634_v6 = vpop.eup %7633  ;;  %7657 = vpow2.f32 %v5097_v50  ;;  %5414 = vperm.xlu0 %7215, %v7626_v53  }
 0x596   : > { %7659 = vrcp.f32 %v5219_v58  ;;  %v5034_v60 = vsub.f32 0.0, %v4970_v3  ;;  %v5214_v36 = vadd.f32 1.0, %v7634_v6 }
 0x597   : > { %v7636_v18 = vpop.eup %7635  ;;  %7661 = vpow2.f32 %v5113_v4  ;;  %v4812_v43 = vpop.xlane.xlu0 %4811 }
 0x598   : > { %v7638_v24 = vpop.eup %7637  ;;  %5464 = vperm.xlu1 %7216, %v7636_v18   ;;  %v5119_v7 = vmul.f32 1.442695, %v5034_v60  ;;  %v4969_v56 = vadd.f32 %v10783_v28, %v4812_v43  ;;  %7663 = vrcp.f32 %v5211_v5 }
 0x599   : > { %v7640_v40 = vpop.eup %7639  ;;  %v5222_v8 = vadd.f32 1.0, %v7638_v24  ;;  %5409 = vperm.xlu0 %7215, %v7632_v45   ;;  %v10848_v45 = vpop.f32.mrf.mxu0 }
 0x59a   : > { %v7642_v1 = vpop.eup %7641  ;;  %v5033_v49 = vsub.f32 0.0, %v4969_v56 }
 0x59b   : > { %v7644_v0 = vpop.eup %7643  ;;  %7665 = vrcp.f32 %v5222_v8  ;;  %v4821_v44 = vpop.xlane.xlu0 %4820  ;;  %v5213_v31 = vadd.f32 1.0, %v7642_v1 }
 0x59c   : > { %v7646_v29 = vpop.eup %7645  ;;  %7667 = vpow2.f32 %v5119_v7  ;;  %5459 = vperm.xlu1 %7216, %v7644_v0   ;;  %v5117_v46 = vmul.f32 1.442695, %v5033_v49  ;;  %v4972_v12 = vadd.f32 %v10783_v28, %v4821_v44  ;;  %v10853_v8 = vpop.f32.mrf.mxu0 }
 0x59d   : > { %v7648_v13 = vpop.eup %7647  ;;  %v5221_v19 = vadd.f32 1.0, %v7646_v29  ;;  %7669 = vrcp.f32 %v5214_v36  ;;  %5424 = vperm.xlu0 %7215, %v7640_v40  }
 0x59e   : > { %v7650_v20 = vpop.eup %7649  ;;  %v5036_v26 = vsub.f32 0.0, %v4972_v12 }
 0x59f   : > { %7671 = vrcp.f32 %v5221_v19  ;;  %v7652_v15 = vpop.eup %7651  ;;  %v4818_v54 = vpop.xlane.xlu0 %4817  ;;  %v5216_v57 = vadd.f32 1.0, %v7650_v20 }
 0x5a0   : > { %7673 = vpow2.f32 %v5117_v46  ;;  %v7654_v51 = vpop.eup %7653  ;;  %v5123_v17 = vmul.f32 1.442695, %v5036_v26  ;;  %v4971_v61 = vadd.f32 %v10783_v28, %v4818_v54  ;;  %5474 = vperm.xlu1 %7216, %v7652_v15   ;;  %v10858_v19 = vpop.f32.mrf.mxu0 }
 0x5a1   : > { %v7656_v22 = vpop.eup %7655  ;;  %7675 = vrcp.f32 %v5213_v31  ;;  %v5224_v11 = vadd.f32 1.0, %v7654_v51  ;;  %5419 = vperm.xlu0 %7215, %v7648_v13  }
 0x5a2   : > { %v7658_v34 = vpop.eup %7657  ;;  %7677 = vpow2.f32 %v5123_v17  ;;  %v5035_v23 = vsub.f32 0.0, %v4971_v61  ;;  %v10863_v17 = vpop.f32.mrf.mxu0 }
 0x5a3   : > { %v7660_v33 = vpop.eup %7659  ;;  %7679 = vrcp.f32 %v5224_v11  ;;  %v4827_v41 = vpop.xlane.xlu0 %4826  ;;  %v5215_v52 = vadd.f32 1.0, %v7658_v34 }
 0x5a4   : > { %v7662_v35 = vpop.eup %7661  ;;  %v5121_v37 = vmul.f32 1.442695, %v5035_v23  ;;  %v10837_v38 = vpop.xlane.xlu1 %4850  ;;  %v4974_v42 = vadd.f32 %v10783_v28, %v4827_v41  ;;  %5469 = vperm.xlu1 %7216, %v7660_v33   ;;  %7681 = vrcp.f32 %v5216_v57 }
 0x5a5   : > { %v5223_v2 = vadd.f32 1.0, %v7662_v35  ;;  %5434 = vperm.xlu0 %7215, %v7656_v22   ;;  %v7664_v21 = vpop.eup %7663  ;;  %v10866_v35 = vpop.f32.mrf.mxu0 }
 0x5a6   : > { %7683 = vpow2.f32 %v5121_v37  ;;  %v5038_v25 = vsub.f32 0.0, %v4974_v42 }
 0x5a7   : > { %7685 = vrcp.f32 %v5223_v2  ;;  %v4824_v9 = vpop.xlane.xlu0 %4823 }
 0x5a8   : > { %v7666_v14 = vpop.eup %7665  ;;  %v5127_v62 = vmul.f32 1.442695, %v5038_v25  ;;  %v10840_v47 = vpop.xlane.xlu1 %4847  ;;  %v4973_v27 = vadd.f32 %v10783_v28, %v4824_v9  ;;  %7687 = vrcp.f32 %v5215_v52 }
 0x5a9   : > { %v7668_v59 = vpop.eup %7667  ;;  %5484 = vperm.xlu1 %7216, %v7666_v14   ;;  %5429 = vperm.xlu0 %7215, %v7664_v21  }
 0x5aa   : > { %v5226_v30 = vadd.f32 1.0, %v7668_v59  ;;  %v7670_v32 = vpop.eup %7669  ;;  %7689 = vpow2.f32 %v5127_v62  ;;  %v5037_v55 = vsub.f32 0.0, %v4973_v27  ;;  %v10872_v27 = vpop.f32.mrf.mxu0 }
 0x5ab   : > { %v4833_v50 = vpop.xlane.xlu0 %4832 }
 0x5ac   : > { %v7672_v53 = vpop.eup %7671  ;;  %7691 = vrcp.f32 %v5226_v30  ;;  %v5125_v10 = vmul.f32 1.442695, %v5037_v55  ;;  %v10845_v63 = vpop.xlane.xlu1 %4856  ;;  %v4976_v16 = vadd.f32 %v10783_v28, %v4833_v50 }
 0x5ad   : > { %v7674_v48 = vpop.eup %7673  ;;  %5479 = vperm.xlu1 %7216, %v7672_v53   ;;  %5444 = vperm.xlu0 %7215, %v7670_v32  }
 0x5ae   : > { %v5225_v58 = vadd.f32 1.0, %v7674_v48  ;;  %v7676_v4 = vpop.eup %7675  ;;  %7693 = vpow2.f32 %v5125_v10  ;;  %v5040_v3 = vsub.f32 0.0, %v4976_v16 }
 0x5af   : > { %v7678_v6 = vpop.eup %7677  ;;  %v4830_v5 = vpop.xlane.xlu0 %4829 }
 0x5b0   : > { %7695 = vrcp.f32 %v5225_v58  ;;  %v7680_v18 = vpop.eup %7679  ;;  %v5228_v60 = vadd.f32 1.0, %v7678_v6  ;;  %v5131_v24 = vmul.f32 1.442695, %v5040_v3  ;;  %v10850_v43 = vpop.xlane.xlu1 %4853  ;;  %v4975_v40 = vadd.f32 %v10783_v28, %v4830_v5 }
 0x5b1   : > { %5439 = vperm.xlu0 %7215, %v7676_v4   ;;  %5494 = vperm.xlu1 %7216, %v7680_v18   ;;  %v7682_v7 = vpop.eup %7681  ;;  %v10876_v58 = vpop.f32.mrf.mxu0 }
 0x5b2   : > { %7697 = vrcp.f32 %v5228_v60  ;;  %v5039_v56 = vsub.f32 0.0, %v4975_v40 }
 0x5b3   : > { %v7684_v1 = vpop.eup %7683  ;;  %v4839_v36 = vpop.xlane.xlu0 %4838  ;;  %7699 = vpow2.f32 %v5131_v24 }
 0x5b4   : > { %v7686_v0 = vpop.eup %7685  ;;  %v5227_v49 = vadd.f32 1.0, %v7684_v1  ;;  %v5129_v29 = vmul.f32 1.442695, %v5039_v56  ;;  %v10855_v44 = vpop.xlane.xlu1 %4862  ;;  %v4978_v13 = vadd.f32 %v10783_v28, %v4839_v36 }
 0x5b5   : > { %5454 = vperm.xlu0 %7215, %v7682_v7   ;;  %5489 = vperm.xlu1 %7216, %v7686_v0   ;;  %v7688_v46 = vpop.eup %7687  ;;  %v10881_v24 = vpop.f32.mrf.mxu0 }
 0x5b6   : > { %7701 = vrcp.f32 %v5227_v49  ;;  %v5042_v12 = vsub.f32 0.0, %v4978_v13 }
 0x5b7   : > { %v7690_v31 = vpop.eup %7689  ;;  %v4836_v20 = vpop.xlane.xlu0 %4835  ;;  %7703 = vpow2.f32 %v5129_v29 }
 0x5b8   : > { %v5230_v15 = vadd.f32 1.0, %v7690_v31  ;;  %v10860_v54 = vpop.xlane.xlu1 %4859  ;;  %v4977_v51 = vadd.f32 %v10783_v28, %v4836_v20  ;;  %v5135_v61 = vmul.f32 1.442695, %v5042_v12  ;;  %v10886_v13 = vpop.f32.mrf.mxu0 }
 0x5b9   : > { %v7692_v26 = vpop.eup %7691  ;;  %5449 = vperm.xlu0 %7215, %v7688_v46  }
 0x5ba   : > { %5504 = vperm.xlu1 %7216, %v7692_v26   ;;  %7705 = vrcp.f32 %v5230_v15  ;;  %v5041_v22 = vsub.f32 0.0, %v4977_v51  ;;  %v10889_v26 = vpop.f32.mrf.mxu0 }
 0x5bb   : > { %v7694_v57 = vpop.eup %7693  ;;  %v4845_v11 = vpop.xlane.xlu0 %4844  ;;  %7707 = vpow2.f32 %v5135_v61 }
 0x5bc   : > { %v5229_v23 = vadd.f32 1.0, %v7694_v57  ;;  %v4869_v33 = vpop.xlane.xlu1 %4868  ;;  %v4980_v41 = vadd.f32 %v10783_v28, %v4845_v11  ;;  %v5133_v37 = vmul.f32 1.442695, %v5041_v22 }
 0x5bd   : > { %v7696_v34 = vpop.eup %7695  ;;  %v4988_v42 = vadd.f32 %v10783_v28, %v4869_v33 }
 0x5be   : > { %5499 = vperm.xlu1 %7216, %v7696_v34   ;;  %7709 = vrcp.f32 %v5229_v23  ;;  %v5044_v52 = vsub.f32 0.0, %v4980_v41 }
 0x5bf   : > { %v7698_v2 = vpop.eup %7697  ;;  %v5052_v21 = vsub.f32 0.0, %v4988_v42  ;;  %v4842_v25 = vpop.xlane.xlu0 %4841  ;;  %7711 = vpow2.f32 %v5133_v37 }
 0x5c0   : > { %v5139_v14 = vmul.f32 1.442695, %v5044_v52  ;;  %v10869_v9 = vpop.xlane.xlu1 %4865  ;;  %v4979_v59 = vadd.f32 %v10783_v28, %v4842_v25  ;;  %v7700_v62 = vpop.eup %7699 }
 0x5c1   : > { %v5155_v30 = vmul.f32 1.442695, %v5052_v21  ;;  %v5232_v32 = vadd.f32 1.0, %v7700_v62  ;;  %v10894_v37 = vpop.f32.mrf.mxu0 }
 0x5c2   : > { %5514 = vperm.xlu1 %7216, %v7698_v2   ;;  %7713 = vpow2.f32 %v5139_v14  ;;  %v5043_v55 = vsub.f32 0.0, %v4979_v59 }
 0x5c3   : > { %v7702_v53 = vpop.eup %7701  ;;  %7715 = vrcp.f32 %v5232_v32  ;;  %v10898_v59 = vpop.f32.mrf.mxu0  ;;  %v4986_v32 = vadd.f32 %v10783_v28, %v10855_v44 }
 0x5c4   : > { %v5137_v50 = vmul.f32 1.442695, %v5043_v55  ;;  %v4875_v48 = vpop.xlane.xlu1 %4874  ;;  %v10874_v10 = vpop.xlane.xlu0 %4898  ;;  %7717 = vpow2.f32 %v5155_v30 }
 0x5c5   : > { %v7704_v16 = vpop.eup %7703  ;;  %v4990_v4 = vadd.f32 %v10783_v28, %v4875_v48 }
 0x5c6   : > { %5509 = vperm.xlu1 %7216, %v7702_v53   ;;  %v5231_v3 = vadd.f32 1.0, %v7704_v16  ;;  %7719 = vpow2.f32 %v5137_v50  ;;  %v10905_v16 = vpop.f32.mrf.mxu0 }
 0x5c7   : > { %v7706_v6 = vpop.eup %7705  ;;  %v5054_v5 = vsub.f32 0.0, %v4990_v4 }
 0x5c8   : > { %7721 = vrcp.f32 %v5231_v3  ;;  %v4872_v18 = vpop.xlane.xlu1 %4871  ;;  %v10879_v60 = vpop.xlane.xlu0 %4895 }
 0x5c9   : > { %v5159_v40 = vmul.f32 1.442695, %v5054_v5  ;;  %v4989_v7 = vadd.f32 %v10783_v28, %v4872_v18  ;;  %v7708_v56 = vpop.eup %7707  ;;  %v10908_v18 = vpop.f32.mrf.mxu0 }
 0x5ca   : > { %5524 = vperm.xlu1 %7216, %v7706_v6   ;;  %v5234_v36 = vadd.f32 1.0, %v7708_v56 }
 0x5cb   : > { %v7710_v1 = vpop.eup %7709  ;;  %v5053_v0 = vsub.f32 0.0, %v4989_v7  ;;  %7723 = vpow2.f32 %v5159_v40  ;;  %v5050_v40 = vsub.f32 0.0, %v4986_v32  ;;  %v4987_v7 = vadd.f32 %v10783_v28, %v10869_v9 }
 0x5cc   : > { %v4881_v49 = vpop.xlane.xlu1 %4880  ;;  %v10884_v29 = vpop.xlane.xlu0 %4904  ;;  %7725 = vrcp.f32 %v5234_v36 }
 0x5cd   : > { %v5157_v46 = vmul.f32 1.442695, %v5053_v0  ;;  %v4992_v12 = vadd.f32 %v10783_v28, %v4881_v49  ;;  %v7712_v31 = vpop.eup %7711 }
 0x5ce   : > { %5519 = vperm.xlu1 %7216, %v7710_v1   ;;  %v5233_v15 = vadd.f32 1.0, %v7712_v31 }
 0x5cf   : > { %v7714_v20 = vpop.eup %7713  ;;  %v5056_v51 = vsub.f32 0.0, %v4992_v12  ;;  %7727 = vpow2.f32 %v5157_v46 }
 0x5d0   : > { %v5236_v61 = vadd.f32 1.0, %v7714_v20  ;;  %v4878_v22 = vpop.xlane.xlu1 %4877  ;;  %v10891_v57 = vpop.xlane.xlu0 %4901  ;;  %7729 = vrcp.f32 %v5233_v15  ;;  %v5151_v15 = vmul.f32 1.442695, %v5050_v40 }
 0x5d1   : > { %v7716_v11 = vpop.eup %7715  ;;  %v5163_v34 = vmul.f32 1.442695, %v5056_v51  ;;  %v4991_v23 = vadd.f32 %v10783_v28, %v4878_v22  ;;  %v10914_v51 = vpop.f32.mrf.mxu0 }
 0x5d2   : > { %v7718_v33 = vpop.eup %7717  ;;  %7731 = vrcp.f32 %v5236_v61  ;;  %5534 = vperm.xlu1 %7216, %v7716_v11   ;;  %v5051_v61 = vsub.f32 0.0, %v4987_v7 }
 0x5d3   : > { %v7720_v41 = vpop.eup %7719  ;;  %v5244_v42 = vadd.f32 1.0, %v7718_v33  ;;  %v5055_v52 = vsub.f32 0.0, %v4991_v23  ;;  %7733 = vpow2.f32 %v5163_v34 }
 0x5d4   : > { %v5235_v2 = vadd.f32 1.0, %v7720_v41  ;;  %v4887_v21 = vpop.xlane.xlu1 %4886  ;;  %v10896_v25 = vpop.xlane.xlu0 %4910 }
 0x5d5   : > { %v7722_v14 = vpop.eup %7721  ;;  %7735 = vrcp.f32 %v5244_v42  ;;  %v5161_v62 = vmul.f32 1.442695, %v5055_v52  ;;  %v4994_v30 = vadd.f32 %v10783_v28, %v4887_v21  ;;  %v10919_v52 = vpop.f32.mrf.mxu0 }
 0x5d6   : > { %7737 = vrcp.f32 %v5235_v2  ;;  %5529 = vperm.xlu1 %7216, %v7722_v14  }
 0x5d7   : > { %v5058_v55 = vsub.f32 0.0, %v4994_v30  ;;  %7739 = vpow2.f32 %v5161_v62  ;;  %v5153_v62 = vmul.f32 1.442695, %v5051_v61 }
 0x5d8   : > { %v4884_v53 = vpop.xlane.xlu1 %4883  ;;  %v10903_v50 = vpop.xlane.xlu0 %4907 }
 0x5d9   : > { %v7724_v48 = vpop.eup %7723  ;;  %v5167_v4 = vmul.f32 1.442695, %v5058_v55  ;;  %v4993_v3 = vadd.f32 %v10783_v28, %v4884_v53  ;;  %v4985_v53 = vadd.f32 %v10783_v28, %v10860_v54 }
 0x5da   : > { %v7726_v6 = vpop.eup %7725  ;;  %v5246_v5 = vadd.f32 1.0, %v7724_v48 }
 0x5db   : > { %7741 = vpow2.f32 %v5167_v4  ;;  %v5057_v44 = vsub.f32 0.0, %v4993_v3  ;;  %5544 = vperm.xlu1 %7216, %v7726_v6   ;;  %v4982_v3 = vadd.f32 %v10783_v28, %v10837_v38  ;;  %v10926_v6 = vpop.f32.mrf.mxu0 }
 0x5dc   : > { %7743 = vrcp.f32 %v5246_v5  ;;  %v4893_v56 = vpop.xlane.xlu1 %4892  ;;  %v4917_v1 = vpop.xlane.xlu0 %4916 }
 0x5dd   : > { %v7728_v36 = vpop.eup %7727  ;;  %v5165_v0 = vmul.f32 1.442695, %v5057_v44  ;;  %v4996_v49 = vadd.f32 %v10783_v28, %v4893_v56  ;;  %v5004_v31 = vadd.f32 %v10783_v28, %v4917_v1  ;;  %v4984_v44 = vadd.f32 %v10783_v28, %v10845_v63  ;;  %v10931_v38 = vpop.f32.mrf.mxu0 }
 0x5de   : > { %v7730_v46 = vpop.eup %7729  ;;  %v5245_v12 = vadd.f32 1.0, %v7728_v36  ;;  %v5049_v1 = vsub.f32 0.0, %v4985_v53  ;;  %v4983_v63 = vadd.f32 %v10783_v28, %v10850_v43 }
 0x5df   : > { %v7732_v20 = vpop.eup %7731  ;;  %7745 = vpow2.f32 %v5165_v0  ;;  %v5060_v9 = vsub.f32 0.0, %v4996_v49  ;;  %5539 = vperm.xlu1 %7216, %v7730_v46   ;;  %v5068_v22 = vsub.f32 0.0, %v5004_v31  ;;  %v5046_v49 = vsub.f32 0.0, %v4982_v3 }
 0x5e0   : > { %7747 = vrcp.f32 %v5245_v12  ;;  %v4890_v11 = vpop.xlane.xlu1 %4889  ;;  %v10916_v34 = vpop.xlane.xlu0 %4913  ;;  %5554 = vperm.xlu0 %7215, %v7732_v20   ;;  %v5048_v20 = vsub.f32 0.0, %v4984_v44  ;;  %v5047_v43 = vsub.f32 0.0, %v4983_v63 }
 0x5e1   : > { %v7734_v23 = vpop.eup %7733  ;;  %v5171_v33 = vmul.f32 1.442695, %v5060_v9  ;;  %v4995_v41 = vadd.f32 %v10783_v28, %v4890_v11  ;;  %v5187_v21 = vmul.f32 1.442695, %v5068_v22  ;;  %7749 = vpow2.f32 %v5151_v15 }
 0x5e2   : > { %v7736_v42 = vpop.eup %7735  ;;  %v5248_v2 = vadd.f32 1.0, %v7734_v23  ;;  %v5149_v9 = vmul.f32 1.442695, %v5049_v1 }
 0x5e3   : > { %v7738_v14 = vpop.eup %7737  ;;  %v5059_v30 = vsub.f32 0.0, %v4995_v41  ;;  %v4981_v41 = vadd.f32 %v10783_v28, %v10840_v47 }
 0x5e4   : > { %7751 = vrcp.f32 %v5248_v2  ;;  %v4923_v32 = vpop.xlane.xlu0 %4922  ;;  %5594 = vperm.xlu0 %7215, %v7736_v42   ;;  %5549 = vperm.xlu1 %7216, %v7738_v14   ;;  %v7740_v55 = vpop.eup %7739  ;;  %v5147_v14 = vmul.f32 1.442695, %v5048_v20 }
 0x5e5   : > { %7753 = vpow2.f32 %v5171_v33  ;;  %v5169_v48 = vmul.f32 1.442695, %v5059_v30  ;;  %v5006_v4 = vadd.f32 %v10783_v28, %v4923_v32  ;;  %v5247_v5 = vadd.f32 1.0, %v7740_v55  ;;  %v10938_v42 = vpop.f32.mrf.mxu0 }
 0x5e6   : > { %7755 = vpow2.f32 %v5187_v21  ;;  %v5143_v33 = vmul.f32 1.442695, %v5046_v49 }
 0x5e7   : > { %7757 = vpow2.f32 %v5153_v62  ;;  %v5070_v40 = vsub.f32 0.0, %v5006_v4  ;;  %v10941_v47 = vpop.f32.mrf.mxu0 }
 0x5e8   : > { %v7742_v7 = vpop.eup %7741  ;;  %7759 = vrcp.f32 %v5247_v5  ;;  %v4920_v56 = vpop.xlane.xlu0 %4919 }
 0x5e9   : > { %v7744_v54 = vpop.eup %7743  ;;  %v5250_v36 = vadd.f32 1.0, %v7742_v7  ;;  %7761 = vpow2.f32 %v5169_v48  ;;  %v5005_v0 = vadd.f32 %v10783_v28, %v4920_v56  ;;  %v5191_v46 = vmul.f32 1.442695, %v5070_v40 }
 0x5ea   : > { %5604 = vperm.xlu0 %7215, %v7744_v54   ;;  %v5045_v48 = vsub.f32 0.0, %v4981_v41  ;;  %v5145_v7 = vmul.f32 1.442695, %v5047_v43 }
 0x5eb   : > { %7763 = vrcp.f32 %v5250_v36  ;;  %v5069_v12 = vsub.f32 0.0, %v5005_v0 }
 0x5ec   : > { %v7746_v31 = vpop.eup %7745  ;;  %v4929_v15 = vpop.xlane.xlu0 %4928  ;;  %7765 = vpow2.f32 %v5191_v46  ;;  %v5141_v49 = vmul.f32 1.442695, %v5045_v48 }
 0x5ed   : > { %v7748_v61 = vpop.eup %7747  ;;  %v5249_v22 = vadd.f32 1.0, %v7746_v31  ;;  %v5189_v11 = vmul.f32 1.442695, %v5069_v12  ;;  %v5008_v23 = vadd.f32 %v10783_v28, %v4929_v15  ;;  %v10944_v46 = vpop.f32.mrf.mxu0 }
 0x5ee   : > { %5599 = vperm.xlu0 %7215, %v7748_v61   ;;  %v7750_v21 = vpop.eup %7749 }
 0x5ef   : > { %7767 = vrcp.f32 %v5249_v22  ;;  %v5072_v2 = vsub.f32 0.0, %v5008_v23  ;;  %v5242_v63 = vadd.f32 1.0, %v7750_v21  ;;  %v10946_v22 = vld [vmem:[#allocation2] ss:$0 sm:$0xff] }
 0x5f0   : > { %7769 = vpow2.f32 %v5189_v11  ;;  %v4926_v62 = vpop.xlane.xlu0 %4925  ;;  %v10949_v11 = vpop.f32.mrf.mxu0 }
 0x5f1   : > { %v7752_v30 = vpop.eup %7751  ;;  %7771 = vpow2.f32 %v5149_v9  ;;  %v5195_v32 = vmul.f32 1.442695, %v5072_v2  ;;  %v5007_v55 = vadd.f32 %v10783_v28, %v4926_v62 }
 0x5f2   : > { %v7754_v53 = vpop.eup %7753  ;;  %7773 = vpow2.f32 %v5143_v33  ;;  %5614 = vperm.xlu0 %7215, %v7752_v30  }
 0x5f3   : > { %v7756_v4 = vpop.eup %7755  ;;  %v5252_v3 = vadd.f32 1.0, %v7754_v53  ;;  %7775 = vpow2.f32 %v5195_v32  ;;  %v5071_v5 = vsub.f32 0.0, %v5007_v55  ;;  %v10952_v32 = vpop.f32.mrf.mxu0  ;;  %v5003_v55 = vadd.f32 %v10946_v22, %v10916_v34 }
 0x5f4   : > { %v7758_v40 = vpop.eup %7757  ;;  %7777 = vpow2.f32 %v5147_v14  ;;  %v5260_v44 = vadd.f32 1.0, %v7756_v4  ;;  %v4935_v56 = vpop.xlane.xlu0 %4934  ;;  %v5002_v34 = vadd.f32 %v10946_v22, %v10896_v25 }
 0x5f5   : > { %v7760_v54 = vpop.eup %7759  ;;  %7779 = vrcp.f32 %v5252_v3  ;;  %v5193_v1 = vmul.f32 1.442695, %v5071_v5  ;;  %v5010_v36 = vadd.f32 %v10783_v28, %v4935_v56  ;;  %v5243_v61 = vadd.f32 1.0, %v7758_v40 }
 0x5f6   : > { %v7762_v0 = vpop.eup %7761  ;;  %7781 = vrcp.f32 %v5260_v44  ;;  %5609 = vperm.xlu0 %7215, %v7760_v54  }
 0x5f7   : > { %v5251_v12 = vadd.f32 1.0, %v7762_v0  ;;  %7783 = vpow2.f32 %v5193_v1  ;;  %v5074_v31 = vsub.f32 0.0, %v5010_v36  ;;  %v10957_v36 = vpop.f32.mrf.mxu0  ;;  %v5067_v0 = vsub.f32 0.0, %v5003_v55 }
 0x5f8   : > { %v7764_v20 = vpop.eup %7763  ;;  %7785 = vpow2.f32 %v5145_v7  ;;  %v4932_v15 = vpop.xlane.xlu0 %4931 }
 0x5f9   : > { %7787 = vrcp.f32 %v5251_v12  ;;  %v5199_v9 = vmul.f32 1.442695, %v5074_v31  ;;  %v5009_v28 = vadd.f32 %v10946_v22, %v4932_v15  ;;  %v7766_v23 = vpop.eup %7765  ;;  %v10966_v25 = vpop.f32.mrf.mxu0 }
 0x5fa   : > { %7789 = vpow2.f32 %v5141_v49  ;;  %5624 = vperm.xlu0 %7215, %v7764_v20   ;;  %v5262_v2 = vadd.f32 1.0, %v7766_v23  ;;  %v10964_v20 = vld [vmem:[%s11580_s11] ss:$0 sm:$0xff]  ;;  %v5066_v23 = vsub.f32 0.0, %v5002_v34 }
 0x5fb   : > { %7791 = vpow2.f32 %v5199_v9  ;;  %v5073_v33 = vsub.f32 0.0, %v5009_v28 }
 0x5fc   : > { %v7768_v41 = vpop.eup %7767  ;;  %7793 = vrcp.f32 %v5242_v63  ;;  %v4941_v14 = vpop.xlane.xlu0 %4940 }
 0x5fd   : > { %v7770_v21 = vpop.eup %7769  ;;  %7795 = vrcp.f32 %v5243_v61  ;;  %v5197_v43 = vmul.f32 1.442695, %v5073_v33  ;;  %v5012_v62 = vadd.f32 %v10946_v22, %v4941_v14  ;;  %v5001_v33 = vadd.f32 %v10946_v22, %v10903_v50 }
 0x5fe   : > { %v7772_v30 = vpop.eup %7771  ;;  %7797 = vrcp.f32 %v5262_v2  ;;  %v5261_v53 = vadd.f32 1.0, %v7770_v21  ;;  %5619 = vperm.xlu0 %7215, %v7768_v41   ;;  %v5185_v41 = vmul.f32 1.442695, %v5067_v0  ;;  %v4366_v14 = vadd.f32 %v10843_v39, %v10964_v20 }
 0x5ff   : > { %v7774_v48 = vpop.eup %7773  ;;  %7799 = vpow2.f32 %v5197_v43  ;;  %v5076_v4 = vsub.f32 0.0, %v5012_v62  ;;  %v5241_v7 = vadd.f32 1.0, %v7772_v30  ;;  %v5000_v50 = vadd.f32 %v10946_v22, %v10884_v29 }
 0x600   : > { %v7776_v3 = vpop.eup %7775  ;;  %7801 = vrcp.f32 %v5261_v53  ;;  %v4938_v5 = vpop.xlane.xlu0 %4937 }
 0x601   : > { %v7778_v40 = vpop.eup %7777  ;;  %v5264_v44 = vadd.f32 1.0, %v7776_v3  ;;  %v5203_v56 = vmul.f32 1.442695, %v5076_v4  ;;  %v5011_v54 = vadd.f32 %v10946_v22, %v4938_v5  ;;  %v10976_v3 = vpop.f32.mrf.mxu0  ;;  %v5183_v5 = vmul.f32 1.442695, %v5066_v23 }
 0x602   : > { %v7780_v1 = vpop.eup %7779  ;;  %v5240_v15 = vadd.f32 1.0, %v7778_v40  ;;  %v5065_v40 = vsub.f32 0.0, %v5001_v33  ;;  %v5064_v29 = vsub.f32 0.0, %v5000_v50 }
 0x603   : > { %v7782_v49 = vpop.eup %7781  ;;  %7803 = vrcp.f32 %v5264_v44  ;;  %v5075_v12 = vsub.f32 0.0, %v5011_v54  ;;  %5634 = vperm.xlu0 %7215, %v7780_v1   ;;  %v5238_v1 = vadd.f32 1.0, %v7774_v48 }
 0x604   : > { %v7784_v31 = vpop.eup %7783  ;;  %7805 = vpow2.f32 %v5203_v56  ;;  %5674 = vperm.xlu1 %7216, %v7782_v49   ;;  %v4999_v49 = vadd.f32 %v10946_v22, %v10891_v57  ;;  %v5179_v23 = vmul.f32 1.442695, %v5064_v29 }
 0x605   : > { %v7786_v63 = vpop.eup %7785  ;;  %7807 = vrcp.f32 %v5241_v7  ;;  %v5263_v61 = vadd.f32 1.0, %v7784_v31  ;;  %v5201_v9 = vmul.f32 1.442695, %v5075_v12  ;;  %v4361_v7 = vadd.f32 %v10964_v20, %v10848_v45  ;;  %v10984_v12 = vpop.f32.mrf.mxu0 }
 0x606   : > { %v7788_v28 = vpop.eup %7787  ;;  %v5239_v30 = vadd.f32 1.0, %v7786_v63  ;;  %v5181_v31 = vmul.f32 1.442695, %v5065_v40  ;;  %v4376_v45 = vadd.f32 %v10853_v8, %v10964_v20  ;;  %v5063_v33 = vsub.f32 0.0, %v4999_v49 }
 0x607   : > { %v7790_v2 = vpop.eup %7789  ;;  %7809 = vrcp.f32 %v5263_v61  ;;  %5629 = vperm.xlu0 %7215, %v7788_v28  }
 0x608   : > { %v7792_v21 = vpop.eup %7791  ;;  %7811 = vpow2.f32 %v5201_v9  ;;  %v5405_v43 = vpop.permute.xlu0 %5404  ;;  %v5237_v61 = vadd.f32 1.0, %v7790_v2  ;;  %v4998_v9 = vadd.f32 %v10946_v22, %v10874_v10  ;;  %v5177_v50 = vmul.f32 1.442695, %v5063_v33 }
 0x609   : > { %v7794_v62 = vpop.eup %7793  ;;  %7813 = vrcp.f32 %v5240_v15  ;;  %v5266_v55 = vadd.f32 1.0, %v7792_v21  ;;  %v10972_v53 = vmul.f32 %v5405_v43, %v4366_v14  ;;  %v4371_v21 = vadd.f32 %v10964_v20, %v10858_v19 }
 0x60a   : > { %v7796_v4 = vpop.eup %7795  ;;  %7815 = vpow2.f32 %v5185_v41  ;;  %v10992_v41 = vpop.f32.mrf.mxu0 }
 0x60b   : > { %11804 = vst [vmem:[#allocation17_spill] sm:$0xff] %v10972_v53  ;;  %v7798_v39 = vpop.eup %7797  ;;  %5589 = vperm.xlu0 %7215, %v7796_v4   ;;  %7817 = vrcp.f32 %v5266_v55 }
 0x60c   : > { %v7800_v44 = vpop.eup %7799  ;;  %5684 = vperm.xlu1 %7216, %v7798_v39   ;;  %v5400_v56 = vpop.permute.xlu0 %5399  ;;  %7819 = vrcp.f32 %v5239_v30  ;;  %v4997_v30 = vadd.f32 %v10946_v22, %v10879_v60 }
 0x60d   : > { %v7802_v54 = vpop.eup %7801  ;;  %v5265_v34 = vadd.f32 1.0, %v7800_v44  ;;  %v10980_v0 = vmul.f32 %v5400_v56, %v4361_v7  ;;  %7821 = vpow2.f32 %v5183_v5  ;;  %v11002_v5 = vpop.f32.mrf.mxu0 }
 0x60e   : > { %v5061_v56 = vsub.f32 0.0, %v4997_v30 }
 0x60f   : > { %11805 = vst [vmem:[#allocation10_spill] sm:$0xff] %v10980_v0  ;;  %5584 = vperm.xlu0 %7215, %v7794_v62   ;;  %7823 = vrcp.f32 %v5265_v34  ;;  %v5062_v62 = vsub.f32 0.0, %v4998_v9  ;;  %v11006_v60 = vpop.f32.mrf.mxu0 }
 0x610   : > { %v7804_v63 = vpop.eup %7803  ;;  %5679 = vperm.xlu1 %7216, %v7802_v54   ;;  %v5415_v48 = vpop.permute.xlu0 %5414  ;;  %7825 = vrcp.f32 %v5238_v1  ;;  %v5785_v1 = vlaneseq }
 0x611   : > { %v7806_v15 = vpop.eup %7805  ;;  %v10990_v28 = vmul.f32 %v5415_v48, %v4376_v45  ;;  %7827 = vpow2.f32 %v5181_v31  ;;  %v5175_v44 = vmul.f32 1.442695, %v5062_v62  ;;  %v5173_v45 = vmul.f32 1.442695, %v5061_v56 }
 0x612   : > { %v7808_v57 = vpop.eup %7807  ;;  %v5268_v8 = vadd.f32 1.0, %v7806_v15  ;;  %v11010_v49 = vshrl.u32 %v5785_v1, 7  ;;  %v11012_v15 = vpop.f32.mrf.mxu0 }
 0x613   : > { %v10994_v14 = vpop.permute.xlu1 %5464  ;;  %5579 = vperm.xlu0 %7215, %v7808_v57  }
 0x614   : > { %v7810_v43 = vpop.eup %7809  ;;  %7829 = vrcp.f32 %v5268_v8  ;;  %5694 = vperm.xlu1 %7216, %v7804_v63   ;;  %v5410_v2 = vpop.permute.xlu0 %5409  ;;  %11807 = vst [vmem:[#allocation19_spill] sm:$0xff] %v11010_v49  ;;  %v5796_v33 = vsub.s32 0, %v11010_v49 }
 0x615   : > { %v7812_v10 = vpop.eup %7811  ;;  %7831 = vrcp.f32 %v5237_v61  ;;  %v11000_v55 = vmul.f32 %v5410_v2, %v4371_v21  ;;  %v5800_v61 = vsub.s32 1, %v11010_v49  ;;  %v11031_v62 = vpop.f32.mrf.mxu0 }
 0x616   : > { %v7814_v4 = vpop.eup %7813  ;;  %7833 = vpow2.f32 %v5179_v23  ;;  %v5267_v40 = vadd.f32 1.0, %v7812_v10  ;;  %v11022_v23 = vld [vmem:[%s11808_s22] sm:$0xf]  ;;  %11811 = vst [vmem:[#allocation21_spill] sm:$0xff] %v11031_v62 }
 0x617   : > { %11806 = vst [vmem:[#allocation11_spill] sm:$0xff] %v11000_v55  ;;  %v11004_v19 = vpop.permute.xlu1 %5459  ;;  %v7816_v39 = vpop.eup %7815  ;;  %5574 = vperm.xlu0 %7215, %v7814_v4   ;;  %v11026_v8 = vrot.slane %v11022_v23, %v5800_v61 }
 0x618   : > { %7835 = vrcp.f32 %v5267_v40  ;;  %5689 = vperm.xlu1 %7216, %v7810_v43   ;;  %v7818_v7 = vpop.eup %7817  ;;  %v5259_v22 = vadd.f32 1.0, %v7816_v39  ;;  %v11029_v43 = vrot.slane %v11022_v23, %v5796_v33  ;;  %v11041_v40 = vadd.s32 8, %v11010_v49  ;;  %v11065_v61 = vpop.permute.xlu0 %5424 }
 0x619   : > { %v7820_v54 = vpop.eup %7819  ;;  %7837 = vpow2.f32 %v5177_v50  ;;  %11809 = vst [vmem:[#allocation12_spill] sm:$0xff] %v11026_v8  ;;  %vm5811_vm6 = vcmp.eq.s32.totalorder %v11010_v49, %v11026_v8  ;;  %v11647_v50 = vmov 1.0  }
 0x61a   : > { %v7822_v34 = vpop.eup %7821  ;;  %7839 = vpow2.f32 %v5175_v44  ;;  %11810 = vst [vmem:[#allocation13_spill] sm:$0xff] %v11029_v43  ;;  %6516 = vmatprep.mubr.msk.f32.mxu1 %vm5811_vm6, %v11647_v50  ;;  %vm5810_vm7 = vcmp.eq.s32.totalorder %v11010_v49, %v11029_v43  ;;  %11813 = vst [vmem:[#allocation15_spill] sm:$0xff] %v11041_v40  ;;  %v11043_v44 = vpop.f32.mrf.mxu0  ;;  %vm5815_vm8 = vcmp.eq.s32.totalorder %v11041_v40, %v11026_v8 }
 0x61b   : > { %5569 = vperm.xlu0 %7215, %v7820_v54   ;;  %v11008_v29 = vpop.permute.xlu1 %5474  ;;  %v5258_v48 = vadd.f32 1.0, %v7822_v34  ;;  %7841 = vrcp.f32 %v5259_v22  ;;  %11814 = vst [vmem:[#allocation16_spill] sm:$0xff] %v11043_v44  ;;  %vm5814_vm9 = vcmp.eq.s32.totalorder %v11041_v40, %v11029_v43  ;;  %v11052_v22 = vadd.s32 16, %v11010_v49 }
 0x61c   : > { %5704 = vperm.xlu1 %7216, %v7818_v7   ;;  %v7824_v31 = vpop.eup %7823  ;;  %7843 = vpow2.f32 %v5173_v45 }
 0x61d   : > { %v7826_v63 = vpop.eup %7825  ;;  %7845 = vrcp.f32 %v5258_v48  ;;  %11816 = vst [vmem:[#allocation20_spill] sm:$0xff] %v11052_v22  ;;  %vm5819_vm10 = vcmp.eq.s32.totalorder %v11052_v22, %v11026_v8  ;;  %vm5818_vm11 = vcmp.eq.s32.totalorder %v11052_v22, %v11029_v43  ;;  %v11063_v48 = vadd.s32 24, %v11010_v49 }
 0x61e   : > { %v7828_v9 = vpop.eup %7827 }
 0x61f   : > { %5564 = vperm.xlu0 %7215, %v7826_v63   ;;  %v11015_v57 = vpop.permute.xlu1 %5469  ;;  %v5257_v10 = vadd.f32 1.0, %v7828_v9  ;;  %11818 = vst [vmem:[#allocation3_spill] sm:$0xff] %v11063_v48  ;;  %vm5823_vm12 = vcmp.eq.s32.totalorder %v11063_v48, %v11026_v8  ;;  %vm5822_vm13 = vcmp.eq.s32.totalorder %v11063_v48, %v11029_v43 }
 0x620   : > { %5699 = vperm.xlu1 %7216, %v7824_v31   ;;  %v11054_v31 = vpop.f32.mrf.mxu0 }
 0x621   : > { %v7830_v21 = vpop.eup %7829  ;;  %7847 = vrcp.f32 %v5257_v10  ;;  %11817 = vst [vmem:[#allocation22_spill] sm:$0xff] %v11054_v31 }
 0x622   : > { %v7832_v2 = vpop.eup %7831 }
 0x623   : > { %v7834_v30 = vpop.eup %7833  ;;  %5559 = vperm.xlu0 %7215, %v7832_v2  }
 0x624   : > { %v11035_v4 = vpop.permute.xlu1 %5484  ;;  %5714 = vperm.xlu1 %7216, %v7830_v21   ;;  %v5256_v7 = vadd.f32 1.0, %v7834_v30  ;;  %v11067_v21 = vpop.f32.mrf.mxu0  ;;  %v11076_v30 = vadd.s32 32, %v11010_v49 }
 0x625   : > { %11812 = vst [vmem:[#allocation14_spill] sm:$0xff] %v11035_v4  ;;  %v7836_v39 = vpop.eup %7835  ;;  %11819 = vst [vmem:[#allocation26_spill] sm:$0xff] %v11067_v21 }
 0x626   : > { %v7838_v56 = vpop.eup %7837  ;;  %7849 = vrcp.f32 %v5256_v7  ;;  %11820 = vst [vmem:[#allocation27_spill] sm:$0xff] %v11076_v30  ;;  %v11078_v7 = vpop.f32.mrf.mxu0  ;;  %vm5827_vm14 = vcmp.eq.s32.totalorder %v11076_v30, %v11026_v8  ;;  %vm5826_vm15 = vcmp.eq.s32.totalorder %v11076_v30, %v11029_v43 }
 0x627   : > { %v7840_v1 = vpop.eup %7839  ;;  %v5255_v34 = vadd.f32 1.0, %v7838_v56  ;;  %11821 = vst [vmem:[#allocation28_spill] sm:$0xff] %v11078_v7 }
 0x628   : > { %v11047_v54 = vpop.permute.xlu1 %5479  ;;  %5709 = vperm.xlu1 %7216, %v7836_v39   ;;  %v7842_v45 = vpop.eup %7841  ;;  %v5254_v33 = vadd.f32 1.0, %v7840_v1 }
 0x629   : > { %11815 = vst [vmem:[#allocation18_spill] sm:$0xff] %v11047_v54  ;;  %v7844_v9 = vpop.eup %7843  ;;  %7851 = vrcp.f32 %v5255_v34  ;;  %v11082_v1 = vpop.permute.xlu0 %5419 }
 0x62a   : > { %v7846_v2 = vpop.eup %7845  ;;  %7853 = vrcp.f32 %v5254_v33  ;;  %v5253_v39 = vadd.f32 1.0, %v7844_v9  ;;  %v11091_v33 = vpop.f32.mrf.mxu0 }
 0x62b   : > { %11823 = vst [vmem:[#allocation30_spill] sm:$0xff] %v11091_v33 }
 0x62c   : > { %5669 = vperm.xlu1 %7216, %v7842_v45   ;;  %v11060_v63 = vpop.permute.xlu1 %5494  ;;  %v11089_v45 = vadd.s32 40, %v11010_v49  ;;  %7855 = vrcp.f32 %v5253_v39  ;;  %v11104_v44 = vpop.f32.mrf.mxu0 }
 0x62d   : > { %v11102_v50 = vpop.permute.xlu0 %5434  ;;  %11825 = vst [vmem:[#allocation32_spill] sm:$0xff] %v11104_v44  ;;  %v5804_v44 = vsub.s32 2, %v11010_v49 }
 0x62e   : > { %v7848_v56 = vpop.eup %7847  ;;  %11822 = vst [vmem:[#allocation29_spill] sm:$0xff] %v11089_v45  ;;  %vm5831_vm0 = vcmp.eq.s32.totalorder %v11089_v45, %v11026_v8  ;;  %vm5830_vm2 = vcmp.eq.s32.totalorder %v11089_v45, %v11029_v43  ;;  %v11115_v21 = vpop.f32.mrf.mxu0 }
 0x62f   : > { %11826 = vst [vmem:[#allocation4_spill] sm:$0xff] %v11115_v21  ;;  %v11133_v8 = vrot.slane %v11022_v23, %v5804_v44 }
 0x630   : > { %5664 = vperm.xlu1 %7216, %v7846_v2   ;;  %v11073_v10 = vpop.permute.xlu1 %5489  ;;  %v11127_v0 = vpop.f32.mrf.mxu0 }
 0x631   : > { %v11119_v33 = vpop.permute.xlu0 %5429  ;;  %11827 = vst [vmem:[#allocation5_spill] sm:$0xff] %v11127_v0  ;;  %11828 = vst [vmem:[#allocation33_spill] sm:$0xff] %v11133_v8  ;;  %vm5828_vm1 = vcmp.eq.s32.totalorder %v11076_v30, %v11133_v8  ;;  %v4516_v30 = vadd.f32 %v11006_v60, %v10964_v20  ;;  %v4431_v60 = vadd.f32 %v10964_v20, %v10914_v51 }
 0x632   : > { %v4421_v51 = vadd.f32 %v10964_v20, %v10905_v16  ;;  %v4491_v16 = vadd.f32 %v10964_v20, %v10984_v12 }
 0x633   : > { %v7850_v9 = vpop.eup %7849 }
 0x634   : > { %5659 = vperm.xlu1 %7216, %v7848_v56   ;;  %v11100_v56 = vadd.s32 48, %v11010_v49 }
 0x635   : > { %v11086_v34 = vpop.permute.xlu1 %5504 }
 0x636   : > { %11824 = vst [vmem:[#allocation31_spill] sm:$0xff] %v11100_v56  ;;  %v7852_v39 = vpop.eup %7851  ;;  %vm5836_vm4 = vcmp.eq.s32.totalorder %v11100_v56, %v11133_v8  ;;  %v4511_v56 = vadd.f32 %v10964_v20, %v11012_v15  ;;  %v4501_v15 = vadd.f32 %v10964_v20, %v11002_v5  ;;  %v4416_v5 = vadd.f32 %v10889_v26, %v10964_v20 }
 0x637   : > { %v7854_v31 = vpop.eup %7853  ;;  %v4406_v26 = vadd.f32 %v10881_v24, %v10964_v20  ;;  %v4476_v24 = vadd.f32 %v10949_v11, %v10964_v20 }
 0x638   : > { %5654 = vperm.xlu1 %7216, %v7850_v9   ;;  %v11113_v9 = vadd.s32 56, %v11010_v49 }
 0x639   : > { %v11097_v2 = vpop.permute.xlu1 %5499  ;;  %v7856_v53 = vpop.eup %7855 }
 0x63a   : > { %vm5840_vm5 = vcmp.eq.s32.totalorder %v11113_v9, %v11133_v8 }
 0x63c   : > { %5649 = vperm.xlu1 %7216, %v7852_v39   ;;  %v5808_v39 = vsub.s32 3, %v11010_v49  ;;  %v4436_v49 = vadd.f32 %v10908_v18, %v10964_v20 }
 0x63d   : > { %v11110_v62 = vpop.permute.xlu1 %5514 }
 0x63e   : > { %v11130_v21 = vrot.slane %v11022_v23, %v5808_v39  ;;  %v11147_v39 = vpop.f32.mrf.mxu0 }
 0x63f   : > { %11829 = vst [vmem:[#allocation34_spill] sm:$0xff] %v11147_v39 }
 0x640   : > { %5644 = vperm.xlu1 %7216, %v7854_v31   ;;  %v11141_v31 = vpop.permute.xlu0 %5444  ;;  %vm5833_vm3 = vcmp.eq.s32.totalorder %v11089_v45, %v11130_v21  ;;  %vm5841_vm6 = vcmp.eq.s32.totalorder %v11113_v9, %v11130_v21 }
 0x641   : > { %v11123_v7 = vpop.permute.xlu1 %5509 }
 0x644   : > { %5639 = vperm.xlu1 %7216, %v7856_v53   ;;  %v11155_v53 = vpop.f32.mrf.mxu0  ;;  %v11157_v44 = vpop.permute.xlu0 %5439 }
 0x645   : > { %v11135_v54 = vpop.permute.xlu1 %5524  ;;  %11830 = vst [vmem:[#allocation24_spill] sm:$0xff] %v11155_v53 }
 0x646   : > { %v11163_v39 = vpop.f32.mrf.mxu0 }
 0x647   : > { %11831 = vst [vmem:[#allocation35_spill] sm:$0xff] %v11163_v39 }
 0x648   : > { %v5455_v40 = vpop.permute.xlu0 %5454  ;;  %v11169_v53 = vpop.f32.mrf.mxu0 }
 0x649   : > { %v11149_v23 = vpop.permute.xlu1 %5519  ;;  %11832 = vst [vmem:[#allocation6_spill] sm:$0xff] %v11169_v53 }
 0x64a   : > { %v11175_v22 = vpop.f32.mrf.mxu0 }
 0x64b   : > { %11833 = vst [vmem:[#allocation23_spill] sm:$0xff] %v11175_v22  ;;  %v5732_v22 = vmul.f32 %v11008_v29, %v4436_v49  ;;  %v4426_v29 = vadd.f32 %v10898_v59, %v10964_v20  ;;  %v5731_v49 = vmul.f32 %v11015_v57, %v4431_v60  ;;  %v5729_v57 = vmul.f32 %v11004_v19, %v4421_v51  ;;  %v11837_v51 = vld [vmem:[#allocation18_spill] sm:$0xff] }
 0x64c   : > { %v5450_v39 = vpop.permute.xlu0 %5449  ;;  %v11183_v53 = vpop.f32.mrf.mxu0 }
 0x64d   : > { %v5535_v0 = vpop.permute.xlu1 %5534  ;;  %11834 = vst [vmem:[#allocation7_spill] sm:$0xff] %v11183_v53 }
 0x64e   : > { %v11196_v53 = vpop.f32.mrf.mxu0 }
 0x650   : > { %v11207_v8 = vpop.f32.mrf.mxu0 }
 0x651   : > { %v5530_v43 = vpop.permute.xlu1 %5529 }
 0x652   : > { %v11221_v60 = vpop.f32.mrf.mxu0 }
 0x656   : > { %v5545_v48 = vpop.permute.xlu1 %5544 }
 0x65a   : > { %v5540_v55 = vpop.permute.xlu1 %5539 }
 0x65b   : > { %v5555_v45 = vpop.permute.xlu0 %5554 }
 0x65c   : > { %v5748_v4 = vmul.f32 %v5555_v45, %v4516_v30  ;;  %v4506_v30 = vadd.f32 %v10992_v41, %v10964_v20  ;;  %v4496_v41 = vadd.f32 %v10976_v3, %v10964_v20  ;;  %v5728_v3 = vmul.f32 %v5455_v40, %v4416_v5  ;;  %v11842_v5 = vld [vmem:[#allocation13_spill] sm:$0xff] }
 0x65d   : > { %v4401_v40 = vadd.f32 %v10964_v20, %v10886_v13  ;;  %v4471_v13 = vadd.f32 %v10964_v20, %v10952_v32  ;;  %v4386_v32 = vadd.f32 %v10863_v17, %v10964_v20  ;;  %v4456_v17 = vadd.f32 %v10931_v38, %v10964_v20 }
 0x65e   : > { %6756 = vmatprep.subr.mxu1 %v5748_v4  ;;  %v5746_v4 = vmul.f32 %v5545_v48, %v4506_v30  ;;  %v5744_v48 = vmul.f32 %v5535_v0, %v4496_v41  ;;  %v4481_v0 = vadd.f32 %v10964_v20, %v10966_v25  ;;  %v11234_v30 = vpop.f32.mrf.mxu0  ;;  %v4396_v25 = vadd.f32 %v10872_v27, %v10964_v20 }
 0x65f   : > { %v5550_v18 = vpop.permute.xlu1 %5549  ;;  %6757 = vmatpush3.msra.mxu1 %v5732_v22  ;;  %v5730_v22 = vmul.f32 %v10994_v14, %v4426_v29  ;;  %v11212_v59 = vpop.permute.xlu0 %5594  ;;  %v4411_v14 = vadd.f32 %v10964_v20, %v10894_v37  ;;  %v4466_v27 = vadd.f32 %v10941_v47, %v10964_v20  ;;  %v4381_v47 = vadd.f32 %v10964_v20, %v10866_v35 }
 0x660   : > { %v5747_v45 = vmul.f32 %v5550_v18, %v4511_v56  ;;  %v5745_v56 = vmul.f32 %v5540_v55, %v4501_v15  ;;  %v4486_v55 = vadd.f32 %v10957_v36, %v10964_v20  ;;  %v5743_v18 = vmul.f32 %v5530_v43, %v4491_v16  ;;  %v11844_v16 = vld [vmem:[#allocation12_spill] sm:$0xff] }
 0x661   : > { %v5727_v19 = vmul.f32 %v5450_v39, %v4411_v14  ;;  %v5726_v36 = vmul.f32 %v11141_v31, %v4406_v26  ;;  %v5741_v43 = vmul.f32 %v11149_v23, %v4481_v0  ;;  %v5740_v39 = vmul.f32 %v11110_v62, %v4476_v24  ;;  %v11846_v0 = vld [vmem:[#allocation3_spill] sm:$0xff] }
 0x662   : > { %6758 = vmatprep.subr.mxu1 %v5747_v45  ;;  %v5742_v12 = vmul.f32 %v11135_v54, %v4486_v55  ;;  %v5725_v54 = vmul.f32 %v11157_v44, %v4401_v40  ;;  %v4391_v31 = vadd.f32 %v10964_v20, %v10876_v58  ;;  %v11248_v45 = vpop.f32.mrf.mxu0  ;;  %v5724_v11 = vmul.f32 %v11102_v50, %v4396_v25  ;;  %v11845_v55 = vld [vmem:[#allocation20_spill] sm:$0xff] }
 0x663   : > { %6759 = vmatpush3.msra.mxu1 %v5731_v49  ;;  %v5739_v23 = vmul.f32 %v11123_v7, %v4471_v13  ;;  %v4461_v58 = vadd.f32 %v10964_v20, %v10944_v46  ;;  %v5738_v50 = vmul.f32 %v11086_v34, %v4466_v27  ;;  %v5722_v7 = vmul.f32 %v11065_v61, %v4386_v32 }
 0x664   : > { %6760 = vmatprep.subr.mxu1 %v5746_v4  ;;  %v5723_v62 = vmul.f32 %v11119_v33, %v4391_v31  ;;  %v11264_v29 = vpop.f32.mrf.mxu0  ;;  %v5721_v49 = vmul.f32 %v11082_v1, %v4381_v47  ;;  %v4451_v46 = vadd.f32 %v10964_v20, %v10938_v42  ;;  %v5736_v34 = vmul.f32 %v11060_v63, %v4456_v17  ;;  %v11835_v42 = vld [vmem:[#allocation14_spill] sm:$0xff]  ;;  %v11836_v4 = vld [vmem:[#allocation11_spill] sm:$0xff] }
 0x665   : > { %6761 = vmatpush3.msra.mxu1 %v5730_v22  ;;  %v11230_v37 = vpop.permute.xlu0 %5604  ;;  %v5737_v33 = vmul.f32 %v11097_v2, %v4461_v58  ;;  %v4446_v38 = vadd.f32 %v10919_v52, %v10964_v20  ;;  %v4441_v1 = vadd.f32 %v10964_v20, %v10926_v6  ;;  %v11838_v52 = vld [vmem:[#allocation17_spill] sm:$0xff]  ;;  %v11840_v6 = vmov 1.0   ;;  %v11855_v47 = vld [vmem:[#allocation7_spill] sm:$0xff] }
 0x666   : > { %6762 = vmatprep.subr.mxu1 %v5745_v56  ;;  %v11276_v15 = vpop.f32.mrf.mxu0  ;;  %v5735_v61 = vmul.f32 %v11073_v10, %v4451_v46  ;;  %v11841_v56 = vld [vmem:[#allocation19_spill] sm:$0xff] }
 0x667   : > { %6763 = vmatpush3.msra.mxu1 %v5729_v57  ;;  %v5734_v2 = vmul.f32 %v11835_v42, %v4446_v38  ;;  %v5733_v22 = vmul.f32 %v11837_v51, %v4441_v1  ;;  %v11843_v57 = vld [vmem:[#allocation15_spill] sm:$0xff] }
 0x668   : > { %6764 = vmatprep.subr.mxu1 %v5744_v48  ;;  %v11285_v63 = vpop.f32.mrf.mxu0 }
 0x669   : > { %6765 = vmatpush3.msra.mxu1 %v5728_v3  ;;  %v11254_v44 = vpop.permute.xlu0 %5599 }
 0x66a   : > { %6766 = vmatprep.subr.mxu1 %v5743_v18  ;;  %v11292_v10 = vpop.f32.mrf.mxu0 }
 0x66b   : > { %6767 = vmatpush3.msra.mxu1 %v5727_v19 }
 0x66c   : > { %6768 = vmatprep.subr.mxu1 %v5742_v12  ;;  %v11303_v14 = vpop.f32.mrf.mxu0 }
 0x66d   : > { %6769 = vmatpush3.msra.mxu1 %v5726_v36  ;;  %v11274_v35 = vpop.permute.xlu0 %5614  ;;  %v11847_v36 = vld [vmem:[#allocation27_spill] sm:$0xff] }
 0x66e   : > { %6770 = vmatprep.subr.mxu1 %v5741_v43  ;;  %v11315_v18 = vpop.f32.mrf.mxu0 }
 0x66f   : > { %6771 = vmatpush3.msra.mxu1 %v5725_v54  ;;  %v11848_v54 = vld [vmem:[#allocation29_spill] sm:$0xff] }
 0x670   : > { %6772 = vmatprep.subr.mxu1 %v5740_v39  ;;  %v7173_v12 = vpop.f32.mrf.mxu0 }
 0x671   : > { %6773 = vmatpush3.msra.mxu1 %v5724_v11  ;;  %v11289_v41 = vpop.permute.xlu0 %5609  ;;  %v11849_v11 = vld [vmem:[#allocation31_spill] sm:$0xff] }
 0x672   : > { %6774 = vmatprep.subr.mxu1 %v5739_v23  ;;  %v4650_v43 = vpop.f32.mrf.mxu0 }
 0x673   : > { %6775 = vmatpush3.msra.mxu1 %v5723_v62 }
 0x674   : > { %6776 = vmatprep.subr.mxu1 %v5738_v50  ;;  %v7176_v13 = vpop.f32.mrf.mxu0 }
 0x675   : > { %6777 = vmatpush3.msra.mxu1 %v5722_v7  ;;  %v5625_v48 = vpop.permute.xlu0 %5624  ;;  %v4596_v7 = vadd.f32 %v11855_v47, %v10964_v20  ;;  %v4666_v42 = vadd.f32 %v7176_v13, %v10964_v20  ;;  %v11858_v47 = vld [vmem:[#allocation24_spill] sm:$0xff] }
 0x676   : > { %6778 = vmatprep.subr.mxu1 %v5737_v33  ;;  %v4660_v27 = vpop.f32.mrf.mxu0 }
 0x677   : > { %6779 = vmatpush3.msra.mxu1 %v5721_v49 }
 0x678   : > { %6780 = vmatprep.subr.mxu1 %v5736_v34  ;;  %v7179_v62 = vpop.f32.mrf.mxu0 }
 0x679   : > { %6781 = vmatpush3.msra.mxu1 %v10990_v28  ;;  %v11839_v28 = vld [vmem:[#allocation10_spill] sm:$0xff]  ;;  %v5620_v19 = vpop.permute.xlu0 %5619  ;;  %v4676_v50 = vadd.f32 %v7179_v62, %v10964_v20 }
 0x67a   : > { %6782 = vmatprep.subr.mxu1 %v5735_v61  ;;  %v4670_v17 = vpop.f32.mrf.mxu0  ;;  %v4591_v61 = vadd.f32 %v10964_v20, %v11196_v53 }
 0x67b   : > { %6783 = vmatpush3.msra.mxu1 %v11836_v4  ;;  %v4671_v38 = vadd.f32 %v10964_v20, %v4670_v17  ;;  %v11856_v4 = vld [vmem:[#allocation6_spill] sm:$0xff] }
 0x67c   : > { %6784 = vmatprep.subr.mxu1 %v5734_v2  ;;  %v4586_v51 = vadd.f32 %v11856_v4, %v10964_v20 }
 0x67d   : > { %6785 = vmatpush3.msra.mxu1 %v11838_v52  ;;  %v4661_v52 = vadd.f32 %v10964_v20, %v4660_v27  ;;  %v4651_v27 = vadd.f32 %v10964_v20, %v4650_v43 }
 0x67e   : > { %6786 = vmatprep.subr.mxu1 %v5733_v22  ;;  %v5635_v24 = vpop.permute.xlu0 %5634  ;;  %v5762_v62 = vmul.f32 %v5625_v48, %v4586_v51 }
 0x67f   : > { %6787 = vmatpush3.msra.mxu1 %v11839_v28  ;;  %v11305_v3 = vpop.permute.xlu1 %5674  ;;  %v5764_v34 = vmul.f32 %v5635_v24, %v4596_v7  ;;  %v4576_v7 = vadd.f32 %v11858_v47, %v10964_v20 }
 0x680   : > { %6517 = vmatmul.mubr.msk.f32.vlgmr.msra.gmra.mxu1 %vm5810_vm7, %v11840_v6  ;;  %vm11850_vm7 = vcmp.eq.s32.totalorder %v11849_v11, %v11844_v16 }
 0x681   : > { %6518 = vmatprep.mubr.msk.f32.mxu1 %vm5815_vm8, %v11840_v6  ;;  %vm11851_vm8 = vcmp.eq.s32.totalorder %v11849_v11, %v11842_v5  ;;  %v5760_v48 = vmul.f32 %v11274_v35, %v4576_v7  ;;  %v11861_v35 = vld [vmem:[#allocation34_spill] sm:$0xff] }
 0x682   : > { %v5630_v31 = vpop.permute.xlu0 %5629 }
 0x683   : > { %v5763_v22 = vmul.f32 %v5630_v31, %v4591_v61 }
 0x684   : > { %6519 = vmatmul.mubr.msk.f32.gmra.mxu1 %vm5814_vm9, %v11840_v6  ;;  %vm11852_vm9 = vcmp.eq.s32.totalorder %v11113_v9, %v11844_v16  ;;  %v11857_v16 = vld [vmem:[#allocation23_spill] sm:$0xff] }
 0x685   : > { %6520 = vmatprep.mubr.msk.f32.mxu1 %vm5819_vm10, %v11840_v6  ;;  %vm11853_vm10 = vcmp.eq.s32.totalorder %v11113_v9, %v11842_v5  ;;  %v4581_v24 = vadd.f32 %v10964_v20, %v11857_v16 }
 0x686   : > { %v11361_v32 = vpop.permute.xlu0 %5589 }
 0x687   : > { %v11317_v26 = vpop.permute.xlu1 %5684  ;;  %v5761_v31 = vmul.f32 %v5620_v19, %v4581_v24  ;;  %v11860_v19 = vld [vmem:[#allocation5_spill] sm:$0xff] }
 0x688   : > { %6521 = vmatmul.mubr.msk.f32.gmra.mxu1 %vm5818_vm11, %v11840_v6  ;;  %vm11854_vm11 = vcmp.eq.s32.totalorder %v11841_v56, %v11130_v21 }
 0x689   : > { %6522 = vmatprep.mubr.msk.f32.mxu1 %vm5823_vm12, %v11840_v6 }
 0x68a   : > { %v11374_v49 = vpop.permute.xlu0 %5584 }
 0x68b   : > { %v11327_v40 = vpop.permute.xlu1 %5679 }
 0x68c   : > { %6523 = vmatmul.mubr.msk.f32.gmra.mxu1 %vm5822_vm13, %v11840_v6  ;;  %vm11872_vm13 = vcmp.eq.s32.totalorder %v11843_v57, %v11130_v21 }
 0x68d   : > { %6524 = vmatprep.mubr.msk.f32.mxu1 %vm5827_vm14, %v11840_v6 }
 0x68e   : > { %v11383_v28 = vpop.permute.xlu0 %5579 }
 0x68f   : > { %v5695_v25 = vpop.permute.xlu1 %5694 }
 0x690   : > { %6525 = vmatmul.mubr.msk.f32.gmra.mxu1 %vm5826_vm15, %v11840_v6  ;;  %vm11874_vm15 = vcmp.eq.s32.totalorder %v11845_v55, %v11130_v21 }
 0x691   : > { %6526 = vmatprep.mubr.msk.f32.mxu1 %vm5831_vm0, %v11840_v6 }
 0x693   : > { %v5690_v39 = vpop.permute.xlu1 %5689 }
 0x694   : > { %6527 = vmatmul.mubr.msk.f32.gmra.mxu1 %vm5830_vm2, %v11840_v6  ;;  %vm11876_vm2 = vcmp.eq.s32.totalorder %v11846_v0, %v11130_v21 }
 0x695   : > { %6528 = vmatprep.mubr.msk.f32.mxu1 %vm11850_vm7, %v11840_v6 }
 0x697   : > { %v5705_v23 = vpop.permute.xlu1 %5704 }
 0x698   : > { %6529 = vmatmul.mubr.msk.f32.gmra.mxu1 %vm11851_vm8, %v11840_v6  ;;  %v5778_v5 = vmul.f32 %v5705_v23, %v4666_v42  ;;  %v11859_v23 = vld [vmem:[#allocation35_spill] sm:$0xff]  ;;  %v4636_v42 = vadd.f32 %v11285_v63, %v10964_v20  ;;  %vm11878_vm8 = vcmp.eq.s32.totalorder %v11847_v36, %v11130_v21 }
 0x699   : > { %6530 = vmatprep.mubr.msk.f32.mxu1 %vm11852_vm9, %v11840_v6 }
 0x69a   : > { %v5772_v51 = vmul.f32 %v11305_v3, %v4636_v42  ;;  %v4621_v3 = vadd.f32 %v10964_v20, %v11276_v15 }
 0x69b   : > { %v5700_v58 = vpop.permute.xlu1 %5699 }
 0x69c   : > { %6531 = vmatmul.mubr.msk.f32.gmra.mxu1 %vm11853_vm10, %v11840_v6  ;;  %v5777_v13 = vmul.f32 %v5700_v58, %v4661_v52  ;;  %v5775_v58 = vmul.f32 %v5690_v39, %v4651_v27  ;;  %v4611_v27 = vadd.f32 %v10964_v20, %v11248_v45  ;;  %v4601_v45 = vadd.f32 %v10964_v20, %v11221_v60 }
 0x69d   : > { %6532 = vmatprep.mubr.msk.f32.mxu1 %vm11854_vm11, %v11840_v6  ;;  %vm11880_vm10 = vcmp.eq.s32.totalorder %v11849_v11, %v11130_v21 }
 0x69f   : > { %v5715_v33 = vpop.permute.xlu1 %5714 }
 0x6a0   : > { %v5780_v46 = vmul.f32 %v5715_v33, %v4676_v50  ;;  %v4656_v50 = vadd.f32 %v7173_v12, %v10964_v20  ;;  %v4571_v33 = vadd.f32 %v10964_v20, %v11859_v23  ;;  %v4646_v12 = vadd.f32 %v11303_v14, %v10964_v20 }
 0x6a2   : > { %6812 = vmatprep.subr.mxu1 %v5780_v46  ;;  %v5776_v17 = vmul.f32 %v5695_v25, %v4656_v50  ;;  %v5759_v43 = vmul.f32 %v11289_v41, %v4571_v33  ;;  %v4641_v25 = vadd.f32 %v10964_v20, %v11315_v18  ;;  %v5774_v61 = vmul.f32 %v11317_v26, %v4646_v12  ;;  %v11862_v41 = vld [vmem:[#allocation32_spill] sm:$0xff]  ;;  %v11865_v50 = vld [vmem:[#allocation30_spill] sm:$0xff]  ;;  %v11868_v12 = vld [vmem:[#allocation21_spill] sm:$0xff] }
 0x6a3   : > { %v5710_v1 = vpop.permute.xlu1 %5709  ;;  %6813 = vmatpush3.msra.mxu1 %v5764_v34  ;;  %v5575_v34 = vpop.permute.xlu0 %5574  ;;  %v4556_v4 = vadd.f32 %v11862_v41, %v10964_v20  ;;  %v4631_v26 = vadd.f32 %v10964_v20, %v11292_v10 }
 0x6a4   : > { %v5779_v2 = vmul.f32 %v5710_v1, %v4671_v38  ;;  %v4566_v38 = vadd.f32 %v11860_v19, %v10964_v20  ;;  %v4561_v1 = vadd.f32 %v10964_v20, %v11861_v35 }
 0x6a5   : > { %v5756_v63 = vmul.f32 %v11212_v59, %v4556_v4  ;;  %v4541_v59 = vadd.f32 %v10964_v20, %v11865_v50 }
 0x6a6   : > { %6814 = vmatprep.subr.mxu1 %v5779_v2  ;;  %v5758_v14 = vmul.f32 %v11230_v37, %v4566_v38  ;;  %v5773_v2 = vmul.f32 %v11327_v40, %v4641_v25  ;;  %v5757_v18 = vmul.f32 %v11254_v44, %v4561_v1  ;;  %v11864_v44 = vld [vmem:[#allocation28_spill] sm:$0xff]  ;;  %v11870_v1 = vld [vmem:[#allocation33_spill] sm:$0xff] }
 0x6a7   : > { %v5670_v53 = vpop.permute.xlu1 %5669  ;;  %6815 = vmatpush3.msra.mxu1 %v5763_v22  ;;  %v5570_v37 = vpop.permute.xlu0 %5569  ;;  %v11863_v22 = vld [vmem:[#allocation4_spill] sm:$0xff]  ;;  %v4546_v24 = vadd.f32 %v11864_v44, %v10964_v20  ;;  %v5753_v15 = vmul.f32 %v11383_v28, %v4541_v59  ;;  %v4526_v28 = vadd.f32 %v11868_v12, %v10964_v20  ;;  %vm11871_vm12 = vcmp.eq.s32.totalorder %v11841_v56, %v11870_v1 }
 0x6a8   : > { %6816 = vmatprep.subr.mxu1 %v5778_v5  ;;  %v4551_v52 = vadd.f32 %v10964_v20, %v11863_v22  ;;  %v4626_v5 = vadd.f32 %v11264_v29, %v10964_v20  ;;  %v5771_v16 = vmul.f32 %v5670_v53, %v4631_v26  ;;  %v4616_v29 = vadd.f32 %v11234_v30, %v10964_v20  ;;  %v5908_v59 = vld [vmem:[%s11583_s14 + $0x10] sm:$0xff] }
 0x6a9   : > { %6817 = vmatpush3.msra.mxu1 %v5762_v62  ;;  %v4606_v30 = vadd.f32 %v11207_v8, %v10964_v20  ;;  %vm11873_vm14 = vcmp.eq.s32.totalorder %v11843_v57, %v11870_v1  ;;  %vm11875_vm0 = vcmp.eq.s32.totalorder %v11845_v55, %v11870_v1  ;;  %vm11877_vm7 = vcmp.eq.s32.totalorder %v11846_v0, %v11870_v1 }
 0x6aa   : > { %6818 = vmatprep.subr.mxu1 %v5777_v13  ;;  %v5755_v10 = vmul.f32 %v11361_v32, %v4551_v52  ;;  %v5754_v13 = vmul.f32 %v11374_v49, %v4546_v24  ;;  %v11866_v32 = vld [vmem:[#allocation22_spill] sm:$0xff]  ;;  %vm11879_vm9 = vcmp.eq.s32.totalorder %v11848_v54, %v11870_v1 }
 0x6ab   : > { %v5665_v46 = vpop.permute.xlu1 %5664  ;;  %6819 = vmatpush3.msra.mxu1 %v5761_v31  ;;  %v5565_v53 = vpop.permute.xlu0 %5564  ;;  %v4536_v31 = vadd.f32 %v11866_v32, %v10964_v20  ;;  %v11867_v49 = vld [vmem:[#allocation26_spill] sm:$0xff] }
 0x6ac   : > { %6820 = vmatprep.subr.mxu1 %v5776_v17  ;;  %v5770_v62 = vmul.f32 %v5665_v46, %v4626_v5  ;;  %v4531_v23 = vadd.f32 %v10964_v20, %v11867_v49  ;;  %v5750_v25 = vmul.f32 %v5565_v53, %v4526_v28 }
 0x6ad   : > { %6821 = vmatpush3.msra.mxu1 %v5760_v48  ;;  %v5752_v33 = vmul.f32 %v5575_v34, %v4536_v31  ;;  %v5909_v31 = vld [vmem:[%s11583_s14 + $0x18] sm:$0xff] }
 0x6ae   : > { %6822 = vmatprep.subr.mxu1 %v5775_v58  ;;  %v5751_v58 = vmul.f32 %v5570_v37, %v4531_v23 }
 0x6af   : > { %v5660_v39 = vpop.permute.xlu1 %5659  ;;  %6823 = vmatpush3.msra.mxu1 %v5759_v43  ;;  %v5560_v19 = vpop.permute.xlu0 %5559  ;;  %v11869_v43 = vld [vmem:[#allocation16_spill] sm:$0xff] }
 0x6b0   : > { %6824 = vmatprep.subr.mxu1 %v5774_v61  ;;  %v5769_v7 = vmul.f32 %v5660_v39, %v4621_v3  ;;  %v4521_v34 = vadd.f32 %v10964_v20, %v11869_v43 }
 0x6b1   : > { %6825 = vmatpush3.msra.mxu1 %v5758_v14 }
 0x6b2   : > { %6826 = vmatprep.subr.mxu1 %v5773_v2  ;;  %v5749_v35 = vmul.f32 %v5560_v19, %v4521_v34  ;;  %v5911_v19 = vld [vmem:[%s11583_s14 + $0x28] sm:$0xff] }
 0x6b3   : > { %v5655_v40 = vpop.permute.xlu1 %5654  ;;  %6827 = vmatpush3.msra.mxu1 %v5757_v18 }
 0x6b4   : > { %6828 = vmatprep.subr.mxu1 %v5772_v51  ;;  %v5768_v17 = vmul.f32 %v5655_v40, %v4616_v29  ;;  %v5906_v51 = vld [vmem:[%s11583_s14] sm:$0xff] }
 0x6b5   : > { %6829 = vmatpush3.msra.mxu1 %v5756_v63 }
 0x6b6   : > { %6830 = vmatprep.subr.mxu1 %v5771_v16  ;;  %v5907_v16 = vld [vmem:[%s11583_s14 + $0x8] sm:$0xff] }
 0x6b7   : > { %v5650_v47 = vpop.permute.xlu1 %5649  ;;  %6831 = vmatpush3.msra.mxu1 %v5755_v10 }
 0x6b8   : > { %6832 = vmatprep.subr.mxu1 %v5770_v62  ;;  %v5767_v46 = vmul.f32 %v5650_v47, %v4611_v27 }
 0x6b9   : > { %6833 = vmatpush3.msra.mxu1 %v5754_v13 }
 0x6ba   : > { %6834 = vmatprep.subr.mxu1 %v5769_v7 }
 0x6bb   : > { %v5645_v48 = vpop.permute.xlu1 %5644  ;;  %6835 = vmatpush3.msra.mxu1 %v5753_v15 }
 0x6bc   : > { %6836 = vmatprep.subr.mxu1 %v5768_v17  ;;  %v5766_v38 = vmul.f32 %v5645_v48, %v4606_v30  ;;  %v5910_v48 = vld [vmem:[%s11583_s14 + $0x20] sm:$0xff] }
 0x6bd   : > { %6837 = vmatpush3.msra.mxu1 %v5752_v33 }
 0x6be   : > { %6838 = vmatprep.subr.mxu1 %v5767_v46 }
 0x6bf   : > { %v5640_v61 = vpop.permute.xlu1 %5639  ;;  %6839 = vmatpush3.msra.mxu1 %v5751_v58 }
 0x6c0   : > { %v5765_v8 = vmul.f32 %v5640_v61, %v4601_v45  ;;  %6840 = vmatprep.subr.mxu1 %v5766_v38 }
 0x6c1   : > { %6841 = vmatpush3.msra.mxu1 %v5750_v25 }
 0x6c2   : > { %6842 = vmatprep.subr.mxu1 %v5765_v8 }
 0x6c3   : > { %6843 = vmatpush3.msra.mxu1 %v5749_v35  ;;  %v5912_v35 = vld [vmem:[%s11583_s14 + $0x30] sm:$0xff] }
 0x6c4   : > { %6533 = vmatmul.mubr.msk.f32.vlgmr.msra.gmra.mxu1 %vm11871_vm12, %v11840_v6 }
 0x6c5   : > { %6534 = vmatprep.mubr.msk.f32.mxu1 %vm11872_vm13, %v11840_v6 }
 0x6c8   : > { %6535 = vmatmul.mubr.msk.f32.gmra.mxu1 %vm11873_vm14, %v11840_v6 }
 0x6c9   : > { %6536 = vmatprep.mubr.msk.f32.mxu1 %vm11874_vm15, %v11840_v6 }
 0x6cc   : > { %6537 = vmatmul.mubr.msk.f32.gmra.mxu1 %vm11875_vm0, %v11840_v6 }
 0x6cd   : > { %6538 = vmatprep.mubr.msk.f32.mxu1 %vm11876_vm2, %v11840_v6 }
 0x6d0   : > { %6539 = vmatmul.mubr.msk.f32.gmra.mxu1 %vm11877_vm7, %v11840_v6 }
 0x6d1   : > { %6540 = vmatprep.mubr.msk.f32.mxu1 %vm11878_vm8, %v11840_v6 }
 0x6d4   : > { %6541 = vmatmul.mubr.msk.f32.gmra.mxu1 %vm5828_vm1, %v11840_v6  ;;  %vm11881_vm1 = vcmask 261120  }
 0x6d5   : > { %6542 = vmatprep.mubr.msk.f32.mxu1 %vm5833_vm3, %v11840_v6  ;;  %vm11882_vm3 = vmmov %vm11881_vm1 }
 0x6d6   : > { %vm11886_vm11 = vmmov %vm11881_vm1 }
 0x6d7   : > { %vm11887_vm12 = vmmov %vm11881_vm1 }
 0x6d8   : > { %6543 = vmatmul.mubr.msk.f32.gmra.mxu1 %vm11879_vm9, %v11840_v6  ;;  %vm11888_vm13 = vmmov %vm11881_vm1 }
 0x6d9   : > { %6544 = vmatprep.mubr.msk.f32.mxu1 %vm11880_vm10, %v11840_v6 }
 0x6dc   : > { %6545 = vmatmul.mubr.msk.f32.gmra.mxu1 %vm5836_vm4, %v11840_v6  ;;  %vm11883_vm4 = vmmov %vm11881_vm1 }
 0x6dd   : > { %6546 = vmatprep.mubr.msk.f32.mxu1 %vm5841_vm6, %v11840_v6  ;;  %vm11885_vm6 = vmmov %vm11881_vm1 }
 0x6e0   : > { %6547 = vmatmul.mubr.msk.f32.gmra.mxu1 %vm5840_vm5, %v11840_v6  ;;  %vm11884_vm5 = vmmov %vm11881_vm1 }
 0x740   : > { %v6788_v20 = vpop.f32.mrf.mxu1 }
 0x742   : > { %v6789_v60 = vpop.f32.mrf.mxu1 }
 0x743   : > { %v6790_v9 = vadd.f32 %v6789_v60, %v6788_v20 }
 0x744   : > { %v6791_v56 = vpop.f32.mrf.mxu1 }
 0x746   : > { %v6792_v57 = vpop.f32.mrf.mxu1 }
 0x747   : > { %v6793_v63 = vadd.f32 %v6792_v57, %v6791_v56 }
 0x748   : > { %v6794_v55 = vpop.f32.mrf.mxu1 }
 0x74a   : > { %v6795_v0 = vpop.f32.mrf.mxu1 }
 0x74b   : > { %v6796_v3 = vadd.f32 %v6795_v0, %v6794_v55  ;;  %v5913_v0 = vld [vmem:[%s11583_s14 + $0x38] sm:$0xff] }
 0x74c   : > { %v6797_v36 = vpop.f32.mrf.mxu1 }
 0x74e   : > { %v6798_v54 = vpop.f32.mrf.mxu1 }
 0x74f   : > { %v6799_v53 = vadd.f32 %v6798_v54, %v6797_v36 }
 0x750   : > { %v6800_v11 = vpop.f32.mrf.mxu1 }
 0x752   : > { %v6801_v14 = vpop.f32.mrf.mxu1 }
 0x753   : > { %v6802_v49 = vadd.f32 %v6801_v14, %v6800_v11 }
 0x754   : > { %v6803_v39 = vpop.f32.mrf.mxu1 }
 0x756   : > { %v6804_v42 = vpop.f32.mrf.mxu1 }
 0x757   : > { %v6805_v28 = vadd.f32 %v6804_v42, %v6803_v39 }
 0x758   : > { %v6806_v2 = vpop.f32.mrf.mxu1 }
 0x75a   : > { %v6807_v21 = vpop.f32.mrf.mxu1 }
 0x75b   : > { %v6808_v25 = vadd.f32 %v6807_v21, %v6806_v2 }
 0x75c   : > { %v6809_v41 = vpop.f32.mrf.mxu1 }
 0x75e   : > { %v6810_v4 = vpop.f32.mrf.mxu1 }
 0x75f   : > { %v6811_v56 = vadd.f32 %v6810_v4, %v6809_v41 }
 0x784   : > { %v6844_v18 = vpop.f32.mrf.mxu1 }
 0x786   : > { %v6845_v26 = vpop.f32.mrf.mxu1 }
 0x787   : > { %v6846_v6 = vadd.f32 %v6845_v26, %v6844_v18 }
 0x788   : > { %v6847_v37 = vpop.f32.mrf.mxu1 }
 0x789   : > { %v6086_v22 = vadd.f32 %v6846_v6, %v6790_v9 }
 0x78a   : > { %v6848_v52 = vpop.f32.mrf.mxu1 }
 0x78b   : > { %v6124_v40 = vadd.f32 %v6086_v22, %v5906_v51  ;;  %v6849_v5 = vadd.f32 %v6848_v52, %v6847_v37 }
 0x78c   : > { %v6850_v44 = vpop.f32.mrf.mxu1 }
 0x78d   : > { %6132 = vst.msk [vmem:[%s11583_s14] sm:$0xff] %vm11881_vm1, %v6124_v40  ;;  %v6091_v24 = vadd.f32 %v6849_v5, %v6793_v63 }
 0x78e   : > { %v6851_v10 = vpop.f32.mrf.mxu1 }
 0x78f   : > { %v6125_v62 = vadd.f32 %v6091_v24, %v5907_v16  ;;  %v6852_v50 = vadd.f32 %v6851_v10, %v6850_v44 }
 0x790   : > { %v6853_v13 = vpop.f32.mrf.mxu1 }
 0x791   : > { %6133 = vst.msk [vmem:[%s11583_s14 + $0x8] sm:$0xff] %vm11882_vm3, %v6125_v62  ;;  %v6096_v47 = vadd.f32 %v6852_v50, %v6796_v3 }
 0x792   : > { %v6854_v29 = vpop.f32.mrf.mxu1 }
 0x793   : > { %v6126_v7 = vadd.f32 %v6096_v47, %v5908_v59  ;;  %v6855_v32 = vadd.f32 %v6854_v29, %v6853_v13 }
 0x794   : > { %v6856_v15 = vpop.f32.mrf.mxu1 }
 0x795   : > { %6134 = vst.msk [vmem:[%s11583_s14 + $0x10] sm:$0xff] %vm11883_vm4, %v6126_v7  ;;  %v6101_v27 = vadd.f32 %v6855_v32, %v6799_v53 }
 0x796   : > { %v6857_v17 = vpop.f32.mrf.mxu1 }
 0x797   : > { %v6127_v23 = vadd.f32 %v6101_v27, %v5909_v31  ;;  %v6858_v33 = vadd.f32 %v6857_v17, %v6856_v15 }
 0x798   : > { %v6859_v30 = vpop.f32.mrf.mxu1 }
 0x799   : > { %6135 = vst.msk [vmem:[%s11583_s14 + $0x18] sm:$0xff] %vm11884_vm5, %v6127_v23  ;;  %v6106_v46 = vadd.f32 %v6858_v33, %v6802_v49 }
 0x79a   : > { %v6860_v12 = vpop.f32.mrf.mxu1 }
 0x79b   : > { %v6128_v58 = vadd.f32 %v6106_v46, %v5910_v48  ;;  %v6861_v45 = vadd.f32 %v6860_v12, %v6859_v30 }
 0x79c   : > { %v6862_v38 = vpop.f32.mrf.mxu1 }
 0x79d   : > { %6136 = vst.msk [vmem:[%s11583_s14 + $0x20] sm:$0xff] %vm11885_vm6, %v6128_v58  ;;  %v6111_v43 = vadd.f32 %v6861_v45, %v6805_v28 }
 0x79e   : > { %v6863_v34 = vpop.f32.mrf.mxu1 }
 0x79f   : > { %v6129_v61 = vadd.f32 %v6111_v43, %v5911_v19  ;;  %v6864_v8 = vadd.f32 %v6863_v34, %v6862_v38 }
 0x7a0   : > { %v6865_v1 = vpop.f32.mrf.mxu1 }
 0x7a1   : > { %6137 = vst.msk [vmem:[%s11583_s14 + $0x28] sm:$0xff] %vm11886_vm11, %v6129_v61  ;;  %v6116_v20 = vadd.f32 %v6864_v8, %v6808_v25 }
 0x7a2   : > { %v6866_v60 = vpop.f32.mrf.mxu1 }
 0x7a3   : > { %v6130_v57 = vadd.f32 %v6116_v20, %v5912_v35  ;;  %v6867_v55 = vadd.f32 %v6866_v60, %v6865_v1 }
 0x7a5   : > { %6138 = vst.msk [vmem:[%s11583_s14 + $0x30] sm:$0xff] %vm11887_vm12, %v6130_v57  ;;  %v6121_v36 = vadd.f32 %v6867_v55, %v6811_v56 }
 0x7a7   : > { %v6131_v54 = vadd.f32 %v6121_v36, %v5913_v0 }
 0x7a9   : > { %6139 = vst.msk [vmem:[%s11583_s14 + $0x38] sm:$0xff] %vm11888_vm13, %v6131_v54 }
 0x7aa PF: > { %s26_s17 = sadd.s32 1, %s7885_s17   ;;  %s11889_s15 = smov %s7881_s16 }
 0x7ab   : > { %p23_p7 = scmp.ge.s32.totalorder %s26_s17, 4   ;;  %s11890_s16 = smov %s11892_s13 }
 0x7ad   :  { %25 = sbr.rel (!%p23_p7) target bundleno = 3 (0x3), region = 113 }

</bundles_post_ra>
